<compile_context>
chip_gen: v6e
topology: v6e:2x2x1
jax: 0.10.0
libtpu: 0.0.40
codegen_flags: <defaults>
</compile_context>

<pallas_src>
import functools
import math

import jax
import jax.numpy as jnp
from jax.experimental import pallas as pl
from jax.experimental.pallas import tpu as pltpu

_BF16 = jnp.bfloat16


# ---------------------------------------------------------------------------
# Per-generation compiler params / tiling helpers
# ---------------------------------------------------------------------------

def _vmem_limit_bytes():
    try:
        cap = getattr(pltpu.get_tpu_info(), "vmem_capacity_bytes", None)
        if cap:
            return int(cap) * 3 // 4      # ~96 MiB on v5e/v6e, ~48 MiB on v7x
    except Exception:
        pass
    return 48 * 1024 * 1024


_VMEM_LIMIT = _vmem_limit_bytes()


def _cparams(grid_rank):
    return pltpu.CompilerParams(
        dimension_semantics=("parallel",) * grid_rank,
        vmem_limit_bytes=_VMEM_LIMIT)


def _pick_row_tile(m, cap=1024):
    """Row (sublane) tile: full dim when small, else a multiple of 8 dividing m."""
    if m <= cap:
        return m
    for t in range(cap - cap % 8, 7, -8):
        if m % t == 0:
            return t
    return m


def _pick_lane_tile(n, cap=512):
    """Lane (last-dim) tile: full dim when small, else a 256/128 multiple dividing n."""
    if n <= cap:
        return n
    for step in (256, 128):           # prefer 256-wide tiles (v6e/v7x MXU)
        t = (cap // step) * step
        while t >= step:
            if n % t == 0:
                return t
            t -= step
    return n                          # single full-width column tile (unaligned N)


def _const_spec(shape):
    n = len(shape)
    return pl.BlockSpec(shape, lambda *args, _n=n: (0,) * _n)


# ---------------------------------------------------------------------------
# In-kernel building blocks (trace-time helpers; everything stays in VMEM/vregs)
# ---------------------------------------------------------------------------

def _layernorm(x, g, b, eps):
    mu = jnp.mean(x, axis=-1, keepdims=True)
    var = jnp.mean((x - mu) ** 2, axis=-1, keepdims=True)
    return (x - mu) * jax.lax.rsqrt(var + eps) * g + b


def _mha(x_q, x_kv, wq, bq, wkv, bkv, wo, bo, heads_ref, *, nhead, scale, causal):
    """Multi-head attention; bf16 MXU matmuls, f32 accumulation & softmax."""
    D = x_q.shape[-1]
    Dh = D // nhead
    Lq, Lk = x_q.shape[0], x_kv.shape[0]

    q = jnp.dot(x_q.astype(_BF16), wq, preferred_element_type=jnp.float32) + bq
    kv = jnp.dot(x_kv.astype(_BF16), wkv, preferred_element_type=jnp.float32) + bkv
    qb, kvb = q.astype(_BF16), kv.astype(_BF16)

    if causal:
        row = jax.lax.broadcasted_iota(jnp.int32, (Lq, Lk), 0)
        col = jax.lax.broadcasted_iota(jnp.int32, (Lq, Lk), 1)
        neg = jnp.where(col > row, -jnp.inf, 0.0).astype(jnp.float32)

    for h in range(nhead):
        qh = qb[:, h * Dh:(h + 1) * Dh]
        kh = kvb[:, h * Dh:(h + 1) * Dh]
        vh = kvb[:, D + h * Dh:D + (h + 1) * Dh]
        s = jax.lax.dot_general(qh, kh, (((1,), (1,)), ((), ())),
                                preferred_element_type=jnp.float32) * scale
        if causal:
            s = s + neg
        # numerically-stable softmax (row max is always finite: diagonal unmasked)
        s = s - jnp.max(s, axis=-1, keepdims=True)
        p = jnp.exp(s)
        p = p * pl.reciprocal(jnp.sum(p, axis=-1, keepdims=True), approx=True)
        # write this head's (Lq, Dh) result into its column slot of the VMEM buffer
        heads_ref[:, h * Dh:(h + 1) * Dh] = jnp.dot(
            p.astype(_BF16), vh, preferred_element_type=jnp.float32)

    # ONE full-K output projection over the concatenated heads
    attn = heads_ref[...]
    return jnp.dot(attn.astype(_BF16), wo, preferred_element_type=jnp.float32) + bo


def _attn_block(x_q, x_kv, wq, bq, wkv, bkv, wo, bo, g, b, heads_ref, *,
                nhead, scale, causal, eps):
    """LayerNorm(x_q + MHA(x_q, x_kv, x_kv))  (post-norm, norm_first=False)."""
    attn = _mha(x_q, x_kv, wq, bq, wkv, bkv, wo, bo, heads_ref,
                nhead=nhead, scale=scale, causal=causal)
    return _layernorm(x_q + attn, g, b, eps)


def _ffn_block(x, w1, b1, w2, b2, g, b, *, eps):
    """LayerNorm(x + ReLU(x@W1+b1)@W2+b2); hidden never leaves VMEM."""
    h = jnp.dot(x.astype(_BF16), w1, preferred_element_type=jnp.float32) + b1
    h = jnp.maximum(h, 0.0)
    y = x + jnp.dot(h.astype(_BF16), w2, preferred_element_type=jnp.float32) + b2
    return _layernorm(y, g, b, eps)


# ---------------------------------------------------------------------------
# Fused per-layer kernels
# ---------------------------------------------------------------------------

def _encoder_layer_kernel(x_ref,
                          wq_ref, bq_ref, wkv_ref, bkv_ref, wo_ref, bo_ref,
                          ln1g_ref, ln1b_ref,
                          w1_ref, b1_ref, w2_ref, b2_ref, ln2g_ref, ln2b_ref,
                          fng_ref, fnb_ref,
                          o_ref, heads_ref,
                          *, nhead, scale, eps, apply_final):
    x = x_ref[0]
    y = _attn_block(x, x, wq_ref[...], bq_ref[...], wkv_ref[...], bkv_ref[...],
                    wo_ref[...], bo_ref[...], ln1g_ref[...], ln1b_ref[...],
                    heads_ref, nhead=nhead, scale=scale, causal=False, eps=eps)
    y = _ffn_block(y, w1_ref[...], b1_ref[...], w2_ref[...], b2_ref[...],
                   ln2g_ref[...], ln2b_ref[...], eps=eps)
    if apply_final:                       # final encoder norm fused into last layer
        y = _layernorm(y, fng_ref[...], fnb_ref[...], eps)
    o_ref[0] = y


def encoder_layer_pallas(x, p, final_g, final_b, *, nhead, apply_final, eps=1e-5):
    B, L, D = x.shape
    dff = p["w1"].shape[1]
    a = p["self_attn"]
    scale = 1.0 / math.sqrt(D // nhead)
    kernel = functools.partial(_encoder_layer_kernel, nhead=nhead, scale=scale,
                               eps=eps, apply_final=apply_final)
    in_specs = [
        pl.BlockSpec((1, L, D), lambda b: (b, 0, 0)),
        _const_spec((D, D)), _const_spec((1, D)),
        _const_spec((D, 2 * D)), _const_spec((1, 2 * D)),
        _const_spec((D, D)), _const_spec((1, D)),
        _const_spec((1, D)), _const_spec((1, D)),
        _const_spec((D, dff)), _const_spec((1, dff)),
        _const_spec((dff, D)), _const_spec((1, D)),
        _const_spec((1, D)), _const_spec((1, D)),
        _const_spec((1, D)), _const_spec((1, D)),
    ]
    return pl.pallas_call(
        kernel,
        out_shape=jax.ShapeDtypeStruct((B, L, D), jnp.float32),
        grid=(B,),
        in_specs=in_specs,
        out_specs=pl.BlockSpec((1, L, D), lambda b: (b, 0, 0)),
        scratch_shapes=[pltpu.VMEM((L, D), jnp.float32)],
        compiler_params=_cparams(1),
    )(x,
      a["wq"].astype(_BF16), a["bq"].reshape(1, D),
      a["wkv"].astype(_BF16), a["bkv"].reshape(1, 2 * D),
      a["wo"].astype(_BF16), a["bo"].reshape(1, D),
      p["ln1_g"].reshape(1, D), p["ln1_b"].reshape(1, D),
      p["w1"].astype(_BF16), p["b1"].reshape(1, dff),
      p["w2"].astype(_BF16), p["b2"].reshape(1, D),
      p["ln2_g"].reshape(1, D), p["ln2_b"].reshape(1, D),
      final_g.reshape(1, D), final_b.reshape(1, D))


def _decoder_layer_kernel(x_ref, mem_ref,
                          swq_ref, sbq_ref, swkv_ref, sbkv_ref, swo_ref, sbo_ref,
                          ln1g_ref, ln1b_ref,
                          cwq_ref, cbq_ref, cwkv_ref, cbkv_ref, cwo_ref, cbo_ref,
                          ln2g_ref, ln2b_ref,
                          w1_ref, b1_ref, w2_ref, b2_ref, ln3g_ref, ln3b_ref,
                          fng_ref, fnb_ref,
                          o_ref, heads_ref,
                          *, nhead, scale, eps, apply_final):
    x = x_ref[0]
    mem = mem_ref[0]
    # masked (causal) self-attention; mask generated in-kernel
    y = _attn_block(x, x, swq_ref[...], sbq_ref[...], swkv_ref[...], sbkv_ref[...],
                    swo_ref[...], sbo_ref[...], ln1g_ref[...], ln1b_ref[...],
                    heads_ref, nhead=nhead, scale=scale, causal=True, eps=eps)
    # cross-attention over encoder memory (no mask)
    y = _attn_block(y, mem, cwq_ref[...], cbq_ref[...], cwkv_ref[...], cbkv_ref[...],
                    cwo_ref[...], cbo_ref[...], ln2g_ref[...], ln2b_ref[...],
                    heads_ref, nhead=nhead, scale=scale, causal=False, eps=eps)
    y = _ffn_block(y, w1_ref[...], b1_ref[...], w2_ref[...], b2_ref[...],
                   ln3g_ref[...], ln3b_ref[...], eps=eps)
    if apply_final:                       # final decoder norm fused into last layer
        y = _layernorm(y, fng_ref[...], fnb_ref[...], eps)
    o_ref[0] = y


def decoder_layer_pallas(x, memory, p, final_g, final_b, *, nhead, apply_final,
                         eps=1e-5):
    B, Lt, D = x.shape
    Ls = memory.shape[1]
    dff = p["w1"].shape[1]
    sa, ca = p["self_attn"], p["cross_attn"]
    scale = 1.0 / math.sqrt(D // nhead)
    kernel = functools.partial(_decoder_layer_kernel, nhead=nhead, scale=scale,
                               eps=eps, apply_final=apply_final)
    in_specs = [
        pl.BlockSpec((1, Lt, D), lambda b: (b, 0, 0)),
        pl.BlockSpec((1, Ls, D), lambda b: (b, 0, 0)),
        _const_spec((D, D)), _const_spec((1, D)),
        _const_spec((D, 2 * D)), _const_spec((1, 2 * D)),
        _const_spec((D, D)), _const_spec((1, D)),
        _const_spec((1, D)), _const_spec((1, D)),
        _const_spec((D, D)), _const_spec((1, D)),
        _const_spec((D, 2 * D)), _const_spec((1, 2 * D)),
        _const_spec((D, D)), _const_spec((1, D)),
        _const_spec((1, D)), _const_spec((1, D)),
        _const_spec((D, dff)), _const_spec((1, dff)),
        _const_spec((dff, D)), _const_spec((1, D)),
        _const_spec((1, D)), _const_spec((1, D)),
        _const_spec((1, D)), _const_spec((1, D)),
    ]
    return pl.pallas_call(
        kernel,
        out_shape=jax.ShapeDtypeStruct((B, Lt, D), jnp.float32),
        grid=(B,),
        in_specs=in_specs,
        out_specs=pl.BlockSpec((1, Lt, D), lambda b: (b, 0, 0)),
        scratch_shapes=[pltpu.VMEM((Lt, D), jnp.float32)],
        compiler_params=_cparams(1),
    )(x, memory,
      sa["wq"].astype(_BF16), sa["bq"].reshape(1, D),
      sa["wkv"].astype(_BF16), sa["bkv"].reshape(1, 2 * D),
      sa["wo"].astype(_BF16), sa["bo"].reshape(1, D),
      p["ln1_g"].reshape(1, D), p["ln1_b"].reshape(1, D),
      ca["wq"].astype(_BF16), ca["bq"].reshape(1, D),
      ca["wkv"].astype(_BF16), ca["bkv"].reshape(1, 2 * D),
      ca["wo"].astype(_BF16), ca["bo"].reshape(1, D),
      p["ln2_g"].reshape(1, D), p["ln2_b"].reshape(1, D),
      p["w1"].astype(_BF16), p["b1"].reshape(1, dff),
      p["w2"].astype(_BF16), p["b2"].reshape(1, D),
      p["ln3_g"].reshape(1, D), p["ln3_b"].reshape(1, D),
      final_g.reshape(1, D), final_b.reshape(1, D))


# ---------------------------------------------------------------------------
# Final vocab projection (lane-aware tiling, no padding / post-slice needed)
# ---------------------------------------------------------------------------

def _linear_kernel(x_ref, w_ref, b_ref, o_ref):
    o_ref[...] = jnp.dot(x_ref[...].astype(_BF16), w_ref[...],
                         preferred_element_type=jnp.float32) + b_ref[...]


def linear_pallas(x2d, w, b, *, row_cap=1024, col_cap=512):
    M, K = x2d.shape
    N = w.shape[1]
    tm = _pick_row_tile(M, row_cap)
    tn = _pick_lane_tile(N, col_cap)
    return pl.pallas_call(
        _linear_kernel,
        out_shape=jax.ShapeDtypeStruct((M, N), jnp.float32),
        grid=(M // tm, N // tn),
        in_specs=[
            pl.BlockSpec((tm, K), lambda i, j: (i, 0)),
            pl.BlockSpec((K, tn), lambda i, j: (0, j)),
            pl.BlockSpec((1, tn), lambda i, j: (0, j)),
        ],
        out_specs=pl.BlockSpec((tm, tn), lambda i, j: (i, j)),
        compiler_params=_cparams(2),
    )(x2d, w.astype(_BF16), b.reshape(1, N))


# ---------------------------------------------------------------------------
# Transformer glue
# ---------------------------------------------------------------------------

def make_positional_encoding(max_len, d_model):
    position = jnp.arange(max_len, dtype=jnp.float32)[:, None]
    div_term = jnp.exp(jnp.arange(0, d_model, 2, dtype=jnp.float32)
                       * (-math.log(10000.0) / d_model))
    pe = jnp.zeros((max_len, d_model), dtype=jnp.float32)
    pe = pe.at[:, 0::2].set(jnp.sin(position * div_term))
    pe = pe.at[:, 1::2].set(jnp.cos(position * div_term))
    return pe


def transformer_seq2seq_forward(params, src, trg, *, nhead):
    d_model = params["src_emb"].shape[1]
    pe = params["pe"]
    B, Ls = src.shape
    Lt = trg.shape[1]

    # embeddings + positional encoding (dropout = identity, eval mode)
    src_x = jnp.take(params["src_emb"], src, axis=0) + pe[:Ls][None, :, :]
    trg_x = jnp.take(params["trg_emb"], trg, axis=0) + pe[:Lt][None, :, :]

    x = src_x
    n_enc = len(params["enc_layers"])
    for i, lp in enumerate(params["enc_layers"]):
        x = encoder_layer_pallas(x, lp, params["enc_norm_g"], params["enc_norm_b"],
                                 nhead=nhead, apply_final=(i == n_enc - 1))
    memory = x

    y = trg_x
    n_dec = len(params["dec_layers"])
    for i, lp in enumerate(params["dec_layers"]):
        y = decoder_layer_pallas(y, memory, lp, params["dec_norm_g"],
                                 params["dec_norm_b"], nhead=nhead,
                                 apply_final=(i == n_dec - 1))

    logits = linear_pallas(y.reshape(-1, d_model), params["w_out"], params["b_out"])
    return logits.reshape(B, Lt, -1)


# ---------------------------------------------------------------------------
# Deterministic parameter initialization (synthetic; no checkpoint load)
# ---------------------------------------------------------------------------

def init_params(key, src_vocab, trg_vocab, d_model, nhead, num_layers, dff, max_len):
    keys = iter(jax.random.split(key, 1024))

    def nrm(shape, scale=0.05):
        return (scale * jax.random.normal(next(keys), shape)).astype(jnp.float32)

    def attn_params():
        wk, wv = nrm((d_model, d_model)), nrm((d_model, d_model))
        return dict(
            wq=nrm((d_model, d_model)), bq=jnp.zeros((d_model,), jnp.float32),
            # k/v projection weights concatenated -> single (D, 2D) matmul in-kernel
            wkv=jnp.concatenate([wk, wv], axis=1),
            bkv=jnp.zeros((2 * d_model,), jnp.float32),
            wo=nrm((d_model, d_model)), bo=jnp.zeros((d_model,), jnp.float32),
        )

    def enc_layer_params():
        return dict(
            self_attn=attn_params(),
            w1=nrm((d_model, dff)), b1=jnp.zeros((dff,), jnp.float32),
            w2=nrm((dff, d_model)), b2=jnp.zeros((d_model,), jnp.float32),
            ln1_g=jnp.ones((d_model,), jnp.float32), ln1_b=jnp.zeros((d_model,), jnp.float32),
            ln2_g=jnp.ones((d_model,), jnp.float32), ln2_b=jnp.zeros((d_model,), jnp.float32),
        )

    def dec_layer_params():
        return dict(
            self_attn=attn_params(),
            cross_attn=attn_params(),
            w1=nrm((d_model, dff)), b1=jnp.zeros((dff,), jnp.float32),
            w2=nrm((dff, d_model)), b2=jnp.zeros((d_model,), jnp.float32),
            ln1_g=jnp.ones((d_model,), jnp.float32), ln1_b=jnp.zeros((d_model,), jnp.float32),
            ln2_g=jnp.ones((d_model,), jnp.float32), ln2_b=jnp.zeros((d_model,), jnp.float32),
            ln3_g=jnp.ones((d_model,), jnp.float32), ln3_b=jnp.zeros((d_model,), jnp.float32),
        )

    return dict(
        src_emb=nrm((src_vocab, d_model), 0.1),
        trg_emb=nrm((trg_vocab, d_model), 0.1),
        pe=make_positional_encoding(max_len, d_model),
        enc_layers=[enc_layer_params() for _ in range(num_layers)],
        dec_layers=[dec_layer_params() for _ in range(num_layers)],
        enc_norm_g=jnp.ones((d_model,), jnp.float32),
        enc_norm_b=jnp.zeros((d_model,), jnp.float32),
        dec_norm_g=jnp.ones((d_model,), jnp.float32),
        dec_norm_b=jnp.zeros((d_model,), jnp.float32),
        w_out=nrm((d_model, trg_vocab)),
        b_out=jnp.zeros((trg_vocab,), jnp.float32),
    )


# ---------------------------------------------------------------------------
# Demo
# ---------------------------------------------------------------------------

if __name__ == "__main__":
    src_vocab_size, trg_vocab_size = 50, 60
    d_model, nhead, num_layers, dim_feedforward = 32, 4, 2, 64
    max_seq_length = 16
    B, Ls, Lt = 2, 8, 8

    key = jax.random.PRNGKey(0)
    pkey, skey, tkey = jax.random.split(key, 3)

    params = init_params(pkey, src_vocab_size, trg_vocab_size, d_model, nhead,
                         num_layers, dim_feedforward, max_seq_length)

    src = jax.random.randint(skey, (B, Ls), 0, src_vocab_size, dtype=jnp.int32)
    trg = jax.random.randint(tkey, (B, Lt), 0, trg_vocab_size, dtype=jnp.int32)

    fwd = jax.jit(functools.partial(transformer_seq2seq_forward, nhead=nhead))
    out = fwd(params, src, trg)
    out = jax.block_until_ready(out)

    assert out.shape == (B, Lt, trg_vocab_size), out.shape
    assert out.dtype == jnp.float32
    assert bool(jnp.all(jnp.isfinite(out)))
    print("KERNEL_OK")
</pallas_src>

<mosaic_0001>
module attributes {stable_mosaic.version = 11 : i64} {
  func.func @_decoder_layer_kernel(%arg0: i32, %arg1: memref<1x8x32xf32, #tpu.memory_space<vmem>>, %arg2: memref<1x8x32xf32, #tpu.memory_space<vmem>>, %arg3: memref<32x32xbf16, #tpu.memory_space<vmem>>, %arg4: memref<1x32xf32, #tpu.memory_space<vmem>>, %arg5: memref<32x64xbf16, #tpu.memory_space<vmem>>, %arg6: memref<1x64xf32, #tpu.memory_space<vmem>>, %arg7: memref<32x32xbf16, #tpu.memory_space<vmem>>, %arg8: memref<1x32xf32, #tpu.memory_space<vmem>>, %arg9: memref<1x32xf32, #tpu.memory_space<vmem>>, %arg10: memref<1x32xf32, #tpu.memory_space<vmem>>, %arg11: memref<32x32xbf16, #tpu.memory_space<vmem>>, %arg12: memref<1x32xf32, #tpu.memory_space<vmem>>, %arg13: memref<32x64xbf16, #tpu.memory_space<vmem>>, %arg14: memref<1x64xf32, #tpu.memory_space<vmem>>, %arg15: memref<32x32xbf16, #tpu.memory_space<vmem>>, %arg16: memref<1x32xf32, #tpu.memory_space<vmem>>, %arg17: memref<1x32xf32, #tpu.memory_space<vmem>>, %arg18: memref<1x32xf32, #tpu.memory_space<vmem>>, %arg19: memref<32x64xbf16, #tpu.memory_space<vmem>>, %arg20: memref<1x64xf32, #tpu.memory_space<vmem>>, %arg21: memref<64x32xbf16, #tpu.memory_space<vmem>>, %arg22: memref<1x32xf32, #tpu.memory_space<vmem>>, %arg23: memref<1x32xf32, #tpu.memory_space<vmem>>, %arg24: memref<1x32xf32, #tpu.memory_space<vmem>>, %arg25: memref<1x32xf32, #tpu.memory_space<vmem>>, %arg26: memref<1x32xf32, #tpu.memory_space<vmem>>, %arg27: memref<1x8x32xf32, #tpu.memory_space<vmem>>, %arg28: memref<8x32xf32, #tpu.memory_space<vmem>>) attributes {dimension_semantics = [#tpu.dimension_semantics<parallel>], iteration_bounds = array<i64: 2>, scalar_prefetch = 0 : i64, scratch_operands = 1 : i64, tpu.core_type = #tpu.core_type<tc>, window_params = [{transform_indices = @transform_0, window_bounds = array<i64: 1, 8, 32>}, {transform_indices = @transform_1, window_bounds = array<i64: 1, 8, 32>}, {pipeline_mode = #tpu.pipeline_mode<synchronous>, transform_indices = @transform_2, window_bounds = array<i64: 32, 32>}, {pipeline_mode = #tpu.pipeline_mode<synchronous>, transform_indices = @transform_3, window_bounds = array<i64: 1, 32>}, {pipeline_mode = #tpu.pipeline_mode<synchronous>, transform_indices = @transform_4, window_bounds = array<i64: 32, 64>}, {pipeline_mode = #tpu.pipeline_mode<synchronous>, transform_indices = @transform_5, window_bounds = array<i64: 1, 64>}, {pipeline_mode = #tpu.pipeline_mode<synchronous>, transform_indices = @transform_6, window_bounds = array<i64: 32, 32>}, {pipeline_mode = #tpu.pipeline_mode<synchronous>, transform_indices = @transform_7, window_bounds = array<i64: 1, 32>}, {pipeline_mode = #tpu.pipeline_mode<synchronous>, transform_indices = @transform_8, window_bounds = array<i64: 1, 32>}, {pipeline_mode = #tpu.pipeline_mode<synchronous>, transform_indices = @transform_9, window_bounds = array<i64: 1, 32>}, {pipeline_mode = #tpu.pipeline_mode<synchronous>, transform_indices = @transform_10, window_bounds = array<i64: 32, 32>}, {pipeline_mode = #tpu.pipeline_mode<synchronous>, transform_indices = @transform_11, window_bounds = array<i64: 1, 32>}, {pipeline_mode = #tpu.pipeline_mode<synchronous>, transform_indices = @transform_12, window_bounds = array<i64: 32, 64>}, {pipeline_mode = #tpu.pipeline_mode<synchronous>, transform_indices = @transform_13, window_bounds = array<i64: 1, 64>}, {pipeline_mode = #tpu.pipeline_mode<synchronous>, transform_indices = @transform_14, window_bounds = array<i64: 32, 32>}, {pipeline_mode = #tpu.pipeline_mode<synchronous>, transform_indices = @transform_15, window_bounds = array<i64: 1, 32>}, {pipeline_mode = #tpu.pipeline_mode<synchronous>, transform_indices = @transform_16, window_bounds = array<i64: 1, 32>}, {pipeline_mode = #tpu.pipeline_mode<synchronous>, transform_indices = @transform_17, window_bounds = array<i64: 1, 32>}, {pipeline_mode = #tpu.pipeline_mode<synchronous>, transform_indices = @transform_18, window_bounds = array<i64: 32, 64>}, {pipeline_mode = #tpu.pipeline_mode<synchronous>, transform_indices = @transform_19, window_bounds = array<i64: 1, 64>}, {pipeline_mode = #tpu.pipeline_mode<synchronous>, transform_indices = @transform_20, window_bounds = array<i64: 64, 32>}, {pipeline_mode = #tpu.pipeline_mode<synchronous>, transform_indices = @transform_21, window_bounds = array<i64: 1, 32>}, {pipeline_mode = #tpu.pipeline_mode<synchronous>, transform_indices = @transform_22, window_bounds = array<i64: 1, 32>}, {pipeline_mode = #tpu.pipeline_mode<synchronous>, transform_indices = @transform_23, window_bounds = array<i64: 1, 32>}, {pipeline_mode = #tpu.pipeline_mode<synchronous>, transform_indices = @transform_24, window_bounds = array<i64: 1, 32>}, {pipeline_mode = #tpu.pipeline_mode<synchronous>, transform_indices = @transform_25, window_bounds = array<i64: 1, 32>}, {transform_indices = @transform_26, window_bounds = array<i64: 1, 8, 32>}]} {
    %c0 = arith.constant 0 : index
    %c0_0 = arith.constant 0 : index
    %c0_1 = arith.constant 0 : index
    %0 = vector.load %arg1[%c0, %c0_0, %c0_1] : memref<1x8x32xf32, #tpu.memory_space<vmem>>, vector<1x8x32xf32>
    %1 = vector.shape_cast %0 : vector<1x8x32xf32> to vector<8x32xf32>
    %c0_2 = arith.constant 0 : index
    %c0_3 = arith.constant 0 : index
    %c0_4 = arith.constant 0 : index
    %2 = vector.load %arg2[%c0_2, %c0_3, %c0_4] : memref<1x8x32xf32, #tpu.memory_space<vmem>>, vector<1x8x32xf32>
    %3 = vector.shape_cast %2 : vector<1x8x32xf32> to vector<8x32xf32>
    %c0_5 = arith.constant 0 : index
    %c0_6 = arith.constant 0 : index
    %4 = vector.load %arg3[%c0_5, %c0_6] : memref<32x32xbf16, #tpu.memory_space<vmem>>, vector<32x32xbf16>
    %c0_7 = arith.constant 0 : index
    %c0_8 = arith.constant 0 : index
    %5 = vector.load %arg4[%c0_7, %c0_8] : memref<1x32xf32, #tpu.memory_space<vmem>>, vector<1x32xf32>
    %c0_9 = arith.constant 0 : index
    %c0_10 = arith.constant 0 : index
    %6 = vector.load %arg5[%c0_9, %c0_10] : memref<32x64xbf16, #tpu.memory_space<vmem>>, vector<32x64xbf16>
    %c0_11 = arith.constant 0 : index
    %c0_12 = arith.constant 0 : index
    %7 = vector.load %arg6[%c0_11, %c0_12] : memref<1x64xf32, #tpu.memory_space<vmem>>, vector<1x64xf32>
    %c0_13 = arith.constant 0 : index
    %c0_14 = arith.constant 0 : index
    %8 = vector.load %arg7[%c0_13, %c0_14] : memref<32x32xbf16, #tpu.memory_space<vmem>>, vector<32x32xbf16>
    %c0_15 = arith.constant 0 : index
    %c0_16 = arith.constant 0 : index
    %9 = vector.load %arg8[%c0_15, %c0_16] : memref<1x32xf32, #tpu.memory_space<vmem>>, vector<1x32xf32>
    %c0_17 = arith.constant 0 : index
    %c0_18 = arith.constant 0 : index
    %10 = vector.load %arg9[%c0_17, %c0_18] : memref<1x32xf32, #tpu.memory_space<vmem>>, vector<1x32xf32>
    %c0_19 = arith.constant 0 : index
    %c0_20 = arith.constant 0 : index
    %11 = vector.load %arg10[%c0_19, %c0_20] : memref<1x32xf32, #tpu.memory_space<vmem>>, vector<1x32xf32>
    %12 = arith.truncf %1 : vector<8x32xf32> to vector<8x32xbf16>
    %cst = arith.constant dense<0.000000e+00> : vector<8x32xf32>
    %13 = tpu.matmul %12, %4, %cst {dimension_numbers = #tpu.dot_dimension_numbers<[1], [0], [0], [1], [0, 0, 1, 1], [], []>} : vector<8x32xbf16>, vector<32x32xbf16>, vector<8x32xf32> -> vector<8x32xf32>
    %14 = vector.broadcast %5 : vector<1x32xf32> to vector<8x32xf32>
    %15 = arith.addf %13, %14 : vector<8x32xf32>
    %16 = arith.truncf %1 : vector<8x32xf32> to vector<8x32xbf16>
    %cst_21 = arith.constant dense<0.000000e+00> : vector<8x64xf32>
    %17 = tpu.matmul %16, %6, %cst_21 {dimension_numbers = #tpu.dot_dimension_numbers<[1], [0], [0], [1], [0, 0, 1, 1], [], []>} : vector<8x32xbf16>, vector<32x64xbf16>, vector<8x64xf32> -> vector<8x64xf32>
    %18 = vector.broadcast %7 : vector<1x64xf32> to vector<8x64xf32>
    %19 = arith.addf %17, %18 : vector<8x64xf32>
    %20 = arith.truncf %15 : vector<8x32xf32> to vector<8x32xbf16>
    %21 = arith.truncf %19 : vector<8x64xf32> to vector<8x64xbf16>
    %22 = tpu.iota {dimensions = array<i32: 0>} : vector<8x8xi32>
    %23 = tpu.iota {dimensions = array<i32: 1>} : vector<8x8xi32>
    %24 = arith.cmpi sgt, %23, %22 : vector<8x8xi32>
    %cst_22 = arith.constant 0xFF800000 : f32
    %cst_23 = arith.constant 0.000000e+00 : f32
    %25 = vector.broadcast %cst_22 : f32 to vector<8x8xf32>
    %26 = vector.broadcast %cst_23 : f32 to vector<8x8xf32>
    %27 = arith.select %24, %25, %26 : vector<8x8xi1>, vector<8x8xf32>
    %28 = vector.extract_strided_slice %20 {offsets = [0, 0], sizes = [8, 8], strides = [1, 1]} : vector<8x32xbf16> to vector<8x8xbf16>
    %29 = vector.extract_strided_slice %21 {offsets = [0, 0], sizes = [8, 8], strides = [1, 1]} : vector<8x64xbf16> to vector<8x8xbf16>
    %30 = vector.extract_strided_slice %21 {offsets = [0, 32], sizes = [8, 8], strides = [1, 1]} : vector<8x64xbf16> to vector<8x8xbf16>
    %cst_24 = arith.constant dense<0.000000e+00> : vector<8x8xf32>
    %31 = tpu.matmul %28, %29, %cst_24 {dimension_numbers = #tpu.dot_dimension_numbers<[1], [1], [0], [0], [0, 0, 1, 0], [], []>} : vector<8x8xbf16>, vector<8x8xbf16>, vector<8x8xf32> -> vector<8x8xf32>
    %cst_25 = arith.constant 0.353553385 : f32
    %32 = vector.broadcast %cst_25 : f32 to vector<8x8xf32>
    %33 = arith.mulf %31, %32 : vector<8x8xf32>
    %34 = arith.addf %33, %27 : vector<8x8xf32>
    %cst_26 = arith.constant dense<0xFF800000> : vector<8xf32>
    %35 = vector.multi_reduction <maximumf>, %34, %cst_26 [1] : vector<8x8xf32> to vector<8xf32>
    %36 = vector.shape_cast %35 : vector<8xf32> to vector<8x1xf32>
    %37 = vector.broadcast %36 : vector<8x1xf32> to vector<8x8xf32>
    %38 = arith.subf %34, %37 : vector<8x8xf32>
    %39 = math.exp %38 : vector<8x8xf32>
    %cst_27 = arith.constant dense<0.000000e+00> : vector<8xf32>
    %40 = vector.multi_reduction <add>, %39, %cst_27 [1] : vector<8x8xf32> to vector<8xf32>
    %41 = vector.shape_cast %40 : vector<8xf32> to vector<8x1xf32>
    %42 = tpu.reciprocal %41 {approx = true} : vector<8x1xf32> -> vector<8x1xf32>
    %43 = vector.broadcast %42 : vector<8x1xf32> to vector<8x8xf32>
    %44 = arith.mulf %39, %43 : vector<8x8xf32>
    %45 = arith.truncf %44 : vector<8x8xf32> to vector<8x8xbf16>
    %cst_28 = arith.constant dense<0.000000e+00> : vector<8x8xf32>
    %46 = tpu.matmul %45, %30, %cst_28 {dimension_numbers = #tpu.dot_dimension_numbers<[1], [0], [0], [1], [0, 0, 1, 1], [], []>} : vector<8x8xbf16>, vector<8x8xbf16>, vector<8x8xf32> -> vector<8x8xf32>
    %c0_29 = arith.constant 0 : index
    %c0_30 = arith.constant 0 : index
    %47 = vector.load %arg28[%c0_29, %c0_30] : memref<8x32xf32, #tpu.memory_space<vmem>>, vector<8x8xf32>
    tpu.vector_store %arg28[%c0_29, %c0_30], %46 {strides = array<i32>} : memref<8x32xf32, #tpu.memory_space<vmem>>, vector<8x8xf32>,
    %48 = vector.extract_strided_slice %20 {offsets = [0, 8], sizes = [8, 8], strides = [1, 1]} : vector<8x32xbf16> to vector<8x8xbf16>
    %49 = vector.extract_strided_slice %21 {offsets = [0, 8], sizes = [8, 8], strides = [1, 1]} : vector<8x64xbf16> to vector<8x8xbf16>
    %50 = vector.extract_strided_slice %21 {offsets = [0, 40], sizes = [8, 8], strides = [1, 1]} : vector<8x64xbf16> to vector<8x8xbf16>
    %cst_31 = arith.constant dense<0.000000e+00> : vector<8x8xf32>
    %51 = tpu.matmul %48, %49, %cst_31 {dimension_numbers = #tpu.dot_dimension_numbers<[1], [1], [0], [0], [0, 0, 1, 0], [], []>} : vector<8x8xbf16>, vector<8x8xbf16>, vector<8x8xf32> -> vector<8x8xf32>
    %cst_32 = arith.constant 0.353553385 : f32
    %52 = vector.broadcast %cst_32 : f32 to vector<8x8xf32>
    %53 = arith.mulf %51, %52 : vector<8x8xf32>
    %54 = arith.addf %53, %27 : vector<8x8xf32>
    %cst_33 = arith.constant dense<0xFF800000> : vector<8xf32>
    %55 = vector.multi_reduction <maximumf>, %54, %cst_33 [1] : vector<8x8xf32> to vector<8xf32>
    %56 = vector.shape_cast %55 : vector<8xf32> to vector<8x1xf32>
    %57 = vector.broadcast %56 : vector<8x1xf32> to vector<8x8xf32>
    %58 = arith.subf %54, %57 : vector<8x8xf32>
    %59 = math.exp %58 : vector<8x8xf32>
    %cst_34 = arith.constant dense<0.000000e+00> : vector<8xf32>
    %60 = vector.multi_reduction <add>, %59, %cst_34 [1] : vector<8x8xf32> to vector<8xf32>
    %61 = vector.shape_cast %60 : vector<8xf32> to vector<8x1xf32>
    %62 = tpu.reciprocal %61 {approx = true} : vector<8x1xf32> -> vector<8x1xf32>
    %63 = vector.broadcast %62 : vector<8x1xf32> to vector<8x8xf32>
    %64 = arith.mulf %59, %63 : vector<8x8xf32>
    %65 = arith.truncf %64 : vector<8x8xf32> to vector<8x8xbf16>
    %cst_35 = arith.constant dense<0.000000e+00> : vector<8x8xf32>
    %66 = tpu.matmul %65, %50, %cst_35 {dimension_numbers = #tpu.dot_dimension_numbers<[1], [0], [0], [1], [0, 0, 1, 1], [], []>} : vector<8x8xbf16>, vector<8x8xbf16>, vector<8x8xf32> -> vector<8x8xf32>
    %c0_36 = arith.constant 0 : index
    %c8 = arith.constant 8 : index
    %67 = vector.load %arg28[%c0_36, %c8] : memref<8x32xf32, #tpu.memory_space<vmem>>, vector<8x8xf32>
    tpu.vector_store %arg28[%c0_36, %c8], %66 {strides = array<i32>} : memref<8x32xf32, #tpu.memory_space<vmem>>, vector<8x8xf32>,
    %68 = vector.extract_strided_slice %20 {offsets = [0, 16], sizes = [8, 8], strides = [1, 1]} : vector<8x32xbf16> to vector<8x8xbf16>
    %69 = vector.extract_strided_slice %21 {offsets = [0, 16], sizes = [8, 8], strides = [1, 1]} : vector<8x64xbf16> to vector<8x8xbf16>
    %70 = vector.extract_strided_slice %21 {offsets = [0, 48], sizes = [8, 8], strides = [1, 1]} : vector<8x64xbf16> to vector<8x8xbf16>
    %cst_37 = arith.constant dense<0.000000e+00> : vector<8x8xf32>
    %71 = tpu.matmul %68, %69, %cst_37 {dimension_numbers = #tpu.dot_dimension_numbers<[1], [1], [0], [0], [0, 0, 1, 0], [], []>} : vector<8x8xbf16>, vector<8x8xbf16>, vector<8x8xf32> -> vector<8x8xf32>
    %cst_38 = arith.constant 0.353553385 : f32
    %72 = vector.broadcast %cst_38 : f32 to vector<8x8xf32>
    %73 = arith.mulf %71, %72 : vector<8x8xf32>
    %74 = arith.addf %73, %27 : vector<8x8xf32>
    %cst_39 = arith.constant dense<0xFF800000> : vector<8xf32>
    %75 = vector.multi_reduction <maximumf>, %74, %cst_39 [1] : vector<8x8xf32> to vector<8xf32>
    %76 = vector.shape_cast %75 : vector<8xf32> to vector<8x1xf32>
    %77 = vector.broadcast %76 : vector<8x1xf32> to vector<8x8xf32>
    %78 = arith.subf %74, %77 : vector<8x8xf32>
    %79 = math.exp %78 : vector<8x8xf32>
    %cst_40 = arith.constant dense<0.000000e+00> : vector<8xf32>
    %80 = vector.multi_reduction <add>, %79, %cst_40 [1] : vector<8x8xf32> to vector<8xf32>
    %81 = vector.shape_cast %80 : vector<8xf32> to vector<8x1xf32>
    %82 = tpu.reciprocal %81 {approx = true} : vector<8x1xf32> -> vector<8x1xf32>
    %83 = vector.broadcast %82 : vector<8x1xf32> to vector<8x8xf32>
    %84 = arith.mulf %79, %83 : vector<8x8xf32>
    %85 = arith.truncf %84 : vector<8x8xf32> to vector<8x8xbf16>
    %cst_41 = arith.constant dense<0.000000e+00> : vector<8x8xf32>
    %86 = tpu.matmul %85, %70, %cst_41 {dimension_numbers = #tpu.dot_dimension_numbers<[1], [0], [0], [1], [0, 0, 1, 1], [], []>} : vector<8x8xbf16>, vector<8x8xbf16>, vector<8x8xf32> -> vector<8x8xf32>
    %c0_42 = arith.constant 0 : index
    %c16 = arith.constant 16 : index
    %87 = vector.load %arg28[%c0_42, %c16] : memref<8x32xf32, #tpu.memory_space<vmem>>, vector<8x8xf32>
    tpu.vector_store %arg28[%c0_42, %c16], %86 {strides = array<i32>} : memref<8x32xf32, #tpu.memory_space<vmem>>, vector<8x8xf32>,
    %88 = vector.extract_strided_slice %20 {offsets = [0, 24], sizes = [8, 8], strides = [1, 1]} : vector<8x32xbf16> to vector<8x8xbf16>
    %89 = vector.extract_strided_slice %21 {offsets = [0, 24], sizes = [8, 8], strides = [1, 1]} : vector<8x64xbf16> to vector<8x8xbf16>
    %90 = vector.extract_strided_slice %21 {offsets = [0, 56], sizes = [8, 8], strides = [1, 1]} : vector<8x64xbf16> to vector<8x8xbf16>
    %cst_43 = arith.constant dense<0.000000e+00> : vector<8x8xf32>
    %91 = tpu.matmul %88, %89, %cst_43 {dimension_numbers = #tpu.dot_dimension_numbers<[1], [1], [0], [0], [0, 0, 1, 0], [], []>} : vector<8x8xbf16>, vector<8x8xbf16>, vector<8x8xf32> -> vector<8x8xf32>
    %cst_44 = arith.constant 0.353553385 : f32
    %92 = vector.broadcast %cst_44 : f32 to vector<8x8xf32>
    %93 = arith.mulf %91, %92 : vector<8x8xf32>
    %94 = arith.addf %93, %27 : vector<8x8xf32>
    %cst_45 = arith.constant dense<0xFF800000> : vector<8xf32>
    %95 = vector.multi_reduction <maximumf>, %94, %cst_45 [1] : vector<8x8xf32> to vector<8xf32>
    %96 = vector.shape_cast %95 : vector<8xf32> to vector<8x1xf32>
    %97 = vector.broadcast %96 : vector<8x1xf32> to vector<8x8xf32>
    %98 = arith.subf %94, %97 : vector<8x8xf32>
    %99 = math.exp %98 : vector<8x8xf32>
    %cst_46 = arith.constant dense<0.000000e+00> : vector<8xf32>
    %100 = vector.multi_reduction <add>, %99, %cst_46 [1] : vector<8x8xf32> to vector<8xf32>
    %101 = vector.shape_cast %100 : vector<8xf32> to vector<8x1xf32>
    %102 = tpu.reciprocal %101 {approx = true} : vector<8x1xf32> -> vector<8x1xf32>
    %103 = vector.broadcast %102 : vector<8x1xf32> to vector<8x8xf32>
    %104 = arith.mulf %99, %103 : vector<8x8xf32>
    %105 = arith.truncf %104 : vector<8x8xf32> to vector<8x8xbf16>
    %cst_47 = arith.constant dense<0.000000e+00> : vector<8x8xf32>
    %106 = tpu.matmul %105, %90, %cst_47 {dimension_numbers = #tpu.dot_dimension_numbers<[1], [0], [0], [1], [0, 0, 1, 1], [], []>} : vector<8x8xbf16>, vector<8x8xbf16>, vector<8x8xf32> -> vector<8x8xf32>
    %c0_48 = arith.constant 0 : index
    %c24 = arith.constant 24 : index
    %107 = vector.load %arg28[%c0_48, %c24] : memref<8x32xf32, #tpu.memory_space<vmem>>, vector<8x8xf32>
    tpu.vector_store %arg28[%c0_48, %c24], %106 {strides = array<i32>} : memref<8x32xf32, #tpu.memory_space<vmem>>, vector<8x8xf32>,
    %c0_49 = arith.constant 0 : index
    %c0_50 = arith.constant 0 : index
    %108 = vector.load %arg28[%c0_49, %c0_50] : memref<8x32xf32, #tpu.memory_space<vmem>>, vector<8x32xf32>
    %109 = arith.truncf %108 : vector<8x32xf32> to vector<8x32xbf16>
    %cst_51 = arith.constant dense<0.000000e+00> : vector<8x32xf32>
    %110 = tpu.matmul %109, %8, %cst_51 {dimension_numbers = #tpu.dot_dimension_numbers<[1], [0], [0], [1], [0, 0, 1, 1], [], []>} : vector<8x32xbf16>, vector<32x32xbf16>, vector<8x32xf32> -> vector<8x32xf32>
    %111 = vector.broadcast %9 : vector<1x32xf32> to vector<8x32xf32>
    %112 = arith.addf %110, %111 : vector<8x32xf32>
    %113 = arith.addf %1, %112 : vector<8x32xf32>
    %cst_52 = arith.constant dense<0.000000e+00> : vector<8xf32>
    %114 = vector.multi_reduction <add>, %113, %cst_52 [1] : vector<8x32xf32> to vector<8xf32>
    %115 = vector.shape_cast %114 : vector<8xf32> to vector<8x1xf32>
    %cst_53 = arith.constant 3.200000e+01 : f32
    %116 = vector.broadcast %cst_53 : f32 to vector<8x1xf32>
    %117 = arith.divf %115, %116 : vector<8x1xf32>
    %118 = vector.broadcast %117 : vector<8x1xf32> to vector<8x32xf32>
    %119 = arith.subf %113, %118 : vector<8x32xf32>
    %120 = arith.mulf %119, %119 : vector<8x32xf32>
    %cst_54 = arith.constant dense<0.000000e+00> : vector<8xf32>
    %121 = vector.multi_reduction <add>, %120, %cst_54 [1] : vector<8x32xf32> to vector<8xf32>
    %122 = vector.shape_cast %121 : vector<8xf32> to vector<8x1xf32>
    %cst_55 = arith.constant 3.200000e+01 : f32
    %123 = vector.broadcast %cst_55 : f32 to vector<8x1xf32>
    %124 = arith.divf %122, %123 : vector<8x1xf32>
    %125 = vector.broadcast %117 : vector<8x1xf32> to vector<8x32xf32>
    %126 = arith.subf %113, %125 : vector<8x32xf32>
    %cst_56 = arith.constant 9.99999974E-6 : f32
    %127 = vector.broadcast %cst_56 : f32 to vector<8x1xf32>
    %128 = arith.addf %124, %127 : vector<8x1xf32>
    %129 = math.rsqrt %128 : vector<8x1xf32>
    %130 = vector.broadcast %129 : vector<8x1xf32> to vector<8x32xf32>
    %131 = arith.mulf %126, %130 : vector<8x32xf32>
    %132 = vector.broadcast %10 : vector<1x32xf32> to vector<8x32xf32>
    %133 = arith.mulf %131, %132 : vector<8x32xf32>
    %134 = vector.broadcast %11 : vector<1x32xf32> to vector<8x32xf32>
    %135 = arith.addf %133, %134 : vector<8x32xf32>
    %c0_57 = arith.constant 0 : index
    %c0_58 = arith.constant 0 : index
    %136 = vector.load %arg11[%c0_57, %c0_58] : memref<32x32xbf16, #tpu.memory_space<vmem>>, vector<32x32xbf16>
    %c0_59 = arith.constant 0 : index
    %c0_60 = arith.constant 0 : index
    %137 = vector.load %arg12[%c0_59, %c0_60] : memref<1x32xf32, #tpu.memory_space<vmem>>, vector<1x32xf32>
    %c0_61 = arith.constant 0 : index
    %c0_62 = arith.constant 0 : index
    %138 = vector.load %arg13[%c0_61, %c0_62] : memref<32x64xbf16, #tpu.memory_space<vmem>>, vector<32x64xbf16>
    %c0_63 = arith.constant 0 : index
    %c0_64 = arith.constant 0 : index
    %139 = vector.load %arg14[%c0_63, %c0_64] : memref<1x64xf32, #tpu.memory_space<vmem>>, vector<1x64xf32>
    %c0_65 = arith.constant 0 : index
    %c0_66 = arith.constant 0 : index
    %140 = vector.load %arg15[%c0_65, %c0_66] : memref<32x32xbf16, #tpu.memory_space<vmem>>, vector<32x32xbf16>
    %c0_67 = arith.constant 0 : index
    %c0_68 = arith.constant 0 : index
    %141 = vector.load %arg16[%c0_67, %c0_68] : memref<1x32xf32, #tpu.memory_space<vmem>>, vector<1x32xf32>
    %c0_69 = arith.constant 0 : index
    %c0_70 = arith.constant 0 : index
    %142 = vector.load %arg17[%c0_69, %c0_70] : memref<1x32xf32, #tpu.memory_space<vmem>>, vector<1x32xf32>
    %c0_71 = arith.constant 0 : index
    %c0_72 = arith.constant 0 : index
    %143 = vector.load %arg18[%c0_71, %c0_72] : memref<1x32xf32, #tpu.memory_space<vmem>>, vector<1x32xf32>
    %144 = arith.truncf %135 : vector<8x32xf32> to vector<8x32xbf16>
    %cst_73 = arith.constant dense<0.000000e+00> : vector<8x32xf32>
    %145 = tpu.matmul %144, %136, %cst_73 {dimension_numbers = #tpu.dot_dimension_numbers<[1], [0], [0], [1], [0, 0, 1, 1], [], []>} : vector<8x32xbf16>, vector<32x32xbf16>, vector<8x32xf32> -> vector<8x32xf32>
    %146 = vector.broadcast %137 : vector<1x32xf32> to vector<8x32xf32>
    %147 = arith.addf %145, %146 : vector<8x32xf32>
    %148 = arith.truncf %3 : vector<8x32xf32> to vector<8x32xbf16>
    %cst_74 = arith.constant dense<0.000000e+00> : vector<8x64xf32>
    %149 = tpu.matmul %148, %138, %cst_74 {dimension_numbers = #tpu.dot_dimension_numbers<[1], [0], [0], [1], [0, 0, 1, 1], [], []>} : vector<8x32xbf16>, vector<32x64xbf16>, vector<8x64xf32> -> vector<8x64xf32>
    %150 = vector.broadcast %139 : vector<1x64xf32> to vector<8x64xf32>
    %151 = arith.addf %149, %150 : vector<8x64xf32>
    %152 = arith.truncf %147 : vector<8x32xf32> to vector<8x32xbf16>
    %153 = arith.truncf %151 : vector<8x64xf32> to vector<8x64xbf16>
    %154 = vector.extract_strided_slice %152 {offsets = [0, 0], sizes = [8, 8], strides = [1, 1]} : vector<8x32xbf16> to vector<8x8xbf16>
    %155 = vector.extract_strided_slice %153 {offsets = [0, 0], sizes = [8, 8], strides = [1, 1]} : vector<8x64xbf16> to vector<8x8xbf16>
    %156 = vector.extract_strided_slice %153 {offsets = [0, 32], sizes = [8, 8], strides = [1, 1]} : vector<8x64xbf16> to vector<8x8xbf16>
    %cst_75 = arith.constant dense<0.000000e+00> : vector<8x8xf32>
    %157 = tpu.matmul %154, %155, %cst_75 {dimension_numbers = #tpu.dot_dimension_numbers<[1], [1], [0], [0], [0, 0, 1, 0], [], []>} : vector<8x8xbf16>, vector<8x8xbf16>, vector<8x8xf32> -> vector<8x8xf32>
    %cst_76 = arith.constant 0.353553385 : f32
    %158 = vector.broadcast %cst_76 : f32 to vector<8x8xf32>
    %159 = arith.mulf %157, %158 : vector<8x8xf32>
    %cst_77 = arith.constant dense<0xFF800000> : vector<8xf32>
    %160 = vector.multi_reduction <maximumf>, %159, %cst_77 [1] : vector<8x8xf32> to vector<8xf32>
    %161 = vector.shape_cast %160 : vector<8xf32> to vector<8x1xf32>
    %162 = vector.broadcast %161 : vector<8x1xf32> to vector<8x8xf32>
    %163 = arith.subf %159, %162 : vector<8x8xf32>
    %164 = math.exp %163 : vector<8x8xf32>
    %cst_78 = arith.constant dense<0.000000e+00> : vector<8xf32>
    %165 = vector.multi_reduction <add>, %164, %cst_78 [1] : vector<8x8xf32> to vector<8xf32>
    %166 = vector.shape_cast %165 : vector<8xf32> to vector<8x1xf32>
    %167 = tpu.reciprocal %166 {approx = true} : vector<8x1xf32> -> vector<8x1xf32>
    %168 = vector.broadcast %167 : vector<8x1xf32> to vector<8x8xf32>
    %169 = arith.mulf %164, %168 : vector<8x8xf32>
    %170 = arith.truncf %169 : vector<8x8xf32> to vector<8x8xbf16>
    %cst_79 = arith.constant dense<0.000000e+00> : vector<8x8xf32>
    %171 = tpu.matmul %170, %156, %cst_79 {dimension_numbers = #tpu.dot_dimension_numbers<[1], [0], [0], [1], [0, 0, 1, 1], [], []>} : vector<8x8xbf16>, vector<8x8xbf16>, vector<8x8xf32> -> vector<8x8xf32>
    %c0_80 = arith.constant 0 : index
    %c0_81 = arith.constant 0 : index
    %172 = vector.load %arg28[%c0_80, %c0_81] : memref<8x32xf32, #tpu.memory_space<vmem>>, vector<8x8xf32>
    tpu.vector_store %arg28[%c0_80, %c0_81], %171 {strides = array<i32>} : memref<8x32xf32, #tpu.memory_space<vmem>>, vector<8x8xf32>,
    %173 = vector.extract_strided_slice %152 {offsets = [0, 8], sizes = [8, 8], strides = [1, 1]} : vector<8x32xbf16> to vector<8x8xbf16>
    %174 = vector.extract_strided_slice %153 {offsets = [0, 8], sizes = [8, 8], strides = [1, 1]} : vector<8x64xbf16> to vector<8x8xbf16>
    %175 = vector.extract_strided_slice %153 {offsets = [0, 40], sizes = [8, 8], strides = [1, 1]} : vector<8x64xbf16> to vector<8x8xbf16>
    %cst_82 = arith.constant dense<0.000000e+00> : vector<8x8xf32>
    %176 = tpu.matmul %173, %174, %cst_82 {dimension_numbers = #tpu.dot_dimension_numbers<[1], [1], [0], [0], [0, 0, 1, 0], [], []>} : vector<8x8xbf16>, vector<8x8xbf16>, vector<8x8xf32> -> vector<8x8xf32>
    %cst_83 = arith.constant 0.353553385 : f32
    %177 = vector.broadcast %cst_83 : f32 to vector<8x8xf32>
    %178 = arith.mulf %176, %177 : vector<8x8xf32>
    %cst_84 = arith.constant dense<0xFF800000> : vector<8xf32>
    %179 = vector.multi_reduction <maximumf>, %178, %cst_84 [1] : vector<8x8xf32> to vector<8xf32>
    %180 = vector.shape_cast %179 : vector<8xf32> to vector<8x1xf32>
    %181 = vector.broadcast %180 : vector<8x1xf32> to vector<8x8xf32>
    %182 = arith.subf %178, %181 : vector<8x8xf32>
    %183 = math.exp %182 : vector<8x8xf32>
    %cst_85 = arith.constant dense<0.000000e+00> : vector<8xf32>
    %184 = vector.multi_reduction <add>, %183, %cst_85 [1] : vector<8x8xf32> to vector<8xf32>
    %185 = vector.shape_cast %184 : vector<8xf32> to vector<8x1xf32>
    %186 = tpu.reciprocal %185 {approx = true} : vector<8x1xf32> -> vector<8x1xf32>
    %187 = vector.broadcast %186 : vector<8x1xf32> to vector<8x8xf32>
    %188 = arith.mulf %183, %187 : vector<8x8xf32>
    %189 = arith.truncf %188 : vector<8x8xf32> to vector<8x8xbf16>
    %cst_86 = arith.constant dense<0.000000e+00> : vector<8x8xf32>
    %190 = tpu.matmul %189, %175, %cst_86 {dimension_numbers = #tpu.dot_dimension_numbers<[1], [0], [0], [1], [0, 0, 1, 1], [], []>} : vector<8x8xbf16>, vector<8x8xbf16>, vector<8x8xf32> -> vector<8x8xf32>
    %c0_87 = arith.constant 0 : index
    %c8_88 = arith.constant 8 : index
    %191 = vector.load %arg28[%c0_87, %c8_88] : memref<8x32xf32, #tpu.memory_space<vmem>>, vector<8x8xf32>
    tpu.vector_store %arg28[%c0_87, %c8_88], %190 {strides = array<i32>} : memref<8x32xf32, #tpu.memory_space<vmem>>, vector<8x8xf32>,
    %192 = vector.extract_strided_slice %152 {offsets = [0, 16], sizes = [8, 8], strides = [1, 1]} : vector<8x32xbf16> to vector<8x8xbf16>
    %193 = vector.extract_strided_slice %153 {offsets = [0, 16], sizes = [8, 8], strides = [1, 1]} : vector<8x64xbf16> to vector<8x8xbf16>
    %194 = vector.extract_strided_slice %153 {offsets = [0, 48], sizes = [8, 8], strides = [1, 1]} : vector<8x64xbf16> to vector<8x8xbf16>
    %cst_89 = arith.constant dense<0.000000e+00> : vector<8x8xf32>
    %195 = tpu.matmul %192, %193, %cst_89 {dimension_numbers = #tpu.dot_dimension_numbers<[1], [1], [0], [0], [0, 0, 1, 0], [], []>} : vector<8x8xbf16>, vector<8x8xbf16>, vector<8x8xf32> -> vector<8x8xf32>
    %cst_90 = arith.constant 0.353553385 : f32
    %196 = vector.broadcast %cst_90 : f32 to vector<8x8xf32>
    %197 = arith.mulf %195, %196 : vector<8x8xf32>
    %cst_91 = arith.constant dense<0xFF800000> : vector<8xf32>
    %198 = vector.multi_reduction <maximumf>, %197, %cst_91 [1] : vector<8x8xf32> to vector<8xf32>
    %199 = vector.shape_cast %198 : vector<8xf32> to vector<8x1xf32>
    %200 = vector.broadcast %199 : vector<8x1xf32> to vector<8x8xf32>
    %201 = arith.subf %197, %200 : vector<8x8xf32>
    %202 = math.exp %201 : vector<8x8xf32>
    %cst_92 = arith.constant dense<0.000000e+00> : vector<8xf32>
    %203 = vector.multi_reduction <add>, %202, %cst_92 [1] : vector<8x8xf32> to vector<8xf32>
    %204 = vector.shape_cast %203 : vector<8xf32> to vector<8x1xf32>
    %205 = tpu.reciprocal %204 {approx = true} : vector<8x1xf32> -> vector<8x1xf32>
    %206 = vector.broadcast %205 : vector<8x1xf32> to vector<8x8xf32>
    %207 = arith.mulf %202, %206 : vector<8x8xf32>
    %208 = arith.truncf %207 : vector<8x8xf32> to vector<8x8xbf16>
    %cst_93 = arith.constant dense<0.000000e+00> : vector<8x8xf32>
    %209 = tpu.matmul %208, %194, %cst_93 {dimension_numbers = #tpu.dot_dimension_numbers<[1], [0], [0], [1], [0, 0, 1, 1], [], []>} : vector<8x8xbf16>, vector<8x8xbf16>, vector<8x8xf32> -> vector<8x8xf32>
    %c0_94 = arith.constant 0 : index
    %c16_95 = arith.constant 16 : index
    %210 = vector.load %arg28[%c0_94, %c16_95] : memref<8x32xf32, #tpu.memory_space<vmem>>, vector<8x8xf32>
    tpu.vector_store %arg28[%c0_94, %c16_95], %209 {strides = array<i32>} : memref<8x32xf32, #tpu.memory_space<vmem>>, vector<8x8xf32>,
    %211 = vector.extract_strided_slice %152 {offsets = [0, 24], sizes = [8, 8], strides = [1, 1]} : vector<8x32xbf16> to vector<8x8xbf16>
    %212 = vector.extract_strided_slice %153 {offsets = [0, 24], sizes = [8, 8], strides = [1, 1]} : vector<8x64xbf16> to vector<8x8xbf16>
    %213 = vector.extract_strided_slice %153 {offsets = [0, 56], sizes = [8, 8], strides = [1, 1]} : vector<8x64xbf16> to vector<8x8xbf16>
    %cst_96 = arith.constant dense<0.000000e+00> : vector<8x8xf32>
    %214 = tpu.matmul %211, %212, %cst_96 {dimension_numbers = #tpu.dot_dimension_numbers<[1], [1], [0], [0], [0, 0, 1, 0], [], []>} : vector<8x8xbf16>, vector<8x8xbf16>, vector<8x8xf32> -> vector<8x8xf32>
    %cst_97 = arith.constant 0.353553385 : f32
    %215 = vector.broadcast %cst_97 : f32 to vector<8x8xf32>
    %216 = arith.mulf %214, %215 : vector<8x8xf32>
    %cst_98 = arith.constant dense<0xFF800000> : vector<8xf32>
    %217 = vector.multi_reduction <maximumf>, %216, %cst_98 [1] : vector<8x8xf32> to vector<8xf32>
    %218 = vector.shape_cast %217 : vector<8xf32> to vector<8x1xf32>
    %219 = vector.broadcast %218 : vector<8x1xf32> to vector<8x8xf32>
    %220 = arith.subf %216, %219 : vector<8x8xf32>
    %221 = math.exp %220 : vector<8x8xf32>
    %cst_99 = arith.constant dense<0.000000e+00> : vector<8xf32>
    %222 = vector.multi_reduction <add>, %221, %cst_99 [1] : vector<8x8xf32> to vector<8xf32>
    %223 = vector.shape_cast %222 : vector<8xf32> to vector<8x1xf32>
    %224 = tpu.reciprocal %223 {approx = true} : vector<8x1xf32> -> vector<8x1xf32>
    %225 = vector.broadcast %224 : vector<8x1xf32> to vector<8x8xf32>
    %226 = arith.mulf %221, %225 : vector<8x8xf32>
    %227 = arith.truncf %226 : vector<8x8xf32> to vector<8x8xbf16>
    %cst_100 = arith.constant dense<0.000000e+00> : vector<8x8xf32>
    %228 = tpu.matmul %227, %213, %cst_100 {dimension_numbers = #tpu.dot_dimension_numbers<[1], [0], [0], [1], [0, 0, 1, 1], [], []>} : vector<8x8xbf16>, vector<8x8xbf16>, vector<8x8xf32> -> vector<8x8xf32>
    %c0_101 = arith.constant 0 : index
    %c24_102 = arith.constant 24 : index
    %229 = vector.load %arg28[%c0_101, %c24_102] : memref<8x32xf32, #tpu.memory_space<vmem>>, vector<8x8xf32>
    tpu.vector_store %arg28[%c0_101, %c24_102], %228 {strides = array<i32>} : memref<8x32xf32, #tpu.memory_space<vmem>>, vector<8x8xf32>,
    %c0_103 = arith.constant 0 : index
    %c0_104 = arith.constant 0 : index
    %230 = vector.load %arg28[%c0_103, %c0_104] : memref<8x32xf32, #tpu.memory_space<vmem>>, vector<8x32xf32>
    %231 = arith.truncf %230 : vector<8x32xf32> to vector<8x32xbf16>
    %cst_105 = arith.constant dense<0.000000e+00> : vector<8x32xf32>
    %232 = tpu.matmul %231, %140, %cst_105 {dimension_numbers = #tpu.dot_dimension_numbers<[1], [0], [0], [1], [0, 0, 1, 1], [], []>} : vector<8x32xbf16>, vector<32x32xbf16>, vector<8x32xf32> -> vector<8x32xf32>
    %233 = vector.broadcast %141 : vector<1x32xf32> to vector<8x32xf32>
    %234 = arith.addf %232, %233 : vector<8x32xf32>
    %235 = arith.addf %135, %234 : vector<8x32xf32>
    %cst_106 = arith.constant dense<0.000000e+00> : vector<8xf32>
    %236 = vector.multi_reduction <add>, %235, %cst_106 [1] : vector<8x32xf32> to vector<8xf32>
    %237 = vector.shape_cast %236 : vector<8xf32> to vector<8x1xf32>
    %cst_107 = arith.constant 3.200000e+01 : f32
    %238 = vector.broadcast %cst_107 : f32 to vector<8x1xf32>
    %239 = arith.divf %237, %238 : vector<8x1xf32>
    %240 = vector.broadcast %239 : vector<8x1xf32> to vector<8x32xf32>
    %241 = arith.subf %235, %240 : vector<8x32xf32>
    %242 = arith.mulf %241, %241 : vector<8x32xf32>
    %cst_108 = arith.constant dense<0.000000e+00> : vector<8xf32>
    %243 = vector.multi_reduction <add>, %242, %cst_108 [1] : vector<8x32xf32> to vector<8xf32>
    %244 = vector.shape_cast %243 : vector<8xf32> to vector<8x1xf32>
    %cst_109 = arith.constant 3.200000e+01 : f32
    %245 = vector.broadcast %cst_109 : f32 to vector<8x1xf32>
    %246 = arith.divf %244, %245 : vector<8x1xf32>
    %247 = vector.broadcast %239 : vector<8x1xf32> to vector<8x32xf32>
    %248 = arith.subf %235, %247 : vector<8x32xf32>
    %cst_110 = arith.constant 9.99999974E-6 : f32
    %249 = vector.broadcast %cst_110 : f32 to vector<8x1xf32>
    %250 = arith.addf %246, %249 : vector<8x1xf32>
    %251 = math.rsqrt %250 : vector<8x1xf32>
    %252 = vector.broadcast %251 : vector<8x1xf32> to vector<8x32xf32>
    %253 = arith.mulf %248, %252 : vector<8x32xf32>
    %254 = vector.broadcast %142 : vector<1x32xf32> to vector<8x32xf32>
    %255 = arith.mulf %253, %254 : vector<8x32xf32>
    %256 = vector.broadcast %143 : vector<1x32xf32> to vector<8x32xf32>
    %257 = arith.addf %255, %256 : vector<8x32xf32>
    %c0_111 = arith.constant 0 : index
    %c0_112 = arith.constant 0 : index
    %258 = vector.load %arg19[%c0_111, %c0_112] : memref<32x64xbf16, #tpu.memory_space<vmem>>, vector<32x64xbf16>
    %c0_113 = arith.constant 0 : index
    %c0_114 = arith.constant 0 : index
    %259 = vector.load %arg20[%c0_113, %c0_114] : memref<1x64xf32, #tpu.memory_space<vmem>>, vector<1x64xf32>
    %c0_115 = arith.constant 0 : index
    %c0_116 = arith.constant 0 : index
    %260 = vector.load %arg21[%c0_115, %c0_116] : memref<64x32xbf16, #tpu.memory_space<vmem>>, vector<64x32xbf16>
    %c0_117 = arith.constant 0 : index
    %c0_118 = arith.constant 0 : index
    %261 = vector.load %arg22[%c0_117, %c0_118] : memref<1x32xf32, #tpu.memory_space<vmem>>, vector<1x32xf32>
    %c0_119 = arith.constant 0 : index
    %c0_120 = arith.constant 0 : index
    %262 = vector.load %arg23[%c0_119, %c0_120] : memref<1x32xf32, #tpu.memory_space<vmem>>, vector<1x32xf32>
    %c0_121 = arith.constant 0 : index
    %c0_122 = arith.constant 0 : index
    %263 = vector.load %arg24[%c0_121, %c0_122] : memref<1x32xf32, #tpu.memory_space<vmem>>, vector<1x32xf32>
    %264 = arith.truncf %257 : vector<8x32xf32> to vector<8x32xbf16>
    %cst_123 = arith.constant dense<0.000000e+00> : vector<8x64xf32>
    %265 = tpu.matmul %264, %258, %cst_123 {dimension_numbers = #tpu.dot_dimension_numbers<[1], [0], [0], [1], [0, 0, 1, 1], [], []>} : vector<8x32xbf16>, vector<32x64xbf16>, vector<8x64xf32> -> vector<8x64xf32>
    %266 = vector.broadcast %259 : vector<1x64xf32> to vector<8x64xf32>
    %267 = arith.addf %265, %266 : vector<8x64xf32>
    %cst_124 = arith.constant 0.000000e+00 : f32
    %268 = vector.broadcast %cst_124 : f32 to vector<8x64xf32>
    %269 = arith.maximumf %267, %268 : vector<8x64xf32>
    %270 = arith.truncf %269 : vector<8x64xf32> to vector<8x64xbf16>
    %cst_125 = arith.constant dense<0.000000e+00> : vector<8x32xf32>
    %271 = tpu.matmul %270, %260, %cst_125 {dimension_numbers = #tpu.dot_dimension_numbers<[1], [0], [0], [1], [0, 0, 1, 1], [], []>} : vector<8x64xbf16>, vector<64x32xbf16>, vector<8x32xf32> -> vector<8x32xf32>
    %272 = arith.addf %257, %271 : vector<8x32xf32>
    %273 = vector.broadcast %261 : vector<1x32xf32> to vector<8x32xf32>
    %274 = arith.addf %272, %273 : vector<8x32xf32>
    %cst_126 = arith.constant dense<0.000000e+00> : vector<8xf32>
    %275 = vector.multi_reduction <add>, %274, %cst_126 [1] : vector<8x32xf32> to vector<8xf32>
    %276 = vector.shape_cast %275 : vector<8xf32> to vector<8x1xf32>
    %cst_127 = arith.constant 3.200000e+01 : f32
    %277 = vector.broadcast %cst_127 : f32 to vector<8x1xf32>
    %278 = arith.divf %276, %277 : vector<8x1xf32>
    %279 = vector.broadcast %278 : vector<8x1xf32> to vector<8x32xf32>
    %280 = arith.subf %274, %279 : vector<8x32xf32>
    %281 = arith.mulf %280, %280 : vector<8x32xf32>
    %cst_128 = arith.constant dense<0.000000e+00> : vector<8xf32>
    %282 = vector.multi_reduction <add>, %281, %cst_128 [1] : vector<8x32xf32> to vector<8xf32>
    %283 = vector.shape_cast %282 : vector<8xf32> to vector<8x1xf32>
    %cst_129 = arith.constant 3.200000e+01 : f32
    %284 = vector.broadcast %cst_129 : f32 to vector<8x1xf32>
    %285 = arith.divf %283, %284 : vector<8x1xf32>
    %286 = vector.broadcast %278 : vector<8x1xf32> to vector<8x32xf32>
    %287 = arith.subf %274, %286 : vector<8x32xf32>
    %cst_130 = arith.constant 9.99999974E-6 : f32
    %288 = vector.broadcast %cst_130 : f32 to vector<8x1xf32>
    %289 = arith.addf %285, %288 : vector<8x1xf32>
    %290 = math.rsqrt %289 : vector<8x1xf32>
    %291 = vector.broadcast %290 : vector<8x1xf32> to vector<8x32xf32>
    %292 = arith.mulf %287, %291 : vector<8x32xf32>
    %293 = vector.broadcast %262 : vector<1x32xf32> to vector<8x32xf32>
    %294 = arith.mulf %292, %293 : vector<8x32xf32>
    %295 = vector.broadcast %263 : vector<1x32xf32> to vector<8x32xf32>
    %296 = arith.addf %294, %295 : vector<8x32xf32>
    %c0_131 = arith.constant 0 : index
    %c0_132 = arith.constant 0 : index
    %c0_133 = arith.constant 0 : index
    %297 = vector.load %arg27[%c0_131, %c0_132, %c0_133] : memref<1x8x32xf32, #tpu.memory_space<vmem>>, vector<1x8x32xf32>
    %298 = vector.shape_cast %297 : vector<1x8x32xf32> to vector<8x32xf32>
    %299 = vector.shape_cast %296 : vector<8x32xf32> to vector<1x8x32xf32>
    tpu.vector_store %arg27[%c0_131, %c0_132, %c0_133], %299 {strides = array<i32>} : memref<1x8x32xf32, #tpu.memory_space<vmem>>, vector<1x8x32xf32>,
    return
  }
  func.func @transform_0(%arg0: i32) -> (i32, i32, i32) {
    %c0_i32 = arith.constant 0 : i32
    %c0_i32_0 = arith.constant 0 : i32
    %c0_i32_1 = arith.constant 0 : i32
    return %arg0, %c0_i32, %c0_i32_0 : i32, i32, i32
  }
  func.func @transform_1(%arg0: i32) -> (i32, i32, i32) {
    %c0_i32 = arith.constant 0 : i32
    %c0_i32_0 = arith.constant 0 : i32
    %c0_i32_1 = arith.constant 0 : i32
    return %arg0, %c0_i32, %c0_i32_0 : i32, i32, i32
  }
  func.func @transform_2(%arg0: i32) -> (i32, i32) {
    %c0_i32 = arith.constant 0 : i32
    %c0_i32_0 = arith.constant 0 : i32
    %c0_i32_1 = arith.constant 0 : i32
    return %c0_i32, %c0_i32_0 : i32, i32
  }
  func.func @transform_3(%arg0: i32) -> (i32, i32) {
    %c0_i32 = arith.constant 0 : i32
    %c0_i32_0 = arith.constant 0 : i32
    %c0_i32_1 = arith.constant 0 : i32
    return %c0_i32, %c0_i32_0 : i32, i32
  }
  func.func @transform_4(%arg0: i32) -> (i32, i32) {
    %c0_i32 = arith.constant 0 : i32
    %c0_i32_0 = arith.constant 0 : i32
    %c0_i32_1 = arith.constant 0 : i32
    return %c0_i32, %c0_i32_0 : i32, i32
  }
  func.func @transform_5(%arg0: i32) -> (i32, i32) {
    %c0_i32 = arith.constant 0 : i32
    %c0_i32_0 = arith.constant 0 : i32
    %c0_i32_1 = arith.constant 0 : i32
    return %c0_i32, %c0_i32_0 : i32, i32
  }
  func.func @transform_6(%arg0: i32) -> (i32, i32) {
    %c0_i32 = arith.constant 0 : i32
    %c0_i32_0 = arith.constant 0 : i32
    %c0_i32_1 = arith.constant 0 : i32
    return %c0_i32, %c0_i32_0 : i32, i32
  }
  func.func @transform_7(%arg0: i32) -> (i32, i32) {
    %c0_i32 = arith.constant 0 : i32
    %c0_i32_0 = arith.constant 0 : i32
    %c0_i32_1 = arith.constant 0 : i32
    return %c0_i32, %c0_i32_0 : i32, i32
  }
  func.func @transform_8(%arg0: i32) -> (i32, i32) {
    %c0_i32 = arith.constant 0 : i32
    %c0_i32_0 = arith.constant 0 : i32
    %c0_i32_1 = arith.constant 0 : i32
    return %c0_i32, %c0_i32_0 : i32, i32
  }
  func.func @transform_9(%arg0: i32) -> (i32, i32) {
    %c0_i32 = arith.constant 0 : i32
    %c0_i32_0 = arith.constant 0 : i32
    %c0_i32_1 = arith.constant 0 : i32
    return %c0_i32, %c0_i32_0 : i32, i32
  }
  func.func @transform_10(%arg0: i32) -> (i32, i32) {
    %c0_i32 = arith.constant 0 : i32
    %c0_i32_0 = arith.constant 0 : i32
    %c0_i32_1 = arith.constant 0 : i32
    return %c0_i32, %c0_i32_0 : i32, i32
  }
  func.func @transform_11(%arg0: i32) -> (i32, i32) {
    %c0_i32 = arith.constant 0 : i32
    %c0_i32_0 = arith.constant 0 : i32
    %c0_i32_1 = arith.constant 0 : i32
    return %c0_i32, %c0_i32_0 : i32, i32
  }
  func.func @transform_12(%arg0: i32) -> (i32, i32) {
    %c0_i32 = arith.constant 0 : i32
    %c0_i32_0 = arith.constant 0 : i32
    %c0_i32_1 = arith.constant 0 : i32
    return %c0_i32, %c0_i32_0 : i32, i32
  }
  func.func @transform_13(%arg0: i32) -> (i32, i32) {
    %c0_i32 = arith.constant 0 : i32
    %c0_i32_0 = arith.constant 0 : i32
    %c0_i32_1 = arith.constant 0 : i32
    return %c0_i32, %c0_i32_0 : i32, i32
  }
  func.func @transform_14(%arg0: i32) -> (i32, i32) {
    %c0_i32 = arith.constant 0 : i32
    %c0_i32_0 = arith.constant 0 : i32
    %c0_i32_1 = arith.constant 0 : i32
    return %c0_i32, %c0_i32_0 : i32, i32
  }
  func.func @transform_15(%arg0: i32) -> (i32, i32) {
    %c0_i32 = arith.constant 0 : i32
    %c0_i32_0 = arith.constant 0 : i32
    %c0_i32_1 = arith.constant 0 : i32
    return %c0_i32, %c0_i32_0 : i32, i32
  }
  func.func @transform_16(%arg0: i32) -> (i32, i32) {
    %c0_i32 = arith.constant 0 : i32
    %c0_i32_0 = arith.constant 0 : i32
    %c0_i32_1 = arith.constant 0 : i32
    return %c0_i32, %c0_i32_0 : i32, i32
  }
  func.func @transform_17(%arg0: i32) -> (i32, i32) {
    %c0_i32 = arith.constant 0 : i32
    %c0_i32_0 = arith.constant 0 : i32
    %c0_i32_1 = arith.constant 0 : i32
    return %c0_i32, %c0_i32_0 : i32, i32
  }
  func.func @transform_18(%arg0: i32) -> (i32, i32) {
    %c0_i32 = arith.constant 0 : i32
    %c0_i32_0 = arith.constant 0 : i32
    %c0_i32_1 = arith.constant 0 : i32
    return %c0_i32, %c0_i32_0 : i32, i32
  }
  func.func @transform_19(%arg0: i32) -> (i32, i32) {
    %c0_i32 = arith.constant 0 : i32
    %c0_i32_0 = arith.constant 0 : i32
    %c0_i32_1 = arith.constant 0 : i32
    return %c0_i32, %c0_i32_0 : i32, i32
  }
  func.func @transform_20(%arg0: i32) -> (i32, i32) {
    %c0_i32 = arith.constant 0 : i32
    %c0_i32_0 = arith.constant 0 : i32
    %c0_i32_1 = arith.constant 0 : i32
    return %c0_i32, %c0_i32_0 : i32, i32
  }
  func.func @transform_21(%arg0: i32) -> (i32, i32) {
    %c0_i32 = arith.constant 0 : i32
    %c0_i32_0 = arith.constant 0 : i32
    %c0_i32_1 = arith.constant 0 : i32
    return %c0_i32, %c0_i32_0 : i32, i32
  }
  func.func @transform_22(%arg0: i32) -> (i32, i32) {
    %c0_i32 = arith.constant 0 : i32
    %c0_i32_0 = arith.constant 0 : i32
    %c0_i32_1 = arith.constant 0 : i32
    return %c0_i32, %c0_i32_0 : i32, i32
  }
  func.func @transform_23(%arg0: i32) -> (i32, i32) {
    %c0_i32 = arith.constant 0 : i32
    %c0_i32_0 = arith.constant 0 : i32
    %c0_i32_1 = arith.constant 0 : i32
    return %c0_i32, %c0_i32_0 : i32, i32
  }
  func.func @transform_24(%arg0: i32) -> (i32, i32) {
    %c0_i32 = arith.constant 0 : i32
    %c0_i32_0 = arith.constant 0 : i32
    %c0_i32_1 = arith.constant 0 : i32
    return %c0_i32, %c0_i32_0 : i32, i32
  }
  func.func @transform_25(%arg0: i32) -> (i32, i32) {
    %c0_i32 = arith.constant 0 : i32
    %c0_i32_0 = arith.constant 0 : i32
    %c0_i32_1 = arith.constant 0 : i32
    return %c0_i32, %c0_i32_0 : i32, i32
  }
  func.func @transform_26(%arg0: i32) -> (i32, i32, i32) {
    %c0_i32 = arith.constant 0 : i32
    %c0_i32_0 = arith.constant 0 : i32
    %c0_i32_1 = arith.constant 0 : i32
    return %arg0, %c0_i32, %c0_i32_0 : i32, i32, i32
  }
}

module attributes {stable_mosaic.version = 11 : i64} {
  func.func @_decoder_layer_kernel(%arg0: i32, %arg1: memref<1x8x32xf32, #tpu.memory_space<vmem>>, %arg2: memref<1x8x32xf32, #tpu.memory_space<vmem>>, %arg3: memref<32x32xbf16, #tpu.memory_space<vmem>>, %arg4: memref<1x32xf32, #tpu.memory_space<vmem>>, %arg5: memref<32x64xbf16, #tpu.memory_space<vmem>>, %arg6: memref<1x64xf32, #tpu.memory_space<vmem>>, %arg7: memref<32x32xbf16, #tpu.memory_space<vmem>>, %arg8: memref<1x32xf32, #tpu.memory_space<vmem>>, %arg9: memref<1x32xf32, #tpu.memory_space<vmem>>, %arg10: memref<1x32xf32, #tpu.memory_space<vmem>>, %arg11: memref<32x32xbf16, #tpu.memory_space<vmem>>, %arg12: memref<1x32xf32, #tpu.memory_space<vmem>>, %arg13: memref<32x64xbf16, #tpu.memory_space<vmem>>, %arg14: memref<1x64xf32, #tpu.memory_space<vmem>>, %arg15: memref<32x32xbf16, #tpu.memory_space<vmem>>, %arg16: memref<1x32xf32, #tpu.memory_space<vmem>>, %arg17: memref<1x32xf32, #tpu.memory_space<vmem>>, %arg18: memref<1x32xf32, #tpu.memory_space<vmem>>, %arg19: memref<32x64xbf16, #tpu.memory_space<vmem>>, %arg20: memref<1x64xf32, #tpu.memory_space<vmem>>, %arg21: memref<64x32xbf16, #tpu.memory_space<vmem>>, %arg22: memref<1x32xf32, #tpu.memory_space<vmem>>, %arg23: memref<1x32xf32, #tpu.memory_space<vmem>>, %arg24: memref<1x32xf32, #tpu.memory_space<vmem>>, %arg25: memref<1x32xf32, #tpu.memory_space<vmem>>, %arg26: memref<1x32xf32, #tpu.memory_space<vmem>>, %arg27: memref<1x8x32xf32, #tpu.memory_space<vmem>>, %arg28: memref<8x32xf32, #tpu.memory_space<vmem>>) attributes {dimension_semantics = [#tpu.dimension_semantics<parallel>], iteration_bounds = array<i64: 2>, scalar_prefetch = 0 : i64, scratch_operands = 1 : i64, tpu.core_type = #tpu.core_type<tc>, window_params = [{transform_indices = @transform_0, window_bounds = array<i64: 1, 8, 32>}, {transform_indices = @transform_1, window_bounds = array<i64: 1, 8, 32>}, {pipeline_mode = #tpu.pipeline_mode<synchronous>, transform_indices = @transform_2, window_bounds = array<i64: 32, 32>}, {pipeline_mode = #tpu.pipeline_mode<synchronous>, transform_indices = @transform_3, window_bounds = array<i64: 1, 32>}, {pipeline_mode = #tpu.pipeline_mode<synchronous>, transform_indices = @transform_4, window_bounds = array<i64: 32, 64>}, {pipeline_mode = #tpu.pipeline_mode<synchronous>, transform_indices = @transform_5, window_bounds = array<i64: 1, 64>}, {pipeline_mode = #tpu.pipeline_mode<synchronous>, transform_indices = @transform_6, window_bounds = array<i64: 32, 32>}, {pipeline_mode = #tpu.pipeline_mode<synchronous>, transform_indices = @transform_7, window_bounds = array<i64: 1, 32>}, {pipeline_mode = #tpu.pipeline_mode<synchronous>, transform_indices = @transform_8, window_bounds = array<i64: 1, 32>}, {pipeline_mode = #tpu.pipeline_mode<synchronous>, transform_indices = @transform_9, window_bounds = array<i64: 1, 32>}, {pipeline_mode = #tpu.pipeline_mode<synchronous>, transform_indices = @transform_10, window_bounds = array<i64: 32, 32>}, {pipeline_mode = #tpu.pipeline_mode<synchronous>, transform_indices = @transform_11, window_bounds = array<i64: 1, 32>}, {pipeline_mode = #tpu.pipeline_mode<synchronous>, transform_indices = @transform_12, window_bounds = array<i64: 32, 64>}, {pipeline_mode = #tpu.pipeline_mode<synchronous>, transform_indices = @transform_13, window_bounds = array<i64: 1, 64>}, {pipeline_mode = #tpu.pipeline_mode<synchronous>, transform_indices = @transform_14, window_bounds = array<i64: 32, 32>}, {pipeline_mode = #tpu.pipeline_mode<synchronous>, transform_indices = @transform_15, window_bounds = array<i64: 1, 32>}, {pipeline_mode = #tpu.pipeline_mode<synchronous>, transform_indices = @transform_16, window_bounds = array<i64: 1, 32>}, {pipeline_mode = #tpu.pipeline_mode<synchronous>, transform_indices = @transform_17, window_bounds = array<i64: 1, 32>}, {pipeline_mode = #tpu.pipeline_mode<synchronous>, transform_indices = @transform_18, window_bounds = array<i64: 32, 64>}, {pipeline_mode = #tpu.pipeline_mode<synchronous>, transform_indices = @transform_19, window_bounds = array<i64: 1, 64>}, {pipeline_mode = #tpu.pipeline_mode<synchronous>, transform_indices = @transform_20, window_bounds = array<i64: 64, 32>}, {pipeline_mode = #tpu.pipeline_mode<synchronous>, transform_indices = @transform_21, window_bounds = array<i64: 1, 32>}, {pipeline_mode = #tpu.pipeline_mode<synchronous>, transform_indices = @transform_22, window_bounds = array<i64: 1, 32>}, {pipeline_mode = #tpu.pipeline_mode<synchronous>, transform_indices = @transform_23, window_bounds = array<i64: 1, 32>}, {pipeline_mode = #tpu.pipeline_mode<synchronous>, transform_indices = @transform_24, window_bounds = array<i64: 1, 32>}, {pipeline_mode = #tpu.pipeline_mode<synchronous>, transform_indices = @transform_25, window_bounds = array<i64: 1, 32>}, {transform_indices = @transform_26, window_bounds = array<i64: 1, 8, 32>}]} {
    %c0 = arith.constant 0 : index
    %c0_0 = arith.constant 0 : index
    %c0_1 = arith.constant 0 : index
    %0 = vector.load %arg1[%c0, %c0_0, %c0_1] : memref<1x8x32xf32, #tpu.memory_space<vmem>>, vector<1x8x32xf32>
    %1 = vector.shape_cast %0 : vector<1x8x32xf32> to vector<8x32xf32>
    %c0_2 = arith.constant 0 : index
    %c0_3 = arith.constant 0 : index
    %c0_4 = arith.constant 0 : index
    %2 = vector.load %arg2[%c0_2, %c0_3, %c0_4] : memref<1x8x32xf32, #tpu.memory_space<vmem>>, vector<1x8x32xf32>
    %3 = vector.shape_cast %2 : vector<1x8x32xf32> to vector<8x32xf32>
    %c0_5 = arith.constant 0 : index
    %c0_6 = arith.constant 0 : index
    %4 = vector.load %arg3[%c0_5, %c0_6] : memref<32x32xbf16, #tpu.memory_space<vmem>>, vector<32x32xbf16>
    %c0_7 = arith.constant 0 : index
    %c0_8 = arith.constant 0 : index
    %5 = vector.load %arg4[%c0_7, %c0_8] : memref<1x32xf32, #tpu.memory_space<vmem>>, vector<1x32xf32>
    %c0_9 = arith.constant 0 : index
    %c0_10 = arith.constant 0 : index
    %6 = vector.load %arg5[%c0_9, %c0_10] : memref<32x64xbf16, #tpu.memory_space<vmem>>, vector<32x64xbf16>
    %c0_11 = arith.constant 0 : index
    %c0_12 = arith.constant 0 : index
    %7 = vector.load %arg6[%c0_11, %c0_12] : memref<1x64xf32, #tpu.memory_space<vmem>>, vector<1x64xf32>
    %c0_13 = arith.constant 0 : index
    %c0_14 = arith.constant 0 : index
    %8 = vector.load %arg7[%c0_13, %c0_14] : memref<32x32xbf16, #tpu.memory_space<vmem>>, vector<32x32xbf16>
    %c0_15 = arith.constant 0 : index
    %c0_16 = arith.constant 0 : index
    %9 = vector.load %arg8[%c0_15, %c0_16] : memref<1x32xf32, #tpu.memory_space<vmem>>, vector<1x32xf32>
    %c0_17 = arith.constant 0 : index
    %c0_18 = arith.constant 0 : index
    %10 = vector.load %arg9[%c0_17, %c0_18] : memref<1x32xf32, #tpu.memory_space<vmem>>, vector<1x32xf32>
    %c0_19 = arith.constant 0 : index
    %c0_20 = arith.constant 0 : index
    %11 = vector.load %arg10[%c0_19, %c0_20] : memref<1x32xf32, #tpu.memory_space<vmem>>, vector<1x32xf32>
    %12 = arith.truncf %1 : vector<8x32xf32> to vector<8x32xbf16>
    %cst = arith.constant dense<0.000000e+00> : vector<8x32xf32>
    %13 = tpu.matmul %12, %4, %cst {dimension_numbers = #tpu.dot_dimension_numbers<[1], [0], [0], [1], [0, 0, 1, 1], [], []>} : vector<8x32xbf16>, vector<32x32xbf16>, vector<8x32xf32> -> vector<8x32xf32>
    %14 = vector.broadcast %5 : vector<1x32xf32> to vector<8x32xf32>
    %15 = arith.addf %13, %14 : vector<8x32xf32>
    %16 = arith.truncf %1 : vector<8x32xf32> to vector<8x32xbf16>
    %cst_21 = arith.constant dense<0.000000e+00> : vector<8x64xf32>
    %17 = tpu.matmul %16, %6, %cst_21 {dimension_numbers = #tpu.dot_dimension_numbers<[1], [0], [0], [1], [0, 0, 1, 1], [], []>} : vector<8x32xbf16>, vector<32x64xbf16>, vector<8x64xf32> -> vector<8x64xf32>
    %18 = vector.broadcast %7 : vector<1x64xf32> to vector<8x64xf32>
    %19 = arith.addf %17, %18 : vector<8x64xf32>
    %20 = arith.truncf %15 : vector<8x32xf32> to vector<8x32xbf16>
    %21 = arith.truncf %19 : vector<8x64xf32> to vector<8x64xbf16>
    %22 = tpu.iota {dimensions = array<i32: 0>} : vector<8x8xi32>
    %23 = tpu.iota {dimensions = array<i32: 1>} : vector<8x8xi32>
    %24 = arith.cmpi sgt, %23, %22 : vector<8x8xi32>
    %cst_22 = arith.constant 0xFF800000 : f32
    %cst_23 = arith.constant 0.000000e+00 : f32
    %25 = vector.broadcast %cst_22 : f32 to vector<8x8xf32>
    %26 = vector.broadcast %cst_23 : f32 to vector<8x8xf32>
    %27 = arith.select %24, %25, %26 : vector<8x8xi1>, vector<8x8xf32>
    %28 = vector.extract_strided_slice %20 {offsets = [0, 0], sizes = [8, 8], strides = [1, 1]} : vector<8x32xbf16> to vector<8x8xbf16>
    %29 = vector.extract_strided_slice %21 {offsets = [0, 0], sizes = [8, 8], strides = [1, 1]} : vector<8x64xbf16> to vector<8x8xbf16>
    %30 = vector.extract_strided_slice %21 {offsets = [0, 32], sizes = [8, 8], strides = [1, 1]} : vector<8x64xbf16> to vector<8x8xbf16>
    %cst_24 = arith.constant dense<0.000000e+00> : vector<8x8xf32>
    %31 = tpu.matmul %28, %29, %cst_24 {dimension_numbers = #tpu.dot_dimension_numbers<[1], [1], [0], [0], [0, 0, 1, 0], [], []>} : vector<8x8xbf16>, vector<8x8xbf16>, vector<8x8xf32> -> vector<8x8xf32>
    %cst_25 = arith.constant 0.353553385 : f32
    %32 = vector.broadcast %cst_25 : f32 to vector<8x8xf32>
    %33 = arith.mulf %31, %32 : vector<8x8xf32>
    %34 = arith.addf %33, %27 : vector<8x8xf32>
    %cst_26 = arith.constant dense<0xFF800000> : vector<8xf32>
    %35 = vector.multi_reduction <maximumf>, %34, %cst_26 [1] : vector<8x8xf32> to vector<8xf32>
    %36 = vector.shape_cast %35 : vector<8xf32> to vector<8x1xf32>
    %37 = vector.broadcast %36 : vector<8x1xf32> to vector<8x8xf32>
    %38 = arith.subf %34, %37 : vector<8x8xf32>
    %39 = math.exp %38 : vector<8x8xf32>
    %cst_27 = arith.constant dense<0.000000e+00> : vector<8xf32>
    %40 = vector.multi_reduction <add>, %39, %cst_27 [1] : vector<8x8xf32> to vector<8xf32>
    %41 = vector.shape_cast %40 : vector<8xf32> to vector<8x1xf32>
    %42 = tpu.reciprocal %41 {approx = true} : vector<8x1xf32> -> vector<8x1xf32>
    %43 = vector.broadcast %42 : vector<8x1xf32> to vector<8x8xf32>
    %44 = arith.mulf %39, %43 : vector<8x8xf32>
    %45 = arith.truncf %44 : vector<8x8xf32> to vector<8x8xbf16>
    %cst_28 = arith.constant dense<0.000000e+00> : vector<8x8xf32>
    %46 = tpu.matmul %45, %30, %cst_28 {dimension_numbers = #tpu.dot_dimension_numbers<[1], [0], [0], [1], [0, 0, 1, 1], [], []>} : vector<8x8xbf16>, vector<8x8xbf16>, vector<8x8xf32> -> vector<8x8xf32>
    %c0_29 = arith.constant 0 : index
    %c0_30 = arith.constant 0 : index
    %47 = vector.load %arg28[%c0_29, %c0_30] : memref<8x32xf32, #tpu.memory_space<vmem>>, vector<8x8xf32>
    tpu.vector_store %arg28[%c0_29, %c0_30], %46 {strides = array<i32>} : memref<8x32xf32, #tpu.memory_space<vmem>>, vector<8x8xf32>,
    %48 = vector.extract_strided_slice %20 {offsets = [0, 8], sizes = [8, 8], strides = [1, 1]} : vector<8x32xbf16> to vector<8x8xbf16>
    %49 = vector.extract_strided_slice %21 {offsets = [0, 8], sizes = [8, 8], strides = [1, 1]} : vector<8x64xbf16> to vector<8x8xbf16>
    %50 = vector.extract_strided_slice %21 {offsets = [0, 40], sizes = [8, 8], strides = [1, 1]} : vector<8x64xbf16> to vector<8x8xbf16>
    %cst_31 = arith.constant dense<0.000000e+00> : vector<8x8xf32>
    %51 = tpu.matmul %48, %49, %cst_31 {dimension_numbers = #tpu.dot_dimension_numbers<[1], [1], [0], [0], [0, 0, 1, 0], [], []>} : vector<8x8xbf16>, vector<8x8xbf16>, vector<8x8xf32> -> vector<8x8xf32>
    %cst_32 = arith.constant 0.353553385 : f32
    %52 = vector.broadcast %cst_32 : f32 to vector<8x8xf32>
    %53 = arith.mulf %51, %52 : vector<8x8xf32>
    %54 = arith.addf %53, %27 : vector<8x8xf32>
    %cst_33 = arith.constant dense<0xFF800000> : vector<8xf32>
    %55 = vector.multi_reduction <maximumf>, %54, %cst_33 [1] : vector<8x8xf32> to vector<8xf32>
    %56 = vector.shape_cast %55 : vector<8xf32> to vector<8x1xf32>
    %57 = vector.broadcast %56 : vector<8x1xf32> to vector<8x8xf32>
    %58 = arith.subf %54, %57 : vector<8x8xf32>
    %59 = math.exp %58 : vector<8x8xf32>
    %cst_34 = arith.constant dense<0.000000e+00> : vector<8xf32>
    %60 = vector.multi_reduction <add>, %59, %cst_34 [1] : vector<8x8xf32> to vector<8xf32>
    %61 = vector.shape_cast %60 : vector<8xf32> to vector<8x1xf32>
    %62 = tpu.reciprocal %61 {approx = true} : vector<8x1xf32> -> vector<8x1xf32>
    %63 = vector.broadcast %62 : vector<8x1xf32> to vector<8x8xf32>
    %64 = arith.mulf %59, %63 : vector<8x8xf32>
    %65 = arith.truncf %64 : vector<8x8xf32> to vector<8x8xbf16>
    %cst_35 = arith.constant dense<0.000000e+00> : vector<8x8xf32>
    %66 = tpu.matmul %65, %50, %cst_35 {dimension_numbers = #tpu.dot_dimension_numbers<[1], [0], [0], [1], [0, 0, 1, 1], [], []>} : vector<8x8xbf16>, vector<8x8xbf16>, vector<8x8xf32> -> vector<8x8xf32>
    %c0_36 = arith.constant 0 : index
    %c8 = arith.constant 8 : index
    %67 = vector.load %arg28[%c0_36, %c8] : memref<8x32xf32, #tpu.memory_space<vmem>>, vector<8x8xf32>
    tpu.vector_store %arg28[%c0_36, %c8], %66 {strides = array<i32>} : memref<8x32xf32, #tpu.memory_space<vmem>>, vector<8x8xf32>,
    %68 = vector.extract_strided_slice %20 {offsets = [0, 16], sizes = [8, 8], strides = [1, 1]} : vector<8x32xbf16> to vector<8x8xbf16>
    %69 = vector.extract_strided_slice %21 {offsets = [0, 16], sizes = [8, 8], strides = [1, 1]} : vector<8x64xbf16> to vector<8x8xbf16>
    %70 = vector.extract_strided_slice %21 {offsets = [0, 48], sizes = [8, 8], strides = [1, 1]} : vector<8x64xbf16> to vector<8x8xbf16>
    %cst_37 = arith.constant dense<0.000000e+00> : vector<8x8xf32>
    %71 = tpu.matmul %68, %69, %cst_37 {dimension_numbers = #tpu.dot_dimension_numbers<[1], [1], [0], [0], [0, 0, 1, 0], [], []>} : vector<8x8xbf16>, vector<8x8xbf16>, vector<8x8xf32> -> vector<8x8xf32>
    %cst_38 = arith.constant 0.353553385 : f32
    %72 = vector.broadcast %cst_38 : f32 to vector<8x8xf32>
    %73 = arith.mulf %71, %72 : vector<8x8xf32>
    %74 = arith.addf %73, %27 : vector<8x8xf32>
    %cst_39 = arith.constant dense<0xFF800000> : vector<8xf32>
    %75 = vector.multi_reduction <maximumf>, %74, %cst_39 [1] : vector<8x8xf32> to vector<8xf32>
    %76 = vector.shape_cast %75 : vector<8xf32> to vector<8x1xf32>
    %77 = vector.broadcast %76 : vector<8x1xf32> to vector<8x8xf32>
    %78 = arith.subf %74, %77 : vector<8x8xf32>
    %79 = math.exp %78 : vector<8x8xf32>
    %cst_40 = arith.constant dense<0.000000e+00> : vector<8xf32>
    %80 = vector.multi_reduction <add>, %79, %cst_40 [1] : vector<8x8xf32> to vector<8xf32>
    %81 = vector.shape_cast %80 : vector<8xf32> to vector<8x1xf32>
    %82 = tpu.reciprocal %81 {approx = true} : vector<8x1xf32> -> vector<8x1xf32>
    %83 = vector.broadcast %82 : vector<8x1xf32> to vector<8x8xf32>
    %84 = arith.mulf %79, %83 : vector<8x8xf32>
    %85 = arith.truncf %84 : vector<8x8xf32> to vector<8x8xbf16>
    %cst_41 = arith.constant dense<0.000000e+00> : vector<8x8xf32>
    %86 = tpu.matmul %85, %70, %cst_41 {dimension_numbers = #tpu.dot_dimension_numbers<[1], [0], [0], [1], [0, 0, 1, 1], [], []>} : vector<8x8xbf16>, vector<8x8xbf16>, vector<8x8xf32> -> vector<8x8xf32>
    %c0_42 = arith.constant 0 : index
    %c16 = arith.constant 16 : index
    %87 = vector.load %arg28[%c0_42, %c16] : memref<8x32xf32, #tpu.memory_space<vmem>>, vector<8x8xf32>
    tpu.vector_store %arg28[%c0_42, %c16], %86 {strides = array<i32>} : memref<8x32xf32, #tpu.memory_space<vmem>>, vector<8x8xf32>,
    %88 = vector.extract_strided_slice %20 {offsets = [0, 24], sizes = [8, 8], strides = [1, 1]} : vector<8x32xbf16> to vector<8x8xbf16>
    %89 = vector.extract_strided_slice %21 {offsets = [0, 24], sizes = [8, 8], strides = [1, 1]} : vector<8x64xbf16> to vector<8x8xbf16>
    %90 = vector.extract_strided_slice %21 {offsets = [0, 56], sizes = [8, 8], strides = [1, 1]} : vector<8x64xbf16> to vector<8x8xbf16>
    %cst_43 = arith.constant dense<0.000000e+00> : vector<8x8xf32>
    %91 = tpu.matmul %88, %89, %cst_43 {dimension_numbers = #tpu.dot_dimension_numbers<[1], [1], [0], [0], [0, 0, 1, 0], [], []>} : vector<8x8xbf16>, vector<8x8xbf16>, vector<8x8xf32> -> vector<8x8xf32>
    %cst_44 = arith.constant 0.353553385 : f32
    %92 = vector.broadcast %cst_44 : f32 to vector<8x8xf32>
    %93 = arith.mulf %91, %92 : vector<8x8xf32>
    %94 = arith.addf %93, %27 : vector<8x8xf32>
    %cst_45 = arith.constant dense<0xFF800000> : vector<8xf32>
    %95 = vector.multi_reduction <maximumf>, %94, %cst_45 [1] : vector<8x8xf32> to vector<8xf32>
    %96 = vector.shape_cast %95 : vector<8xf32> to vector<8x1xf32>
    %97 = vector.broadcast %96 : vector<8x1xf32> to vector<8x8xf32>
    %98 = arith.subf %94, %97 : vector<8x8xf32>
    %99 = math.exp %98 : vector<8x8xf32>
    %cst_46 = arith.constant dense<0.000000e+00> : vector<8xf32>
    %100 = vector.multi_reduction <add>, %99, %cst_46 [1] : vector<8x8xf32> to vector<8xf32>
    %101 = vector.shape_cast %100 : vector<8xf32> to vector<8x1xf32>
    %102 = tpu.reciprocal %101 {approx = true} : vector<8x1xf32> -> vector<8x1xf32>
    %103 = vector.broadcast %102 : vector<8x1xf32> to vector<8x8xf32>
    %104 = arith.mulf %99, %103 : vector<8x8xf32>
    %105 = arith.truncf %104 : vector<8x8xf32> to vector<8x8xbf16>
    %cst_47 = arith.constant dense<0.000000e+00> : vector<8x8xf32>
    %106 = tpu.matmul %105, %90, %cst_47 {dimension_numbers = #tpu.dot_dimension_numbers<[1], [0], [0], [1], [0, 0, 1, 1], [], []>} : vector<8x8xbf16>, vector<8x8xbf16>, vector<8x8xf32> -> vector<8x8xf32>
    %c0_48 = arith.constant 0 : index
    %c24 = arith.constant 24 : index
    %107 = vector.load %arg28[%c0_48, %c24] : memref<8x32xf32, #tpu.memory_space<vmem>>, vector<8x8xf32>
    tpu.vector_store %arg28[%c0_48, %c24], %106 {strides = array<i32>} : memref<8x32xf32, #tpu.memory_space<vmem>>, vector<8x8xf32>,
    %c0_49 = arith.constant 0 : index
    %c0_50 = arith.constant 0 : index
    %108 = vector.load %arg28[%c0_49, %c0_50] : memref<8x32xf32, #tpu.memory_space<vmem>>, vector<8x32xf32>
    %109 = arith.truncf %108 : vector<8x32xf32> to vector<8x32xbf16>
    %cst_51 = arith.constant dense<0.000000e+00> : vector<8x32xf32>
    %110 = tpu.matmul %109, %8, %cst_51 {dimension_numbers = #tpu.dot_dimension_numbers<[1], [0], [0], [1], [0, 0, 1, 1], [], []>} : vector<8x32xbf16>, vector<32x32xbf16>, vector<8x32xf32> -> vector<8x32xf32>
    %111 = vector.broadcast %9 : vector<1x32xf32> to vector<8x32xf32>
    %112 = arith.addf %110, %111 : vector<8x32xf32>
    %113 = arith.addf %1, %112 : vector<8x32xf32>
    %cst_52 = arith.constant dense<0.000000e+00> : vector<8xf32>
    %114 = vector.multi_reduction <add>, %113, %cst_52 [1] : vector<8x32xf32> to vector<8xf32>
    %115 = vector.shape_cast %114 : vector<8xf32> to vector<8x1xf32>
    %cst_53 = arith.constant 3.200000e+01 : f32
    %116 = vector.broadcast %cst_53 : f32 to vector<8x1xf32>
    %117 = arith.divf %115, %116 : vector<8x1xf32>
    %118 = vector.broadcast %117 : vector<8x1xf32> to vector<8x32xf32>
    %119 = arith.subf %113, %118 : vector<8x32xf32>
    %120 = arith.mulf %119, %119 : vector<8x32xf32>
    %cst_54 = arith.constant dense<0.000000e+00> : vector<8xf32>
    %121 = vector.multi_reduction <add>, %120, %cst_54 [1] : vector<8x32xf32> to vector<8xf32>
    %122 = vector.shape_cast %121 : vector<8xf32> to vector<8x1xf32>
    %cst_55 = arith.constant 3.200000e+01 : f32
    %123 = vector.broadcast %cst_55 : f32 to vector<8x1xf32>
    %124 = arith.divf %122, %123 : vector<8x1xf32>
    %125 = vector.broadcast %117 : vector<8x1xf32> to vector<8x32xf32>
    %126 = arith.subf %113, %125 : vector<8x32xf32>
    %cst_56 = arith.constant 9.99999974E-6 : f32
    %127 = vector.broadcast %cst_56 : f32 to vector<8x1xf32>
    %128 = arith.addf %124, %127 : vector<8x1xf32>
    %129 = math.rsqrt %128 : vector<8x1xf32>
    %130 = vector.broadcast %129 : vector<8x1xf32> to vector<8x32xf32>
    %131 = arith.mulf %126, %130 : vector<8x32xf32>
    %132 = vector.broadcast %10 : vector<1x32xf32> to vector<8x32xf32>
    %133 = arith.mulf %131, %132 : vector<8x32xf32>
    %134 = vector.broadcast %11 : vector<1x32xf32> to vector<8x32xf32>
    %135 = arith.addf %133, %134 : vector<8x32xf32>
    %c0_57 = arith.constant 0 : index
    %c0_58 = arith.constant 0 : index
    %136 = vector.load %arg11[%c0_57, %c0_58] : memref<32x32xbf16, #tpu.memory_space<vmem>>, vector<32x32xbf16>
    %c0_59 = arith.constant 0 : index
    %c0_60 = arith.constant 0 : index
    %137 = vector.load %arg12[%c0_59, %c0_60] : memref<1x32xf32, #tpu.memory_space<vmem>>, vector<1x32xf32>
    %c0_61 = arith.constant 0 : index
    %c0_62 = arith.constant 0 : index
    %138 = vector.load %arg13[%c0_61, %c0_62] : memref<32x64xbf16, #tpu.memory_space<vmem>>, vector<32x64xbf16>
    %c0_63 = arith.constant 0 : index
    %c0_64 = arith.constant 0 : index
    %139 = vector.load %arg14[%c0_63, %c0_64] : memref<1x64xf32, #tpu.memory_space<vmem>>, vector<1x64xf32>
    %c0_65 = arith.constant 0 : index
    %c0_66 = arith.constant 0 : index
    %140 = vector.load %arg15[%c0_65, %c0_66] : memref<32x32xbf16, #tpu.memory_space<vmem>>, vector<32x32xbf16>
    %c0_67 = arith.constant 0 : index
    %c0_68 = arith.constant 0 : index
    %141 = vector.load %arg16[%c0_67, %c0_68] : memref<1x32xf32, #tpu.memory_space<vmem>>, vector<1x32xf32>
    %c0_69 = arith.constant 0 : index
    %c0_70 = arith.constant 0 : index
    %142 = vector.load %arg17[%c0_69, %c0_70] : memref<1x32xf32, #tpu.memory_space<vmem>>, vector<1x32xf32>
    %c0_71 = arith.constant 0 : index
    %c0_72 = arith.constant 0 : index
    %143 = vector.load %arg18[%c0_71, %c0_72] : memref<1x32xf32, #tpu.memory_space<vmem>>, vector<1x32xf32>
    %144 = arith.truncf %135 : vector<8x32xf32> to vector<8x32xbf16>
    %cst_73 = arith.constant dense<0.000000e+00> : vector<8x32xf32>
    %145 = tpu.matmul %144, %136, %cst_73 {dimension_numbers = #tpu.dot_dimension_numbers<[1], [0], [0], [1], [0, 0, 1, 1], [], []>} : vector<8x32xbf16>, vector<32x32xbf16>, vector<8x32xf32> -> vector<8x32xf32>
    %146 = vector.broadcast %137 : vector<1x32xf32> to vector<8x32xf32>
    %147 = arith.addf %145, %146 : vector<8x32xf32>
    %148 = arith.truncf %3 : vector<8x32xf32> to vector<8x32xbf16>
    %cst_74 = arith.constant dense<0.000000e+00> : vector<8x64xf32>
    %149 = tpu.matmul %148, %138, %cst_74 {dimension_numbers = #tpu.dot_dimension_numbers<[1], [0], [0], [1], [0, 0, 1, 1], [], []>} : vector<8x32xbf16>, vector<32x64xbf16>, vector<8x64xf32> -> vector<8x64xf32>
    %150 = vector.broadcast %139 : vector<1x64xf32> to vector<8x64xf32>
    %151 = arith.addf %149, %150 : vector<8x64xf32>
    %152 = arith.truncf %147 : vector<8x32xf32> to vector<8x32xbf16>
    %153 = arith.truncf %151 : vector<8x64xf32> to vector<8x64xbf16>
    %154 = vector.extract_strided_slice %152 {offsets = [0, 0], sizes = [8, 8], strides = [1, 1]} : vector<8x32xbf16> to vector<8x8xbf16>
    %155 = vector.extract_strided_slice %153 {offsets = [0, 0], sizes = [8, 8], strides = [1, 1]} : vector<8x64xbf16> to vector<8x8xbf16>
    %156 = vector.extract_strided_slice %153 {offsets = [0, 32], sizes = [8, 8], strides = [1, 1]} : vector<8x64xbf16> to vector<8x8xbf16>
    %cst_75 = arith.constant dense<0.000000e+00> : vector<8x8xf32>
    %157 = tpu.matmul %154, %155, %cst_75 {dimension_numbers = #tpu.dot_dimension_numbers<[1], [1], [0], [0], [0, 0, 1, 0], [], []>} : vector<8x8xbf16>, vector<8x8xbf16>, vector<8x8xf32> -> vector<8x8xf32>
    %cst_76 = arith.constant 0.353553385 : f32
    %158 = vector.broadcast %cst_76 : f32 to vector<8x8xf32>
    %159 = arith.mulf %157, %158 : vector<8x8xf32>
    %cst_77 = arith.constant dense<0xFF800000> : vector<8xf32>
    %160 = vector.multi_reduction <maximumf>, %159, %cst_77 [1] : vector<8x8xf32> to vector<8xf32>
    %161 = vector.shape_cast %160 : vector<8xf32> to vector<8x1xf32>
    %162 = vector.broadcast %161 : vector<8x1xf32> to vector<8x8xf32>
    %163 = arith.subf %159, %162 : vector<8x8xf32>
    %164 = math.exp %163 : vector<8x8xf32>
    %cst_78 = arith.constant dense<0.000000e+00> : vector<8xf32>
    %165 = vector.multi_reduction <add>, %164, %cst_78 [1] : vector<8x8xf32> to vector<8xf32>
    %166 = vector.shape_cast %165 : vector<8xf32> to vector<8x1xf32>
    %167 = tpu.reciprocal %166 {approx = true} : vector<8x1xf32> -> vector<8x1xf32>
    %168 = vector.broadcast %167 : vector<8x1xf32> to vector<8x8xf32>
    %169 = arith.mulf %164, %168 : vector<8x8xf32>
    %170 = arith.truncf %169 : vector<8x8xf32> to vector<8x8xbf16>
    %cst_79 = arith.constant dense<0.000000e+00> : vector<8x8xf32>
    %171 = tpu.matmul %170, %156, %cst_79 {dimension_numbers = #tpu.dot_dimension_numbers<[1], [0], [0], [1], [0, 0, 1, 1], [], []>} : vector<8x8xbf16>, vector<8x8xbf16>, vector<8x8xf32> -> vector<8x8xf32>
    %c0_80 = arith.constant 0 : index
    %c0_81 = arith.constant 0 : index
    %172 = vector.load %arg28[%c0_80, %c0_81] : memref<8x32xf32, #tpu.memory_space<vmem>>, vector<8x8xf32>
    tpu.vector_store %arg28[%c0_80, %c0_81], %171 {strides = array<i32>} : memref<8x32xf32, #tpu.memory_space<vmem>>, vector<8x8xf32>,
    %173 = vector.extract_strided_slice %152 {offsets = [0, 8], sizes = [8, 8], strides = [1, 1]} : vector<8x32xbf16> to vector<8x8xbf16>
    %174 = vector.extract_strided_slice %153 {offsets = [0, 8], sizes = [8, 8], strides = [1, 1]} : vector<8x64xbf16> to vector<8x8xbf16>
    %175 = vector.extract_strided_slice %153 {offsets = [0, 40], sizes = [8, 8], strides = [1, 1]} : vector<8x64xbf16> to vector<8x8xbf16>
    %cst_82 = arith.constant dense<0.000000e+00> : vector<8x8xf32>
    %176 = tpu.matmul %173, %174, %cst_82 {dimension_numbers = #tpu.dot_dimension_numbers<[1], [1], [0], [0], [0, 0, 1, 0], [], []>} : vector<8x8xbf16>, vector<8x8xbf16>, vector<8x8xf32> -> vector<8x8xf32>
    %cst_83 = arith.constant 0.353553385 : f32
    %177 = vector.broadcast %cst_83 : f32 to vector<8x8xf32>
    %178 = arith.mulf %176, %177 : vector<8x8xf32>
    %cst_84 = arith.constant dense<0xFF800000> : vector<8xf32>
    %179 = vector.multi_reduction <maximumf>, %178, %cst_84 [1] : vector<8x8xf32> to vector<8xf32>
    %180 = vector.shape_cast %179 : vector<8xf32> to vector<8x1xf32>
    %181 = vector.broadcast %180 : vector<8x1xf32> to vector<8x8xf32>
    %182 = arith.subf %178, %181 : vector<8x8xf32>
    %183 = math.exp %182 : vector<8x8xf32>
    %cst_85 = arith.constant dense<0.000000e+00> : vector<8xf32>
    %184 = vector.multi_reduction <add>, %183, %cst_85 [1] : vector<8x8xf32> to vector<8xf32>
    %185 = vector.shape_cast %184 : vector<8xf32> to vector<8x1xf32>
    %186 = tpu.reciprocal %185 {approx = true} : vector<8x1xf32> -> vector<8x1xf32>
    %187 = vector.broadcast %186 : vector<8x1xf32> to vector<8x8xf32>
    %188 = arith.mulf %183, %187 : vector<8x8xf32>
    %189 = arith.truncf %188 : vector<8x8xf32> to vector<8x8xbf16>
    %cst_86 = arith.constant dense<0.000000e+00> : vector<8x8xf32>
    %190 = tpu.matmul %189, %175, %cst_86 {dimension_numbers = #tpu.dot_dimension_numbers<[1], [0], [0], [1], [0, 0, 1, 1], [], []>} : vector<8x8xbf16>, vector<8x8xbf16>, vector<8x8xf32> -> vector<8x8xf32>
    %c0_87 = arith.constant 0 : index
    %c8_88 = arith.constant 8 : index
    %191 = vector.load %arg28[%c0_87, %c8_88] : memref<8x32xf32, #tpu.memory_space<vmem>>, vector<8x8xf32>
    tpu.vector_store %arg28[%c0_87, %c8_88], %190 {strides = array<i32>} : memref<8x32xf32, #tpu.memory_space<vmem>>, vector<8x8xf32>,
    %192 = vector.extract_strided_slice %152 {offsets = [0, 16], sizes = [8, 8], strides = [1, 1]} : vector<8x32xbf16> to vector<8x8xbf16>
    %193 = vector.extract_strided_slice %153 {offsets = [0, 16], sizes = [8, 8], strides = [1, 1]} : vector<8x64xbf16> to vector<8x8xbf16>
    %194 = vector.extract_strided_slice %153 {offsets = [0, 48], sizes = [8, 8], strides = [1, 1]} : vector<8x64xbf16> to vector<8x8xbf16>
    %cst_89 = arith.constant dense<0.000000e+00> : vector<8x8xf32>
    %195 = tpu.matmul %192, %193, %cst_89 {dimension_numbers = #tpu.dot_dimension_numbers<[1], [1], [0], [0], [0, 0, 1, 0], [], []>} : vector<8x8xbf16>, vector<8x8xbf16>, vector<8x8xf32> -> vector<8x8xf32>
    %cst_90 = arith.constant 0.353553385 : f32
    %196 = vector.broadcast %cst_90 : f32 to vector<8x8xf32>
    %197 = arith.mulf %195, %196 : vector<8x8xf32>
    %cst_91 = arith.constant dense<0xFF800000> : vector<8xf32>
    %198 = vector.multi_reduction <maximumf>, %197, %cst_91 [1] : vector<8x8xf32> to vector<8xf32>
    %199 = vector.shape_cast %198 : vector<8xf32> to vector<8x1xf32>
    %200 = vector.broadcast %199 : vector<8x1xf32> to vector<8x8xf32>
    %201 = arith.subf %197, %200 : vector<8x8xf32>
    %202 = math.exp %201 : vector<8x8xf32>
    %cst_92 = arith.constant dense<0.000000e+00> : vector<8xf32>
    %203 = vector.multi_reduction <add>, %202, %cst_92 [1] : vector<8x8xf32> to vector<8xf32>
    %204 = vector.shape_cast %203 : vector<8xf32> to vector<8x1xf32>
    %205 = tpu.reciprocal %204 {approx = true} : vector<8x1xf32> -> vector<8x1xf32>
    %206 = vector.broadcast %205 : vector<8x1xf32> to vector<8x8xf32>
    %207 = arith.mulf %202, %206 : vector<8x8xf32>
    %208 = arith.truncf %207 : vector<8x8xf32> to vector<8x8xbf16>
    %cst_93 = arith.constant dense<0.000000e+00> : vector<8x8xf32>
    %209 = tpu.matmul %208, %194, %cst_93 {dimension_numbers = #tpu.dot_dimension_numbers<[1], [0], [0], [1], [0, 0, 1, 1], [], []>} : vector<8x8xbf16>, vector<8x8xbf16>, vector<8x8xf32> -> vector<8x8xf32>
    %c0_94 = arith.constant 0 : index
    %c16_95 = arith.constant 16 : index
    %210 = vector.load %arg28[%c0_94, %c16_95] : memref<8x32xf32, #tpu.memory_space<vmem>>, vector<8x8xf32>
    tpu.vector_store %arg28[%c0_94, %c16_95], %209 {strides = array<i32>} : memref<8x32xf32, #tpu.memory_space<vmem>>, vector<8x8xf32>,
    %211 = vector.extract_strided_slice %152 {offsets = [0, 24], sizes = [8, 8], strides = [1, 1]} : vector<8x32xbf16> to vector<8x8xbf16>
    %212 = vector.extract_strided_slice %153 {offsets = [0, 24], sizes = [8, 8], strides = [1, 1]} : vector<8x64xbf16> to vector<8x8xbf16>
    %213 = vector.extract_strided_slice %153 {offsets = [0, 56], sizes = [8, 8], strides = [1, 1]} : vector<8x64xbf16> to vector<8x8xbf16>
    %cst_96 = arith.constant dense<0.000000e+00> : vector<8x8xf32>
    %214 = tpu.matmul %211, %212, %cst_96 {dimension_numbers = #tpu.dot_dimension_numbers<[1], [1], [0], [0], [0, 0, 1, 0], [], []>} : vector<8x8xbf16>, vector<8x8xbf16>, vector<8x8xf32> -> vector<8x8xf32>
    %cst_97 = arith.constant 0.353553385 : f32
    %215 = vector.broadcast %cst_97 : f32 to vector<8x8xf32>
    %216 = arith.mulf %214, %215 : vector<8x8xf32>
    %cst_98 = arith.constant dense<0xFF800000> : vector<8xf32>
    %217 = vector.multi_reduction <maximumf>, %216, %cst_98 [1] : vector<8x8xf32> to vector<8xf32>
    %218 = vector.shape_cast %217 : vector<8xf32> to vector<8x1xf32>
    %219 = vector.broadcast %218 : vector<8x1xf32> to vector<8x8xf32>
    %220 = arith.subf %216, %219 : vector<8x8xf32>
    %221 = math.exp %220 : vector<8x8xf32>
    %cst_99 = arith.constant dense<0.000000e+00> : vector<8xf32>
    %222 = vector.multi_reduction <add>, %221, %cst_99 [1] : vector<8x8xf32> to vector<8xf32>
    %223 = vector.shape_cast %222 : vector<8xf32> to vector<8x1xf32>
    %224 = tpu.reciprocal %223 {approx = true} : vector<8x1xf32> -> vector<8x1xf32>
    %225 = vector.broadcast %224 : vector<8x1xf32> to vector<8x8xf32>
    %226 = arith.mulf %221, %225 : vector<8x8xf32>
    %227 = arith.truncf %226 : vector<8x8xf32> to vector<8x8xbf16>
    %cst_100 = arith.constant dense<0.000000e+00> : vector<8x8xf32>
    %228 = tpu.matmul %227, %213, %cst_100 {dimension_numbers = #tpu.dot_dimension_numbers<[1], [0], [0], [1], [0, 0, 1, 1], [], []>} : vector<8x8xbf16>, vector<8x8xbf16>, vector<8x8xf32> -> vector<8x8xf32>
    %c0_101 = arith.constant 0 : index
    %c24_102 = arith.constant 24 : index
    %229 = vector.load %arg28[%c0_101, %c24_102] : memref<8x32xf32, #tpu.memory_space<vmem>>, vector<8x8xf32>
    tpu.vector_store %arg28[%c0_101, %c24_102], %228 {strides = array<i32>} : memref<8x32xf32, #tpu.memory_space<vmem>>, vector<8x8xf32>,
    %c0_103 = arith.constant 0 : index
    %c0_104 = arith.constant 0 : index
    %230 = vector.load %arg28[%c0_103, %c0_104] : memref<8x32xf32, #tpu.memory_space<vmem>>, vector<8x32xf32>
    %231 = arith.truncf %230 : vector<8x32xf32> to vector<8x32xbf16>
    %cst_105 = arith.constant dense<0.000000e+00> : vector<8x32xf32>
    %232 = tpu.matmul %231, %140, %cst_105 {dimension_numbers = #tpu.dot_dimension_numbers<[1], [0], [0], [1], [0, 0, 1, 1], [], []>} : vector<8x32xbf16>, vector<32x32xbf16>, vector<8x32xf32> -> vector<8x32xf32>
    %233 = vector.broadcast %141 : vector<1x32xf32> to vector<8x32xf32>
    %234 = arith.addf %232, %233 : vector<8x32xf32>
    %235 = arith.addf %135, %234 : vector<8x32xf32>
    %cst_106 = arith.constant dense<0.000000e+00> : vector<8xf32>
    %236 = vector.multi_reduction <add>, %235, %cst_106 [1] : vector<8x32xf32> to vector<8xf32>
    %237 = vector.shape_cast %236 : vector<8xf32> to vector<8x1xf32>
    %cst_107 = arith.constant 3.200000e+01 : f32
    %238 = vector.broadcast %cst_107 : f32 to vector<8x1xf32>
    %239 = arith.divf %237, %238 : vector<8x1xf32>
    %240 = vector.broadcast %239 : vector<8x1xf32> to vector<8x32xf32>
    %241 = arith.subf %235, %240 : vector<8x32xf32>
    %242 = arith.mulf %241, %241 : vector<8x32xf32>
    %cst_108 = arith.constant dense<0.000000e+00> : vector<8xf32>
    %243 = vector.multi_reduction <add>, %242, %cst_108 [1] : vector<8x32xf32> to vector<8xf32>
    %244 = vector.shape_cast %243 : vector<8xf32> to vector<8x1xf32>
    %cst_109 = arith.constant 3.200000e+01 : f32
    %245 = vector.broadcast %cst_109 : f32 to vector<8x1xf32>
    %246 = arith.divf %244, %245 : vector<8x1xf32>
    %247 = vector.broadcast %239 : vector<8x1xf32> to vector<8x32xf32>
    %248 = arith.subf %235, %247 : vector<8x32xf32>
    %cst_110 = arith.constant 9.99999974E-6 : f32
    %249 = vector.broadcast %cst_110 : f32 to vector<8x1xf32>
    %250 = arith.addf %246, %249 : vector<8x1xf32>
    %251 = math.rsqrt %250 : vector<8x1xf32>
    %252 = vector.broadcast %251 : vector<8x1xf32> to vector<8x32xf32>
    %253 = arith.mulf %248, %252 : vector<8x32xf32>
    %254 = vector.broadcast %142 : vector<1x32xf32> to vector<8x32xf32>
    %255 = arith.mulf %253, %254 : vector<8x32xf32>
    %256 = vector.broadcast %143 : vector<1x32xf32> to vector<8x32xf32>
    %257 = arith.addf %255, %256 : vector<8x32xf32>
    %c0_111 = arith.constant 0 : index
    %c0_112 = arith.constant 0 : index
    %258 = vector.load %arg19[%c0_111, %c0_112] : memref<32x64xbf16, #tpu.memory_space<vmem>>, vector<32x64xbf16>
    %c0_113 = arith.constant 0 : index
    %c0_114 = arith.constant 0 : index
    %259 = vector.load %arg20[%c0_113, %c0_114] : memref<1x64xf32, #tpu.memory_space<vmem>>, vector<1x64xf32>
    %c0_115 = arith.constant 0 : index
    %c0_116 = arith.constant 0 : index
    %260 = vector.load %arg21[%c0_115, %c0_116] : memref<64x32xbf16, #tpu.memory_space<vmem>>, vector<64x32xbf16>
    %c0_117 = arith.constant 0 : index
    %c0_118 = arith.constant 0 : index
    %261 = vector.load %arg22[%c0_117, %c0_118] : memref<1x32xf32, #tpu.memory_space<vmem>>, vector<1x32xf32>
    %c0_119 = arith.constant 0 : index
    %c0_120 = arith.constant 0 : index
    %262 = vector.load %arg23[%c0_119, %c0_120] : memref<1x32xf32, #tpu.memory_space<vmem>>, vector<1x32xf32>
    %c0_121 = arith.constant 0 : index
    %c0_122 = arith.constant 0 : index
    %263 = vector.load %arg24[%c0_121, %c0_122] : memref<1x32xf32, #tpu.memory_space<vmem>>, vector<1x32xf32>
    %264 = arith.truncf %257 : vector<8x32xf32> to vector<8x32xbf16>
    %cst_123 = arith.constant dense<0.000000e+00> : vector<8x64xf32>
    %265 = tpu.matmul %264, %258, %cst_123 {dimension_numbers = #tpu.dot_dimension_numbers<[1], [0], [0], [1], [0, 0, 1, 1], [], []>} : vector<8x32xbf16>, vector<32x64xbf16>, vector<8x64xf32> -> vector<8x64xf32>
    %266 = vector.broadcast %259 : vector<1x64xf32> to vector<8x64xf32>
    %267 = arith.addf %265, %266 : vector<8x64xf32>
    %cst_124 = arith.constant 0.000000e+00 : f32
    %268 = vector.broadcast %cst_124 : f32 to vector<8x64xf32>
    %269 = arith.maximumf %267, %268 : vector<8x64xf32>
    %270 = arith.truncf %269 : vector<8x64xf32> to vector<8x64xbf16>
    %cst_125 = arith.constant dense<0.000000e+00> : vector<8x32xf32>
    %271 = tpu.matmul %270, %260, %cst_125 {dimension_numbers = #tpu.dot_dimension_numbers<[1], [0], [0], [1], [0, 0, 1, 1], [], []>} : vector<8x64xbf16>, vector<64x32xbf16>, vector<8x32xf32> -> vector<8x32xf32>
    %272 = arith.addf %257, %271 : vector<8x32xf32>
    %273 = vector.broadcast %261 : vector<1x32xf32> to vector<8x32xf32>
    %274 = arith.addf %272, %273 : vector<8x32xf32>
    %cst_126 = arith.constant dense<0.000000e+00> : vector<8xf32>
    %275 = vector.multi_reduction <add>, %274, %cst_126 [1] : vector<8x32xf32> to vector<8xf32>
    %276 = vector.shape_cast %275 : vector<8xf32> to vector<8x1xf32>
    %cst_127 = arith.constant 3.200000e+01 : f32
    %277 = vector.broadcast %cst_127 : f32 to vector<8x1xf32>
    %278 = arith.divf %276, %277 : vector<8x1xf32>
    %279 = vector.broadcast %278 : vector<8x1xf32> to vector<8x32xf32>
    %280 = arith.subf %274, %279 : vector<8x32xf32>
    %281 = arith.mulf %280, %280 : vector<8x32xf32>
    %cst_128 = arith.constant dense<0.000000e+00> : vector<8xf32>
    %282 = vector.multi_reduction <add>, %281, %cst_128 [1] : vector<8x32xf32> to vector<8xf32>
    %283 = vector.shape_cast %282 : vector<8xf32> to vector<8x1xf32>
    %cst_129 = arith.constant 3.200000e+01 : f32
    %284 = vector.broadcast %cst_129 : f32 to vector<8x1xf32>
    %285 = arith.divf %283, %284 : vector<8x1xf32>
    %286 = vector.broadcast %278 : vector<8x1xf32> to vector<8x32xf32>
    %287 = arith.subf %274, %286 : vector<8x32xf32>
    %cst_130 = arith.constant 9.99999974E-6 : f32
    %288 = vector.broadcast %cst_130 : f32 to vector<8x1xf32>
    %289 = arith.addf %285, %288 : vector<8x1xf32>
    %290 = math.rsqrt %289 : vector<8x1xf32>
    %291 = vector.broadcast %290 : vector<8x1xf32> to vector<8x32xf32>
    %292 = arith.mulf %287, %291 : vector<8x32xf32>
    %293 = vector.broadcast %262 : vector<1x32xf32> to vector<8x32xf32>
    %294 = arith.mulf %292, %293 : vector<8x32xf32>
    %295 = vector.broadcast %263 : vector<1x32xf32> to vector<8x32xf32>
    %296 = arith.addf %294, %295 : vector<8x32xf32>
    %c0_131 = arith.constant 0 : index
    %c0_132 = arith.constant 0 : index
    %297 = vector.load %arg25[%c0_131, %c0_132] : memref<1x32xf32, #tpu.memory_space<vmem>>, vector<1x32xf32>
    %c0_133 = arith.constant 0 : index
    %c0_134 = arith.constant 0 : index
    %298 = vector.load %arg26[%c0_133, %c0_134] : memref<1x32xf32, #tpu.memory_space<vmem>>, vector<1x32xf32>
    %cst_135 = arith.constant dense<0.000000e+00> : vector<8xf32>
    %299 = vector.multi_reduction <add>, %296, %cst_135 [1] : vector<8x32xf32> to vector<8xf32>
    %300 = vector.shape_cast %299 : vector<8xf32> to vector<8x1xf32>
    %cst_136 = arith.constant 3.200000e+01 : f32
    %301 = vector.broadcast %cst_136 : f32 to vector<8x1xf32>
    %302 = arith.divf %300, %301 : vector<8x1xf32>
    %303 = vector.broadcast %302 : vector<8x1xf32> to vector<8x32xf32>
    %304 = arith.subf %296, %303 : vector<8x32xf32>
    %305 = arith.mulf %304, %304 : vector<8x32xf32>
    %cst_137 = arith.constant dense<0.000000e+00> : vector<8xf32>
    %306 = vector.multi_reduction <add>, %305, %cst_137 [1] : vector<8x32xf32> to vector<8xf32>
    %307 = vector.shape_cast %306 : vector<8xf32> to vector<8x1xf32>
    %cst_138 = arith.constant 3.200000e+01 : f32
    %308 = vector.broadcast %cst_138 : f32 to vector<8x1xf32>
    %309 = arith.divf %307, %308 : vector<8x1xf32>
    %310 = vector.broadcast %302 : vector<8x1xf32> to vector<8x32xf32>
    %311 = arith.subf %296, %310 : vector<8x32xf32>
    %cst_139 = arith.constant 9.99999974E-6 : f32
    %312 = vector.broadcast %cst_139 : f32 to vector<8x1xf32>
    %313 = arith.addf %309, %312 : vector<8x1xf32>
    %314 = math.rsqrt %313 : vector<8x1xf32>
    %315 = vector.broadcast %314 : vector<8x1xf32> to vector<8x32xf32>
    %316 = arith.mulf %311, %315 : vector<8x32xf32>
    %317 = vector.broadcast %297 : vector<1x32xf32> to vector<8x32xf32>
    %318 = arith.mulf %316, %317 : vector<8x32xf32>
    %319 = vector.broadcast %298 : vector<1x32xf32> to vector<8x32xf32>
    %320 = arith.addf %318, %319 : vector<8x32xf32>
    %c0_140 = arith.constant 0 : index
    %c0_141 = arith.constant 0 : index
    %c0_142 = arith.constant 0 : index
    %321 = vector.load %arg27[%c0_140, %c0_141, %c0_142] : memref<1x8x32xf32, #tpu.memory_space<vmem>>, vector<1x8x32xf32>
    %322 = vector.shape_cast %321 : vector<1x8x32xf32> to vector<8x32xf32>
    %323 = vector.shape_cast %320 : vector<8x32xf32> to vector<1x8x32xf32>
    tpu.vector_store %arg27[%c0_140, %c0_141, %c0_142], %323 {strides = array<i32>} : memref<1x8x32xf32, #tpu.memory_space<vmem>>, vector<1x8x32xf32>,
    return
  }
  func.func @transform_0(%arg0: i32) -> (i32, i32, i32) {
    %c0_i32 = arith.constant 0 : i32
    %c0_i32_0 = arith.constant 0 : i32
    %c0_i32_1 = arith.constant 0 : i32
    return %arg0, %c0_i32, %c0_i32_0 : i32, i32, i32
  }
  func.func @transform_1(%arg0: i32) -> (i32, i32, i32) {
    %c0_i32 = arith.constant 0 : i32
    %c0_i32_0 = arith.constant 0 : i32
    %c0_i32_1 = arith.constant 0 : i32
    return %arg0, %c0_i32, %c0_i32_0 : i32, i32, i32
  }
  func.func @transform_2(%arg0: i32) -> (i32, i32) {
    %c0_i32 = arith.constant 0 : i32
    %c0_i32_0 = arith.constant 0 : i32
    %c0_i32_1 = arith.constant 0 : i32
    return %c0_i32, %c0_i32_0 : i32, i32
  }
  func.func @transform_3(%arg0: i32) -> (i32, i32) {
    %c0_i32 = arith.constant 0 : i32
    %c0_i32_0 = arith.constant 0 : i32
    %c0_i32_1 = arith.constant 0 : i32
    return %c0_i32, %c0_i32_0 : i32, i32
  }
  func.func @transform_4(%arg0: i32) -> (i32, i32) {
    %c0_i32 = arith.constant 0 : i32
    %c0_i32_0 = arith.constant 0 : i32
    %c0_i32_1 = arith.constant 0 : i32
    return %c0_i32, %c0_i32_0 : i32, i32
  }
  func.func @transform_5(%arg0: i32) -> (i32, i32) {
    %c0_i32 = arith.constant 0 : i32
    %c0_i32_0 = arith.constant 0 : i32
    %c0_i32_1 = arith.constant 0 : i32
    return %c0_i32, %c0_i32_0 : i32, i32
  }
  func.func @transform_6(%arg0: i32) -> (i32, i32) {
    %c0_i32 = arith.constant 0 : i32
    %c0_i32_0 = arith.constant 0 : i32
    %c0_i32_1 = arith.constant 0 : i32
    return %c0_i32, %c0_i32_0 : i32, i32
  }
  func.func @transform_7(%arg0: i32) -> (i32, i32) {
    %c0_i32 = arith.constant 0 : i32
    %c0_i32_0 = arith.constant 0 : i32
    %c0_i32_1 = arith.constant 0 : i32
    return %c0_i32, %c0_i32_0 : i32, i32
  }
  func.func @transform_8(%arg0: i32) -> (i32, i32) {
    %c0_i32 = arith.constant 0 : i32
    %c0_i32_0 = arith.constant 0 : i32
    %c0_i32_1 = arith.constant 0 : i32
    return %c0_i32, %c0_i32_0 : i32, i32
  }
  func.func @transform_9(%arg0: i32) -> (i32, i32) {
    %c0_i32 = arith.constant 0 : i32
    %c0_i32_0 = arith.constant 0 : i32
    %c0_i32_1 = arith.constant 0 : i32
    return %c0_i32, %c0_i32_0 : i32, i32
  }
  func.func @transform_10(%arg0: i32) -> (i32, i32) {
    %c0_i32 = arith.constant 0 : i32
    %c0_i32_0 = arith.constant 0 : i32
    %c0_i32_1 = arith.constant 0 : i32
    return %c0_i32, %c0_i32_0 : i32, i32
  }
  func.func @transform_11(%arg0: i32) -> (i32, i32) {
    %c0_i32 = arith.constant 0 : i32
    %c0_i32_0 = arith.constant 0 : i32
    %c0_i32_1 = arith.constant 0 : i32
    return %c0_i32, %c0_i32_0 : i32, i32
  }
  func.func @transform_12(%arg0: i32) -> (i32, i32) {
    %c0_i32 = arith.constant 0 : i32
    %c0_i32_0 = arith.constant 0 : i32
    %c0_i32_1 = arith.constant 0 : i32
    return %c0_i32, %c0_i32_0 : i32, i32
  }
  func.func @transform_13(%arg0: i32) -> (i32, i32) {
    %c0_i32 = arith.constant 0 : i32
    %c0_i32_0 = arith.constant 0 : i32
    %c0_i32_1 = arith.constant 0 : i32
    return %c0_i32, %c0_i32_0 : i32, i32
  }
  func.func @transform_14(%arg0: i32) -> (i32, i32) {
    %c0_i32 = arith.constant 0 : i32
    %c0_i32_0 = arith.constant 0 : i32
    %c0_i32_1 = arith.constant 0 : i32
    return %c0_i32, %c0_i32_0 : i32, i32
  }
  func.func @transform_15(%arg0: i32) -> (i32, i32) {
    %c0_i32 = arith.constant 0 : i32
    %c0_i32_0 = arith.constant 0 : i32
    %c0_i32_1 = arith.constant 0 : i32
    return %c0_i32, %c0_i32_0 : i32, i32
  }
  func.func @transform_16(%arg0: i32) -> (i32, i32) {
    %c0_i32 = arith.constant 0 : i32
    %c0_i32_0 = arith.constant 0 : i32
    %c0_i32_1 = arith.constant 0 : i32
    return %c0_i32, %c0_i32_0 : i32, i32
  }
  func.func @transform_17(%arg0: i32) -> (i32, i32) {
    %c0_i32 = arith.constant 0 : i32
    %c0_i32_0 = arith.constant 0 : i32
    %c0_i32_1 = arith.constant 0 : i32
    return %c0_i32, %c0_i32_0 : i32, i32
  }
  func.func @transform_18(%arg0: i32) -> (i32, i32) {
    %c0_i32 = arith.constant 0 : i32
    %c0_i32_0 = arith.constant 0 : i32
    %c0_i32_1 = arith.constant 0 : i32
    return %c0_i32, %c0_i32_0 : i32, i32
  }
  func.func @transform_19(%arg0: i32) -> (i32, i32) {
    %c0_i32 = arith.constant 0 : i32
    %c0_i32_0 = arith.constant 0 : i32
    %c0_i32_1 = arith.constant 0 : i32
    return %c0_i32, %c0_i32_0 : i32, i32
  }
  func.func @transform_20(%arg0: i32) -> (i32, i32) {
    %c0_i32 = arith.constant 0 : i32
    %c0_i32_0 = arith.constant 0 : i32
    %c0_i32_1 = arith.constant 0 : i32
    return %c0_i32, %c0_i32_0 : i32, i32
  }
  func.func @transform_21(%arg0: i32) -> (i32, i32) {
    %c0_i32 = arith.constant 0 : i32
    %c0_i32_0 = arith.constant 0 : i32
    %c0_i32_1 = arith.constant 0 : i32
    return %c0_i32, %c0_i32_0 : i32, i32
  }
  func.func @transform_22(%arg0: i32) -> (i32, i32) {
    %c0_i32 = arith.constant 0 : i32
    %c0_i32_0 = arith.constant 0 : i32
    %c0_i32_1 = arith.constant 0 : i32
    return %c0_i32, %c0_i32_0 : i32, i32
  }
  func.func @transform_23(%arg0: i32) -> (i32, i32) {
    %c0_i32 = arith.constant 0 : i32
    %c0_i32_0 = arith.constant 0 : i32
    %c0_i32_1 = arith.constant 0 : i32
    return %c0_i32, %c0_i32_0 : i32, i32
  }
  func.func @transform_24(%arg0: i32) -> (i32, i32) {
    %c0_i32 = arith.constant 0 : i32
    %c0_i32_0 = arith.constant 0 : i32
    %c0_i32_1 = arith.constant 0 : i32
    return %c0_i32, %c0_i32_0 : i32, i32
  }
  func.func @transform_25(%arg0: i32) -> (i32, i32) {
    %c0_i32 = arith.constant 0 : i32
    %c0_i32_0 = arith.constant 0 : i32
    %c0_i32_1 = arith.constant 0 : i32
    return %c0_i32, %c0_i32_0 : i32, i32
  }
  func.func @transform_26(%arg0: i32) -> (i32, i32, i32) {
    %c0_i32 = arith.constant 0 : i32
    %c0_i32_0 = arith.constant 0 : i32
    %c0_i32_1 = arith.constant 0 : i32
    return %arg0, %c0_i32, %c0_i32_0 : i32, i32, i32
  }
}

module attributes {stable_mosaic.version = 11 : i64} {
  func.func @_encoder_layer_kernel(%arg0: i32, %arg1: memref<1x8x32xf32, #tpu.memory_space<vmem>>, %arg2: memref<32x32xbf16, #tpu.memory_space<vmem>>, %arg3: memref<1x32xf32, #tpu.memory_space<vmem>>, %arg4: memref<32x64xbf16, #tpu.memory_space<vmem>>, %arg5: memref<1x64xf32, #tpu.memory_space<vmem>>, %arg6: memref<32x32xbf16, #tpu.memory_space<vmem>>, %arg7: memref<1x32xf32, #tpu.memory_space<vmem>>, %arg8: memref<1x32xf32, #tpu.memory_space<vmem>>, %arg9: memref<1x32xf32, #tpu.memory_space<vmem>>, %arg10: memref<32x64xbf16, #tpu.memory_space<vmem>>, %arg11: memref<1x64xf32, #tpu.memory_space<vmem>>, %arg12: memref<64x32xbf16, #tpu.memory_space<vmem>>, %arg13: memref<1x32xf32, #tpu.memory_space<vmem>>, %arg14: memref<1x32xf32, #tpu.memory_space<vmem>>, %arg15: memref<1x32xf32, #tpu.memory_space<vmem>>, %arg16: memref<1x32xf32, #tpu.memory_space<vmem>>, %arg17: memref<1x32xf32, #tpu.memory_space<vmem>>, %arg18: memref<1x8x32xf32, #tpu.memory_space<vmem>>, %arg19: memref<8x32xf32, #tpu.memory_space<vmem>>) attributes {dimension_semantics = [#tpu.dimension_semantics<parallel>], iteration_bounds = array<i64: 2>, scalar_prefetch = 0 : i64, scratch_operands = 1 : i64, tpu.core_type = #tpu.core_type<tc>, window_params = [{transform_indices = @transform_0, window_bounds = array<i64: 1, 8, 32>}, {pipeline_mode = #tpu.pipeline_mode<synchronous>, transform_indices = @transform_1, window_bounds = array<i64: 32, 32>}, {pipeline_mode = #tpu.pipeline_mode<synchronous>, transform_indices = @transform_2, window_bounds = array<i64: 1, 32>}, {pipeline_mode = #tpu.pipeline_mode<synchronous>, transform_indices = @transform_3, window_bounds = array<i64: 32, 64>}, {pipeline_mode = #tpu.pipeline_mode<synchronous>, transform_indices = @transform_4, window_bounds = array<i64: 1, 64>}, {pipeline_mode = #tpu.pipeline_mode<synchronous>, transform_indices = @transform_5, window_bounds = array<i64: 32, 32>}, {pipeline_mode = #tpu.pipeline_mode<synchronous>, transform_indices = @transform_6, window_bounds = array<i64: 1, 32>}, {pipeline_mode = #tpu.pipeline_mode<synchronous>, transform_indices = @transform_7, window_bounds = array<i64: 1, 32>}, {pipeline_mode = #tpu.pipeline_mode<synchronous>, transform_indices = @transform_8, window_bounds = array<i64: 1, 32>}, {pipeline_mode = #tpu.pipeline_mode<synchronous>, transform_indices = @transform_9, window_bounds = array<i64: 32, 64>}, {pipeline_mode = #tpu.pipeline_mode<synchronous>, transform_indices = @transform_10, window_bounds = array<i64: 1, 64>}, {pipeline_mode = #tpu.pipeline_mode<synchronous>, transform_indices = @transform_11, window_bounds = array<i64: 64, 32>}, {pipeline_mode = #tpu.pipeline_mode<synchronous>, transform_indices = @transform_12, window_bounds = array<i64: 1, 32>}, {pipeline_mode = #tpu.pipeline_mode<synchronous>, transform_indices = @transform_13, window_bounds = array<i64: 1, 32>}, {pipeline_mode = #tpu.pipeline_mode<synchronous>, transform_indices = @transform_14, window_bounds = array<i64: 1, 32>}, {pipeline_mode = #tpu.pipeline_mode<synchronous>, transform_indices = @transform_15, window_bounds = array<i64: 1, 32>}, {pipeline_mode = #tpu.pipeline_mode<synchronous>, transform_indices = @transform_16, window_bounds = array<i64: 1, 32>}, {transform_indices = @transform_17, window_bounds = array<i64: 1, 8, 32>}]} {
    %c0 = arith.constant 0 : index
    %c0_0 = arith.constant 0 : index
    %c0_1 = arith.constant 0 : index
    %0 = vector.load %arg1[%c0, %c0_0, %c0_1] : memref<1x8x32xf32, #tpu.memory_space<vmem>>, vector<1x8x32xf32>
    %1 = vector.shape_cast %0 : vector<1x8x32xf32> to vector<8x32xf32>
    %c0_2 = arith.constant 0 : index
    %c0_3 = arith.constant 0 : index
    %2 = vector.load %arg2[%c0_2, %c0_3] : memref<32x32xbf16, #tpu.memory_space<vmem>>, vector<32x32xbf16>
    %c0_4 = arith.constant 0 : index
    %c0_5 = arith.constant 0 : index
    %3 = vector.load %arg3[%c0_4, %c0_5] : memref<1x32xf32, #tpu.memory_space<vmem>>, vector<1x32xf32>
    %c0_6 = arith.constant 0 : index
    %c0_7 = arith.constant 0 : index
    %4 = vector.load %arg4[%c0_6, %c0_7] : memref<32x64xbf16, #tpu.memory_space<vmem>>, vector<32x64xbf16>
    %c0_8 = arith.constant 0 : index
    %c0_9 = arith.constant 0 : index
    %5 = vector.load %arg5[%c0_8, %c0_9] : memref<1x64xf32, #tpu.memory_space<vmem>>, vector<1x64xf32>
    %c0_10 = arith.constant 0 : index
    %c0_11 = arith.constant 0 : index
    %6 = vector.load %arg6[%c0_10, %c0_11] : memref<32x32xbf16, #tpu.memory_space<vmem>>, vector<32x32xbf16>
    %c0_12 = arith.constant 0 : index
    %c0_13 = arith.constant 0 : index
    %7 = vector.load %arg7[%c0_12, %c0_13] : memref<1x32xf32, #tpu.memory_space<vmem>>, vector<1x32xf32>
    %c0_14 = arith.constant 0 : index
    %c0_15 = arith.constant 0 : index
    %8 = vector.load %arg8[%c0_14, %c0_15] : memref<1x32xf32, #tpu.memory_space<vmem>>, vector<1x32xf32>
    %c0_16 = arith.constant 0 : index
    %c0_17 = arith.constant 0 : index
    %9 = vector.load %arg9[%c0_16, %c0_17] : memref<1x32xf32, #tpu.memory_space<vmem>>, vector<1x32xf32>
    %10 = arith.truncf %1 : vector<8x32xf32> to vector<8x32xbf16>
    %cst = arith.constant dense<0.000000e+00> : vector<8x32xf32>
    %11 = tpu.matmul %10, %2, %cst {dimension_numbers = #tpu.dot_dimension_numbers<[1], [0], [0], [1], [0, 0, 1, 1], [], []>} : vector<8x32xbf16>, vector<32x32xbf16>, vector<8x32xf32> -> vector<8x32xf32>
    %12 = vector.broadcast %3 : vector<1x32xf32> to vector<8x32xf32>
    %13 = arith.addf %11, %12 : vector<8x32xf32>
    %14 = arith.truncf %1 : vector<8x32xf32> to vector<8x32xbf16>
    %cst_18 = arith.constant dense<0.000000e+00> : vector<8x64xf32>
    %15 = tpu.matmul %14, %4, %cst_18 {dimension_numbers = #tpu.dot_dimension_numbers<[1], [0], [0], [1], [0, 0, 1, 1], [], []>} : vector<8x32xbf16>, vector<32x64xbf16>, vector<8x64xf32> -> vector<8x64xf32>
    %16 = vector.broadcast %5 : vector<1x64xf32> to vector<8x64xf32>
    %17 = arith.addf %15, %16 : vector<8x64xf32>
    %18 = arith.truncf %13 : vector<8x32xf32> to vector<8x32xbf16>
    %19 = arith.truncf %17 : vector<8x64xf32> to vector<8x64xbf16>
    %20 = vector.extract_strided_slice %18 {offsets = [0, 0], sizes = [8, 8], strides = [1, 1]} : vector<8x32xbf16> to vector<8x8xbf16>
    %21 = vector.extract_strided_slice %19 {offsets = [0, 0], sizes = [8, 8], strides = [1, 1]} : vector<8x64xbf16> to vector<8x8xbf16>
    %22 = vector.extract_strided_slice %19 {offsets = [0, 32], sizes = [8, 8], strides = [1, 1]} : vector<8x64xbf16> to vector<8x8xbf16>
    %cst_19 = arith.constant dense<0.000000e+00> : vector<8x8xf32>
    %23 = tpu.matmul %20, %21, %cst_19 {dimension_numbers = #tpu.dot_dimension_numbers<[1], [1], [0], [0], [0, 0, 1, 0], [], []>} : vector<8x8xbf16>, vector<8x8xbf16>, vector<8x8xf32> -> vector<8x8xf32>
    %cst_20 = arith.constant 0.353553385 : f32
    %24 = vector.broadcast %cst_20 : f32 to vector<8x8xf32>
    %25 = arith.mulf %23, %24 : vector<8x8xf32>
    %cst_21 = arith.constant dense<0xFF800000> : vector<8xf32>
    %26 = vector.multi_reduction <maximumf>, %25, %cst_21 [1] : vector<8x8xf32> to vector<8xf32>
    %27 = vector.shape_cast %26 : vector<8xf32> to vector<8x1xf32>
    %28 = vector.broadcast %27 : vector<8x1xf32> to vector<8x8xf32>
    %29 = arith.subf %25, %28 : vector<8x8xf32>
    %30 = math.exp %29 : vector<8x8xf32>
    %cst_22 = arith.constant dense<0.000000e+00> : vector<8xf32>
    %31 = vector.multi_reduction <add>, %30, %cst_22 [1] : vector<8x8xf32> to vector<8xf32>
    %32 = vector.shape_cast %31 : vector<8xf32> to vector<8x1xf32>
    %33 = tpu.reciprocal %32 {approx = true} : vector<8x1xf32> -> vector<8x1xf32>
    %34 = vector.broadcast %33 : vector<8x1xf32> to vector<8x8xf32>
    %35 = arith.mulf %30, %34 : vector<8x8xf32>
    %36 = arith.truncf %35 : vector<8x8xf32> to vector<8x8xbf16>
    %cst_23 = arith.constant dense<0.000000e+00> : vector<8x8xf32>
    %37 = tpu.matmul %36, %22, %cst_23 {dimension_numbers = #tpu.dot_dimension_numbers<[1], [0], [0], [1], [0, 0, 1, 1], [], []>} : vector<8x8xbf16>, vector<8x8xbf16>, vector<8x8xf32> -> vector<8x8xf32>
    %c0_24 = arith.constant 0 : index
    %c0_25 = arith.constant 0 : index
    %38 = vector.load %arg19[%c0_24, %c0_25] : memref<8x32xf32, #tpu.memory_space<vmem>>, vector<8x8xf32>
    tpu.vector_store %arg19[%c0_24, %c0_25], %37 {strides = array<i32>} : memref<8x32xf32, #tpu.memory_space<vmem>>, vector<8x8xf32>,
    %39 = vector.extract_strided_slice %18 {offsets = [0, 8], sizes = [8, 8], strides = [1, 1]} : vector<8x32xbf16> to vector<8x8xbf16>
    %40 = vector.extract_strided_slice %19 {offsets = [0, 8], sizes = [8, 8], strides = [1, 1]} : vector<8x64xbf16> to vector<8x8xbf16>
    %41 = vector.extract_strided_slice %19 {offsets = [0, 40], sizes = [8, 8], strides = [1, 1]} : vector<8x64xbf16> to vector<8x8xbf16>
    %cst_26 = arith.constant dense<0.000000e+00> : vector<8x8xf32>
    %42 = tpu.matmul %39, %40, %cst_26 {dimension_numbers = #tpu.dot_dimension_numbers<[1], [1], [0], [0], [0, 0, 1, 0], [], []>} : vector<8x8xbf16>, vector<8x8xbf16>, vector<8x8xf32> -> vector<8x8xf32>
    %cst_27 = arith.constant 0.353553385 : f32
    %43 = vector.broadcast %cst_27 : f32 to vector<8x8xf32>
    %44 = arith.mulf %42, %43 : vector<8x8xf32>
    %cst_28 = arith.constant dense<0xFF800000> : vector<8xf32>
    %45 = vector.multi_reduction <maximumf>, %44, %cst_28 [1] : vector<8x8xf32> to vector<8xf32>
    %46 = vector.shape_cast %45 : vector<8xf32> to vector<8x1xf32>
    %47 = vector.broadcast %46 : vector<8x1xf32> to vector<8x8xf32>
    %48 = arith.subf %44, %47 : vector<8x8xf32>
    %49 = math.exp %48 : vector<8x8xf32>
    %cst_29 = arith.constant dense<0.000000e+00> : vector<8xf32>
    %50 = vector.multi_reduction <add>, %49, %cst_29 [1] : vector<8x8xf32> to vector<8xf32>
    %51 = vector.shape_cast %50 : vector<8xf32> to vector<8x1xf32>
    %52 = tpu.reciprocal %51 {approx = true} : vector<8x1xf32> -> vector<8x1xf32>
    %53 = vector.broadcast %52 : vector<8x1xf32> to vector<8x8xf32>
    %54 = arith.mulf %49, %53 : vector<8x8xf32>
    %55 = arith.truncf %54 : vector<8x8xf32> to vector<8x8xbf16>
    %cst_30 = arith.constant dense<0.000000e+00> : vector<8x8xf32>
    %56 = tpu.matmul %55, %41, %cst_30 {dimension_numbers = #tpu.dot_dimension_numbers<[1], [0], [0], [1], [0, 0, 1, 1], [], []>} : vector<8x8xbf16>, vector<8x8xbf16>, vector<8x8xf32> -> vector<8x8xf32>
    %c0_31 = arith.constant 0 : index
    %c8 = arith.constant 8 : index
    %57 = vector.load %arg19[%c0_31, %c8] : memref<8x32xf32, #tpu.memory_space<vmem>>, vector<8x8xf32>
    tpu.vector_store %arg19[%c0_31, %c8], %56 {strides = array<i32>} : memref<8x32xf32, #tpu.memory_space<vmem>>, vector<8x8xf32>,
    %58 = vector.extract_strided_slice %18 {offsets = [0, 16], sizes = [8, 8], strides = [1, 1]} : vector<8x32xbf16> to vector<8x8xbf16>
    %59 = vector.extract_strided_slice %19 {offsets = [0, 16], sizes = [8, 8], strides = [1, 1]} : vector<8x64xbf16> to vector<8x8xbf16>
    %60 = vector.extract_strided_slice %19 {offsets = [0, 48], sizes = [8, 8], strides = [1, 1]} : vector<8x64xbf16> to vector<8x8xbf16>
    %cst_32 = arith.constant dense<0.000000e+00> : vector<8x8xf32>
    %61 = tpu.matmul %58, %59, %cst_32 {dimension_numbers = #tpu.dot_dimension_numbers<[1], [1], [0], [0], [0, 0, 1, 0], [], []>} : vector<8x8xbf16>, vector<8x8xbf16>, vector<8x8xf32> -> vector<8x8xf32>
    %cst_33 = arith.constant 0.353553385 : f32
    %62 = vector.broadcast %cst_33 : f32 to vector<8x8xf32>
    %63 = arith.mulf %61, %62 : vector<8x8xf32>
    %cst_34 = arith.constant dense<0xFF800000> : vector<8xf32>
    %64 = vector.multi_reduction <maximumf>, %63, %cst_34 [1] : vector<8x8xf32> to vector<8xf32>
    %65 = vector.shape_cast %64 : vector<8xf32> to vector<8x1xf32>
    %66 = vector.broadcast %65 : vector<8x1xf32> to vector<8x8xf32>
    %67 = arith.subf %63, %66 : vector<8x8xf32>
    %68 = math.exp %67 : vector<8x8xf32>
    %cst_35 = arith.constant dense<0.000000e+00> : vector<8xf32>
    %69 = vector.multi_reduction <add>, %68, %cst_35 [1] : vector<8x8xf32> to vector<8xf32>
    %70 = vector.shape_cast %69 : vector<8xf32> to vector<8x1xf32>
    %71 = tpu.reciprocal %70 {approx = true} : vector<8x1xf32> -> vector<8x1xf32>
    %72 = vector.broadcast %71 : vector<8x1xf32> to vector<8x8xf32>
    %73 = arith.mulf %68, %72 : vector<8x8xf32>
    %74 = arith.truncf %73 : vector<8x8xf32> to vector<8x8xbf16>
    %cst_36 = arith.constant dense<0.000000e+00> : vector<8x8xf32>
    %75 = tpu.matmul %74, %60, %cst_36 {dimension_numbers = #tpu.dot_dimension_numbers<[1], [0], [0], [1], [0, 0, 1, 1], [], []>} : vector<8x8xbf16>, vector<8x8xbf16>, vector<8x8xf32> -> vector<8x8xf32>
    %c0_37 = arith.constant 0 : index
    %c16 = arith.constant 16 : index
    %76 = vector.load %arg19[%c0_37, %c16] : memref<8x32xf32, #tpu.memory_space<vmem>>, vector<8x8xf32>
    tpu.vector_store %arg19[%c0_37, %c16], %75 {strides = array<i32>} : memref<8x32xf32, #tpu.memory_space<vmem>>, vector<8x8xf32>,
    %77 = vector.extract_strided_slice %18 {offsets = [0, 24], sizes = [8, 8], strides = [1, 1]} : vector<8x32xbf16> to vector<8x8xbf16>
    %78 = vector.extract_strided_slice %19 {offsets = [0, 24], sizes = [8, 8], strides = [1, 1]} : vector<8x64xbf16> to vector<8x8xbf16>
    %79 = vector.extract_strided_slice %19 {offsets = [0, 56], sizes = [8, 8], strides = [1, 1]} : vector<8x64xbf16> to vector<8x8xbf16>
    %cst_38 = arith.constant dense<0.000000e+00> : vector<8x8xf32>
    %80 = tpu.matmul %77, %78, %cst_38 {dimension_numbers = #tpu.dot_dimension_numbers<[1], [1], [0], [0], [0, 0, 1, 0], [], []>} : vector<8x8xbf16>, vector<8x8xbf16>, vector<8x8xf32> -> vector<8x8xf32>
    %cst_39 = arith.constant 0.353553385 : f32
    %81 = vector.broadcast %cst_39 : f32 to vector<8x8xf32>
    %82 = arith.mulf %80, %81 : vector<8x8xf32>
    %cst_40 = arith.constant dense<0xFF800000> : vector<8xf32>
    %83 = vector.multi_reduction <maximumf>, %82, %cst_40 [1] : vector<8x8xf32> to vector<8xf32>
    %84 = vector.shape_cast %83 : vector<8xf32> to vector<8x1xf32>
    %85 = vector.broadcast %84 : vector<8x1xf32> to vector<8x8xf32>
    %86 = arith.subf %82, %85 : vector<8x8xf32>
    %87 = math.exp %86 : vector<8x8xf32>
    %cst_41 = arith.constant dense<0.000000e+00> : vector<8xf32>
    %88 = vector.multi_reduction <add>, %87, %cst_41 [1] : vector<8x8xf32> to vector<8xf32>
    %89 = vector.shape_cast %88 : vector<8xf32> to vector<8x1xf32>
    %90 = tpu.reciprocal %89 {approx = true} : vector<8x1xf32> -> vector<8x1xf32>
    %91 = vector.broadcast %90 : vector<8x1xf32> to vector<8x8xf32>
    %92 = arith.mulf %87, %91 : vector<8x8xf32>
    %93 = arith.truncf %92 : vector<8x8xf32> to vector<8x8xbf16>
    %cst_42 = arith.constant dense<0.000000e+00> : vector<8x8xf32>
    %94 = tpu.matmul %93, %79, %cst_42 {dimension_numbers = #tpu.dot_dimension_numbers<[1], [0], [0], [1], [0, 0, 1, 1], [], []>} : vector<8x8xbf16>, vector<8x8xbf16>, vector<8x8xf32> -> vector<8x8xf32>
    %c0_43 = arith.constant 0 : index
    %c24 = arith.constant 24 : index
    %95 = vector.load %arg19[%c0_43, %c24] : memref<8x32xf32, #tpu.memory_space<vmem>>, vector<8x8xf32>
    tpu.vector_store %arg19[%c0_43, %c24], %94 {strides = array<i32>} : memref<8x32xf32, #tpu.memory_space<vmem>>, vector<8x8xf32>,
    %c0_44 = arith.constant 0 : index
    %c0_45 = arith.constant 0 : index
    %96 = vector.load %arg19[%c0_44, %c0_45] : memref<8x32xf32, #tpu.memory_space<vmem>>, vector<8x32xf32>
    %97 = arith.truncf %96 : vector<8x32xf32> to vector<8x32xbf16>
    %cst_46 = arith.constant dense<0.000000e+00> : vector<8x32xf32>
    %98 = tpu.matmul %97, %6, %cst_46 {dimension_numbers = #tpu.dot_dimension_numbers<[1], [0], [0], [1], [0, 0, 1, 1], [], []>} : vector<8x32xbf16>, vector<32x32xbf16>, vector<8x32xf32> -> vector<8x32xf32>
    %99 = vector.broadcast %7 : vector<1x32xf32> to vector<8x32xf32>
    %100 = arith.addf %98, %99 : vector<8x32xf32>
    %101 = arith.addf %1, %100 : vector<8x32xf32>
    %cst_47 = arith.constant dense<0.000000e+00> : vector<8xf32>
    %102 = vector.multi_reduction <add>, %101, %cst_47 [1] : vector<8x32xf32> to vector<8xf32>
    %103 = vector.shape_cast %102 : vector<8xf32> to vector<8x1xf32>
    %cst_48 = arith.constant 3.200000e+01 : f32
    %104 = vector.broadcast %cst_48 : f32 to vector<8x1xf32>
    %105 = arith.divf %103, %104 : vector<8x1xf32>
    %106 = vector.broadcast %105 : vector<8x1xf32> to vector<8x32xf32>
    %107 = arith.subf %101, %106 : vector<8x32xf32>
    %108 = arith.mulf %107, %107 : vector<8x32xf32>
    %cst_49 = arith.constant dense<0.000000e+00> : vector<8xf32>
    %109 = vector.multi_reduction <add>, %108, %cst_49 [1] : vector<8x32xf32> to vector<8xf32>
    %110 = vector.shape_cast %109 : vector<8xf32> to vector<8x1xf32>
    %cst_50 = arith.constant 3.200000e+01 : f32
    %111 = vector.broadcast %cst_50 : f32 to vector<8x1xf32>
    %112 = arith.divf %110, %111 : vector<8x1xf32>
    %113 = vector.broadcast %105 : vector<8x1xf32> to vector<8x32xf32>
    %114 = arith.subf %101, %113 : vector<8x32xf32>
    %cst_51 = arith.constant 9.99999974E-6 : f32
    %115 = vector.broadcast %cst_51 : f32 to vector<8x1xf32>
    %116 = arith.addf %112, %115 : vector<8x1xf32>
    %117 = math.rsqrt %116 : vector<8x1xf32>
    %118 = vector.broadcast %117 : vector<8x1xf32> to vector<8x32xf32>
    %119 = arith.mulf %114, %118 : vector<8x32xf32>
    %120 = vector.broadcast %8 : vector<1x32xf32> to vector<8x32xf32>
    %121 = arith.mulf %119, %120 : vector<8x32xf32>
    %122 = vector.broadcast %9 : vector<1x32xf32> to vector<8x32xf32>
    %123 = arith.addf %121, %122 : vector<8x32xf32>
    %c0_52 = arith.constant 0 : index
    %c0_53 = arith.constant 0 : index
    %124 = vector.load %arg10[%c0_52, %c0_53] : memref<32x64xbf16, #tpu.memory_space<vmem>>, vector<32x64xbf16>
    %c0_54 = arith.constant 0 : index
    %c0_55 = arith.constant 0 : index
    %125 = vector.load %arg11[%c0_54, %c0_55] : memref<1x64xf32, #tpu.memory_space<vmem>>, vector<1x64xf32>
    %c0_56 = arith.constant 0 : index
    %c0_57 = arith.constant 0 : index
    %126 = vector.load %arg12[%c0_56, %c0_57] : memref<64x32xbf16, #tpu.memory_space<vmem>>, vector<64x32xbf16>
    %c0_58 = arith.constant 0 : index
    %c0_59 = arith.constant 0 : index
    %127 = vector.load %arg13[%c0_58, %c0_59] : memref<1x32xf32, #tpu.memory_space<vmem>>, vector<1x32xf32>
    %c0_60 = arith.constant 0 : index
    %c0_61 = arith.constant 0 : index
    %128 = vector.load %arg14[%c0_60, %c0_61] : memref<1x32xf32, #tpu.memory_space<vmem>>, vector<1x32xf32>
    %c0_62 = arith.constant 0 : index
    %c0_63 = arith.constant 0 : index
    %129 = vector.load %arg15[%c0_62, %c0_63] : memref<1x32xf32, #tpu.memory_space<vmem>>, vector<1x32xf32>
    %130 = arith.truncf %123 : vector<8x32xf32> to vector<8x32xbf16>
    %cst_64 = arith.constant dense<0.000000e+00> : vector<8x64xf32>
    %131 = tpu.matmul %130, %124, %cst_64 {dimension_numbers = #tpu.dot_dimension_numbers<[1], [0], [0], [1], [0, 0, 1, 1], [], []>} : vector<8x32xbf16>, vector<32x64xbf16>, vector<8x64xf32> -> vector<8x64xf32>
    %132 = vector.broadcast %125 : vector<1x64xf32> to vector<8x64xf32>
    %133 = arith.addf %131, %132 : vector<8x64xf32>
    %cst_65 = arith.constant 0.000000e+00 : f32
    %134 = vector.broadcast %cst_65 : f32 to vector<8x64xf32>
    %135 = arith.maximumf %133, %134 : vector<8x64xf32>
    %136 = arith.truncf %135 : vector<8x64xf32> to vector<8x64xbf16>
    %cst_66 = arith.constant dense<0.000000e+00> : vector<8x32xf32>
    %137 = tpu.matmul %136, %126, %cst_66 {dimension_numbers = #tpu.dot_dimension_numbers<[1], [0], [0], [1], [0, 0, 1, 1], [], []>} : vector<8x64xbf16>, vector<64x32xbf16>, vector<8x32xf32> -> vector<8x32xf32>
    %138 = arith.addf %123, %137 : vector<8x32xf32>
    %139 = vector.broadcast %127 : vector<1x32xf32> to vector<8x32xf32>
    %140 = arith.addf %138, %139 : vector<8x32xf32>
    %cst_67 = arith.constant dense<0.000000e+00> : vector<8xf32>
    %141 = vector.multi_reduction <add>, %140, %cst_67 [1] : vector<8x32xf32> to vector<8xf32>
    %142 = vector.shape_cast %141 : vector<8xf32> to vector<8x1xf32>
    %cst_68 = arith.constant 3.200000e+01 : f32
    %143 = vector.broadcast %cst_68 : f32 to vector<8x1xf32>
    %144 = arith.divf %142, %143 : vector<8x1xf32>
    %145 = vector.broadcast %144 : vector<8x1xf32> to vector<8x32xf32>
    %146 = arith.subf %140, %145 : vector<8x32xf32>
    %147 = arith.mulf %146, %146 : vector<8x32xf32>
    %cst_69 = arith.constant dense<0.000000e+00> : vector<8xf32>
    %148 = vector.multi_reduction <add>, %147, %cst_69 [1] : vector<8x32xf32> to vector<8xf32>
    %149 = vector.shape_cast %148 : vector<8xf32> to vector<8x1xf32>
    %cst_70 = arith.constant 3.200000e+01 : f32
    %150 = vector.broadcast %cst_70 : f32 to vector<8x1xf32>
    %151 = arith.divf %149, %150 : vector<8x1xf32>
    %152 = vector.broadcast %144 : vector<8x1xf32> to vector<8x32xf32>
    %153 = arith.subf %140, %152 : vector<8x32xf32>
    %cst_71 = arith.constant 9.99999974E-6 : f32
    %154 = vector.broadcast %cst_71 : f32 to vector<8x1xf32>
    %155 = arith.addf %151, %154 : vector<8x1xf32>
    %156 = math.rsqrt %155 : vector<8x1xf32>
    %157 = vector.broadcast %156 : vector<8x1xf32> to vector<8x32xf32>
    %158 = arith.mulf %153, %157 : vector<8x32xf32>
    %159 = vector.broadcast %128 : vector<1x32xf32> to vector<8x32xf32>
    %160 = arith.mulf %158, %159 : vector<8x32xf32>
    %161 = vector.broadcast %129 : vector<1x32xf32> to vector<8x32xf32>
    %162 = arith.addf %160, %161 : vector<8x32xf32>
    %c0_72 = arith.constant 0 : index
    %c0_73 = arith.constant 0 : index
    %163 = vector.load %arg16[%c0_72, %c0_73] : memref<1x32xf32, #tpu.memory_space<vmem>>, vector<1x32xf32>
    %c0_74 = arith.constant 0 : index
    %c0_75 = arith.constant 0 : index
    %164 = vector.load %arg17[%c0_74, %c0_75] : memref<1x32xf32, #tpu.memory_space<vmem>>, vector<1x32xf32>
    %cst_76 = arith.constant dense<0.000000e+00> : vector<8xf32>
    %165 = vector.multi_reduction <add>, %162, %cst_76 [1] : vector<8x32xf32> to vector<8xf32>
    %166 = vector.shape_cast %165 : vector<8xf32> to vector<8x1xf32>
    %cst_77 = arith.constant 3.200000e+01 : f32
    %167 = vector.broadcast %cst_77 : f32 to vector<8x1xf32>
    %168 = arith.divf %166, %167 : vector<8x1xf32>
    %169 = vector.broadcast %168 : vector<8x1xf32> to vector<8x32xf32>
    %170 = arith.subf %162, %169 : vector<8x32xf32>
    %171 = arith.mulf %170, %170 : vector<8x32xf32>
    %cst_78 = arith.constant dense<0.000000e+00> : vector<8xf32>
    %172 = vector.multi_reduction <add>, %171, %cst_78 [1] : vector<8x32xf32> to vector<8xf32>
    %173 = vector.shape_cast %172 : vector<8xf32> to vector<8x1xf32>
    %cst_79 = arith.constant 3.200000e+01 : f32
    %174 = vector.broadcast %cst_79 : f32 to vector<8x1xf32>
    %175 = arith.divf %173, %174 : vector<8x1xf32>
    %176 = vector.broadcast %168 : vector<8x1xf32> to vector<8x32xf32>
    %177 = arith.subf %162, %176 : vector<8x32xf32>
    %cst_80 = arith.constant 9.99999974E-6 : f32
    %178 = vector.broadcast %cst_80 : f32 to vector<8x1xf32>
    %179 = arith.addf %175, %178 : vector<8x1xf32>
    %180 = math.rsqrt %179 : vector<8x1xf32>
    %181 = vector.broadcast %180 : vector<8x1xf32> to vector<8x32xf32>
    %182 = arith.mulf %177, %181 : vector<8x32xf32>
    %183 = vector.broadcast %163 : vector<1x32xf32> to vector<8x32xf32>
    %184 = arith.mulf %182, %183 : vector<8x32xf32>
    %185 = vector.broadcast %164 : vector<1x32xf32> to vector<8x32xf32>
    %186 = arith.addf %184, %185 : vector<8x32xf32>
    %c0_81 = arith.constant 0 : index
    %c0_82 = arith.constant 0 : index
    %c0_83 = arith.constant 0 : index
    %187 = vector.load %arg18[%c0_81, %c0_82, %c0_83] : memref<1x8x32xf32, #tpu.memory_space<vmem>>, vector<1x8x32xf32>
    %188 = vector.shape_cast %187 : vector<1x8x32xf32> to vector<8x32xf32>
    %189 = vector.shape_cast %186 : vector<8x32xf32> to vector<1x8x32xf32>
    tpu.vector_store %arg18[%c0_81, %c0_82, %c0_83], %189 {strides = array<i32>} : memref<1x8x32xf32, #tpu.memory_space<vmem>>, vector<1x8x32xf32>,
    return
  }
  func.func @transform_0(%arg0: i32) -> (i32, i32, i32) {
    %c0_i32 = arith.constant 0 : i32
    %c0_i32_0 = arith.constant 0 : i32
    %c0_i32_1 = arith.constant 0 : i32
    return %arg0, %c0_i32, %c0_i32_0 : i32, i32, i32
  }
  func.func @transform_1(%arg0: i32) -> (i32, i32) {
    %c0_i32 = arith.constant 0 : i32
    %c0_i32_0 = arith.constant 0 : i32
    %c0_i32_1 = arith.constant 0 : i32
    return %c0_i32, %c0_i32_0 : i32, i32
  }
  func.func @transform_2(%arg0: i32) -> (i32, i32) {
    %c0_i32 = arith.constant 0 : i32
    %c0_i32_0 = arith.constant 0 : i32
    %c0_i32_1 = arith.constant 0 : i32
    return %c0_i32, %c0_i32_0 : i32, i32
  }
  func.func @transform_3(%arg0: i32) -> (i32, i32) {
    %c0_i32 = arith.constant 0 : i32
    %c0_i32_0 = arith.constant 0 : i32
    %c0_i32_1 = arith.constant 0 : i32
    return %c0_i32, %c0_i32_0 : i32, i32
  }
  func.func @transform_4(%arg0: i32) -> (i32, i32) {
    %c0_i32 = arith.constant 0 : i32
    %c0_i32_0 = arith.constant 0 : i32
    %c0_i32_1 = arith.constant 0 : i32
    return %c0_i32, %c0_i32_0 : i32, i32
  }
  func.func @transform_5(%arg0: i32) -> (i32, i32) {
    %c0_i32 = arith.constant 0 : i32
    %c0_i32_0 = arith.constant 0 : i32
    %c0_i32_1 = arith.constant 0 : i32
    return %c0_i32, %c0_i32_0 : i32, i32
  }
  func.func @transform_6(%arg0: i32) -> (i32, i32) {
    %c0_i32 = arith.constant 0 : i32
    %c0_i32_0 = arith.constant 0 : i32
    %c0_i32_1 = arith.constant 0 : i32
    return %c0_i32, %c0_i32_0 : i32, i32
  }
  func.func @transform_7(%arg0: i32) -> (i32, i32) {
    %c0_i32 = arith.constant 0 : i32
    %c0_i32_0 = arith.constant 0 : i32
    %c0_i32_1 = arith.constant 0 : i32
    return %c0_i32, %c0_i32_0 : i32, i32
  }
  func.func @transform_8(%arg0: i32) -> (i32, i32) {
    %c0_i32 = arith.constant 0 : i32
    %c0_i32_0 = arith.constant 0 : i32
    %c0_i32_1 = arith.constant 0 : i32
    return %c0_i32, %c0_i32_0 : i32, i32
  }
  func.func @transform_9(%arg0: i32) -> (i32, i32) {
    %c0_i32 = arith.constant 0 : i32
    %c0_i32_0 = arith.constant 0 : i32
    %c0_i32_1 = arith.constant 0 : i32
    return %c0_i32, %c0_i32_0 : i32, i32
  }
  func.func @transform_10(%arg0: i32) -> (i32, i32) {
    %c0_i32 = arith.constant 0 : i32
    %c0_i32_0 = arith.constant 0 : i32
    %c0_i32_1 = arith.constant 0 : i32
    return %c0_i32, %c0_i32_0 : i32, i32
  }
  func.func @transform_11(%arg0: i32) -> (i32, i32) {
    %c0_i32 = arith.constant 0 : i32
    %c0_i32_0 = arith.constant 0 : i32
    %c0_i32_1 = arith.constant 0 : i32
    return %c0_i32, %c0_i32_0 : i32, i32
  }
  func.func @transform_12(%arg0: i32) -> (i32, i32) {
    %c0_i32 = arith.constant 0 : i32
    %c0_i32_0 = arith.constant 0 : i32
    %c0_i32_1 = arith.constant 0 : i32
    return %c0_i32, %c0_i32_0 : i32, i32
  }
  func.func @transform_13(%arg0: i32) -> (i32, i32) {
    %c0_i32 = arith.constant 0 : i32
    %c0_i32_0 = arith.constant 0 : i32
    %c0_i32_1 = arith.constant 0 : i32
    return %c0_i32, %c0_i32_0 : i32, i32
  }
  func.func @transform_14(%arg0: i32) -> (i32, i32) {
    %c0_i32 = arith.constant 0 : i32
    %c0_i32_0 = arith.constant 0 : i32
    %c0_i32_1 = arith.constant 0 : i32
    return %c0_i32, %c0_i32_0 : i32, i32
  }
  func.func @transform_15(%arg0: i32) -> (i32, i32) {
    %c0_i32 = arith.constant 0 : i32
    %c0_i32_0 = arith.constant 0 : i32
    %c0_i32_1 = arith.constant 0 : i32
    return %c0_i32, %c0_i32_0 : i32, i32
  }
  func.func @transform_16(%arg0: i32) -> (i32, i32) {
    %c0_i32 = arith.constant 0 : i32
    %c0_i32_0 = arith.constant 0 : i32
    %c0_i32_1 = arith.constant 0 : i32
    return %c0_i32, %c0_i32_0 : i32, i32
  }
  func.func @transform_17(%arg0: i32) -> (i32, i32, i32) {
    %c0_i32 = arith.constant 0 : i32
    %c0_i32_0 = arith.constant 0 : i32
    %c0_i32_1 = arith.constant 0 : i32
    return %arg0, %c0_i32, %c0_i32_0 : i32, i32, i32
  }
}

module attributes {stable_mosaic.version = 11 : i64} {
  func.func @_encoder_layer_kernel(%arg0: i32, %arg1: memref<1x8x32xf32, #tpu.memory_space<vmem>>, %arg2: memref<32x32xbf16, #tpu.memory_space<vmem>>, %arg3: memref<1x32xf32, #tpu.memory_space<vmem>>, %arg4: memref<32x64xbf16, #tpu.memory_space<vmem>>, %arg5: memref<1x64xf32, #tpu.memory_space<vmem>>, %arg6: memref<32x32xbf16, #tpu.memory_space<vmem>>, %arg7: memref<1x32xf32, #tpu.memory_space<vmem>>, %arg8: memref<1x32xf32, #tpu.memory_space<vmem>>, %arg9: memref<1x32xf32, #tpu.memory_space<vmem>>, %arg10: memref<32x64xbf16, #tpu.memory_space<vmem>>, %arg11: memref<1x64xf32, #tpu.memory_space<vmem>>, %arg12: memref<64x32xbf16, #tpu.memory_space<vmem>>, %arg13: memref<1x32xf32, #tpu.memory_space<vmem>>, %arg14: memref<1x32xf32, #tpu.memory_space<vmem>>, %arg15: memref<1x32xf32, #tpu.memory_space<vmem>>, %arg16: memref<1x32xf32, #tpu.memory_space<vmem>>, %arg17: memref<1x32xf32, #tpu.memory_space<vmem>>, %arg18: memref<1x8x32xf32, #tpu.memory_space<vmem>>, %arg19: memref<8x32xf32, #tpu.memory_space<vmem>>) attributes {dimension_semantics = [#tpu.dimension_semantics<parallel>], iteration_bounds = array<i64: 2>, scalar_prefetch = 0 : i64, scratch_operands = 1 : i64, tpu.core_type = #tpu.core_type<tc>, window_params = [{transform_indices = @transform_0, window_bounds = array<i64: 1, 8, 32>}, {pipeline_mode = #tpu.pipeline_mode<synchronous>, transform_indices = @transform_1, window_bounds = array<i64: 32, 32>}, {pipeline_mode = #tpu.pipeline_mode<synchronous>, transform_indices = @transform_2, window_bounds = array<i64: 1, 32>}, {pipeline_mode = #tpu.pipeline_mode<synchronous>, transform_indices = @transform_3, window_bounds = array<i64: 32, 64>}, {pipeline_mode = #tpu.pipeline_mode<synchronous>, transform_indices = @transform_4, window_bounds = array<i64: 1, 64>}, {pipeline_mode = #tpu.pipeline_mode<synchronous>, transform_indices = @transform_5, window_bounds = array<i64: 32, 32>}, {pipeline_mode = #tpu.pipeline_mode<synchronous>, transform_indices = @transform_6, window_bounds = array<i64: 1, 32>}, {pipeline_mode = #tpu.pipeline_mode<synchronous>, transform_indices = @transform_7, window_bounds = array<i64: 1, 32>}, {pipeline_mode = #tpu.pipeline_mode<synchronous>, transform_indices = @transform_8, window_bounds = array<i64: 1, 32>}, {pipeline_mode = #tpu.pipeline_mode<synchronous>, transform_indices = @transform_9, window_bounds = array<i64: 32, 64>}, {pipeline_mode = #tpu.pipeline_mode<synchronous>, transform_indices = @transform_10, window_bounds = array<i64: 1, 64>}, {pipeline_mode = #tpu.pipeline_mode<synchronous>, transform_indices = @transform_11, window_bounds = array<i64: 64, 32>}, {pipeline_mode = #tpu.pipeline_mode<synchronous>, transform_indices = @transform_12, window_bounds = array<i64: 1, 32>}, {pipeline_mode = #tpu.pipeline_mode<synchronous>, transform_indices = @transform_13, window_bounds = array<i64: 1, 32>}, {pipeline_mode = #tpu.pipeline_mode<synchronous>, transform_indices = @transform_14, window_bounds = array<i64: 1, 32>}, {pipeline_mode = #tpu.pipeline_mode<synchronous>, transform_indices = @transform_15, window_bounds = array<i64: 1, 32>}, {pipeline_mode = #tpu.pipeline_mode<synchronous>, transform_indices = @transform_16, window_bounds = array<i64: 1, 32>}, {transform_indices = @transform_17, window_bounds = array<i64: 1, 8, 32>}]} {
    %c0 = arith.constant 0 : index
    %c0_0 = arith.constant 0 : index
    %c0_1 = arith.constant 0 : index
    %0 = vector.load %arg1[%c0, %c0_0, %c0_1] : memref<1x8x32xf32, #tpu.memory_space<vmem>>, vector<1x8x32xf32>
    %1 = vector.shape_cast %0 : vector<1x8x32xf32> to vector<8x32xf32>
    %c0_2 = arith.constant 0 : index
    %c0_3 = arith.constant 0 : index
    %2 = vector.load %arg2[%c0_2, %c0_3] : memref<32x32xbf16, #tpu.memory_space<vmem>>, vector<32x32xbf16>
    %c0_4 = arith.constant 0 : index
    %c0_5 = arith.constant 0 : index
    %3 = vector.load %arg3[%c0_4, %c0_5] : memref<1x32xf32, #tpu.memory_space<vmem>>, vector<1x32xf32>
    %c0_6 = arith.constant 0 : index
    %c0_7 = arith.constant 0 : index
    %4 = vector.load %arg4[%c0_6, %c0_7] : memref<32x64xbf16, #tpu.memory_space<vmem>>, vector<32x64xbf16>
    %c0_8 = arith.constant 0 : index
    %c0_9 = arith.constant 0 : index
    %5 = vector.load %arg5[%c0_8, %c0_9] : memref<1x64xf32, #tpu.memory_space<vmem>>, vector<1x64xf32>
    %c0_10 = arith.constant 0 : index
    %c0_11 = arith.constant 0 : index
    %6 = vector.load %arg6[%c0_10, %c0_11] : memref<32x32xbf16, #tpu.memory_space<vmem>>, vector<32x32xbf16>
    %c0_12 = arith.constant 0 : index
    %c0_13 = arith.constant 0 : index
    %7 = vector.load %arg7[%c0_12, %c0_13] : memref<1x32xf32, #tpu.memory_space<vmem>>, vector<1x32xf32>
    %c0_14 = arith.constant 0 : index
    %c0_15 = arith.constant 0 : index
    %8 = vector.load %arg8[%c0_14, %c0_15] : memref<1x32xf32, #tpu.memory_space<vmem>>, vector<1x32xf32>
    %c0_16 = arith.constant 0 : index
    %c0_17 = arith.constant 0 : index
    %9 = vector.load %arg9[%c0_16, %c0_17] : memref<1x32xf32, #tpu.memory_space<vmem>>, vector<1x32xf32>
    %10 = arith.truncf %1 : vector<8x32xf32> to vector<8x32xbf16>
    %cst = arith.constant dense<0.000000e+00> : vector<8x32xf32>
    %11 = tpu.matmul %10, %2, %cst {dimension_numbers = #tpu.dot_dimension_numbers<[1], [0], [0], [1], [0, 0, 1, 1], [], []>} : vector<8x32xbf16>, vector<32x32xbf16>, vector<8x32xf32> -> vector<8x32xf32>
    %12 = vector.broadcast %3 : vector<1x32xf32> to vector<8x32xf32>
    %13 = arith.addf %11, %12 : vector<8x32xf32>
    %14 = arith.truncf %1 : vector<8x32xf32> to vector<8x32xbf16>
    %cst_18 = arith.constant dense<0.000000e+00> : vector<8x64xf32>
    %15 = tpu.matmul %14, %4, %cst_18 {dimension_numbers = #tpu.dot_dimension_numbers<[1], [0], [0], [1], [0, 0, 1, 1], [], []>} : vector<8x32xbf16>, vector<32x64xbf16>, vector<8x64xf32> -> vector<8x64xf32>
    %16 = vector.broadcast %5 : vector<1x64xf32> to vector<8x64xf32>
    %17 = arith.addf %15, %16 : vector<8x64xf32>
    %18 = arith.truncf %13 : vector<8x32xf32> to vector<8x32xbf16>
    %19 = arith.truncf %17 : vector<8x64xf32> to vector<8x64xbf16>
    %20 = vector.extract_strided_slice %18 {offsets = [0, 0], sizes = [8, 8], strides = [1, 1]} : vector<8x32xbf16> to vector<8x8xbf16>
    %21 = vector.extract_strided_slice %19 {offsets = [0, 0], sizes = [8, 8], strides = [1, 1]} : vector<8x64xbf16> to vector<8x8xbf16>
    %22 = vector.extract_strided_slice %19 {offsets = [0, 32], sizes = [8, 8], strides = [1, 1]} : vector<8x64xbf16> to vector<8x8xbf16>
    %cst_19 = arith.constant dense<0.000000e+00> : vector<8x8xf32>
    %23 = tpu.matmul %20, %21, %cst_19 {dimension_numbers = #tpu.dot_dimension_numbers<[1], [1], [0], [0], [0, 0, 1, 0], [], []>} : vector<8x8xbf16>, vector<8x8xbf16>, vector<8x8xf32> -> vector<8x8xf32>
    %cst_20 = arith.constant 0.353553385 : f32
    %24 = vector.broadcast %cst_20 : f32 to vector<8x8xf32>
    %25 = arith.mulf %23, %24 : vector<8x8xf32>
    %cst_21 = arith.constant dense<0xFF800000> : vector<8xf32>
    %26 = vector.multi_reduction <maximumf>, %25, %cst_21 [1] : vector<8x8xf32> to vector<8xf32>
    %27 = vector.shape_cast %26 : vector<8xf32> to vector<8x1xf32>
    %28 = vector.broadcast %27 : vector<8x1xf32> to vector<8x8xf32>
    %29 = arith.subf %25, %28 : vector<8x8xf32>
    %30 = math.exp %29 : vector<8x8xf32>
    %cst_22 = arith.constant dense<0.000000e+00> : vector<8xf32>
    %31 = vector.multi_reduction <add>, %30, %cst_22 [1] : vector<8x8xf32> to vector<8xf32>
    %32 = vector.shape_cast %31 : vector<8xf32> to vector<8x1xf32>
    %33 = tpu.reciprocal %32 {approx = true} : vector<8x1xf32> -> vector<8x1xf32>
    %34 = vector.broadcast %33 : vector<8x1xf32> to vector<8x8xf32>
    %35 = arith.mulf %30, %34 : vector<8x8xf32>
    %36 = arith.truncf %35 : vector<8x8xf32> to vector<8x8xbf16>
    %cst_23 = arith.constant dense<0.000000e+00> : vector<8x8xf32>
    %37 = tpu.matmul %36, %22, %cst_23 {dimension_numbers = #tpu.dot_dimension_numbers<[1], [0], [0], [1], [0, 0, 1, 1], [], []>} : vector<8x8xbf16>, vector<8x8xbf16>, vector<8x8xf32> -> vector<8x8xf32>
    %c0_24 = arith.constant 0 : index
    %c0_25 = arith.constant 0 : index
    %38 = vector.load %arg19[%c0_24, %c0_25] : memref<8x32xf32, #tpu.memory_space<vmem>>, vector<8x8xf32>
    tpu.vector_store %arg19[%c0_24, %c0_25], %37 {strides = array<i32>} : memref<8x32xf32, #tpu.memory_space<vmem>>, vector<8x8xf32>,
    %39 = vector.extract_strided_slice %18 {offsets = [0, 8], sizes = [8, 8], strides = [1, 1]} : vector<8x32xbf16> to vector<8x8xbf16>
    %40 = vector.extract_strided_slice %19 {offsets = [0, 8], sizes = [8, 8], strides = [1, 1]} : vector<8x64xbf16> to vector<8x8xbf16>
    %41 = vector.extract_strided_slice %19 {offsets = [0, 40], sizes = [8, 8], strides = [1, 1]} : vector<8x64xbf16> to vector<8x8xbf16>
    %cst_26 = arith.constant dense<0.000000e+00> : vector<8x8xf32>
    %42 = tpu.matmul %39, %40, %cst_26 {dimension_numbers = #tpu.dot_dimension_numbers<[1], [1], [0], [0], [0, 0, 1, 0], [], []>} : vector<8x8xbf16>, vector<8x8xbf16>, vector<8x8xf32> -> vector<8x8xf32>
    %cst_27 = arith.constant 0.353553385 : f32
    %43 = vector.broadcast %cst_27 : f32 to vector<8x8xf32>
    %44 = arith.mulf %42, %43 : vector<8x8xf32>
    %cst_28 = arith.constant dense<0xFF800000> : vector<8xf32>
    %45 = vector.multi_reduction <maximumf>, %44, %cst_28 [1] : vector<8x8xf32> to vector<8xf32>
    %46 = vector.shape_cast %45 : vector<8xf32> to vector<8x1xf32>
    %47 = vector.broadcast %46 : vector<8x1xf32> to vector<8x8xf32>
    %48 = arith.subf %44, %47 : vector<8x8xf32>
    %49 = math.exp %48 : vector<8x8xf32>
    %cst_29 = arith.constant dense<0.000000e+00> : vector<8xf32>
    %50 = vector.multi_reduction <add>, %49, %cst_29 [1] : vector<8x8xf32> to vector<8xf32>
    %51 = vector.shape_cast %50 : vector<8xf32> to vector<8x1xf32>
    %52 = tpu.reciprocal %51 {approx = true} : vector<8x1xf32> -> vector<8x1xf32>
    %53 = vector.broadcast %52 : vector<8x1xf32> to vector<8x8xf32>
    %54 = arith.mulf %49, %53 : vector<8x8xf32>
    %55 = arith.truncf %54 : vector<8x8xf32> to vector<8x8xbf16>
    %cst_30 = arith.constant dense<0.000000e+00> : vector<8x8xf32>
    %56 = tpu.matmul %55, %41, %cst_30 {dimension_numbers = #tpu.dot_dimension_numbers<[1], [0], [0], [1], [0, 0, 1, 1], [], []>} : vector<8x8xbf16>, vector<8x8xbf16>, vector<8x8xf32> -> vector<8x8xf32>
    %c0_31 = arith.constant 0 : index
    %c8 = arith.constant 8 : index
    %57 = vector.load %arg19[%c0_31, %c8] : memref<8x32xf32, #tpu.memory_space<vmem>>, vector<8x8xf32>
    tpu.vector_store %arg19[%c0_31, %c8], %56 {strides = array<i32>} : memref<8x32xf32, #tpu.memory_space<vmem>>, vector<8x8xf32>,
    %58 = vector.extract_strided_slice %18 {offsets = [0, 16], sizes = [8, 8], strides = [1, 1]} : vector<8x32xbf16> to vector<8x8xbf16>
    %59 = vector.extract_strided_slice %19 {offsets = [0, 16], sizes = [8, 8], strides = [1, 1]} : vector<8x64xbf16> to vector<8x8xbf16>
    %60 = vector.extract_strided_slice %19 {offsets = [0, 48], sizes = [8, 8], strides = [1, 1]} : vector<8x64xbf16> to vector<8x8xbf16>
    %cst_32 = arith.constant dense<0.000000e+00> : vector<8x8xf32>
    %61 = tpu.matmul %58, %59, %cst_32 {dimension_numbers = #tpu.dot_dimension_numbers<[1], [1], [0], [0], [0, 0, 1, 0], [], []>} : vector<8x8xbf16>, vector<8x8xbf16>, vector<8x8xf32> -> vector<8x8xf32>
    %cst_33 = arith.constant 0.353553385 : f32
    %62 = vector.broadcast %cst_33 : f32 to vector<8x8xf32>
    %63 = arith.mulf %61, %62 : vector<8x8xf32>
    %cst_34 = arith.constant dense<0xFF800000> : vector<8xf32>
    %64 = vector.multi_reduction <maximumf>, %63, %cst_34 [1] : vector<8x8xf32> to vector<8xf32>
    %65 = vector.shape_cast %64 : vector<8xf32> to vector<8x1xf32>
    %66 = vector.broadcast %65 : vector<8x1xf32> to vector<8x8xf32>
    %67 = arith.subf %63, %66 : vector<8x8xf32>
    %68 = math.exp %67 : vector<8x8xf32>
    %cst_35 = arith.constant dense<0.000000e+00> : vector<8xf32>
    %69 = vector.multi_reduction <add>, %68, %cst_35 [1] : vector<8x8xf32> to vector<8xf32>
    %70 = vector.shape_cast %69 : vector<8xf32> to vector<8x1xf32>
    %71 = tpu.reciprocal %70 {approx = true} : vector<8x1xf32> -> vector<8x1xf32>
    %72 = vector.broadcast %71 : vector<8x1xf32> to vector<8x8xf32>
    %73 = arith.mulf %68, %72 : vector<8x8xf32>
    %74 = arith.truncf %73 : vector<8x8xf32> to vector<8x8xbf16>
    %cst_36 = arith.constant dense<0.000000e+00> : vector<8x8xf32>
    %75 = tpu.matmul %74, %60, %cst_36 {dimension_numbers = #tpu.dot_dimension_numbers<[1], [0], [0], [1], [0, 0, 1, 1], [], []>} : vector<8x8xbf16>, vector<8x8xbf16>, vector<8x8xf32> -> vector<8x8xf32>
    %c0_37 = arith.constant 0 : index
    %c16 = arith.constant 16 : index
    %76 = vector.load %arg19[%c0_37, %c16] : memref<8x32xf32, #tpu.memory_space<vmem>>, vector<8x8xf32>
    tpu.vector_store %arg19[%c0_37, %c16], %75 {strides = array<i32>} : memref<8x32xf32, #tpu.memory_space<vmem>>, vector<8x8xf32>,
    %77 = vector.extract_strided_slice %18 {offsets = [0, 24], sizes = [8, 8], strides = [1, 1]} : vector<8x32xbf16> to vector<8x8xbf16>
    %78 = vector.extract_strided_slice %19 {offsets = [0, 24], sizes = [8, 8], strides = [1, 1]} : vector<8x64xbf16> to vector<8x8xbf16>
    %79 = vector.extract_strided_slice %19 {offsets = [0, 56], sizes = [8, 8], strides = [1, 1]} : vector<8x64xbf16> to vector<8x8xbf16>
    %cst_38 = arith.constant dense<0.000000e+00> : vector<8x8xf32>
    %80 = tpu.matmul %77, %78, %cst_38 {dimension_numbers = #tpu.dot_dimension_numbers<[1], [1], [0], [0], [0, 0, 1, 0], [], []>} : vector<8x8xbf16>, vector<8x8xbf16>, vector<8x8xf32> -> vector<8x8xf32>
    %cst_39 = arith.constant 0.353553385 : f32
    %81 = vector.broadcast %cst_39 : f32 to vector<8x8xf32>
    %82 = arith.mulf %80, %81 : vector<8x8xf32>
    %cst_40 = arith.constant dense<0xFF800000> : vector<8xf32>
    %83 = vector.multi_reduction <maximumf>, %82, %cst_40 [1] : vector<8x8xf32> to vector<8xf32>
    %84 = vector.shape_cast %83 : vector<8xf32> to vector<8x1xf32>
    %85 = vector.broadcast %84 : vector<8x1xf32> to vector<8x8xf32>
    %86 = arith.subf %82, %85 : vector<8x8xf32>
    %87 = math.exp %86 : vector<8x8xf32>
    %cst_41 = arith.constant dense<0.000000e+00> : vector<8xf32>
    %88 = vector.multi_reduction <add>, %87, %cst_41 [1] : vector<8x8xf32> to vector<8xf32>
    %89 = vector.shape_cast %88 : vector<8xf32> to vector<8x1xf32>
    %90 = tpu.reciprocal %89 {approx = true} : vector<8x1xf32> -> vector<8x1xf32>
    %91 = vector.broadcast %90 : vector<8x1xf32> to vector<8x8xf32>
    %92 = arith.mulf %87, %91 : vector<8x8xf32>
    %93 = arith.truncf %92 : vector<8x8xf32> to vector<8x8xbf16>
    %cst_42 = arith.constant dense<0.000000e+00> : vector<8x8xf32>
    %94 = tpu.matmul %93, %79, %cst_42 {dimension_numbers = #tpu.dot_dimension_numbers<[1], [0], [0], [1], [0, 0, 1, 1], [], []>} : vector<8x8xbf16>, vector<8x8xbf16>, vector<8x8xf32> -> vector<8x8xf32>
    %c0_43 = arith.constant 0 : index
    %c24 = arith.constant 24 : index
    %95 = vector.load %arg19[%c0_43, %c24] : memref<8x32xf32, #tpu.memory_space<vmem>>, vector<8x8xf32>
    tpu.vector_store %arg19[%c0_43, %c24], %94 {strides = array<i32>} : memref<8x32xf32, #tpu.memory_space<vmem>>, vector<8x8xf32>,
    %c0_44 = arith.constant 0 : index
    %c0_45 = arith.constant 0 : index
    %96 = vector.load %arg19[%c0_44, %c0_45] : memref<8x32xf32, #tpu.memory_space<vmem>>, vector<8x32xf32>
    %97 = arith.truncf %96 : vector<8x32xf32> to vector<8x32xbf16>
    %cst_46 = arith.constant dense<0.000000e+00> : vector<8x32xf32>
    %98 = tpu.matmul %97, %6, %cst_46 {dimension_numbers = #tpu.dot_dimension_numbers<[1], [0], [0], [1], [0, 0, 1, 1], [], []>} : vector<8x32xbf16>, vector<32x32xbf16>, vector<8x32xf32> -> vector<8x32xf32>
    %99 = vector.broadcast %7 : vector<1x32xf32> to vector<8x32xf32>
    %100 = arith.addf %98, %99 : vector<8x32xf32>
    %101 = arith.addf %1, %100 : vector<8x32xf32>
    %cst_47 = arith.constant dense<0.000000e+00> : vector<8xf32>
    %102 = vector.multi_reduction <add>, %101, %cst_47 [1] : vector<8x32xf32> to vector<8xf32>
    %103 = vector.shape_cast %102 : vector<8xf32> to vector<8x1xf32>
    %cst_48 = arith.constant 3.200000e+01 : f32
    %104 = vector.broadcast %cst_48 : f32 to vector<8x1xf32>
    %105 = arith.divf %103, %104 : vector<8x1xf32>
    %106 = vector.broadcast %105 : vector<8x1xf32> to vector<8x32xf32>
    %107 = arith.subf %101, %106 : vector<8x32xf32>
    %108 = arith.mulf %107, %107 : vector<8x32xf32>
    %cst_49 = arith.constant dense<0.000000e+00> : vector<8xf32>
    %109 = vector.multi_reduction <add>, %108, %cst_49 [1] : vector<8x32xf32> to vector<8xf32>
    %110 = vector.shape_cast %109 : vector<8xf32> to vector<8x1xf32>
    %cst_50 = arith.constant 3.200000e+01 : f32
    %111 = vector.broadcast %cst_50 : f32 to vector<8x1xf32>
    %112 = arith.divf %110, %111 : vector<8x1xf32>
    %113 = vector.broadcast %105 : vector<8x1xf32> to vector<8x32xf32>
    %114 = arith.subf %101, %113 : vector<8x32xf32>
    %cst_51 = arith.constant 9.99999974E-6 : f32
    %115 = vector.broadcast %cst_51 : f32 to vector<8x1xf32>
    %116 = arith.addf %112, %115 : vector<8x1xf32>
    %117 = math.rsqrt %116 : vector<8x1xf32>
    %118 = vector.broadcast %117 : vector<8x1xf32> to vector<8x32xf32>
    %119 = arith.mulf %114, %118 : vector<8x32xf32>
    %120 = vector.broadcast %8 : vector<1x32xf32> to vector<8x32xf32>
    %121 = arith.mulf %119, %120 : vector<8x32xf32>
    %122 = vector.broadcast %9 : vector<1x32xf32> to vector<8x32xf32>
    %123 = arith.addf %121, %122 : vector<8x32xf32>
    %c0_52 = arith.constant 0 : index
    %c0_53 = arith.constant 0 : index
    %124 = vector.load %arg10[%c0_52, %c0_53] : memref<32x64xbf16, #tpu.memory_space<vmem>>, vector<32x64xbf16>
    %c0_54 = arith.constant 0 : index
    %c0_55 = arith.constant 0 : index
    %125 = vector.load %arg11[%c0_54, %c0_55] : memref<1x64xf32, #tpu.memory_space<vmem>>, vector<1x64xf32>
    %c0_56 = arith.constant 0 : index
    %c0_57 = arith.constant 0 : index
    %126 = vector.load %arg12[%c0_56, %c0_57] : memref<64x32xbf16, #tpu.memory_space<vmem>>, vector<64x32xbf16>
    %c0_58 = arith.constant 0 : index
    %c0_59 = arith.constant 0 : index
    %127 = vector.load %arg13[%c0_58, %c0_59] : memref<1x32xf32, #tpu.memory_space<vmem>>, vector<1x32xf32>
    %c0_60 = arith.constant 0 : index
    %c0_61 = arith.constant 0 : index
    %128 = vector.load %arg14[%c0_60, %c0_61] : memref<1x32xf32, #tpu.memory_space<vmem>>, vector<1x32xf32>
    %c0_62 = arith.constant 0 : index
    %c0_63 = arith.constant 0 : index
    %129 = vector.load %arg15[%c0_62, %c0_63] : memref<1x32xf32, #tpu.memory_space<vmem>>, vector<1x32xf32>
    %130 = arith.truncf %123 : vector<8x32xf32> to vector<8x32xbf16>
    %cst_64 = arith.constant dense<0.000000e+00> : vector<8x64xf32>
    %131 = tpu.matmul %130, %124, %cst_64 {dimension_numbers = #tpu.dot_dimension_numbers<[1], [0], [0], [1], [0, 0, 1, 1], [], []>} : vector<8x32xbf16>, vector<32x64xbf16>, vector<8x64xf32> -> vector<8x64xf32>
    %132 = vector.broadcast %125 : vector<1x64xf32> to vector<8x64xf32>
    %133 = arith.addf %131, %132 : vector<8x64xf32>
    %cst_65 = arith.constant 0.000000e+00 : f32
    %134 = vector.broadcast %cst_65 : f32 to vector<8x64xf32>
    %135 = arith.maximumf %133, %134 : vector<8x64xf32>
    %136 = arith.truncf %135 : vector<8x64xf32> to vector<8x64xbf16>
    %cst_66 = arith.constant dense<0.000000e+00> : vector<8x32xf32>
    %137 = tpu.matmul %136, %126, %cst_66 {dimension_numbers = #tpu.dot_dimension_numbers<[1], [0], [0], [1], [0, 0, 1, 1], [], []>} : vector<8x64xbf16>, vector<64x32xbf16>, vector<8x32xf32> -> vector<8x32xf32>
    %138 = arith.addf %123, %137 : vector<8x32xf32>
    %139 = vector.broadcast %127 : vector<1x32xf32> to vector<8x32xf32>
    %140 = arith.addf %138, %139 : vector<8x32xf32>
    %cst_67 = arith.constant dense<0.000000e+00> : vector<8xf32>
    %141 = vector.multi_reduction <add>, %140, %cst_67 [1] : vector<8x32xf32> to vector<8xf32>
    %142 = vector.shape_cast %141 : vector<8xf32> to vector<8x1xf32>
    %cst_68 = arith.constant 3.200000e+01 : f32
    %143 = vector.broadcast %cst_68 : f32 to vector<8x1xf32>
    %144 = arith.divf %142, %143 : vector<8x1xf32>
    %145 = vector.broadcast %144 : vector<8x1xf32> to vector<8x32xf32>
    %146 = arith.subf %140, %145 : vector<8x32xf32>
    %147 = arith.mulf %146, %146 : vector<8x32xf32>
    %cst_69 = arith.constant dense<0.000000e+00> : vector<8xf32>
    %148 = vector.multi_reduction <add>, %147, %cst_69 [1] : vector<8x32xf32> to vector<8xf32>
    %149 = vector.shape_cast %148 : vector<8xf32> to vector<8x1xf32>
    %cst_70 = arith.constant 3.200000e+01 : f32
    %150 = vector.broadcast %cst_70 : f32 to vector<8x1xf32>
    %151 = arith.divf %149, %150 : vector<8x1xf32>
    %152 = vector.broadcast %144 : vector<8x1xf32> to vector<8x32xf32>
    %153 = arith.subf %140, %152 : vector<8x32xf32>
    %cst_71 = arith.constant 9.99999974E-6 : f32
    %154 = vector.broadcast %cst_71 : f32 to vector<8x1xf32>
    %155 = arith.addf %151, %154 : vector<8x1xf32>
    %156 = math.rsqrt %155 : vector<8x1xf32>
    %157 = vector.broadcast %156 : vector<8x1xf32> to vector<8x32xf32>
    %158 = arith.mulf %153, %157 : vector<8x32xf32>
    %159 = vector.broadcast %128 : vector<1x32xf32> to vector<8x32xf32>
    %160 = arith.mulf %158, %159 : vector<8x32xf32>
    %161 = vector.broadcast %129 : vector<1x32xf32> to vector<8x32xf32>
    %162 = arith.addf %160, %161 : vector<8x32xf32>
    %c0_72 = arith.constant 0 : index
    %c0_73 = arith.constant 0 : index
    %c0_74 = arith.constant 0 : index
    %163 = vector.load %arg18[%c0_72, %c0_73, %c0_74] : memref<1x8x32xf32, #tpu.memory_space<vmem>>, vector<1x8x32xf32>
    %164 = vector.shape_cast %163 : vector<1x8x32xf32> to vector<8x32xf32>
    %165 = vector.shape_cast %162 : vector<8x32xf32> to vector<1x8x32xf32>
    tpu.vector_store %arg18[%c0_72, %c0_73, %c0_74], %165 {strides = array<i32>} : memref<1x8x32xf32, #tpu.memory_space<vmem>>, vector<1x8x32xf32>,
    return
  }
  func.func @transform_0(%arg0: i32) -> (i32, i32, i32) {
    %c0_i32 = arith.constant 0 : i32
    %c0_i32_0 = arith.constant 0 : i32
    %c0_i32_1 = arith.constant 0 : i32
    return %arg0, %c0_i32, %c0_i32_0 : i32, i32, i32
  }
  func.func @transform_1(%arg0: i32) -> (i32, i32) {
    %c0_i32 = arith.constant 0 : i32
    %c0_i32_0 = arith.constant 0 : i32
    %c0_i32_1 = arith.constant 0 : i32
    return %c0_i32, %c0_i32_0 : i32, i32
  }
  func.func @transform_2(%arg0: i32) -> (i32, i32) {
    %c0_i32 = arith.constant 0 : i32
    %c0_i32_0 = arith.constant 0 : i32
    %c0_i32_1 = arith.constant 0 : i32
    return %c0_i32, %c0_i32_0 : i32, i32
  }
  func.func @transform_3(%arg0: i32) -> (i32, i32) {
    %c0_i32 = arith.constant 0 : i32
    %c0_i32_0 = arith.constant 0 : i32
    %c0_i32_1 = arith.constant 0 : i32
    return %c0_i32, %c0_i32_0 : i32, i32
  }
  func.func @transform_4(%arg0: i32) -> (i32, i32) {
    %c0_i32 = arith.constant 0 : i32
    %c0_i32_0 = arith.constant 0 : i32
    %c0_i32_1 = arith.constant 0 : i32
    return %c0_i32, %c0_i32_0 : i32, i32
  }
  func.func @transform_5(%arg0: i32) -> (i32, i32) {
    %c0_i32 = arith.constant 0 : i32
    %c0_i32_0 = arith.constant 0 : i32
    %c0_i32_1 = arith.constant 0 : i32
    return %c0_i32, %c0_i32_0 : i32, i32
  }
  func.func @transform_6(%arg0: i32) -> (i32, i32) {
    %c0_i32 = arith.constant 0 : i32
    %c0_i32_0 = arith.constant 0 : i32
    %c0_i32_1 = arith.constant 0 : i32
    return %c0_i32, %c0_i32_0 : i32, i32
  }
  func.func @transform_7(%arg0: i32) -> (i32, i32) {
    %c0_i32 = arith.constant 0 : i32
    %c0_i32_0 = arith.constant 0 : i32
    %c0_i32_1 = arith.constant 0 : i32
    return %c0_i32, %c0_i32_0 : i32, i32
  }
  func.func @transform_8(%arg0: i32) -> (i32, i32) {
    %c0_i32 = arith.constant 0 : i32
    %c0_i32_0 = arith.constant 0 : i32
    %c0_i32_1 = arith.constant 0 : i32
    return %c0_i32, %c0_i32_0 : i32, i32
  }
  func.func @transform_9(%arg0: i32) -> (i32, i32) {
    %c0_i32 = arith.constant 0 : i32
    %c0_i32_0 = arith.constant 0 : i32
    %c0_i32_1 = arith.constant 0 : i32
    return %c0_i32, %c0_i32_0 : i32, i32
  }
  func.func @transform_10(%arg0: i32) -> (i32, i32) {
    %c0_i32 = arith.constant 0 : i32
    %c0_i32_0 = arith.constant 0 : i32
    %c0_i32_1 = arith.constant 0 : i32
    return %c0_i32, %c0_i32_0 : i32, i32
  }
  func.func @transform_11(%arg0: i32) -> (i32, i32) {
    %c0_i32 = arith.constant 0 : i32
    %c0_i32_0 = arith.constant 0 : i32
    %c0_i32_1 = arith.constant 0 : i32
    return %c0_i32, %c0_i32_0 : i32, i32
  }
  func.func @transform_12(%arg0: i32) -> (i32, i32) {
    %c0_i32 = arith.constant 0 : i32
    %c0_i32_0 = arith.constant 0 : i32
    %c0_i32_1 = arith.constant 0 : i32
    return %c0_i32, %c0_i32_0 : i32, i32
  }
  func.func @transform_13(%arg0: i32) -> (i32, i32) {
    %c0_i32 = arith.constant 0 : i32
    %c0_i32_0 = arith.constant 0 : i32
    %c0_i32_1 = arith.constant 0 : i32
    return %c0_i32, %c0_i32_0 : i32, i32
  }
  func.func @transform_14(%arg0: i32) -> (i32, i32) {
    %c0_i32 = arith.constant 0 : i32
    %c0_i32_0 = arith.constant 0 : i32
    %c0_i32_1 = arith.constant 0 : i32
    return %c0_i32, %c0_i32_0 : i32, i32
  }
  func.func @transform_15(%arg0: i32) -> (i32, i32) {
    %c0_i32 = arith.constant 0 : i32
    %c0_i32_0 = arith.constant 0 : i32
    %c0_i32_1 = arith.constant 0 : i32
    return %c0_i32, %c0_i32_0 : i32, i32
  }
  func.func @transform_16(%arg0: i32) -> (i32, i32) {
    %c0_i32 = arith.constant 0 : i32
    %c0_i32_0 = arith.constant 0 : i32
    %c0_i32_1 = arith.constant 0 : i32
    return %c0_i32, %c0_i32_0 : i32, i32
  }
  func.func @transform_17(%arg0: i32) -> (i32, i32, i32) {
    %c0_i32 = arith.constant 0 : i32
    %c0_i32_0 = arith.constant 0 : i32
    %c0_i32_1 = arith.constant 0 : i32
    return %arg0, %c0_i32, %c0_i32_0 : i32, i32, i32
  }
}

module attributes {stable_mosaic.version = 11 : i64} {
  func.func @_linear_kernel(%arg0: i32, %arg1: i32, %arg2: memref<16x32xf32, #tpu.memory_space<vmem>>, %arg3: memref<32x60xbf16, #tpu.memory_space<vmem>>, %arg4: memref<1x60xf32, #tpu.memory_space<vmem>>, %arg5: memref<16x60xf32, #tpu.memory_space<vmem>>) attributes {dimension_semantics = [#tpu.dimension_semantics<parallel>, #tpu.dimension_semantics<parallel>], iteration_bounds = array<i64: 1, 1>, scalar_prefetch = 0 : i64, scratch_operands = 0 : i64, tpu.core_type = #tpu.core_type<tc>, window_params = [{transform_indices = @transform_0, window_bounds = array<i64: 16, 32>}, {transform_indices = @transform_1, window_bounds = array<i64: 32, 60>}, {transform_indices = @transform_2, window_bounds = array<i64: 1, 60>}, {transform_indices = @transform_3, window_bounds = array<i64: 16, 60>}]} {
    %c0 = arith.constant 0 : index
    %c0_0 = arith.constant 0 : index
    %0 = vector.load %arg2[%c0, %c0_0] : memref<16x32xf32, #tpu.memory_space<vmem>>, vector<16x32xf32>
    %1 = arith.truncf %0 : vector<16x32xf32> to vector<16x32xbf16>
    %c0_1 = arith.constant 0 : index
    %c0_2 = arith.constant 0 : index
    %2 = vector.load %arg3[%c0_1, %c0_2] : memref<32x60xbf16, #tpu.memory_space<vmem>>, vector<32x60xbf16>
    %cst = arith.constant dense<0.000000e+00> : vector<16x60xf32>
    %3 = tpu.matmul %1, %2, %cst {dimension_numbers = #tpu.dot_dimension_numbers<[1], [0], [0], [1], [0, 0, 1, 1], [], []>} : vector<16x32xbf16>, vector<32x60xbf16>, vector<16x60xf32> -> vector<16x60xf32>
    %c0_3 = arith.constant 0 : index
    %c0_4 = arith.constant 0 : index
    %4 = vector.load %arg4[%c0_3, %c0_4] : memref<1x60xf32, #tpu.memory_space<vmem>>, vector<1x60xf32>
    %5 = vector.broadcast %4 : vector<1x60xf32> to vector<16x60xf32>
    %6 = arith.addf %3, %5 : vector<16x60xf32>
    %c0_5 = arith.constant 0 : index
    %c0_6 = arith.constant 0 : index
    %7 = vector.load %arg5[%c0_5, %c0_6] : memref<16x60xf32, #tpu.memory_space<vmem>>, vector<16x60xf32>
    tpu.vector_store %arg5[%c0_5, %c0_6], %6 {strides = array<i32>} : memref<16x60xf32, #tpu.memory_space<vmem>>, vector<16x60xf32>,
    return
  }
  func.func @transform_0(%arg0: i32, %arg1: i32) -> (i32, i32) {
    %c0_i32 = arith.constant 0 : i32
    %c0_i32_0 = arith.constant 0 : i32
    return %arg0, %c0_i32 : i32, i32
  }
  func.func @transform_1(%arg0: i32, %arg1: i32) -> (i32, i32) {
    %c0_i32 = arith.constant 0 : i32
    %c0_i32_0 = arith.constant 0 : i32
    return %c0_i32, %arg1 : i32, i32
  }
  func.func @transform_2(%arg0: i32, %arg1: i32) -> (i32, i32) {
    %c0_i32 = arith.constant 0 : i32
    %c0_i32_0 = arith.constant 0 : i32
    return %c0_i32, %arg1 : i32, i32
  }
  func.func @transform_3(%arg0: i32, %arg1: i32) -> (i32, i32) {
    %c0_i32 = arith.constant 0 : i32
    return %arg0, %arg1 : i32, i32
  }
}

</mosaic_0001>

<bundles_post_ra>
// kernel: transformer_seq2seq_forward.6
= control target key start
LH: loop header
LB: loop body
LE: loop exit
PB: predicated region body
PF: predicated region fallthrough
CT: control target
= control target key end

     0   :  { %s1841_s24 = smov 0   ;;  %s2031_s0 = inlined_call_operand.vmem [shape: f32[2,8,32], index: 0, kind: input, shape index: {}]   ;;  %s2032_s1 = inlined_call_operand.vmem [shape: bf16[32,32], index: 1, kind: input, shape index: {}]   ;;  %s2033_s2 = inlined_call_operand.vmem [shape: f32[1,32], index: 2, kind: input, shape index: {}]   ;;  %s2034_s3 = inlined_call_operand.vmem [shape: bf16[32,64], index: 3, kind: input, shape index: {}]   ;;  %s2035_s4 = inlined_call_operand.vmem [shape: f32[1,64], index: 4, kind: input, shape index: {}]   ;;  %s2036_s5 = inlined_call_operand.vmem [shape: bf16[32,32], index: 5, kind: input, shape index: {}]   ;;  %s2037_s6 = inlined_call_operand.vmem [shape: f32[1,32], index: 6, kind: input, shape index: {}]   ;;  %s2038_s7 = inlined_call_operand.vmem [shape: f32[1,32], index: 7, kind: input, shape index: {}]   ;;  %s2039_s8 = inlined_call_operand.vmem [shape: f32[1,32], index: 8, kind: input, shape index: {}]   ;;  %s2040_s9 = inlined_call_operand.vmem [shape: bf16[32,64], index: 9, kind: input, shape index: {}]   ;;  %s2041_s10 = inlined_call_operand.vmem [shape: f32[1,64], index: 10, kind: input, shape index: {}]   ;;  %s2042_s11 = inlined_call_operand.vmem [shape: bf16[64,32], index: 11, kind: input, shape index: {}]   ;;  %s2043_s12 = inlined_call_operand.vmem [shape: f32[1,32], index: 12, kind: input, shape index: {}]   ;;  %s2044_s13 = inlined_call_operand.vmem [shape: f32[1,32], index: 13, kind: input, shape index: {}]   ;;  %s2045_s14 = inlined_call_operand.vmem [shape: f32[1,32], index: 14, kind: input, shape index: {}]   ;;  %s2046_s15 = inlined_call_operand.vmem [shape: f32[1,32], index: 15, kind: input, shape index: {}]   ;;  %s2047_s16 = inlined_call_operand.vmem [shape: f32[1,32], index: 16, kind: input, shape index: {}]   ;;  %s2048_s17 = inlined_call_operand.vmem [shape: f32[2,8,32], index: 17, kind: output, shape index: {}]  }
   0x1   :  { %2050 = sst [smem:[#allocation3_spill]] %s2031_s0 }
   0x2   :  { %2051 = sst [smem:[#allocation4_spill]] %s2032_s1 }
   0x3 LB: > { %s1507_s25 = sadd.s32 4294967295, %s1737_s24   ;;  %p1511_p0 = scmp.ge.s32.totalorder %s1737_s24, 1  ;;  %s1737_s24 = sphi %s1841_s24, %s27_s24  }
   0x4   : > { %p486_p1 = scmp.lt.s32.totalorder %s1737_s24, 3 }
   0x6   : > { %p487_p2 = pnand %p1511_p0, %p486_p1 }
   0x7   : > { %s2052_s28 = sld [smem:[#allocation4_spill]] (!%p487_p2)  ;;  %p536_p3 = scmp.lt.s32.totalorder (!%p487_p2), %s1507_s25, 1 }
   0x8   : > { %490 = sbr.rel (%p487_p2) target bundleno = 2719 (0xa9f), region = 88  ;;  %s2053_s21 = sld [smem:[#allocation3_spill]] (!%p487_p2) }
   0x9   : > { %s1741_s19 = smov (!%p487_p2), 112   ;;  %s1742_s1 = smov (!%p487_p2), 120  }
   0xa   : > { %s1743_s20 = smov (!%p487_p2), 104   ;;  %s1746_s23 = smov (!%p487_p2), 72  }
   0xb   : > { %s1747_s26 = smov (!%p487_p2), 88   ;;  %s1748_s27 = smov (!%p487_p2), 8  }
   0xd   : > { %v1697_v0 = vld [vmem:[%s2052_s28 + $0x8] sm:$0xff]   ;;  %v1739_v1 = vmov 0.0   ;;  %v1698_v2 = vld [vmem:[%s2052_s28] sm:$0xff]   ;;  %vm1740_vm0 = vmmov 0   ;;  %s2055_s25 = smov (!%p536_p3, %s1507_s25), 1  ;;  %vm582_vm1 = vcmask 261120  }
   0xe   : > { %1585 = vmatprep.subr.bf16.mxu1 %v1739_v1  ;;  %1601 = vmatprep.subr.bf16.mxu0 %v1739_v1  ;;  %s1512_s30 = sshll.u32 %s2055_s25, 3  ;;  %v1699_v3 = vld [vmem:[%s2034_s3 + $0x8] sm:$0xff]   ;;  %v1700_v6 = vld [vmem:[%s2034_s3] sm:$0xff]   ;;  %vm686_vm2 = vcmask 64512   ;;  %vm752_vm3 = vcmask 1043456   ;;  %vm913_vm4 = vcmask 130112  }
   0xf   : > { %1586 = vmatpush3.bf16.msra.mxu1 %v1697_v0  ;;  %1589 = vmatprep.mubr.msk.bf16.mxu1 %vm1740_vm0, %v1739_v1  ;;  %s539_s22 = scalar_lea.vmem %s2053_s21, %s1512_s30  ;;  %v1518_v11 = vld [vmem:[%s2035_s4] ss:$0 sm:$0xff]  ;;  %s1744_s21 = smov 96   ;;  %vm1030_vm5 = vcmask 195712   ;;  %vm1147_vm6 = vcmask 261312   ;;  %vm1345_vm7 = vcmask 523264  }
  0x10   : > { %1587 = vmatprep.subr.bf16.mxu1 %v1739_v1  ;;  %1603 = vmatprep.mubr.msk.bf16.mxu0 %vm1740_vm0, %v1739_v1  ;;  %v1874_v4 = vld [vmem:[%s539_s22] sm:$0xff]  ;;  %s1745_s22 = smov 80  }
  0x11   : > { %v563_v5 = vpack.c.bf16 %v1874_v4, %v1874_v4  ;;  %v1514_v12 = vld [vmem:[%s2033_s2] ss:$0 sm:$0xff] }
  0x13   : > { %1588 = vmatpush3.bf16.msra.mxu1 %v1698_v2 }
  0x14   : > { %1593 = vmatprep.subr.bf16.mxu1 %v1739_v1 }
  0x16   : > { %1590 = vmatmul.mubr.msk.bf16.vlgmr.msra.gmra.mxu1 %vm582_vm1, %v563_v5 }
  0x17   : > { %1594 = vmatpush3.bf16.msra.mxu1 %v1699_v3  ;;  %1597 = vmatprep.mubr.msk.bf16.mxu1 %vm1740_vm0, %v1739_v1 }
  0x18   : > { %1595 = vmatprep.subr.bf16.mxu1 %v1739_v1 }
  0x1b   : > { %1596 = vmatpush3.bf16.msra.mxu1 %v1700_v6 }
  0x1c   : > { %1607 = vmatprep.subr.bf16.mxu1 %v1739_v1 }
  0x1e   : > { %1598 = vmatmul.mubr.msk.bf16.vlgmr.msra.gmra.mxu1 %vm582_vm1, %v563_v5 }
  0x1f   : > { %1609 = vmatprep.mubr.msk.bf16.mxu1 %vm1740_vm0, %v1739_v1 }
  0xd6   : > { %v620_v7 = vpop.f32.mrf.mxu1 }
  0xd7   : > { %v621_v16 = vadd.f32 %v1514_v12, %v620_v7 }
  0xd8   : > { %v1591_v8 = vpop.f32.mrf.mxu1 }
  0xd9   : > { %v684_v21 = vpack.c.bf16 %v621_v16, %v621_v16 }
  0xda   : > { %v623_v9 = vpop.f32.mrf.mxu1 }
  0xdc   : > { %v1592_v10 = vpop.f32.mrf.mxu1 }
  0xde   : > { %v678_v13 = vpop.f32.mrf.mxu1 }
  0xdf   : > { %v679_v14 = vadd.f32 %v1518_v11, %v678_v13 }
  0xe0   : > { %v1599_v15 = vpop.f32.mrf.mxu1 }
  0xe1   : > { %v1895_v17 = vpack.c.bf16 %v679_v14, %v679_v14 }
  0xe2   : > { %v681_v18 = vpop.f32.mrf.mxu1 }
  0xe3   : > { %917 = vrot.lane.b32.xlu1 %v1895_v17, %s1741_s19  ;;  %800 = vrot.lane.b32.xlu0 %v1895_v17, %s1742_s1  ;;  %v691_v19 = vsel %vm686_vm2, %v1895_v17, 0 }
  0xe4   : > { %v1600_v20 = vpop.f32.mrf.mxu1  ;;  %1602 = vmatpush3.bf16.xpose.msra.mxu0 %v691_v19 }
  0xe5   : > { %1613 = vmatprep.subr.bf16.mxu0 %v1739_v1 }
  0xe7   : > { %915 = vrot.lane.b32.xlu1 %v684_v21, %s1741_s19  ;;  %798 = vrot.lane.b32.xlu0 %v684_v21, %s1742_s1  ;;  %s1749_s1 = smov 16  }
  0xeb   : > { %1032 = vrot.lane.b32.xlu1 %v684_v21, %s1743_s20  ;;  %1034 = vrot.lane.b32.xlu0 %v1895_v17, %s1743_s20  ;;  %s1750_s20 = smov 24  }
  0xec   : > { %1604 = vmatmul.mubr.msk.bf16.vlgmr.msra.gmra.mxu0 %vm686_vm2, %v684_v21 }
  0xed   : > { %1615 = vmatprep.mubr.msk.bf16.mxu0 %vm1740_vm0, %v1739_v1 }
 0x155   : > { %v801_v22 = vpop.permute.xlu0 %800  ;;  %v918_v24 = vpop.permute.xlu1 %917 }
 0x156   : > { %v806_v23 = vsel %vm686_vm2, %v801_v22, 0  ;;  %v923_v26 = vsel %vm686_vm2, %v918_v24, 0 }
 0x157   : > { %1614 = vmatpush3.bf16.xpose.msra.mxu0 %v806_v23 }
 0x158   : > { %1625 = vmatprep.subr.bf16.mxu0 %v1739_v1 }
 0x159   : > { %v799_v25 = vpop.permute.xlu0 %798  ;;  %v916_v28 = vpop.permute.xlu1 %915 }
 0x15d   : > { %v1035_v27 = vpop.permute.xlu0 %1034  ;;  %v1033_v30 = vpop.permute.xlu1 %1032 }
 0x15e   : > { %1616 = vmatmul.mubr.msk.bf16.vlgmr.msra.gmra.mxu0 %vm686_vm2, %v799_v25  ;;  %v1040_v29 = vsel %vm686_vm2, %v1035_v27, 0 }
 0x15f   : > { %1626 = vmatpush3.bf16.xpose.msra.mxu0 %v923_v26  ;;  %1627 = vmatprep.mubr.msk.bf16.mxu0 %vm1740_vm0, %v1739_v1 }
 0x160   : > { %1637 = vmatprep.subr.bf16.mxu0 %v1739_v1 }
 0x166   : > { %1628 = vmatmul.mubr.msk.bf16.vlgmr.msra.gmra.mxu0 %vm686_vm2, %v916_v28 }
 0x167   : > { %1638 = vmatpush3.bf16.xpose.msra.mxu0 %v1040_v29  ;;  %1639 = vmatprep.mubr.msk.bf16.mxu0 %vm1740_vm0, %v1739_v1 }
 0x168   : > { %1649 = vmatprep.subr.bf16.mxu0 %v1739_v1 }
 0x16e   : > { %1640 = vmatmul.mubr.msk.bf16.vlgmr.msra.gmra.mxu0 %vm686_vm2, %v1033_v30 }
 0x16f   : > { %1653 = vmatprep.mubr.msk.bf16.mxu0 %vm1740_vm0, %v1739_v1 }
 0x1ac   : > { %v727_v31 = vpop.f32.mrf.mxu0 }
 0x1ad   : > { %v733_v32 = vmul.f32 0.35355338, %v727_v31 }
 0x1ae   : > { %v1605_v33 = vpop.f32.mrf.mxu0 }
 0x1af   : > { %v734_v34 = vsel %vm686_vm2, %v733_v32, -inf }
 0x1b0   : > { %735 = vmax.xlane.f32.xlu0 %v734_v34  ;;  %v730_v35 = vpop.f32.mrf.mxu0 }
 0x1b2   : > { %v1606_v36 = vpop.f32.mrf.mxu0 }
 0x21e   : > { %v842_v37 = vpop.f32.mrf.mxu0 }
 0x21f   : > { %v848_v38 = vmul.f32 0.35355338, %v842_v37 }
 0x220   : > { %v1617_v39 = vpop.f32.mrf.mxu0 }
 0x221   : > { %v849_v40 = vsel %vm686_vm2, %v848_v38, -inf }
 0x222   : > { %850 = vmax.xlane.f32.xlu1 %v849_v40  ;;  %v845_v41 = vpop.f32.mrf.mxu0 }
 0x224   : > { %v1618_v42 = vpop.f32.mrf.mxu0 }
 0x226   : > { %v959_v43 = vpop.f32.mrf.mxu0 }
 0x227   : > { %v965_v44 = vmul.f32 0.35355338, %v959_v43 }
 0x228   : > { %v1629_v45 = vpop.f32.mrf.mxu0 }
 0x229   : > { %v966_v46 = vsel %vm686_vm2, %v965_v44, -inf }
 0x22a   : > { %967 = vmax.xlane.f32.xlu0 %v966_v46  ;;  %v962_v47 = vpop.f32.mrf.mxu0  ;;  %v1702_v46 = vld [vmem:[%s2036_s5] sm:$0xff]  }
 0x22c   : > { %v1630_v48 = vpop.f32.mrf.mxu0 }
 0x22e   : > { %v1076_v49 = vpop.f32.mrf.mxu0 }
 0x22f   : > { %v1082_v50 = vmul.f32 0.35355338, %v1076_v49 }
 0x230   : > { %v1641_v51 = vpop.f32.mrf.mxu0 }
 0x231   : > { %v1083_v52 = vsel %vm686_vm2, %v1082_v50, -inf }
 0x232   : > { %1084 = vmax.xlane.f32.xlu0 %v1083_v52  ;;  %v1079_v53 = vpop.f32.mrf.mxu0 }
 0x234   : > { %v1642_v54 = vpop.f32.mrf.mxu0 }
 0x239   : > { %v736_v55 = vpop.xlane.xlu0 %735 }
 0x23a   : > { %v737_v56 = vsub.f32 %v733_v32, %v736_v55 }
 0x23c   : > { %v738_v57 = vmul.f32 1.442695, %v737_v56 }
 0x23e   : > { %1709 = vpow2.f32 %v738_v57 }
 0x24b   : > { %v1710_v58 = vpop.eup %1709 }
 0x24c   : > { %v740_v59 = vsel %vm686_vm2, %v1710_v58, 0.0 }
 0x24d   : > { %741 = vadd.xlane.f32.xlu1 %v740_v59 }
 0x25e   : > { %747 = vrot.lane.b32.xlu1 %v1895_v17, %s1744_s21 }
 0x2ab   : > { %v851_v60 = vpop.xlane.xlu1 %850 }
 0x2ac   : > { %v852_v61 = vsub.f32 %v848_v38, %v851_v60  ;;  %v1530_v60 = vld [vmem:[%s2037_s6] ss:$0 sm:$0xff] }
 0x2ae   : > { %v853_v62 = vmul.f32 1.442695, %v852_v61 }
 0x2b0   : > { %1711 = vpow2.f32 %v853_v62 }
 0x2b3   : > { %v968_v63 = vpop.xlane.xlu0 %967 }
 0x2b4   : > { %v969_v0 = vsub.f32 %v965_v44, %v968_v63  ;;  %v1701_v44 = vld [vmem:[%s2036_s5 + $0x8] sm:$0xff]  }
 0x2b5   : > { %1650 = vmatpush3.bf16.msra.mxu0 %v1701_v44 }
 0x2b6   : > { %v970_v2 = vmul.f32 1.442695, %v969_v0  ;;  %1651 = vmatprep.subr.bf16.mxu0 %v1739_v1 }
 0x2b8   : > { %1713 = vpow2.f32 %v970_v2 }
 0x2b9   : > { %1652 = vmatpush3.bf16.msra.mxu0 %v1702_v46 }
 0x2ba   : > { %1665 = vmatprep.subr.bf16.mxu0 %v1739_v1 }
 0x2bb   : > { %v1085_v3 = vpop.xlane.xlu0 %1084 }
 0x2bc   : > { %v1086_v5 = vsub.f32 %v1082_v50, %v1085_v3 }
 0x2bd   : > { %v1712_v6 = vpop.eup %1711 }
 0x2be   : > { %v1087_v7 = vmul.f32 1.442695, %v1086_v5  ;;  %v855_v8 = vsel %vm686_vm2, %v1712_v6, 0.0 }
 0x2bf   : > { %856 = vadd.xlane.f32.xlu0 %v855_v8 }
 0x2c0   : > { %1715 = vpow2.f32 %v1087_v7 }
 0x2c5   : > { %v1714_v9 = vpop.eup %1713 }
 0x2c6   : > { %v972_v10 = vsel %vm686_vm2, %v1714_v9, 0.0 }
 0x2c7   : > { %973 = vadd.xlane.f32.xlu1 %v972_v10 }
 0x2cd   : > { %v1716_v11 = vpop.eup %1715 }
 0x2ce   : > { %v1089_v12 = vsel %vm686_vm2, %v1716_v11, 0.0 }
 0x2cf   : > { %1090 = vadd.xlane.f32.xlu0 %v1089_v12  ;;  %v1705_v12 = vld [vmem:[%s2042_s11 + $0x18] sm:$0xff]  }
 0x2d6   : > { %v742_v13 = vpop.xlane.xlu1 %741 }
 0x2d7   : > { %1717 = vrcp.f32 %v742_v13  ;;  %v1706_v13 = vld [vmem:[%s2042_s11 + $0x10] sm:$0xff]  }
 0x2d8   : > { %978 = vrot.lane.b32.xlu1 %v1895_v17, %s1745_s22 }
 0x2da   : > { %v748_v14 = vpop.permute.xlu1 %747 }
 0x2db   : > { %v754_v15 = vsel %vm752_vm3, %v748_v14, 0 }
 0x2dc   : > { %1608 = vmatpush3.bf16.msra.mxu1 %v754_v15  ;;  %1095 = vrot.lane.b32.xlu1 %v1895_v17, %s1746_s23 }
 0x2dd   : > { %1619 = vmatprep.subr.bf16.mxu1 %v1739_v1 }
 0x2e4   : > { %v1718_v16 = vpop.eup %1717 }
 0x2e5   : > { %861 = vrot.lane.b32.xlu0 %v1895_v17, %s1747_s26  ;;  %v744_v18 = vmul.f32 %v1718_v16, %v1710_v58 }
 0x2e7   : > { %v745_v19 = vpack.c.bf16 %v744_v18, %v744_v18 }
 0x2e9   : > { %1610 = vmatmul.mubr.msk.bf16.vlgmr.msra.gmra.mxu1 %vm686_vm2, %v745_v19  ;;  %v1534_v19 = vld [vmem:[%s2038_s7] ss:$0 sm:$0xff] }
 0x2ea   : > { %1621 = vmatprep.mubr.msk.bf16.mxu1 %vm1740_vm0, %v1739_v1 }
 0x348   : > { %v857_v20 = vpop.xlane.xlu0 %856 }
 0x349   : > { %1719 = vrcp.f32 %v857_v20 }
 0x350   : > { %v974_v21 = vpop.xlane.xlu1 %973 }
 0x351   : > { %1721 = vrcp.f32 %v974_v21  ;;  %v1535_v21 = vld [vmem:[%s2039_s8] ss:$0 sm:$0xff] }
 0x354   : > { %v979_v27 = vpop.permute.xlu1 %978 }
 0x355   : > { %v984_v29 = vsel %vm752_vm3, %v979_v27, 0  ;;  %v1536_v27 = vld [vmem:[%s2041_s10] ss:$0 sm:$0xff] }
 0x356   : > { %v1720_v22 = vpop.eup %1719 }
 0x357   : > { %v859_v24 = vmul.f32 %v1720_v22, %v1712_v6 }
 0x358   : > { %v1091_v23 = vpop.xlane.xlu0 %1090  ;;  %v1096_v31 = vpop.permute.xlu1 %1095 }
 0x359   : > { %1723 = vrcp.f32 %v1091_v23  ;;  %v860_v17 = vpack.c.bf16 %v859_v24, %v859_v24  ;;  %v1101_v34 = vsel %vm752_vm3, %v1096_v31, 0 }
 0x35c   : > { %v862_v25 = vpop.permute.xlu0 %861 }
 0x35d   : > { %v867_v26 = vsel %vm752_vm3, %v862_v25, 0  ;;  %v1707_v25 = vld [vmem:[%s2042_s11 + $0x8] sm:$0xff]  }
 0x35e   : > { %1620 = vmatpush3.bf16.msra.mxu1 %v867_v26  ;;  %v1722_v28 = vpop.eup %1721  ;;  %v1708_v26 = vld [vmem:[%s2042_s11] sm:$0xff]  }
 0x35f   : > { %1631 = vmatprep.subr.bf16.mxu1 %v1739_v1  ;;  %v976_v30 = vmul.f32 %v1722_v28, %v1714_v9 }
 0x361   : > { %1622 = vmatmul.mubr.msk.bf16.vlgmr.msra.gmra.mxu1 %vm686_vm2, %v860_v17  ;;  %v977_v32 = vpack.c.bf16 %v976_v30, %v976_v30 }
 0x362   : > { %1632 = vmatpush3.bf16.msra.mxu1 %v984_v29  ;;  %1633 = vmatprep.mubr.msk.bf16.mxu1 %vm1740_vm0, %v1739_v1 }
 0x363   : > { %1643 = vmatprep.subr.bf16.mxu1 %v1739_v1 }
 0x366   : > { %v1724_v33 = vpop.eup %1723 }
 0x367   : > { %v1093_v35 = vmul.f32 %v1724_v33, %v1716_v11  ;;  %v1703_v11 = vld [vmem:[%s2040_s9 + $0x8] sm:$0xff]  }
 0x369   : > { %1634 = vmatmul.mubr.msk.bf16.vlgmr.msra.gmra.mxu1 %vm686_vm2, %v977_v32  ;;  %v1094_v36 = vpack.c.bf16 %v1093_v35, %v1093_v35 }
 0x36a   : > { %1644 = vmatpush3.bf16.msra.mxu1 %v1101_v34  ;;  %1645 = vmatprep.mubr.msk.bf16.mxu1 %vm1740_vm0, %v1739_v1 }
 0x36b   : > { %1657 = vmatprep.subr.bf16.mxu1 %v1739_v1 }
 0x371   : > { %1646 = vmatmul.mubr.msk.bf16.vlgmr.msra.gmra.mxu1 %vm686_vm2, %v1094_v36 }
 0x372   : > { %1661 = vmatprep.mubr.msk.bf16.mxu1 %vm1740_vm0, %v1739_v1  ;;  %1658 = vmatpush3.bf16.msra.mxu1 %v1703_v11 }
 0x373   : > { %1659 = vmatprep.subr.bf16.mxu1 %v1739_v1 }
 0x3a9   : > { %v790_v37 = vpop.f32.mrf.mxu1 }
 0x3aa   : > { %796 = vst.msk [vmem:[#allocation2] sm:$0xff] %vm686_vm2, %v790_v37 }
 0x3ab   : > { %v1611_v38 = vpop.f32.mrf.mxu1 }
 0x3ad   : > { %v793_v39 = vpop.f32.mrf.mxu1 }
 0x3af   : > { %v1612_v40 = vpop.f32.mrf.mxu1 }
 0x421   : > { %v903_v41 = vpop.f32.mrf.mxu1 }
 0x422   : > { %910 = vrot.lane.b32.xlu0 %v903_v41, %s1748_s27 }
 0x423   : > { %v1623_v42 = vpop.f32.mrf.mxu1 }
 0x425   : > { %v906_v43 = vpop.f32.mrf.mxu1 }
 0x427   : > { %v1624_v45 = vpop.f32.mrf.mxu1 }
 0x429   : > { %v1020_v47 = vpop.f32.mrf.mxu1 }
 0x42a   : > { %1027 = vrot.lane.b32.xlu1 %v1020_v47, %s1749_s1 }
 0x42b   : > { %v1635_v48 = vpop.f32.mrf.mxu1 }
 0x42d   : > { %v1023_v49 = vpop.f32.mrf.mxu1 }
 0x42f   : > { %v1636_v50 = vpop.f32.mrf.mxu1 }
 0x430   : > { %v1546_v50 = vld [vmem:[%s2044_s13] ss:$0 sm:$0xff] }
 0x431   : > { %v1137_v51 = vpop.f32.mrf.mxu1 }
 0x432   : > { %1144 = vrot.lane.b32.xlu0 %v1137_v51, %s1750_s20  ;;  %s543_s20 = scalar_lea.vmem %s2048_s17, %s1512_s30 }
 0x433   : > { %v1647_v52 = vpop.f32.mrf.mxu1 }
 0x434   : > { %v1547_v52 = vld [vmem:[%s2045_s14] ss:$0 sm:$0xff] }
 0x435   : > { %v1140_v53 = vpop.f32.mrf.mxu1 }
 0x437   : > { %v1648_v54 = vpop.f32.mrf.mxu1 }
 0x494   : > { %v911_v55 = vpop.permute.xlu0 %910 }
 0x495   : > { %914 = vst.msk [vmem:[#allocation2] sm:$0xff] %vm913_vm4, %v911_v55 }
 0x49c   : > { %v1028_v56 = vpop.permute.xlu1 %1027 }
 0x49d   : > { %1031 = vst.msk [vmem:[#allocation2] sm:$0xff] %vm1030_vm5, %v1028_v56 }
 0x4a4   : > { %v1145_v57 = vpop.permute.xlu0 %1144 }
 0x4a5   : > { %1148 = vst.msk [vmem:[#allocation2] sm:$0xff] %vm1147_vm6, %v1145_v57 }
 0x4ac   : > { %v1149_v58 = vld [vmem:[#allocation2] sm:$0xff] }
 0x4ad   : > { %v1150_v59 = vpack.c.bf16 %v1149_v58, %v1149_v58 }
 0x4af   : > { %1654 = vmatmul.mubr.msk.bf16.vlgmr.msra.gmra.mxu0 %vm582_vm1, %v1150_v59 }
 0x4b0   : > { %1673 = vmatprep.mubr.msk.bf16.mxu0 %vm1740_vm0, %v1739_v1  ;;  %1666 = vmatpush3.bf16.msra.mxu0 %v1705_v12 }
 0x4b1   : > { %1667 = vmatprep.subr.bf16.mxu0 %v1739_v1 }
 0x4b4   : > { %1668 = vmatpush3.bf16.msra.mxu0 %v1706_v13 }
 0x4b5   : > { %1669 = vmatprep.subr.bf16.mxu0 %v1739_v1 }
 0x4b8   : > { %1670 = vmatpush3.bf16.msra.mxu0 %v1707_v25 }
 0x4b9   : > { %1671 = vmatprep.subr.bf16.mxu0 %v1739_v1  ;;  %v1545_v1 = vld [vmem:[%s2043_s12] ss:$0 sm:$0xff] }
 0x4bc   : > { %1672 = vmatpush3.bf16.msra.mxu0 %v1708_v26 }
 0x56f   : > { %v1206_v61 = vpop.f32.mrf.mxu0 }
 0x570   : > { %v1207_v62 = vadd.f32 %v1530_v60, %v1206_v61 }
 0x571   : > { %v1655_v63 = vpop.f32.mrf.mxu0 }
 0x572   : > { %v1212_v0 = vadd.f32 %v1207_v62, %v1874_v4  ;;  %v1704_v4 = vld [vmem:[%s2040_s9] sm:$0xff]  }
 0x573   : > { %v1209_v2 = vpop.f32.mrf.mxu0  ;;  %1660 = vmatpush3.bf16.msra.mxu1 %v1704_v4 }
 0x574   : > { %v1213_v3 = vsel %vm582_vm1, %v1212_v0, 0.0  ;;  %v1548_v2 = vld [vmem:[%s2046_s15] ss:$0 sm:$0xff] }
 0x575   : > { %1214 = vadd.xlane.f32.xlu1 %v1213_v3  ;;  %v1656_v5 = vpop.f32.mrf.mxu0 }
 0x576   : > { %v1549_v5 = vld [vmem:[%s2047_s16] ss:$0 sm:$0xff] }
 0x5fe   : > { %v1215_v6 = vpop.xlane.xlu1 %1214 }
 0x5ff   : > { %v1217_v7 = vmul.f32 0.03125, %v1215_v6 }
 0x601   : > { %v1218_v8 = vsub.f32 %v1212_v0, %v1217_v7 }
 0x603   : > { %v1219_v9 = vmul.f32 %v1218_v8, %v1218_v8 }
 0x605   : > { %v1220_v10 = vsel %vm582_vm1, %v1219_v9, 0.0 }
 0x606   : > { %1221 = vadd.xlane.f32.xlu0 %v1220_v10 }
 0x68f   : > { %v1222_v14 = vpop.xlane.xlu0 %1221 }
 0x690   : > { %v1223_v15 = vmul.f32 0.03125, %v1222_v14 }
 0x692   : > { %v1224_v16 = vadd.f32 1e-05, %v1223_v15 }
 0x694   : > { %1725 = vrsqrt.f32 %v1224_v16 }
 0x6a1   : > { %v1726_v18 = vpop.eup %1725 }
 0x6a2   : > { %v1226_v20 = vmul.f32 %v1726_v18, %v1218_v8 }
 0x6a4   : > { %v1233_v22 = vmul.f32 %v1534_v19, %v1226_v20 }
 0x6a6   : > { %v1240_v23 = vadd.f32 %v1535_v21, %v1233_v22 }
 0x6a8   : > { %v1257_v24 = vpack.c.bf16 %v1240_v23, %v1240_v23 }
 0x6aa   : > { %1662 = vmatmul.mubr.msk.bf16.vlgmr.msra.gmra.mxu1 %vm582_vm1, %v1257_v24 }
 0x76a   : > { %v1313_v17 = vpop.f32.mrf.mxu1 }
 0x76b   : > { %v1314_v28 = vadd.f32 %v1536_v27, %v1313_v17 }
 0x76c   : > { %v1663_v29 = vpop.f32.mrf.mxu1 }
 0x76d   : > { %v1319_v30 = vmax.f32 %v1314_v28, 0.0 }
 0x76e   : > { %v1316_v31 = vpop.f32.mrf.mxu1 }
 0x76f   : > { %v1320_v32 = vpack.c.bf16 %v1319_v30, %v1319_v30 }
 0x770   : > { %v1664_v33 = vpop.f32.mrf.mxu1 }
 0x771   : > { %1674 = vmatmul.mubr.msk.bf16.vlgmr.msra.gmra.mxu0 %vm1345_vm7, %v1320_v32 }
 0x831   : > { %v1383_v34 = vpop.f32.mrf.mxu0 }
 0x832   : > { %v1389_v35 = vadd.f32 %v1383_v34, %v1240_v23 }
 0x833   : > { %v1675_v36 = vpop.f32.mrf.mxu0 }
 0x834   : > { %v1396_v37 = vadd.f32 %v1545_v1, %v1389_v35 }
 0x835   : > { %v1386_v38 = vpop.f32.mrf.mxu0 }
 0x836   : > { %v1397_v39 = vsel %vm582_vm1, %v1396_v37, 0.0 }
 0x837   : > { %1398 = vadd.xlane.f32.xlu0 %v1397_v39  ;;  %v1676_v40 = vpop.f32.mrf.mxu0 }
 0x8c0   : > { %v1399_v41 = vpop.xlane.xlu0 %1398 }
 0x8c1   : > { %v1400_v42 = vmul.f32 0.03125, %v1399_v41 }
 0x8c3   : > { %v1401_v43 = vsub.f32 %v1396_v37, %v1400_v42 }
 0x8c5   : > { %v1402_v44 = vmul.f32 %v1401_v43, %v1401_v43 }
 0x8c7   : > { %v1403_v45 = vsel %vm582_vm1, %v1402_v44, 0.0 }
 0x8c8   : > { %1404 = vadd.xlane.f32.xlu1 %v1403_v45 }
 0x951   : > { %v1405_v46 = vpop.xlane.xlu1 %1404 }
 0x952   : > { %v1406_v47 = vmul.f32 0.03125, %v1405_v46 }
 0x954   : > { %v1407_v48 = vadd.f32 1e-05, %v1406_v47 }
 0x956   : > { %1727 = vrsqrt.f32 %v1407_v48 }
 0x963   : > { %v1728_v49 = vpop.eup %1727 }
 0x964   : > { %v1409_v51 = vmul.f32 %v1728_v49, %v1401_v43 }
 0x966   : > { %v1416_v53 = vmul.f32 %v1546_v50, %v1409_v51 }
 0x968   : > { %v1423_v54 = vadd.f32 %v1547_v52, %v1416_v53 }
 0x96a   : > { %v1426_v55 = vsel %vm582_vm1, %v1423_v54, 0.0 }
 0x96b   : > { %1427 = vadd.xlane.f32.xlu0 %v1426_v55 }
 0x9f4   : > { %v1428_v56 = vpop.xlane.xlu0 %1427 }
 0x9f5   : > { %v1429_v57 = vmul.f32 0.03125, %v1428_v56 }
 0x9f7   : > { %v1430_v58 = vsub.f32 %v1423_v54, %v1429_v57 }
 0x9f9   : > { %v1431_v59 = vmul.f32 %v1430_v58, %v1430_v58 }
 0x9fb   : > { %v1432_v60 = vsel %vm582_vm1, %v1431_v59, 0.0 }
 0x9fc   : > { %1433 = vadd.xlane.f32.xlu1 %v1432_v60 }
 0xa85   : > { %v1434_v61 = vpop.xlane.xlu1 %1433 }
 0xa86   : > { %v1435_v62 = vmul.f32 0.03125, %v1434_v61 }
 0xa88   : > { %v1436_v63 = vadd.f32 1e-05, %v1435_v62 }
 0xa8a   : > { %1729 = vrsqrt.f32 %v1436_v63 }
 0xa97   : > { %v1730_v0 = vpop.eup %1729 }
 0xa98   : > { %v1438_v3 = vmul.f32 %v1730_v0, %v1430_v58 }
 0xa9a   : > { %v1445_v6 = vmul.f32 %v1548_v2, %v1438_v3 }
 0xa9c   : > { %v1452_v7 = vadd.f32 %v1549_v5, %v1445_v6 }
 0xa9e   : > { %1453 = vst.msk [vmem:[%s543_s20] sm:$0xff] %vm582_vm1, %v1452_v7 }
 0xa9f PF: > { %s27_s24 = sadd.s32 1, %s1737_s24  }
 0xaa0   : > { %p24_p4 = scmp.ge.s32.totalorder %s27_s24, 4  }
 0xaa2   :  { %26 = sbr.rel (!%p24_p4) target bundleno = 3 (0x3), region = 118 }

// kernel: transformer_seq2seq_forward.5
= control target key start
LH: loop header
LB: loop body
LE: loop exit
PB: predicated region body
PF: predicated region fallthrough
CT: control target
= control target key end

     0   :  { %s1808_s24 = smov 0   ;;  %s1990_s0 = inlined_call_operand.vmem [shape: f32[2,8,32], index: 0, kind: input, shape index: {}]   ;;  %s1991_s1 = inlined_call_operand.vmem [shape: bf16[32,32], index: 1, kind: input, shape index: {}]   ;;  %s1992_s2 = inlined_call_operand.vmem [shape: f32[1,32], index: 2, kind: input, shape index: {}]   ;;  %s1993_s3 = inlined_call_operand.vmem [shape: bf16[32,64], index: 3, kind: input, shape index: {}]   ;;  %s1994_s4 = inlined_call_operand.vmem [shape: f32[1,64], index: 4, kind: input, shape index: {}]   ;;  %s1995_s5 = inlined_call_operand.vmem [shape: bf16[32,32], index: 5, kind: input, shape index: {}]   ;;  %s1996_s6 = inlined_call_operand.vmem [shape: f32[1,32], index: 6, kind: input, shape index: {}]   ;;  %s1997_s7 = inlined_call_operand.vmem [shape: f32[1,32], index: 7, kind: input, shape index: {}]   ;;  %s1998_s8 = inlined_call_operand.vmem [shape: f32[1,32], index: 8, kind: input, shape index: {}]   ;;  %s1999_s9 = inlined_call_operand.vmem [shape: bf16[32,64], index: 9, kind: input, shape index: {}]   ;;  %s2000_s10 = inlined_call_operand.vmem [shape: f32[1,64], index: 10, kind: input, shape index: {}]   ;;  %s2001_s11 = inlined_call_operand.vmem [shape: bf16[64,32], index: 11, kind: input, shape index: {}]   ;;  %s2002_s12 = inlined_call_operand.vmem [shape: f32[1,32], index: 12, kind: input, shape index: {}]   ;;  %s2003_s13 = inlined_call_operand.vmem [shape: f32[1,32], index: 13, kind: input, shape index: {}]   ;;  %s2004_s14 = inlined_call_operand.vmem [shape: f32[1,32], index: 14, kind: input, shape index: {}]   ;;  %s2005_s15 = inlined_call_operand.vmem [shape: f32[1,32], index: 15, kind: input, shape index: {}]   ;;  %s2006_s16 = inlined_call_operand.vmem [shape: f32[1,32], index: 16, kind: input, shape index: {}]   ;;  %s2007_s17 = inlined_call_operand.vmem [shape: f32[2,8,32], index: 17, kind: output, shape index: {}]  }
   0x1   :  { %2009 = sst [smem:[#allocation3_spill]] %s1990_s0 }
   0x2   :  { %2010 = sst [smem:[#allocation4_spill]] %s1991_s1 }
   0x3 LB: > { %s1478_s25 = sadd.s32 4294967295, %s1704_s24   ;;  %p1482_p0 = scmp.ge.s32.totalorder %s1704_s24, 1  ;;  %s1704_s24 = sphi %s1808_s24, %s27_s24  }
   0x4   : > { %p486_p1 = scmp.lt.s32.totalorder %s1704_s24, 3 }
   0x6   : > { %p487_p2 = pnand %p1482_p0, %p486_p1 }
   0x7   : > { %s2011_s26 = sld [smem:[#allocation4_spill]] (!%p487_p2)  ;;  %p536_p3 = scmp.lt.s32.totalorder (!%p487_p2), %s1478_s25, 1 }
   0x8   : > { %490 = sbr.rel (%p487_p2) target bundleno = 2411 (0x96b), region = 88  ;;  %s2012_s1 = sld [smem:[#allocation3_spill]] (!%p487_p2) }
   0x9   : > { %s1708_s28 = smov (!%p487_p2), 112   ;;  %s1709_s0 = smov (!%p487_p2), 120  }
   0xa   : > { %s1710_s30 = smov (!%p487_p2), 104   ;;  %s1711_s18 = smov (!%p487_p2), 96  }
   0xb   : > { %s1712_s19 = smov (!%p487_p2), 80   ;;  %s1715_s21 = smov (!%p487_p2), 8  }
   0xc   : > { %s1716_s27 = smov (!%p487_p2), 16  }
   0xd   : > { %v1666_v0 = vld [vmem:[%s2011_s26 + $0x8] sm:$0xff]   ;;  %v1706_v1 = vmov 0.0   ;;  %v1667_v2 = vld [vmem:[%s2011_s26] sm:$0xff]   ;;  %vm1707_vm0 = vmmov 0   ;;  %s2014_s25 = smov (!%p536_p3, %s1478_s25), 1  ;;  %vm582_vm1 = vcmask 261120  }
   0xe   : > { %1554 = vmatprep.subr.bf16.mxu1 %v1706_v1  ;;  %1570 = vmatprep.subr.bf16.mxu0 %v1706_v1  ;;  %s1483_s29 = sshll.u32 %s2014_s25, 3  ;;  %v1668_v3 = vld [vmem:[%s1993_s3 + $0x8] sm:$0xff]   ;;  %v1669_v6 = vld [vmem:[%s1993_s3] sm:$0xff]   ;;  %vm686_vm2 = vcmask 64512   ;;  %vm752_vm3 = vcmask 1043456   ;;  %vm913_vm4 = vcmask 130112  }
   0xf   : > { %1555 = vmatpush3.bf16.msra.mxu1 %v1666_v0  ;;  %1558 = vmatprep.mubr.msk.bf16.mxu1 %vm1707_vm0, %v1706_v1  ;;  %s539_s20 = scalar_lea.vmem %s2012_s1, %s1483_s29  ;;  %v1489_v11 = vld [vmem:[%s1994_s4] ss:$0 sm:$0xff]  ;;  %s1713_s1 = smov 72   ;;  %vm1030_vm5 = vcmask 195712   ;;  %vm1147_vm6 = vcmask 261312   ;;  %vm1345_vm7 = vcmask 523264  }
  0x10   : > { %1556 = vmatprep.subr.bf16.mxu1 %v1706_v1  ;;  %1572 = vmatprep.mubr.msk.bf16.mxu0 %vm1707_vm0, %v1706_v1  ;;  %v1841_v4 = vld [vmem:[%s539_s20] sm:$0xff]  ;;  %s1714_s20 = smov 88  }
  0x11   : > { %v563_v5 = vpack.c.bf16 %v1841_v4, %v1841_v4  ;;  %v1485_v12 = vld [vmem:[%s1992_s2] ss:$0 sm:$0xff] }
  0x13   : > { %1557 = vmatpush3.bf16.msra.mxu1 %v1667_v2 }
  0x14   : > { %1562 = vmatprep.subr.bf16.mxu1 %v1706_v1 }
  0x16   : > { %1559 = vmatmul.mubr.msk.bf16.vlgmr.msra.gmra.mxu1 %vm582_vm1, %v563_v5 }
  0x17   : > { %1563 = vmatpush3.bf16.msra.mxu1 %v1668_v3  ;;  %1566 = vmatprep.mubr.msk.bf16.mxu1 %vm1707_vm0, %v1706_v1 }
  0x18   : > { %1564 = vmatprep.subr.bf16.mxu1 %v1706_v1 }
  0x1b   : > { %1565 = vmatpush3.bf16.msra.mxu1 %v1669_v6 }
  0x1c   : > { %1576 = vmatprep.subr.bf16.mxu1 %v1706_v1 }
  0x1e   : > { %1567 = vmatmul.mubr.msk.bf16.vlgmr.msra.gmra.mxu1 %vm582_vm1, %v563_v5 }
  0x1f   : > { %1578 = vmatprep.mubr.msk.bf16.mxu1 %vm1707_vm0, %v1706_v1 }
  0xd6   : > { %v620_v7 = vpop.f32.mrf.mxu1 }
  0xd7   : > { %v621_v16 = vadd.f32 %v1485_v12, %v620_v7 }
  0xd8   : > { %v1560_v8 = vpop.f32.mrf.mxu1 }
  0xd9   : > { %v684_v21 = vpack.c.bf16 %v621_v16, %v621_v16 }
  0xda   : > { %v623_v9 = vpop.f32.mrf.mxu1 }
  0xdc   : > { %v1561_v10 = vpop.f32.mrf.mxu1 }
  0xde   : > { %v678_v13 = vpop.f32.mrf.mxu1 }
  0xdf   : > { %v679_v14 = vadd.f32 %v1489_v11, %v678_v13 }
  0xe0   : > { %v1568_v15 = vpop.f32.mrf.mxu1 }
  0xe1   : > { %v1862_v17 = vpack.c.bf16 %v679_v14, %v679_v14 }
  0xe2   : > { %v681_v18 = vpop.f32.mrf.mxu1 }
  0xe3   : > { %917 = vrot.lane.b32.xlu1 %v1862_v17, %s1708_s28  ;;  %800 = vrot.lane.b32.xlu0 %v1862_v17, %s1709_s0  ;;  %v691_v19 = vsel %vm686_vm2, %v1862_v17, 0 }
  0xe4   : > { %v1569_v20 = vpop.f32.mrf.mxu1  ;;  %1571 = vmatpush3.bf16.xpose.msra.mxu0 %v691_v19 }
  0xe5   : > { %1582 = vmatprep.subr.bf16.mxu0 %v1706_v1 }
  0xe7   : > { %915 = vrot.lane.b32.xlu1 %v684_v21, %s1708_s28  ;;  %798 = vrot.lane.b32.xlu0 %v684_v21, %s1709_s0  ;;  %s1717_s28 = smov 24  }
  0xeb   : > { %1032 = vrot.lane.b32.xlu1 %v684_v21, %s1710_s30  ;;  %1034 = vrot.lane.b32.xlu0 %v1862_v17, %s1710_s30 }
  0xec   : > { %1573 = vmatmul.mubr.msk.bf16.vlgmr.msra.gmra.mxu0 %vm686_vm2, %v684_v21 }
  0xed   : > { %1584 = vmatprep.mubr.msk.bf16.mxu0 %vm1707_vm0, %v1706_v1 }
 0x155   : > { %v801_v22 = vpop.permute.xlu0 %800  ;;  %v918_v24 = vpop.permute.xlu1 %917 }
 0x156   : > { %v806_v23 = vsel %vm686_vm2, %v801_v22, 0  ;;  %v923_v26 = vsel %vm686_vm2, %v918_v24, 0 }
 0x157   : > { %1583 = vmatpush3.bf16.xpose.msra.mxu0 %v806_v23 }
 0x158   : > { %1594 = vmatprep.subr.bf16.mxu0 %v1706_v1 }
 0x159   : > { %v799_v25 = vpop.permute.xlu0 %798  ;;  %v916_v28 = vpop.permute.xlu1 %915 }
 0x15d   : > { %v1035_v27 = vpop.permute.xlu0 %1034  ;;  %v1033_v30 = vpop.permute.xlu1 %1032 }
 0x15e   : > { %1585 = vmatmul.mubr.msk.bf16.vlgmr.msra.gmra.mxu0 %vm686_vm2, %v799_v25  ;;  %v1040_v29 = vsel %vm686_vm2, %v1035_v27, 0 }
 0x15f   : > { %1595 = vmatpush3.bf16.xpose.msra.mxu0 %v923_v26  ;;  %1596 = vmatprep.mubr.msk.bf16.mxu0 %vm1707_vm0, %v1706_v1 }
 0x160   : > { %1606 = vmatprep.subr.bf16.mxu0 %v1706_v1 }
 0x166   : > { %1597 = vmatmul.mubr.msk.bf16.vlgmr.msra.gmra.mxu0 %vm686_vm2, %v916_v28 }
 0x167   : > { %1607 = vmatpush3.bf16.xpose.msra.mxu0 %v1040_v29  ;;  %1608 = vmatprep.mubr.msk.bf16.mxu0 %vm1707_vm0, %v1706_v1 }
 0x168   : > { %1618 = vmatprep.subr.bf16.mxu0 %v1706_v1 }
 0x16e   : > { %1609 = vmatmul.mubr.msk.bf16.vlgmr.msra.gmra.mxu0 %vm686_vm2, %v1033_v30 }
 0x16f   : > { %1622 = vmatprep.mubr.msk.bf16.mxu0 %vm1707_vm0, %v1706_v1 }
 0x1ac   : > { %v727_v31 = vpop.f32.mrf.mxu0 }
 0x1ad   : > { %v733_v32 = vmul.f32 0.35355338, %v727_v31 }
 0x1ae   : > { %v1574_v33 = vpop.f32.mrf.mxu0 }
 0x1af   : > { %v734_v34 = vsel %vm686_vm2, %v733_v32, -inf }
 0x1b0   : > { %735 = vmax.xlane.f32.xlu0 %v734_v34  ;;  %v730_v35 = vpop.f32.mrf.mxu0 }
 0x1b2   : > { %v1575_v36 = vpop.f32.mrf.mxu0 }
 0x21e   : > { %v842_v37 = vpop.f32.mrf.mxu0 }
 0x21f   : > { %v848_v38 = vmul.f32 0.35355338, %v842_v37 }
 0x220   : > { %v1586_v39 = vpop.f32.mrf.mxu0 }
 0x221   : > { %v849_v40 = vsel %vm686_vm2, %v848_v38, -inf }
 0x222   : > { %850 = vmax.xlane.f32.xlu1 %v849_v40  ;;  %v845_v41 = vpop.f32.mrf.mxu0 }
 0x224   : > { %v1587_v42 = vpop.f32.mrf.mxu0 }
 0x226   : > { %v959_v43 = vpop.f32.mrf.mxu0 }
 0x227   : > { %v965_v44 = vmul.f32 0.35355338, %v959_v43 }
 0x228   : > { %v1598_v45 = vpop.f32.mrf.mxu0 }
 0x229   : > { %v966_v46 = vsel %vm686_vm2, %v965_v44, -inf }
 0x22a   : > { %967 = vmax.xlane.f32.xlu0 %v966_v46  ;;  %v962_v47 = vpop.f32.mrf.mxu0  ;;  %v1671_v46 = vld [vmem:[%s1995_s5] sm:$0xff]  }
 0x22c   : > { %v1599_v48 = vpop.f32.mrf.mxu0 }
 0x22e   : > { %v1076_v49 = vpop.f32.mrf.mxu0 }
 0x22f   : > { %v1082_v50 = vmul.f32 0.35355338, %v1076_v49 }
 0x230   : > { %v1610_v51 = vpop.f32.mrf.mxu0 }
 0x231   : > { %v1083_v52 = vsel %vm686_vm2, %v1082_v50, -inf }
 0x232   : > { %1084 = vmax.xlane.f32.xlu0 %v1083_v52  ;;  %v1079_v53 = vpop.f32.mrf.mxu0 }
 0x234   : > { %v1611_v54 = vpop.f32.mrf.mxu0 }
 0x239   : > { %v736_v55 = vpop.xlane.xlu0 %735 }
 0x23a   : > { %v737_v56 = vsub.f32 %v733_v32, %v736_v55 }
 0x23c   : > { %v738_v57 = vmul.f32 1.442695, %v737_v56 }
 0x23e   : > { %1678 = vpow2.f32 %v738_v57 }
 0x24b   : > { %v1679_v58 = vpop.eup %1678 }
 0x24c   : > { %v740_v59 = vsel %vm686_vm2, %v1679_v58, 0.0 }
 0x24d   : > { %741 = vadd.xlane.f32.xlu1 %v740_v59 }
 0x25e   : > { %747 = vrot.lane.b32.xlu1 %v1862_v17, %s1711_s18  ;;  %s543_s18 = scalar_lea.vmem %s2007_s17, %s1483_s29 }
 0x2ab   : > { %v851_v60 = vpop.xlane.xlu1 %850 }
 0x2ac   : > { %v852_v61 = vsub.f32 %v848_v38, %v851_v60  ;;  %v1501_v60 = vld [vmem:[%s1996_s6] ss:$0 sm:$0xff] }
 0x2ae   : > { %v853_v62 = vmul.f32 1.442695, %v852_v61 }
 0x2b0   : > { %1680 = vpow2.f32 %v853_v62 }
 0x2b3   : > { %v968_v63 = vpop.xlane.xlu0 %967 }
 0x2b4   : > { %v969_v0 = vsub.f32 %v965_v44, %v968_v63  ;;  %v1670_v44 = vld [vmem:[%s1995_s5 + $0x8] sm:$0xff]  }
 0x2b5   : > { %1619 = vmatpush3.bf16.msra.mxu0 %v1670_v44 }
 0x2b6   : > { %v970_v2 = vmul.f32 1.442695, %v969_v0  ;;  %1620 = vmatprep.subr.bf16.mxu0 %v1706_v1 }
 0x2b8   : > { %1682 = vpow2.f32 %v970_v2 }
 0x2b9   : > { %1621 = vmatpush3.bf16.msra.mxu0 %v1671_v46 }
 0x2ba   : > { %1634 = vmatprep.subr.bf16.mxu0 %v1706_v1 }
 0x2bb   : > { %v1085_v3 = vpop.xlane.xlu0 %1084 }
 0x2bc   : > { %v1086_v5 = vsub.f32 %v1082_v50, %v1085_v3 }
 0x2bd   : > { %v1681_v6 = vpop.eup %1680 }
 0x2be   : > { %v1087_v7 = vmul.f32 1.442695, %v1086_v5  ;;  %v855_v8 = vsel %vm686_vm2, %v1681_v6, 0.0 }
 0x2bf   : > { %856 = vadd.xlane.f32.xlu0 %v855_v8 }
 0x2c0   : > { %1684 = vpow2.f32 %v1087_v7 }
 0x2c5   : > { %v1683_v9 = vpop.eup %1682 }
 0x2c6   : > { %v972_v10 = vsel %vm686_vm2, %v1683_v9, 0.0 }
 0x2c7   : > { %973 = vadd.xlane.f32.xlu1 %v972_v10 }
 0x2cd   : > { %v1685_v11 = vpop.eup %1684 }
 0x2ce   : > { %v1089_v12 = vsel %vm686_vm2, %v1685_v11, 0.0 }
 0x2cf   : > { %1090 = vadd.xlane.f32.xlu0 %v1089_v12  ;;  %v1674_v12 = vld [vmem:[%s2001_s11 + $0x18] sm:$0xff]  }
 0x2d6   : > { %v742_v13 = vpop.xlane.xlu1 %741 }
 0x2d7   : > { %1686 = vrcp.f32 %v742_v13  ;;  %v1675_v13 = vld [vmem:[%s2001_s11 + $0x10] sm:$0xff]  }
 0x2d8   : > { %978 = vrot.lane.b32.xlu1 %v1862_v17, %s1712_s19 }
 0x2da   : > { %v748_v14 = vpop.permute.xlu1 %747 }
 0x2db   : > { %v754_v15 = vsel %vm752_vm3, %v748_v14, 0 }
 0x2dc   : > { %1577 = vmatpush3.bf16.msra.mxu1 %v754_v15  ;;  %1095 = vrot.lane.b32.xlu1 %v1862_v17, %s1713_s1 }
 0x2dd   : > { %1588 = vmatprep.subr.bf16.mxu1 %v1706_v1 }
 0x2e4   : > { %v1687_v16 = vpop.eup %1686 }
 0x2e5   : > { %861 = vrot.lane.b32.xlu0 %v1862_v17, %s1714_s20  ;;  %v744_v18 = vmul.f32 %v1687_v16, %v1679_v58 }
 0x2e7   : > { %v745_v19 = vpack.c.bf16 %v744_v18, %v744_v18 }
 0x2e9   : > { %1579 = vmatmul.mubr.msk.bf16.vlgmr.msra.gmra.mxu1 %vm686_vm2, %v745_v19  ;;  %v1505_v19 = vld [vmem:[%s1997_s7] ss:$0 sm:$0xff] }
 0x2ea   : > { %1590 = vmatprep.mubr.msk.bf16.mxu1 %vm1707_vm0, %v1706_v1 }
 0x348   : > { %v857_v20 = vpop.xlane.xlu0 %856 }
 0x349   : > { %1688 = vrcp.f32 %v857_v20 }
 0x350   : > { %v974_v21 = vpop.xlane.xlu1 %973 }
 0x351   : > { %1690 = vrcp.f32 %v974_v21  ;;  %v1506_v21 = vld [vmem:[%s1998_s8] ss:$0 sm:$0xff] }
 0x354   : > { %v979_v27 = vpop.permute.xlu1 %978 }
 0x355   : > { %v984_v29 = vsel %vm752_vm3, %v979_v27, 0  ;;  %v1507_v27 = vld [vmem:[%s2000_s10] ss:$0 sm:$0xff] }
 0x356   : > { %v1689_v22 = vpop.eup %1688 }
 0x357   : > { %v859_v24 = vmul.f32 %v1689_v22, %v1681_v6 }
 0x358   : > { %v1091_v23 = vpop.xlane.xlu0 %1090  ;;  %v1096_v31 = vpop.permute.xlu1 %1095 }
 0x359   : > { %1692 = vrcp.f32 %v1091_v23  ;;  %v860_v17 = vpack.c.bf16 %v859_v24, %v859_v24  ;;  %v1101_v34 = vsel %vm752_vm3, %v1096_v31, 0 }
 0x35c   : > { %v862_v25 = vpop.permute.xlu0 %861 }
 0x35d   : > { %v867_v26 = vsel %vm752_vm3, %v862_v25, 0  ;;  %v1676_v25 = vld [vmem:[%s2001_s11 + $0x8] sm:$0xff]  }
 0x35e   : > { %1589 = vmatpush3.bf16.msra.mxu1 %v867_v26  ;;  %v1691_v28 = vpop.eup %1690  ;;  %v1677_v26 = vld [vmem:[%s2001_s11] sm:$0xff]  }
 0x35f   : > { %1600 = vmatprep.subr.bf16.mxu1 %v1706_v1  ;;  %v976_v30 = vmul.f32 %v1691_v28, %v1683_v9 }
 0x361   : > { %1591 = vmatmul.mubr.msk.bf16.vlgmr.msra.gmra.mxu1 %vm686_vm2, %v860_v17  ;;  %v977_v32 = vpack.c.bf16 %v976_v30, %v976_v30 }
 0x362   : > { %1601 = vmatpush3.bf16.msra.mxu1 %v984_v29  ;;  %1602 = vmatprep.mubr.msk.bf16.mxu1 %vm1707_vm0, %v1706_v1 }
 0x363   : > { %1612 = vmatprep.subr.bf16.mxu1 %v1706_v1 }
 0x366   : > { %v1693_v33 = vpop.eup %1692 }
 0x367   : > { %v1093_v35 = vmul.f32 %v1693_v33, %v1685_v11  ;;  %v1672_v11 = vld [vmem:[%s1999_s9 + $0x8] sm:$0xff]  }
 0x369   : > { %1603 = vmatmul.mubr.msk.bf16.vlgmr.msra.gmra.mxu1 %vm686_vm2, %v977_v32  ;;  %v1094_v36 = vpack.c.bf16 %v1093_v35, %v1093_v35 }
 0x36a   : > { %1613 = vmatpush3.bf16.msra.mxu1 %v1101_v34  ;;  %1614 = vmatprep.mubr.msk.bf16.mxu1 %vm1707_vm0, %v1706_v1 }
 0x36b   : > { %1626 = vmatprep.subr.bf16.mxu1 %v1706_v1 }
 0x371   : > { %1615 = vmatmul.mubr.msk.bf16.vlgmr.msra.gmra.mxu1 %vm686_vm2, %v1094_v36 }
 0x372   : > { %1630 = vmatprep.mubr.msk.bf16.mxu1 %vm1707_vm0, %v1706_v1  ;;  %1627 = vmatpush3.bf16.msra.mxu1 %v1672_v11 }
 0x373   : > { %1628 = vmatprep.subr.bf16.mxu1 %v1706_v1 }
 0x3a9   : > { %v790_v37 = vpop.f32.mrf.mxu1 }
 0x3aa   : > { %796 = vst.msk [vmem:[#allocation2] sm:$0xff] %vm686_vm2, %v790_v37 }
 0x3ab   : > { %v1580_v38 = vpop.f32.mrf.mxu1 }
 0x3ad   : > { %v793_v39 = vpop.f32.mrf.mxu1 }
 0x3af   : > { %v1581_v40 = vpop.f32.mrf.mxu1 }
 0x421   : > { %v903_v41 = vpop.f32.mrf.mxu1 }
 0x422   : > { %910 = vrot.lane.b32.xlu0 %v903_v41, %s1715_s21 }
 0x423   : > { %v1592_v42 = vpop.f32.mrf.mxu1 }
 0x425   : > { %v906_v43 = vpop.f32.mrf.mxu1 }
 0x427   : > { %v1593_v45 = vpop.f32.mrf.mxu1 }
 0x429   : > { %v1020_v47 = vpop.f32.mrf.mxu1 }
 0x42a   : > { %1027 = vrot.lane.b32.xlu1 %v1020_v47, %s1716_s27 }
 0x42b   : > { %v1604_v48 = vpop.f32.mrf.mxu1 }
 0x42d   : > { %v1023_v49 = vpop.f32.mrf.mxu1 }
 0x42f   : > { %v1605_v50 = vpop.f32.mrf.mxu1 }
 0x430   : > { %v1517_v50 = vld [vmem:[%s2003_s13] ss:$0 sm:$0xff] }
 0x431   : > { %v1137_v51 = vpop.f32.mrf.mxu1 }
 0x432   : > { %1144 = vrot.lane.b32.xlu0 %v1137_v51, %s1717_s28 }
 0x433   : > { %v1616_v52 = vpop.f32.mrf.mxu1 }
 0x434   : > { %v1518_v52 = vld [vmem:[%s2004_s14] ss:$0 sm:$0xff] }
 0x435   : > { %v1140_v53 = vpop.f32.mrf.mxu1 }
 0x437   : > { %v1617_v54 = vpop.f32.mrf.mxu1 }
 0x494   : > { %v911_v55 = vpop.permute.xlu0 %910 }
 0x495   : > { %914 = vst.msk [vmem:[#allocation2] sm:$0xff] %vm913_vm4, %v911_v55 }
 0x49c   : > { %v1028_v56 = vpop.permute.xlu1 %1027 }
 0x49d   : > { %1031 = vst.msk [vmem:[#allocation2] sm:$0xff] %vm1030_vm5, %v1028_v56 }
 0x4a4   : > { %v1145_v57 = vpop.permute.xlu0 %1144 }
 0x4a5   : > { %1148 = vst.msk [vmem:[#allocation2] sm:$0xff] %vm1147_vm6, %v1145_v57 }
 0x4ac   : > { %v1149_v58 = vld [vmem:[#allocation2] sm:$0xff] }
 0x4ad   : > { %v1150_v59 = vpack.c.bf16 %v1149_v58, %v1149_v58 }
 0x4af   : > { %1623 = vmatmul.mubr.msk.bf16.vlgmr.msra.gmra.mxu0 %vm582_vm1, %v1150_v59 }
 0x4b0   : > { %1642 = vmatprep.mubr.msk.bf16.mxu0 %vm1707_vm0, %v1706_v1  ;;  %1635 = vmatpush3.bf16.msra.mxu0 %v1674_v12 }
 0x4b1   : > { %1636 = vmatprep.subr.bf16.mxu0 %v1706_v1 }
 0x4b4   : > { %1637 = vmatpush3.bf16.msra.mxu0 %v1675_v13 }
 0x4b5   : > { %1638 = vmatprep.subr.bf16.mxu0 %v1706_v1 }
 0x4b8   : > { %1639 = vmatpush3.bf16.msra.mxu0 %v1676_v25 }
 0x4b9   : > { %1640 = vmatprep.subr.bf16.mxu0 %v1706_v1  ;;  %v1516_v1 = vld [vmem:[%s2002_s12] ss:$0 sm:$0xff] }
 0x4bc   : > { %1641 = vmatpush3.bf16.msra.mxu0 %v1677_v26 }
 0x56f   : > { %v1206_v61 = vpop.f32.mrf.mxu0 }
 0x570   : > { %v1207_v62 = vadd.f32 %v1501_v60, %v1206_v61 }
 0x571   : > { %v1624_v63 = vpop.f32.mrf.mxu0 }
 0x572   : > { %v1212_v0 = vadd.f32 %v1207_v62, %v1841_v4  ;;  %v1673_v4 = vld [vmem:[%s1999_s9] sm:$0xff]  }
 0x573   : > { %v1209_v2 = vpop.f32.mrf.mxu0  ;;  %1629 = vmatpush3.bf16.msra.mxu1 %v1673_v4 }
 0x574   : > { %v1213_v3 = vsel %vm582_vm1, %v1212_v0, 0.0 }
 0x575   : > { %1214 = vadd.xlane.f32.xlu1 %v1213_v3  ;;  %v1625_v5 = vpop.f32.mrf.mxu0 }
 0x5fe   : > { %v1215_v6 = vpop.xlane.xlu1 %1214 }
 0x5ff   : > { %v1217_v7 = vmul.f32 0.03125, %v1215_v6 }
 0x601   : > { %v1218_v8 = vsub.f32 %v1212_v0, %v1217_v7 }
 0x603   : > { %v1219_v9 = vmul.f32 %v1218_v8, %v1218_v8 }
 0x605   : > { %v1220_v10 = vsel %vm582_vm1, %v1219_v9, 0.0 }
 0x606   : > { %1221 = vadd.xlane.f32.xlu0 %v1220_v10 }
 0x68f   : > { %v1222_v14 = vpop.xlane.xlu0 %1221 }
 0x690   : > { %v1223_v15 = vmul.f32 0.03125, %v1222_v14 }
 0x692   : > { %v1224_v16 = vadd.f32 1e-05, %v1223_v15 }
 0x694   : > { %1694 = vrsqrt.f32 %v1224_v16 }
 0x6a1   : > { %v1695_v18 = vpop.eup %1694 }
 0x6a2   : > { %v1226_v20 = vmul.f32 %v1695_v18, %v1218_v8 }
 0x6a4   : > { %v1233_v22 = vmul.f32 %v1505_v19, %v1226_v20 }
 0x6a6   : > { %v1240_v23 = vadd.f32 %v1506_v21, %v1233_v22 }
 0x6a8   : > { %v1257_v24 = vpack.c.bf16 %v1240_v23, %v1240_v23 }
 0x6aa   : > { %1631 = vmatmul.mubr.msk.bf16.vlgmr.msra.gmra.mxu1 %vm582_vm1, %v1257_v24 }
 0x76a   : > { %v1313_v17 = vpop.f32.mrf.mxu1 }
 0x76b   : > { %v1314_v28 = vadd.f32 %v1507_v27, %v1313_v17 }
 0x76c   : > { %v1632_v29 = vpop.f32.mrf.mxu1 }
 0x76d   : > { %v1319_v30 = vmax.f32 %v1314_v28, 0.0 }
 0x76e   : > { %v1316_v31 = vpop.f32.mrf.mxu1 }
 0x76f   : > { %v1320_v32 = vpack.c.bf16 %v1319_v30, %v1319_v30 }
 0x770   : > { %v1633_v33 = vpop.f32.mrf.mxu1 }
 0x771   : > { %1643 = vmatmul.mubr.msk.bf16.vlgmr.msra.gmra.mxu0 %vm1345_vm7, %v1320_v32 }
 0x831   : > { %v1383_v34 = vpop.f32.mrf.mxu0 }
 0x832   : > { %v1389_v35 = vadd.f32 %v1383_v34, %v1240_v23 }
 0x833   : > { %v1644_v36 = vpop.f32.mrf.mxu0 }
 0x834   : > { %v1396_v37 = vadd.f32 %v1516_v1, %v1389_v35 }
 0x835   : > { %v1386_v38 = vpop.f32.mrf.mxu0 }
 0x836   : > { %v1397_v39 = vsel %vm582_vm1, %v1396_v37, 0.0 }
 0x837   : > { %1398 = vadd.xlane.f32.xlu0 %v1397_v39  ;;  %v1645_v40 = vpop.f32.mrf.mxu0 }
 0x8c0   : > { %v1399_v41 = vpop.xlane.xlu0 %1398 }
 0x8c1   : > { %v1400_v42 = vmul.f32 0.03125, %v1399_v41 }
 0x8c3   : > { %v1401_v43 = vsub.f32 %v1396_v37, %v1400_v42 }
 0x8c5   : > { %v1402_v44 = vmul.f32 %v1401_v43, %v1401_v43 }
 0x8c7   : > { %v1403_v45 = vsel %vm582_vm1, %v1402_v44, 0.0 }
 0x8c8   : > { %1404 = vadd.xlane.f32.xlu1 %v1403_v45 }
 0x951   : > { %v1405_v46 = vpop.xlane.xlu1 %1404 }
 0x952   : > { %v1406_v47 = vmul.f32 0.03125, %v1405_v46 }
 0x954   : > { %v1407_v48 = vadd.f32 1e-05, %v1406_v47 }
 0x956   : > { %1696 = vrsqrt.f32 %v1407_v48 }
 0x963   : > { %v1697_v49 = vpop.eup %1696 }
 0x964   : > { %v1409_v51 = vmul.f32 %v1697_v49, %v1401_v43 }
 0x966   : > { %v1416_v53 = vmul.f32 %v1517_v50, %v1409_v51 }
 0x968   : > { %v1423_v54 = vadd.f32 %v1518_v52, %v1416_v53 }
 0x96a   : > { %1424 = vst.msk [vmem:[%s543_s18] sm:$0xff] %vm582_vm1, %v1423_v54 }
 0x96b PF: > { %s27_s24 = sadd.s32 1, %s1704_s24  }
 0x96c   : > { %p24_p4 = scmp.ge.s32.totalorder %s27_s24, 4  }
 0x96e   :  { %26 = sbr.rel (!%p24_p4) target bundleno = 3 (0x3), region = 118 }

// kernel: transformer_seq2seq_forward.7
= control target key start
LH: loop header
LB: loop body
LE: loop exit
PB: predicated region body
PF: predicated region fallthrough
CT: control target
= control target key end

     0   :  { %s2972_s27 = smov 0   ;;  %s3302_s0 = inlined_call_operand.vmem [shape: f32[2,8,32], index: 0, kind: input, shape index: {}]   ;;  %s3303_s1 = inlined_call_operand.vmem [shape: f32[2,8,32], index: 1, kind: input, shape index: {}]   ;;  %s3304_s2 = inlined_call_operand.vmem [shape: bf16[32,32], index: 2, kind: input, shape index: {}]   ;;  %s3305_s3 = inlined_call_operand.vmem [shape: f32[1,32], index: 3, kind: input, shape index: {}]   ;;  %s3306_s4 = inlined_call_operand.vmem [shape: bf16[32,64], index: 4, kind: input, shape index: {}]   ;;  %s3307_s5 = inlined_call_operand.vmem [shape: f32[1,64], index: 5, kind: input, shape index: {}]   ;;  %s3308_s6 = inlined_call_operand.vmem [shape: bf16[32,32], index: 6, kind: input, shape index: {}]   ;;  %s3309_s7 = inlined_call_operand.vmem [shape: f32[1,32], index: 7, kind: input, shape index: {}]   ;;  %s3310_s8 = inlined_call_operand.vmem [shape: f32[1,32], index: 8, kind: input, shape index: {}]   ;;  %s3311_s9 = inlined_call_operand.vmem [shape: f32[1,32], index: 9, kind: input, shape index: {}]   ;;  %s3312_s10 = inlined_call_operand.vmem [shape: bf16[32,32], index: 10, kind: input, shape index: {}]   ;;  %s3313_s11 = inlined_call_operand.vmem [shape: f32[1,32], index: 11, kind: input, shape index: {}]   ;;  %s3314_s12 = inlined_call_operand.vmem [shape: bf16[32,64], index: 12, kind: input, shape index: {}]   ;;  %s3315_s13 = inlined_call_operand.vmem [shape: f32[1,64], index: 13, kind: input, shape index: {}]   ;;  %s3316_s14 = inlined_call_operand.vmem [shape: bf16[32,32], index: 14, kind: input, shape index: {}]   ;;  %s3317_s15 = inlined_call_operand.vmem [shape: f32[1,32], index: 15, kind: input, shape index: {}]   ;;  %s3318_s16 = inlined_call_operand.vmem [shape: f32[1,32], index: 16, kind: input, shape index: {}]   ;;  %s3319_s17 = inlined_call_operand.vmem [shape: f32[1,32], index: 17, kind: input, shape index: {}]   ;;  %s3320_s18 = inlined_call_operand.vmem [shape: bf16[32,64], index: 18, kind: input, shape index: {}]   ;;  %s3321_s19 = inlined_call_operand.vmem [shape: f32[1,64], index: 19, kind: input, shape index: {}]   ;;  %s3322_s20 = inlined_call_operand.vmem [shape: bf16[64,32], index: 20, kind: input, shape index: {}]   ;;  %s3323_s21 = inlined_call_operand.vmem [shape: f32[1,32], index: 21, kind: input, shape index: {}]   ;;  %s3324_s22 = inlined_call_operand.vmem [shape: f32[1,32], index: 22, kind: input, shape index: {}]   ;;  %s3325_s23 = inlined_call_operand.vmem [shape: f32[1,32], index: 23, kind: input, shape index: {}]   ;;  %s3326_s24 = inlined_call_operand.vmem [shape: f32[1,32], index: 24, kind: input, shape index: {}]   ;;  %s3327_s25 = inlined_call_operand.vmem [shape: f32[1,32], index: 25, kind: input, shape index: {}]   ;;  %s3328_s26 = inlined_call_operand.vmem [shape: f32[2,8,32], index: 26, kind: output, shape index: {}]  }
   0x1   :  { %3340 = sst [smem:[#allocation3_spill]] %s3302_s0 }
   0x2   :  { %3341 = sst [smem:[#allocation4_spill]] %s3303_s1 }
   0x3   :  { %3342 = sst [smem:[#allocation5_spill]] %s3304_s2 }
   0x4   :  { %3343 = sst [smem:[#allocation6_spill]] %s3305_s3 }
   0x5   :  { %3344 = sst [smem:[#allocation7_spill]] %s3306_s4 }
   0x6   :  { %3345 = sst [smem:[#allocation8_spill]] %s3307_s5 }
   0x7   :  { %3346 = sst [smem:[#allocation9_spill]] %s3308_s6 }
   0x8   :  { %3347 = sst [smem:[#allocation10_spill]] %s3309_s7 }
   0x9   :  { %3348 = sst [smem:[#allocation11_spill]] %s3310_s8 }
   0xa   :  { %3349 = sst [smem:[#allocation12_spill]] %s3311_s9 }
   0xb   :  { %3350 = sst [smem:[#allocation13_spill]] %s3312_s10 }
   0xc LB: > { %s2453_s3 = sadd.s32 4294967295, %s2823_s27   ;;  %p2457_p0 = scmp.ge.s32.totalorder %s2823_s27, 1  ;;  %s2823_s27 = sphi %s2972_s27, %s36_s27  }
   0xd   : > { %p720_p1 = scmp.lt.s32.totalorder %s2823_s27, 3 }
   0xf   : > { %p721_p2 = pnand %p2457_p0, %p720_p1 }
  0x10   : > { %s3351_s7 = sld [smem:[#allocation7_spill]] (!%p721_p2)  ;;  %p792_p3 = scmp.lt.s32.totalorder (!%p721_p2), %s2453_s3, 1 }
  0x11   : > { %724 = sbr.rel (%p721_p2) target bundleno = 4113 (0x1011), region = 124  ;;  %s3352_s4 = sld [smem:[#allocation5_spill]] (!%p721_p2) }
  0x12   : > { %s3353_s6 = sld [smem:[#allocation3_spill]] (!%p721_p2)  ;;  %s2827_s0 = smov (!%p721_p2), 112  }
  0x13   : > { %s3354_s25 = sld [smem:[#allocation8_spill]] (!%p721_p2)  ;;  %s2828_s9 = smov (!%p721_p2), 120  }
  0x14   : > { %s3355_s29 = sld [smem:[#allocation6_spill]] (!%p721_p2)  ;;  %s2829_s30 = smov (!%p721_p2), 104  }
  0x15   : > { %s3338_s5 = smov (!%p721_p2), 96   ;;  %s3333_s10 = smov (!%p721_p2), 80  }
  0x16   : > { %v2761_v0 = vld [vmem:[%s3351_s7 + $0x8] sm:$0xff]   ;;  %v2825_v1 = vmov 0.0   ;;  %v2763_v3 = vld [vmem:[%s3351_s7] sm:$0xff]   ;;  %vm2826_vm0 = vmmov 0   ;;  %s3370_s3 = smov (!%p792_p3, %s2453_s3), 1  ;;  %vm843_vm1 = vcmask 261120   ;;  %v947_v31 = vlaneseq }
  0x17   : > { %2585 = vmatprep.subr.bf16.mxu1 %v2825_v1  ;;  %2577 = vmatprep.subr.bf16.mxu0 %v2825_v1  ;;  %v2762_v2 = vld [vmem:[%s3352_s4 + $0x8] sm:$0xff]   ;;  %v2764_v4 = vld [vmem:[%s3352_s4] sm:$0xff]   ;;  %s3000_s2 = sshll.u32 %s3370_s3, 3  ;;  %vm953_vm2 = vcmask 64512   ;;  %vm1020_vm4 = vcmask 1043456   ;;  %s3336_s3 = smov 8  }
  0x18   : > { %2586 = vmatpush3.bf16.msra.mxu1 %v2761_v0  ;;  %2589 = vmatprep.mubr.msk.bf16.mxu1 %vm2826_vm0, %v2825_v1  ;;  %s795_s1 = scalar_lea.vmem %s3353_s6, %s3000_s2  ;;  %v948_v32 = vshrl.u32 %v947_v31, 7  ;;  %v950_v33 = vand.u32 127, %v947_v31  ;;  %s3337_s6 = smov 72   ;;  %vm1182_vm5 = vcmask 130112   ;;  %vm1300_vm6 = vcmask 195712  }
  0x19   : > { %2578 = vmatpush3.bf16.msra.mxu0 %v2762_v2  ;;  %2587 = vmatprep.subr.bf16.mxu1 %v2825_v1  ;;  %v3007_v5 = vld [vmem:[%s795_s1] sm:$0xff]  ;;  %s3339_s1 = smov 88   ;;  %s3356_s28 = sld [smem:[#allocation9_spill]]  ;;  %vm1418_vm7 = vcmask 261312   ;;  %vm2308_vm8 = vcmask 523264  }
  0x1a   : > { %2579 = vmatprep.subr.bf16.mxu0 %v2825_v1  ;;  %2581 = vmatprep.mubr.msk.bf16.mxu0 %vm2826_vm0, %v2825_v1  ;;  %v824_v6 = vpack.c.bf16 %v3007_v5, %v3007_v5  ;;  %v2465_v7 = vld [vmem:[%s3354_s25] ss:$0 sm:$0xff]  ;;  %vm951_vm3 = vcmp.gt.s32.totalorder %v950_v33, %v948_v32  ;;  %s3334_s24 = smov 24   ;;  %s3361_s8 = sld [smem:[#allocation12_spill]] }
  0x1b   : > { %v2461_v8 = vld [vmem:[%s3355_s29] ss:$0 sm:$0xff]  ;;  %v952_v35 = vsel %vm951_vm3, -inf, %v2825_v1  ;;  %s3357_s29 = sld [smem:[#allocation10_spill]] }
  0x1c   : > { %2588 = vmatpush3.bf16.msra.mxu1 %v2763_v3 }
  0x1d   : > { %2580 = vmatpush3.bf16.msra.mxu0 %v2764_v4  ;;  %2599 = vmatprep.subr.bf16.mxu1 %v2825_v1 }
  0x1e   : > { %2593 = vmatprep.subr.bf16.mxu0 %v2825_v1 }
  0x1f   : > { %2590 = vmatmul.mubr.msk.bf16.vlgmr.msra.gmra.mxu1 %vm843_vm1, %v824_v6 }
  0x20   : > { %2582 = vmatmul.mubr.msk.bf16.vlgmr.msra.gmra.mxu0 %vm843_vm1, %v824_v6  ;;  %2601 = vmatprep.mubr.msk.bf16.mxu1 %vm2826_vm0, %v2825_v1 }
  0x21   : > { %2595 = vmatprep.mubr.msk.bf16.mxu0 %vm2826_vm0, %v2825_v1 }
  0xdf   : > { %v939_v9 = vpop.f32.mrf.mxu1 }
  0xe0   : > { %v881_v10 = vpop.f32.mrf.mxu0  ;;  %v940_v11 = vadd.f32 %v2465_v7, %v939_v9 }
  0xe1   : > { %v882_v12 = vadd.f32 %v2461_v8, %v881_v10  ;;  %v2591_v13 = vpop.f32.mrf.mxu1 }
  0xe2   : > { %v2583_v14 = vpop.f32.mrf.mxu0  ;;  %v3024_v15 = vpack.c.bf16 %v940_v11, %v940_v11 }
  0xe3   : > { %v942_v16 = vpop.f32.mrf.mxu1  ;;  %v945_v18 = vpack.c.bf16 %v882_v12, %v882_v12 }
  0xe4   : > { %v884_v17 = vpop.f32.mrf.mxu0  ;;  %1186 = vrot.lane.b32.xlu1 %v3024_v15, %s2827_s0  ;;  %1068 = vrot.lane.b32.xlu0 %v3024_v15, %s2828_s9  ;;  %v958_v19 = vsel %vm953_vm2, %v3024_v15, 0 }
  0xe5   : > { %v2592_v20 = vpop.f32.mrf.mxu1  ;;  %2594 = vmatpush3.bf16.xpose.msra.mxu0 %v958_v19 }
  0xe6   : > { %v2584_v21 = vpop.f32.mrf.mxu0  ;;  %2605 = vmatprep.subr.bf16.mxu0 %v2825_v1 }
  0xe8   : > { %1184 = vrot.lane.b32.xlu1 %v945_v18, %s2827_s0  ;;  %1066 = vrot.lane.b32.xlu0 %v945_v18, %s2828_s9 }
  0xec   : > { %1302 = vrot.lane.b32.xlu1 %v945_v18, %s2829_s30  ;;  %1304 = vrot.lane.b32.xlu0 %v3024_v15, %s2829_s30 }
  0xed   : > { %2596 = vmatmul.mubr.msk.bf16.vlgmr.msra.gmra.mxu0 %vm953_vm2, %v945_v18 }
  0xee   : > { %2607 = vmatprep.mubr.msk.bf16.mxu0 %vm2826_vm0, %v2825_v1 }
 0x156   : > { %v1069_v22 = vpop.permute.xlu0 %1068  ;;  %v1187_v24 = vpop.permute.xlu1 %1186 }
 0x157   : > { %v1074_v23 = vsel %vm953_vm2, %v1069_v22, 0  ;;  %v1192_v26 = vsel %vm953_vm2, %v1187_v24, 0 }
 0x158   : > { %2606 = vmatpush3.bf16.xpose.msra.mxu0 %v1074_v23 }
 0x159   : > { %2617 = vmatprep.subr.bf16.mxu0 %v2825_v1 }
 0x15a   : > { %v1067_v25 = vpop.permute.xlu0 %1066  ;;  %v1185_v28 = vpop.permute.xlu1 %1184 }
 0x15e   : > { %v1305_v27 = vpop.permute.xlu0 %1304  ;;  %v1303_v30 = vpop.permute.xlu1 %1302 }
 0x15f   : > { %2608 = vmatmul.mubr.msk.bf16.vlgmr.msra.gmra.mxu0 %vm953_vm2, %v1067_v25  ;;  %v1310_v29 = vsel %vm953_vm2, %v1305_v27, 0 }
 0x160   : > { %2618 = vmatpush3.bf16.xpose.msra.mxu0 %v1192_v26  ;;  %2619 = vmatprep.mubr.msk.bf16.mxu0 %vm2826_vm0, %v2825_v1 }
 0x161   : > { %2629 = vmatprep.subr.bf16.mxu0 %v2825_v1 }
 0x167   : > { %2620 = vmatmul.mubr.msk.bf16.vlgmr.msra.gmra.mxu0 %vm953_vm2, %v1185_v28 }
 0x168   : > { %2630 = vmatpush3.bf16.xpose.msra.mxu0 %v1310_v29  ;;  %2631 = vmatprep.mubr.msk.bf16.mxu0 %vm2826_vm0, %v2825_v1 }
 0x169   : > { %2641 = vmatprep.subr.bf16.mxu0 %v2825_v1 }
 0x16f   : > { %2632 = vmatmul.mubr.msk.bf16.vlgmr.msra.gmra.mxu0 %vm953_vm2, %v1303_v30 }
 0x170   : > { %2645 = vmatprep.mubr.msk.bf16.mxu0 %vm2826_vm0, %v2825_v1 }
 0x1ad   : > { %v994_v34 = vpop.f32.mrf.mxu0 }
 0x1ae   : > { %v1000_v36 = vmul.f32 0.35355338, %v994_v34 }
 0x1af   : > { %v2597_v37 = vpop.f32.mrf.mxu0 }
 0x1b0   : > { %v1001_v38 = vadd.f32 %v1000_v36, %v952_v35 }
 0x1b1   : > { %v997_v39 = vpop.f32.mrf.mxu0 }
 0x1b2   : > { %v1002_v40 = vsel %vm953_vm2, %v1001_v38, -inf }
 0x1b3   : > { %1003 = vmax.xlane.f32.xlu0 %v1002_v40  ;;  %v2598_v41 = vpop.f32.mrf.mxu0 }
 0x21f   : > { %v1110_v42 = vpop.f32.mrf.mxu0 }
 0x220   : > { %v1116_v43 = vmul.f32 0.35355338, %v1110_v42 }
 0x221   : > { %v2609_v44 = vpop.f32.mrf.mxu0 }
 0x222   : > { %v1117_v45 = vadd.f32 %v1116_v43, %v952_v35 }
 0x223   : > { %v1113_v46 = vpop.f32.mrf.mxu0 }
 0x224   : > { %v1118_v47 = vsel %vm953_vm2, %v1117_v45, -inf }
 0x225   : > { %1119 = vmax.xlane.f32.xlu1 %v1118_v47  ;;  %v2610_v48 = vpop.f32.mrf.mxu0 }
 0x227   : > { %v1228_v49 = vpop.f32.mrf.mxu0 }
 0x228   : > { %v1234_v50 = vmul.f32 0.35355338, %v1228_v49 }
 0x229   : > { %v2621_v51 = vpop.f32.mrf.mxu0 }
 0x22a   : > { %v1235_v52 = vadd.f32 %v1234_v50, %v952_v35 }
 0x22b   : > { %v1231_v53 = vpop.f32.mrf.mxu0 }
 0x22c   : > { %v1236_v54 = vsel %vm953_vm2, %v1235_v52, -inf }
 0x22d   : > { %1237 = vmax.xlane.f32.xlu0 %v1236_v54  ;;  %v2622_v55 = vpop.f32.mrf.mxu0  ;;  %v2766_v54 = vld [vmem:[%s3356_s28] sm:$0xff]  }
 0x22f   : > { %v1346_v56 = vpop.f32.mrf.mxu0 }
 0x230   : > { %v1352_v57 = vmul.f32 0.35355338, %v1346_v56 }
 0x231   : > { %v2633_v58 = vpop.f32.mrf.mxu0 }
 0x232   : > { %v1353_v59 = vadd.f32 %v1352_v57, %v952_v35 }
 0x233   : > { %v1349_v60 = vpop.f32.mrf.mxu0 }
 0x234   : > { %v1354_v61 = vsel %vm953_vm2, %v1353_v59, -inf }
 0x235   : > { %1355 = vmax.xlane.f32.xlu0 %v1354_v61  ;;  %v2634_v62 = vpop.f32.mrf.mxu0 }
 0x23c   : > { %v1004_v63 = vpop.xlane.xlu0 %1003 }
 0x23d   : > { %v1005_v0 = vsub.f32 %v1001_v38, %v1004_v63 }
 0x23f   : > { %v1006_v2 = vmul.f32 1.442695, %v1005_v0 }
 0x241   : > { %2779 = vpow2.f32 %v1006_v2 }
 0x24e   : > { %v2780_v3 = vpop.eup %2779 }
 0x24f   : > { %v1008_v4 = vsel %vm953_vm2, %v2780_v3, 0.0 }
 0x250   : > { %1009 = vadd.xlane.f32.xlu1 %v1008_v4 }
 0x261   : > { %1015 = vrot.lane.b32.xlu1 %v3024_v15, %s3338_s5 }
 0x2ae   : > { %v1120_v6 = vpop.xlane.xlu1 %1119 }
 0x2af   : > { %v1121_v7 = vsub.f32 %v1117_v45, %v1120_v6  ;;  %v2477_v6 = vld [vmem:[%s3357_s29] ss:$0 sm:$0xff] }
 0x2b1   : > { %v1122_v8 = vmul.f32 1.442695, %v1121_v7 }
 0x2b3   : > { %2781 = vpow2.f32 %v1122_v8 }
 0x2b6   : > { %v1238_v9 = vpop.xlane.xlu0 %1237 }
 0x2b7   : > { %v1239_v10 = vsub.f32 %v1235_v52, %v1238_v9  ;;  %v2765_v52 = vld [vmem:[%s3356_s28 + $0x8] sm:$0xff]  }
 0x2b8   : > { %2642 = vmatpush3.bf16.msra.mxu0 %v2765_v52 }
 0x2b9   : > { %v1240_v11 = vmul.f32 1.442695, %v1239_v10  ;;  %2643 = vmatprep.subr.bf16.mxu0 %v2825_v1 }
 0x2bb   : > { %2783 = vpow2.f32 %v1240_v11 }
 0x2bc   : > { %2644 = vmatpush3.bf16.msra.mxu0 %v2766_v54 }
 0x2bd   : > { %2657 = vmatprep.subr.bf16.mxu0 %v2825_v1 }
 0x2be   : > { %v1356_v12 = vpop.xlane.xlu0 %1355 }
 0x2bf   : > { %v1357_v13 = vsub.f32 %v1353_v59, %v1356_v12 }
 0x2c0   : > { %v2782_v14 = vpop.eup %2781 }
 0x2c1   : > { %v1358_v16 = vmul.f32 1.442695, %v1357_v13  ;;  %v1124_v17 = vsel %vm953_vm2, %v2782_v14, 0.0 }
 0x2c2   : > { %1125 = vadd.xlane.f32.xlu0 %v1124_v17 }
 0x2c3   : > { %2785 = vpow2.f32 %v1358_v16 }
 0x2c8   : > { %v2784_v18 = vpop.eup %2783 }
 0x2c9   : > { %v1242_v19 = vsel %vm953_vm2, %v2784_v18, 0.0 }
 0x2ca   : > { %1243 = vadd.xlane.f32.xlu1 %v1242_v19 }
 0x2d0   : > { %v2786_v20 = vpop.eup %2785 }
 0x2d1   : > { %v1360_v21 = vsel %vm953_vm2, %v2786_v20, 0.0 }
 0x2d2   : > { %1361 = vadd.xlane.f32.xlu0 %v1360_v21 }
 0x2d9   : > { %v1010_v22 = vpop.xlane.xlu1 %1009 }
 0x2da   : > { %2787 = vrcp.f32 %v1010_v22 }
 0x2db   : > { %1248 = vrot.lane.b32.xlu1 %v3024_v15, %s3333_s10  ;;  %s3335_s10 = smov 16  }
 0x2dd   : > { %v1016_v23 = vpop.permute.xlu1 %1015 }
 0x2de   : > { %v1022_v24 = vsel %vm1020_vm4, %v1016_v23, 0 }
 0x2df   : > { %2600 = vmatpush3.bf16.msra.mxu1 %v1022_v24  ;;  %1366 = vrot.lane.b32.xlu1 %v3024_v15, %s3337_s6  ;;  %s3358_s6 = sld [smem:[#allocation4_spill]] }
 0x2e0   : > { %2611 = vmatprep.subr.bf16.mxu1 %v2825_v1 }
 0x2e5   : > { %s799_s5 = scalar_lea.vmem %s3358_s6, %s3000_s2  ;;  %s3360_s6 = sld [smem:[#allocation11_spill]] }
 0x2e6   : > { %v806_v21 = vld [vmem:[%s799_s5] sm:$0xff]  ;;  %s3367_s5 = smov 16  }
 0x2e7   : > { %v2788_v25 = vpop.eup %2787  ;;  %v1591_v22 = vpack.c.bf16 %v806_v21, %v806_v21 }
 0x2e8   : > { %1130 = vrot.lane.b32.xlu0 %v3024_v15, %s3339_s1  ;;  %v1012_v26 = vmul.f32 %v2788_v25, %v2780_v3  ;;  %s3359_s1 = sld [smem:[#allocation13_spill]] }
 0x2ea   : > { %v1013_v27 = vpack.c.bf16 %v1012_v26, %v1012_v26 }
 0x2ec   : > { %2602 = vmatmul.mubr.msk.bf16.vlgmr.msra.gmra.mxu1 %vm953_vm2, %v1013_v27 }
 0x2ed   : > { %2613 = vmatprep.mubr.msk.bf16.mxu1 %vm2826_vm0, %v2825_v1 }
 0x2ee   : > { %v2769_v23 = vld [vmem:[%s3359_s1 + $0x8] sm:$0xff]   ;;  %v2770_v24 = vld [vmem:[%s3359_s1] sm:$0xff]  }
 0x34b   : > { %v1126_v28 = vpop.xlane.xlu0 %1125 }
 0x34c   : > { %2789 = vrcp.f32 %v1126_v28 }
 0x353   : > { %v1244_v29 = vpop.xlane.xlu1 %1243 }
 0x354   : > { %2791 = vrcp.f32 %v1244_v29  ;;  %v2481_v29 = vld [vmem:[%s3360_s6] ss:$0 sm:$0xff]  ;;  %s3365_s6 = smov 80  }
 0x357   : > { %v1249_v35 = vpop.permute.xlu1 %1248 }
 0x358   : > { %v1254_v37 = vsel %vm1020_vm4, %v1249_v35, 0  ;;  %v2487_v35 = vld [vmem:[%s3315_s13] ss:$0 sm:$0xff] }
 0x359   : > { %v2790_v30 = vpop.eup %2789 }
 0x35a   : > { %v1128_v32 = vmul.f32 %v2790_v30, %v2782_v14 }
 0x35b   : > { %v1362_v31 = vpop.xlane.xlu0 %1361  ;;  %v1367_v39 = vpop.permute.xlu1 %1366 }
 0x35c   : > { %2793 = vrcp.f32 %v1362_v31  ;;  %v1129_v15 = vpack.c.bf16 %v1128_v32, %v1128_v32  ;;  %v1372_v42 = vsel %vm1020_vm4, %v1367_v39, 0  ;;  %v2482_v31 = vld [vmem:[%s3361_s8] ss:$0 sm:$0xff]  ;;  %s803_s8 = scalar_lea.vmem %s3328_s26, %s3000_s2 }
 0x35f   : > { %v1131_v33 = vpop.permute.xlu0 %1130 }
 0x360   : > { %v1136_v34 = vsel %vm1020_vm4, %v1131_v33, 0 }
 0x361   : > { %2612 = vmatpush3.bf16.msra.mxu1 %v1136_v34  ;;  %v2792_v36 = vpop.eup %2791 }
 0x362   : > { %2623 = vmatprep.subr.bf16.mxu1 %v2825_v1  ;;  %v1246_v38 = vmul.f32 %v2792_v36, %v2784_v18 }
 0x364   : > { %2614 = vmatmul.mubr.msk.bf16.vlgmr.msra.gmra.mxu1 %vm953_vm2, %v1129_v15  ;;  %v1247_v40 = vpack.c.bf16 %v1246_v38, %v1246_v38 }
 0x365   : > { %2624 = vmatpush3.bf16.msra.mxu1 %v1254_v37  ;;  %2625 = vmatprep.mubr.msk.bf16.mxu1 %vm2826_vm0, %v2825_v1 }
 0x366   : > { %2635 = vmatprep.subr.bf16.mxu1 %v2825_v1 }
 0x369   : > { %v2794_v41 = vpop.eup %2793 }
 0x36a   : > { %v1364_v43 = vmul.f32 %v2794_v41, %v2786_v20  ;;  %v2767_v20 = vld [vmem:[%s3314_s12 + $0x8] sm:$0xff]  }
 0x36c   : > { %2626 = vmatmul.mubr.msk.bf16.vlgmr.msra.gmra.mxu1 %vm953_vm2, %v1247_v40  ;;  %v1365_v44 = vpack.c.bf16 %v1364_v43, %v1364_v43 }
 0x36d   : > { %2636 = vmatpush3.bf16.msra.mxu1 %v1372_v42  ;;  %2637 = vmatprep.mubr.msk.bf16.mxu1 %vm2826_vm0, %v2825_v1  ;;  %v2483_v42 = vld [vmem:[%s3313_s11] ss:$0 sm:$0xff] }
 0x36e   : > { %2649 = vmatprep.subr.bf16.mxu1 %v2825_v1 }
 0x374   : > { %2638 = vmatmul.mubr.msk.bf16.vlgmr.msra.gmra.mxu1 %vm953_vm2, %v1365_v44 }
 0x375   : > { %2653 = vmatprep.mubr.msk.bf16.mxu1 %vm2826_vm0, %v2825_v1  ;;  %2650 = vmatpush3.bf16.msra.mxu1 %v2769_v23 }
 0x376   : > { %2651 = vmatprep.subr.bf16.mxu1 %v2825_v1 }
 0x379   : > { %2652 = vmatpush3.bf16.msra.mxu1 %v2770_v24 }
 0x37a   : > { %2665 = vmatprep.subr.bf16.mxu1 %v2825_v1 }
 0x3ac   : > { %v1058_v45 = vpop.f32.mrf.mxu1 }
 0x3ad   : > { %1064 = vst.msk [vmem:[#allocation2] sm:$0xff] %vm953_vm2, %v1058_v45 }
 0x3ae   : > { %v2603_v46 = vpop.f32.mrf.mxu1 }
 0x3b0   : > { %v1061_v47 = vpop.f32.mrf.mxu1 }
 0x3b2   : > { %v2604_v48 = vpop.f32.mrf.mxu1 }
 0x424   : > { %v1172_v49 = vpop.f32.mrf.mxu1 }
 0x425   : > { %1179 = vrot.lane.b32.xlu0 %v1172_v49, %s3336_s3  ;;  %s3366_s3 = smov 8  }
 0x426   : > { %v2615_v50 = vpop.f32.mrf.mxu1 }
 0x428   : > { %v1175_v51 = vpop.f32.mrf.mxu1 }
 0x42a   : > { %v2616_v53 = vpop.f32.mrf.mxu1 }
 0x42c   : > { %v1290_v55 = vpop.f32.mrf.mxu1 }
 0x42d   : > { %1297 = vrot.lane.b32.xlu1 %v1290_v55, %s3335_s10  ;;  %s3368_s10 = smov 24  }
 0x42e   : > { %v2627_v56 = vpop.f32.mrf.mxu1 }
 0x430   : > { %v1293_v57 = vpop.f32.mrf.mxu1 }
 0x432   : > { %v2628_v58 = vpop.f32.mrf.mxu1 }
 0x434   : > { %v1408_v59 = vpop.f32.mrf.mxu1 }
 0x435   : > { %1415 = vrot.lane.b32.xlu0 %v1408_v59, %s3334_s24 }
 0x436   : > { %v2639_v60 = vpop.f32.mrf.mxu1 }
 0x438   : > { %v1411_v61 = vpop.f32.mrf.mxu1 }
 0x43a   : > { %v2640_v62 = vpop.f32.mrf.mxu1 }
 0x497   : > { %v1180_v63 = vpop.permute.xlu0 %1179 }
 0x498   : > { %1183 = vst.msk [vmem:[#allocation2] sm:$0xff] %vm1182_vm5, %v1180_v63 }
 0x49f   : > { %v1298_v0 = vpop.permute.xlu1 %1297 }
 0x4a0   : > { %1301 = vst.msk [vmem:[#allocation2] sm:$0xff] %vm1300_vm6, %v1298_v0 }
 0x4a7   : > { %v1416_v2 = vpop.permute.xlu0 %1415 }
 0x4a8   : > { %1419 = vst.msk [vmem:[#allocation2] sm:$0xff] %vm1418_vm7, %v1416_v2 }
 0x4af   : > { %v1420_v3 = vld [vmem:[#allocation2] sm:$0xff] }
 0x4b0   : > { %v1421_v4 = vpack.c.bf16 %v1420_v3, %v1420_v3 }
 0x4b2   : > { %2646 = vmatmul.mubr.msk.bf16.vlgmr.msra.gmra.mxu0 %vm843_vm1, %v1421_v4 }
 0x4b3   : > { %2661 = vmatprep.mubr.msk.bf16.mxu0 %vm2826_vm0, %v2825_v1  ;;  %2658 = vmatpush3.bf16.msra.mxu0 %v2767_v20 }
 0x4b4   : > { %2659 = vmatprep.subr.bf16.mxu0 %v2825_v1 }
 0x572   : > { %v1477_v7 = vpop.f32.mrf.mxu0 }
 0x573   : > { %v1478_v8 = vadd.f32 %v2477_v6, %v1477_v7 }
 0x574   : > { %v2647_v9 = vpop.f32.mrf.mxu0 }
 0x575   : > { %v1483_v10 = vadd.f32 %v1478_v8, %v3007_v5  ;;  %v2768_v5 = vld [vmem:[%s3314_s12] sm:$0xff]  }
 0x576   : > { %v1480_v11 = vpop.f32.mrf.mxu0  ;;  %2660 = vmatpush3.bf16.msra.mxu0 %v2768_v5 }
 0x577   : > { %v1484_v12 = vsel %vm843_vm1, %v1483_v10, 0.0  ;;  %2671 = vmatprep.subr.bf16.mxu0 %v2825_v1 }
 0x578   : > { %1485 = vadd.xlane.f32.xlu1 %v1484_v12  ;;  %v2648_v13 = vpop.f32.mrf.mxu0 }
 0x579   : > { %2662 = vmatmul.mubr.msk.bf16.vlgmr.msra.gmra.mxu0 %vm843_vm1, %v1591_v22 }
 0x57a   : > { %2673 = vmatprep.mubr.msk.bf16.mxu0 %vm2826_vm0, %v2825_v1 }
 0x601   : > { %v1486_v14 = vpop.xlane.xlu1 %1485 }
 0x602   : > { %v1488_v16 = vmul.f32 0.03125, %v1486_v14 }
 0x604   : > { %v1489_v17 = vsub.f32 %v1483_v10, %v1488_v16 }
 0x606   : > { %v1490_v18 = vmul.f32 %v1489_v17, %v1489_v17 }
 0x608   : > { %v1491_v19 = vsel %vm843_vm1, %v1490_v18, 0.0 }
 0x609   : > { %1492 = vadd.xlane.f32.xlu0 %v1491_v19 }
 0x639   : > { %v1647_v15 = vpop.f32.mrf.mxu0 }
 0x63a   : > { %v1648_v36 = vadd.f32 %v2487_v35, %v1647_v15 }
 0x63b   : > { %v2663_v37 = vpop.f32.mrf.mxu0 }
 0x63c   : > { %v3156_v38 = vpack.c.bf16 %v1648_v36, %v1648_v36 }
 0x63d   : > { %v1650_v39 = vpop.f32.mrf.mxu0 }
 0x63e   : > { %1767 = vrot.lane.b32.xlu0 %v3156_v38, %s2828_s9  ;;  %v1659_v40 = vsel %vm953_vm2, %v3156_v38, 0 }
 0x63f   : > { %v2664_v41 = vpop.f32.mrf.mxu0 }
 0x692   : > { %v1493_v25 = vpop.xlane.xlu0 %1492 }
 0x693   : > { %v1494_v26 = vmul.f32 0.03125, %v1493_v25 }
 0x695   : > { %v1495_v27 = vadd.f32 1e-05, %v1494_v26 }
 0x697   : > { %2795 = vrsqrt.f32 %v1495_v27 }
 0x6a4   : > { %v2796_v28 = vpop.eup %2795 }
 0x6a5   : > { %v1497_v30 = vmul.f32 %v2796_v28, %v1489_v17 }
 0x6a7   : > { %v1504_v32 = vmul.f32 %v2481_v29, %v1497_v30 }
 0x6a9   : > { %v3146_v33 = vadd.f32 %v2482_v31, %v1504_v32 }
 0x6ab   : > { %v1529_v34 = vpack.c.bf16 %v3146_v33, %v3146_v33 }
 0x6ad   : > { %2654 = vmatmul.mubr.msk.bf16.vlgmr.msra.gmra.mxu1 %vm843_vm1, %v1529_v34 }
 0x6ae   : > { %2667 = vmatprep.mubr.msk.bf16.mxu1 %vm2826_vm0, %v2825_v1  ;;  %2666 = vmatpush3.bf16.xpose.msra.mxu1 %v1659_v40 }
 0x6af   : > { %2677 = vmatprep.subr.bf16.mxu1 %v2825_v1 }
 0x6b0   : > { %v1768_v45 = vpop.permute.xlu0 %1767 }
 0x6b1   : > { %v1773_v49 = vsel %vm953_vm2, %v1768_v45, 0 }
 0x76d   : > { %v1585_v43 = vpop.f32.mrf.mxu1 }
 0x76e   : > { %v1586_v44 = vadd.f32 %v2483_v42, %v1585_v43 }
 0x76f   : > { %v2655_v46 = vpop.f32.mrf.mxu1 }
 0x770   : > { %v1653_v47 = vpack.c.bf16 %v1586_v44, %v1586_v44 }
 0x771   : > { %v1588_v48 = vpop.f32.mrf.mxu1 }
 0x772   : > { %1765 = vrot.lane.b32.xlu1 %v1653_v47, %s2828_s9  ;;  %1881 = vrot.lane.b32.xlu0 %v1653_v47, %s2827_s0  ;;  %s3363_s9 = smov 96  }
 0x773   : > { %2668 = vmatmul.mubr.msk.bf16.vlgmr.msra.gmra.mxu1 %vm953_vm2, %v1653_v47  ;;  %v2656_v50 = vpop.f32.mrf.mxu1 }
 0x774   : > { %2678 = vmatpush3.bf16.xpose.msra.mxu1 %v1773_v49  ;;  %2679 = vmatprep.mubr.msk.bf16.mxu1 %vm2826_vm0, %v2825_v1 }
 0x775   : > { %2689 = vmatprep.subr.bf16.mxu1 %v2825_v1 }
 0x776   : > { %1883 = vrot.lane.b32.xlu1 %v3156_v38, %s2827_s0  ;;  %1997 = vrot.lane.b32.xlu0 %v1653_v47, %s2829_s30  ;;  %s3362_s0 = smov 88  }
 0x77a   : > { %1999 = vrot.lane.b32.xlu1 %v3156_v38, %s2829_s30  ;;  %s3364_s30 = smov 72  }
 0x7e4   : > { %v1766_v51 = vpop.permute.xlu1 %1765  ;;  %v1882_v55 = vpop.permute.xlu0 %1881 }
 0x7e5   : > { %2680 = vmatmul.mubr.msk.bf16.vlgmr.msra.gmra.mxu1 %vm953_vm2, %v1766_v51 }
 0x7e6   : > { %2691 = vmatprep.mubr.msk.bf16.mxu1 %vm2826_vm0, %v2825_v1 }
 0x7e8   : > { %v1884_v52 = vpop.permute.xlu1 %1883  ;;  %v1998_v57 = vpop.permute.xlu0 %1997 }
 0x7e9   : > { %v1889_v53 = vsel %vm953_vm2, %v1884_v52, 0 }
 0x7ea   : > { %2690 = vmatpush3.bf16.xpose.msra.mxu1 %v1889_v53 }
 0x7eb   : > { %2701 = vmatprep.subr.bf16.mxu1 %v2825_v1 }
 0x7ec   : > { %v2000_v54 = vpop.permute.xlu1 %1999 }
 0x7ed   : > { %v2005_v56 = vsel %vm953_vm2, %v2000_v54, 0 }
 0x7f1   : > { %2692 = vmatmul.mubr.msk.bf16.vlgmr.msra.gmra.mxu1 %vm953_vm2, %v1882_v55 }
 0x7f2   : > { %2702 = vmatpush3.bf16.xpose.msra.mxu1 %v2005_v56  ;;  %2703 = vmatprep.mubr.msk.bf16.mxu1 %vm2826_vm0, %v2825_v1 }
 0x7f3   : > { %2713 = vmatprep.subr.bf16.mxu1 %v2825_v1 }
 0x7f9   : > { %2704 = vmatmul.mubr.msk.bf16.vlgmr.msra.gmra.mxu1 %vm953_vm2, %v1998_v57 }
 0x7fa   : > { %2717 = vmatprep.mubr.msk.bf16.mxu1 %vm2826_vm0, %v2825_v1 }
 0x833   : > { %v1695_v58 = vpop.f32.mrf.mxu1 }
 0x834   : > { %v1701_v59 = vmul.f32 0.35355338, %v1695_v58 }
 0x835   : > { %v2669_v60 = vpop.f32.mrf.mxu1 }
 0x836   : > { %v1702_v61 = vsel %vm953_vm2, %v1701_v59, -inf }
 0x837   : > { %1703 = vmax.xlane.f32.xlu1 %v1702_v61  ;;  %v1698_v62 = vpop.f32.mrf.mxu1 }
 0x839   : > { %v2670_v63 = vpop.f32.mrf.mxu1 }
 0x8a5   : > { %v1809_v0 = vpop.f32.mrf.mxu1 }
 0x8a6   : > { %v1815_v2 = vmul.f32 0.35355338, %v1809_v0 }
 0x8a7   : > { %v2681_v3 = vpop.f32.mrf.mxu1 }
 0x8a8   : > { %v1816_v4 = vsel %vm953_vm2, %v1815_v2, -inf }
 0x8a9   : > { %1817 = vmax.xlane.f32.xlu0 %v1816_v4  ;;  %v1812_v6 = vpop.f32.mrf.mxu1 }
 0x8ab   : > { %v2682_v7 = vpop.f32.mrf.mxu1 }
 0x8b1   : > { %v1925_v8 = vpop.f32.mrf.mxu1 }
 0x8b2   : > { %v1931_v9 = vmul.f32 0.35355338, %v1925_v8 }
 0x8b3   : > { %v2693_v10 = vpop.f32.mrf.mxu1 }
 0x8b4   : > { %v1932_v11 = vsel %vm953_vm2, %v1931_v9, -inf  ;;  %v2771_v10 = vld [vmem:[%s3316_s14 + $0x8] sm:$0xff]  }
 0x8b5   : > { %1933 = vmax.xlane.f32.xlu0 %v1932_v11  ;;  %v1928_v12 = vpop.f32.mrf.mxu1  ;;  %2714 = vmatpush3.bf16.msra.mxu1 %v2771_v10 }
 0x8b6   : > { %v2772_v12 = vld [vmem:[%s3316_s14] sm:$0xff]   ;;  %2715 = vmatprep.subr.bf16.mxu1 %v2825_v1 }
 0x8b7   : > { %v2694_v13 = vpop.f32.mrf.mxu1 }
 0x8b9   : > { %v2041_v14 = vpop.f32.mrf.mxu1  ;;  %2716 = vmatpush3.bf16.msra.mxu1 %v2772_v12 }
 0x8ba   : > { %v2047_v16 = vmul.f32 0.35355338, %v2041_v14  ;;  %2729 = vmatprep.subr.bf16.mxu1 %v2825_v1 }
 0x8bb   : > { %v2705_v17 = vpop.f32.mrf.mxu1 }
 0x8bc   : > { %v2048_v18 = vsel %vm953_vm2, %v2047_v16, -inf }
 0x8bd   : > { %2049 = vmax.xlane.f32.xlu1 %v2048_v18  ;;  %v2044_v19 = vpop.f32.mrf.mxu1 }
 0x8bf   : > { %v2706_v20 = vpop.f32.mrf.mxu1 }
 0x8c0   : > { %v1704_v5 = vpop.xlane.xlu1 %1703 }
 0x8c1   : > { %v1705_v21 = vsub.f32 %v1701_v59, %v1704_v5 }
 0x8c3   : > { %v1706_v22 = vmul.f32 1.442695, %v1705_v21 }
 0x8c5   : > { %2797 = vpow2.f32 %v1706_v22 }
 0x8d2   : > { %v2798_v23 = vpop.eup %2797 }
 0x8d3   : > { %v1708_v24 = vsel %vm953_vm2, %v2798_v23, 0.0 }
 0x8d4   : > { %1709 = vadd.xlane.f32.xlu0 %v1708_v24 }
 0x932   : > { %v1818_v25 = vpop.xlane.xlu0 %1817 }
 0x933   : > { %v1819_v26 = vsub.f32 %v1815_v2, %v1818_v25  ;;  %v2499_v25 = vld [vmem:[%s3317_s15] ss:$0 sm:$0xff] }
 0x935   : > { %v1820_v27 = vmul.f32 1.442695, %v1819_v26 }
 0x937   : > { %2799 = vpow2.f32 %v1820_v27 }
 0x93e   : > { %v1934_v28 = vpop.xlane.xlu0 %1933 }
 0x93f   : > { %v1935_v29 = vsub.f32 %v1931_v9, %v1934_v28 }
 0x941   : > { %v1936_v30 = vmul.f32 1.442695, %v1935_v29 }
 0x943   : > { %2801 = vpow2.f32 %v1936_v30 }
 0x944   : > { %v2800_v31 = vpop.eup %2799 }
 0x945   : > { %v1822_v32 = vsel %vm953_vm2, %v2800_v31, 0.0 }
 0x946   : > { %1823 = vadd.xlane.f32.xlu1 %v1822_v32  ;;  %v2050_v15 = vpop.xlane.xlu1 %2049 }
 0x947   : > { %v2051_v36 = vsub.f32 %v2047_v16, %v2050_v15 }
 0x949   : > { %v2052_v37 = vmul.f32 1.442695, %v2051_v36 }
 0x94b   : > { %2803 = vpow2.f32 %v2052_v37 }
 0x950   : > { %v2802_v34 = vpop.eup %2801 }
 0x951   : > { %v1938_v35 = vsel %vm953_vm2, %v2802_v34, 0.0 }
 0x952   : > { %1939 = vadd.xlane.f32.xlu0 %v1938_v35 }
 0x957   : > { %1828 = vrot.lane.b32.xlu1 %v3156_v38, %s3362_s0 }
 0x958   : > { %v2804_v39 = vpop.eup %2803 }
 0x959   : > { %v2054_v40 = vsel %vm953_vm2, %v2804_v39, 0.0 }
 0x95d   : > { %v1710_v41 = vpop.xlane.xlu0 %1709 }
 0x95e   : > { %2805 = vrcp.f32 %v1710_v41  ;;  %v2776_v41 = vld [vmem:[%s3322_s20 + $0x10] sm:$0xff]  }
 0x968   : > { %1715 = vrot.lane.b32.xlu0 %v3156_v38, %s3363_s9 }
 0x96b   : > { %v2806_v43 = vpop.eup %2805 }
 0x96c   : > { %2060 = vrot.lane.b32.xlu0 %v3156_v38, %s3364_s30  ;;  %v1712_v45 = vmul.f32 %v2806_v43, %v2798_v23 }
 0x96e   : > { %v1713_v49 = vpack.c.bf16 %v1712_v45, %v1712_v45 }
 0x97b   : > { %2055 = vadd.xlane.f32.xlu1 %v2054_v40  ;;  %v2775_v40 = vld [vmem:[%s3322_s20 + $0x18] sm:$0xff]  }
 0x98c   : > { %1944 = vrot.lane.b32.xlu1 %v3156_v38, %s3365_s6 }
 0x9cf   : > { %v1824_v42 = vpop.xlane.xlu1 %1823 }
 0x9d0   : > { %2807 = vrcp.f32 %v1824_v42 }
 0x9d3   : > { %v1829_v48 = vpop.permute.xlu1 %1828 }
 0x9d4   : > { %v1834_v51 = vsel %vm1020_vm4, %v1829_v48, 0  ;;  %v2504_v48 = vld [vmem:[%s3319_s17] ss:$0 sm:$0xff] }
 0x9db   : > { %v1940_v44 = vpop.xlane.xlu0 %1939 }
 0x9dc   : > { %2809 = vrcp.f32 %v1940_v44 }
 0x9dd   : > { %v2808_v50 = vpop.eup %2807 }
 0x9de   : > { %v1826_v38 = vmul.f32 %v2808_v50, %v2800_v31 }
 0x9df   : > { %v1716_v46 = vpop.permute.xlu0 %1715 }
 0x9e0   : > { %v1721_v47 = vsel %vm1020_vm4, %v1716_v46, 0  ;;  %v1827_v52 = vpack.c.bf16 %v1826_v38, %v1826_v38  ;;  %v2503_v46 = vld [vmem:[%s3318_s16] ss:$0 sm:$0xff]  ;;  %v2777_v38 = vld [vmem:[%s3322_s20 + $0x8] sm:$0xff]  }
 0x9e1   : > { %2672 = vmatpush3.bf16.msra.mxu0 %v1721_v47 }
 0x9e2   : > { %2683 = vmatprep.subr.bf16.mxu0 %v2825_v1 }
 0x9e3   : > { %v2061_v58 = vpop.permute.xlu0 %2060 }
 0x9e4   : > { %2674 = vmatmul.mubr.msk.bf16.vlgmr.msra.gmra.mxu0 %vm953_vm2, %v1713_v49  ;;  %v2066_v60 = vsel %vm1020_vm4, %v2061_v58, 0 }
 0x9e5   : > { %2684 = vmatpush3.bf16.msra.mxu0 %v1834_v51  ;;  %2685 = vmatprep.mubr.msk.bf16.mxu0 %vm2826_vm0, %v2825_v1 }
 0x9e6   : > { %2695 = vmatprep.subr.bf16.mxu0 %v2825_v1 }
 0x9e9   : > { %v2810_v53 = vpop.eup %2809 }
 0x9ea   : > { %v1942_v55 = vmul.f32 %v2810_v53, %v2802_v34  ;;  %v2505_v53 = vld [vmem:[%s3321_s19] ss:$0 sm:$0xff] }
 0x9ec   : > { %2686 = vmatmul.mubr.msk.bf16.vlgmr.msra.gmra.mxu0 %vm953_vm2, %v1827_v52  ;;  %v1943_v59 = vpack.c.bf16 %v1942_v55, %v1942_v55  ;;  %v2778_v52 = vld [vmem:[%s3322_s20] sm:$0xff]  }
 0x9ed   : > { %2697 = vmatprep.mubr.msk.bf16.mxu0 %vm2826_vm0, %v2825_v1 }
 0xa04   : > { %v2056_v54 = vpop.xlane.xlu1 %2055 }
 0xa05   : > { %2811 = vrcp.f32 %v2056_v54 }
 0xa08   : > { %v1945_v56 = vpop.permute.xlu1 %1944 }
 0xa09   : > { %v1950_v57 = vsel %vm1020_vm4, %v1945_v56, 0 }
 0xa0a   : > { %2696 = vmatpush3.bf16.msra.mxu0 %v1950_v57 }
 0xa0b   : > { %2707 = vmatprep.subr.bf16.mxu0 %v2825_v1 }
 0xa0d   : > { %2698 = vmatmul.mubr.msk.bf16.vlgmr.msra.gmra.mxu0 %vm953_vm2, %v1943_v59 }
 0xa0e   : > { %2708 = vmatpush3.bf16.msra.mxu0 %v2066_v60  ;;  %2709 = vmatprep.mubr.msk.bf16.mxu0 %vm2826_vm0, %v2825_v1 }
 0xa0f   : > { %2721 = vmatprep.subr.bf16.mxu0 %v2825_v1 }
 0xa12   : > { %v2812_v61 = vpop.eup %2811 }
 0xa13   : > { %v2058_v62 = vmul.f32 %v2812_v61, %v2804_v39  ;;  %v2773_v39 = vld [vmem:[%s3320_s18 + $0x8] sm:$0xff]  }
 0xa15   : > { %v2059_v63 = vpack.c.bf16 %v2058_v62, %v2058_v62 }
 0xa17   : > { %2710 = vmatmul.mubr.msk.bf16.vlgmr.msra.gmra.mxu0 %vm953_vm2, %v2059_v63 }
 0xa18   : > { %2725 = vmatprep.mubr.msk.bf16.mxu0 %vm2826_vm0, %v2825_v1  ;;  %2722 = vmatpush3.bf16.msra.mxu0 %v2773_v39 }
 0xa19   : > { %2723 = vmatprep.subr.bf16.mxu0 %v2825_v1 }
 0xaa4   : > { %v1757_v0 = vpop.f32.mrf.mxu0 }
 0xaa5   : > { %1763 = vst.msk [vmem:[#allocation2] sm:$0xff] %vm953_vm2, %v1757_v0 }
 0xaa6   : > { %v2675_v2 = vpop.f32.mrf.mxu0 }
 0xaa8   : > { %v1760_v3 = vpop.f32.mrf.mxu0 }
 0xaaa   : > { %v2676_v4 = vpop.f32.mrf.mxu0 }
 0xaac   : > { %v1870_v6 = vpop.f32.mrf.mxu0 }
 0xaad   : > { %1877 = vrot.lane.b32.xlu1 %v1870_v6, %s3366_s3 }
 0xaae   : > { %v2687_v7 = vpop.f32.mrf.mxu0 }
 0xab0   : > { %v1873_v8 = vpop.f32.mrf.mxu0 }
 0xab2   : > { %v2688_v9 = vpop.f32.mrf.mxu0 }
 0xacd   : > { %v1986_v11 = vpop.f32.mrf.mxu0 }
 0xace   : > { %1993 = vrot.lane.b32.xlu0 %v1986_v11, %s3367_s5 }
 0xacf   : > { %v2699_v13 = vpop.f32.mrf.mxu0 }
 0xad1   : > { %v1989_v14 = vpop.f32.mrf.mxu0 }
 0xad3   : > { %v2700_v16 = vpop.f32.mrf.mxu0 }
 0xad4   : > { %v2515_v16 = vld [vmem:[%s3324_s22] ss:$0 sm:$0xff] }
 0xad7   : > { %v2102_v17 = vpop.f32.mrf.mxu0 }
 0xad8   : > { %2109 = vrot.lane.b32.xlu1 %v2102_v17, %s3368_s10 }
 0xad9   : > { %v2711_v18 = vpop.f32.mrf.mxu0 }
 0xada   : > { %v2516_v18 = vld [vmem:[%s3325_s23] ss:$0 sm:$0xff] }
 0xadb   : > { %v2105_v19 = vpop.f32.mrf.mxu0 }
 0xadd   : > { %v2712_v20 = vpop.f32.mrf.mxu0 }
 0xb1f   : > { %v1878_v5 = vpop.permute.xlu1 %1877 }
 0xb20   : > { %1880 = vst.msk [vmem:[#allocation2] sm:$0xff] %vm1182_vm5, %v1878_v5 }
 0xb40   : > { %v1994_v21 = vpop.permute.xlu0 %1993 }
 0xb41   : > { %1996 = vst.msk [vmem:[#allocation2] sm:$0xff] %vm1300_vm6, %v1994_v21 }
 0xb4a   : > { %v2110_v22 = vpop.permute.xlu1 %2109 }
 0xb4b   : > { %2112 = vst.msk [vmem:[#allocation2] sm:$0xff] %vm1418_vm7, %v2110_v22 }
 0xb52   : > { %v2113_v23 = vld [vmem:[#allocation2] sm:$0xff] }
 0xb53   : > { %v2114_v24 = vpack.c.bf16 %v2113_v23, %v2113_v23 }
 0xb55   : > { %2718 = vmatmul.mubr.msk.bf16.vlgmr.msra.gmra.mxu1 %vm843_vm1, %v2114_v24 }
 0xb56   : > { %2737 = vmatprep.mubr.msk.bf16.mxu1 %vm2826_vm0, %v2825_v1  ;;  %2730 = vmatpush3.bf16.msra.mxu1 %v2775_v40 }
 0xb57   : > { %2731 = vmatprep.subr.bf16.mxu1 %v2825_v1 }
 0xb5a   : > { %2732 = vmatpush3.bf16.msra.mxu1 %v2776_v41 }
 0xb5b   : > { %2733 = vmatprep.subr.bf16.mxu1 %v2825_v1 }
 0xb5e   : > { %2734 = vmatpush3.bf16.msra.mxu1 %v2777_v38 }
 0xb5f   : > { %2735 = vmatprep.subr.bf16.mxu1 %v2825_v1  ;;  %v2514_v1 = vld [vmem:[%s3323_s21] ss:$0 sm:$0xff] }
 0xb62   : > { %2736 = vmatpush3.bf16.msra.mxu1 %v2778_v52 }
 0xc15   : > { %v2170_v26 = vpop.f32.mrf.mxu1 }
 0xc16   : > { %v2171_v27 = vadd.f32 %v2499_v25, %v2170_v26 }
 0xc17   : > { %v2719_v28 = vpop.f32.mrf.mxu1 }
 0xc18   : > { %v2176_v29 = vadd.f32 %v2171_v27, %v3146_v33  ;;  %v2774_v33 = vld [vmem:[%s3320_s18] sm:$0xff]  }
 0xc19   : > { %v2173_v30 = vpop.f32.mrf.mxu1  ;;  %2724 = vmatpush3.bf16.msra.mxu0 %v2774_v33 }
 0xc1a   : > { %v2177_v31 = vsel %vm843_vm1, %v2176_v29, 0.0 }
 0xc1b   : > { %2178 = vadd.xlane.f32.xlu0 %v2177_v31  ;;  %v2720_v32 = vpop.f32.mrf.mxu1 }
 0xca4   : > { %v2179_v34 = vpop.xlane.xlu0 %2178 }
 0xca5   : > { %v2180_v35 = vmul.f32 0.03125, %v2179_v34 }
 0xca7   : > { %v2181_v15 = vsub.f32 %v2176_v29, %v2180_v35 }
 0xca9   : > { %v2182_v36 = vmul.f32 %v2181_v15, %v2181_v15 }
 0xcab   : > { %v2183_v37 = vsel %vm843_vm1, %v2182_v36, 0.0 }
 0xcac   : > { %2184 = vadd.xlane.f32.xlu1 %v2183_v37 }
 0xd35   : > { %v2185_v42 = vpop.xlane.xlu1 %2184 }
 0xd36   : > { %v2186_v43 = vmul.f32 0.03125, %v2185_v42 }
 0xd38   : > { %v2187_v44 = vadd.f32 1e-05, %v2186_v43 }
 0xd3a   : > { %2813 = vrsqrt.f32 %v2187_v44 }
 0xd47   : > { %v2814_v45 = vpop.eup %2813 }
 0xd48   : > { %v2189_v47 = vmul.f32 %v2814_v45, %v2181_v15 }
 0xd4a   : > { %v2196_v49 = vmul.f32 %v2503_v46, %v2189_v47 }
 0xd4c   : > { %v2203_v50 = vadd.f32 %v2504_v48, %v2196_v49 }
 0xd4e   : > { %v2220_v51 = vpack.c.bf16 %v2203_v50, %v2203_v50 }
 0xd50   : > { %2726 = vmatmul.mubr.msk.bf16.vlgmr.msra.gmra.mxu0 %vm843_vm1, %v2220_v51 }
 0xe10   : > { %v2276_v54 = vpop.f32.mrf.mxu0 }
 0xe11   : > { %v2277_v55 = vadd.f32 %v2505_v53, %v2276_v54 }
 0xe12   : > { %v2727_v56 = vpop.f32.mrf.mxu0 }
 0xe13   : > { %v2282_v57 = vmax.f32 %v2277_v55, 0.0 }
 0xe14   : > { %v2279_v58 = vpop.f32.mrf.mxu0 }
 0xe15   : > { %v2283_v59 = vpack.c.bf16 %v2282_v57, %v2282_v57 }
 0xe16   : > { %v2728_v60 = vpop.f32.mrf.mxu0 }
 0xe17   : > { %2738 = vmatmul.mubr.msk.bf16.vlgmr.msra.gmra.mxu1 %vm2308_vm8, %v2283_v59 }
 0xed7   : > { %v2346_v61 = vpop.f32.mrf.mxu1 }
 0xed8   : > { %v2352_v62 = vadd.f32 %v2346_v61, %v2203_v50 }
 0xed9   : > { %v2739_v63 = vpop.f32.mrf.mxu1 }
 0xeda   : > { %v2359_v0 = vadd.f32 %v2514_v1, %v2352_v62 }
 0xedb   : > { %v2349_v2 = vpop.f32.mrf.mxu1 }
 0xedc   : > { %v2360_v3 = vsel %vm843_vm1, %v2359_v0, 0.0 }
 0xedd   : > { %2361 = vadd.xlane.f32.xlu0 %v2360_v3  ;;  %v2740_v4 = vpop.f32.mrf.mxu1 }
 0xf66   : > { %v2362_v6 = vpop.xlane.xlu0 %2361 }
 0xf67   : > { %v2363_v7 = vmul.f32 0.03125, %v2362_v6 }
 0xf69   : > { %v2364_v8 = vsub.f32 %v2359_v0, %v2363_v7 }
 0xf6b   : > { %v2365_v9 = vmul.f32 %v2364_v8, %v2364_v8 }
 0xf6d   : > { %v2366_v10 = vsel %vm843_vm1, %v2365_v9, 0.0 }
 0xf6e   : > { %2367 = vadd.xlane.f32.xlu0 %v2366_v10 }
 0xff7   : > { %v2368_v11 = vpop.xlane.xlu0 %2367 }
 0xff8   : > { %v2369_v12 = vmul.f32 0.03125, %v2368_v11 }
 0xffa   : > { %v2370_v13 = vadd.f32 1e-05, %v2369_v12 }
 0xffc   : > { %2815 = vrsqrt.f32 %v2370_v13 }
0x1009   : > { %v2816_v14 = vpop.eup %2815 }
0x100a   : > { %v2372_v17 = vmul.f32 %v2816_v14, %v2364_v8 }
0x100c   : > { %v2379_v19 = vmul.f32 %v2515_v16, %v2372_v17 }
0x100e   : > { %v2386_v20 = vadd.f32 %v2516_v18, %v2379_v19 }
0x1010   : > { %2387 = vst.msk [vmem:[%s803_s8] sm:$0xff] %vm843_vm1, %v2386_v20 }
0x1011 PF: > { %s36_s27 = sadd.s32 1, %s2823_s27  }
0x1012   : > { %p33_p4 = scmp.ge.s32.totalorder %s36_s27, 4  }
0x1014   :  { %35 = sbr.rel (!%p33_p4) target bundleno = 12 (0xc), region = 157 }

// kernel: transformer_seq2seq_forward.8
= control target key start
LH: loop header
LB: loop body
LE: loop exit
PB: predicated region body
PF: predicated region fallthrough
CT: control target
= control target key end

     0   :  { %s3005_s27 = smov 0   ;;  %s3343_s0 = inlined_call_operand.vmem [shape: f32[2,8,32], index: 0, kind: input, shape index: {}]   ;;  %s3344_s1 = inlined_call_operand.vmem [shape: f32[2,8,32], index: 1, kind: input, shape index: {}]   ;;  %s3345_s2 = inlined_call_operand.vmem [shape: bf16[32,32], index: 2, kind: input, shape index: {}]   ;;  %s3346_s3 = inlined_call_operand.vmem [shape: f32[1,32], index: 3, kind: input, shape index: {}]   ;;  %s3347_s4 = inlined_call_operand.vmem [shape: bf16[32,64], index: 4, kind: input, shape index: {}]   ;;  %s3348_s5 = inlined_call_operand.vmem [shape: f32[1,64], index: 5, kind: input, shape index: {}]   ;;  %s3349_s6 = inlined_call_operand.vmem [shape: bf16[32,32], index: 6, kind: input, shape index: {}]   ;;  %s3350_s7 = inlined_call_operand.vmem [shape: f32[1,32], index: 7, kind: input, shape index: {}]   ;;  %s3351_s8 = inlined_call_operand.vmem [shape: f32[1,32], index: 8, kind: input, shape index: {}]   ;;  %s3352_s9 = inlined_call_operand.vmem [shape: f32[1,32], index: 9, kind: input, shape index: {}]   ;;  %s3353_s10 = inlined_call_operand.vmem [shape: bf16[32,32], index: 10, kind: input, shape index: {}]   ;;  %s3354_s11 = inlined_call_operand.vmem [shape: f32[1,32], index: 11, kind: input, shape index: {}]   ;;  %s3355_s12 = inlined_call_operand.vmem [shape: bf16[32,64], index: 12, kind: input, shape index: {}]   ;;  %s3356_s13 = inlined_call_operand.vmem [shape: f32[1,64], index: 13, kind: input, shape index: {}]   ;;  %s3357_s14 = inlined_call_operand.vmem [shape: bf16[32,32], index: 14, kind: input, shape index: {}]   ;;  %s3358_s15 = inlined_call_operand.vmem [shape: f32[1,32], index: 15, kind: input, shape index: {}]   ;;  %s3359_s16 = inlined_call_operand.vmem [shape: f32[1,32], index: 16, kind: input, shape index: {}]   ;;  %s3360_s17 = inlined_call_operand.vmem [shape: f32[1,32], index: 17, kind: input, shape index: {}]   ;;  %s3361_s18 = inlined_call_operand.vmem [shape: bf16[32,64], index: 18, kind: input, shape index: {}]   ;;  %s3362_s19 = inlined_call_operand.vmem [shape: f32[1,64], index: 19, kind: input, shape index: {}]   ;;  %s3363_s20 = inlined_call_operand.vmem [shape: bf16[64,32], index: 20, kind: input, shape index: {}]   ;;  %s3364_s21 = inlined_call_operand.vmem [shape: f32[1,32], index: 21, kind: input, shape index: {}]   ;;  %s3365_s22 = inlined_call_operand.vmem [shape: f32[1,32], index: 22, kind: input, shape index: {}]   ;;  %s3366_s23 = inlined_call_operand.vmem [shape: f32[1,32], index: 23, kind: input, shape index: {}]   ;;  %s3367_s24 = inlined_call_operand.vmem [shape: f32[1,32], index: 24, kind: input, shape index: {}]   ;;  %s3368_s25 = inlined_call_operand.vmem [shape: f32[1,32], index: 25, kind: input, shape index: {}]   ;;  %s3369_s26 = inlined_call_operand.vmem [shape: f32[2,8,32], index: 26, kind: output, shape index: {}]  }
   0x1   :  { %3385 = sst [smem:[#allocation3_spill]] %s3343_s0 }
   0x2   :  { %3386 = sst [smem:[#allocation4_spill]] %s3344_s1 }
   0x3   :  { %3387 = sst [smem:[#allocation5_spill]] %s3345_s2 }
   0x4   :  { %3388 = sst [smem:[#allocation6_spill]] %s3346_s3 }
   0x5   :  { %3389 = sst [smem:[#allocation7_spill]] %s3347_s4 }
   0x6   :  { %3390 = sst [smem:[#allocation8_spill]] %s3348_s5 }
   0x7   :  { %3391 = sst [smem:[#allocation9_spill]] %s3349_s6 }
   0x8   :  { %3392 = sst [smem:[#allocation10_spill]] %s3350_s7 }
   0x9   :  { %3393 = sst [smem:[#allocation11_spill]] %s3351_s8 }
   0xa   :  { %3394 = sst [smem:[#allocation12_spill]] %s3352_s9 }
   0xb   :  { %3395 = sst [smem:[#allocation13_spill]] %s3353_s10 }
   0xc LB: > { %s2482_s3 = sadd.s32 4294967295, %s2856_s27   ;;  %p2486_p0 = scmp.ge.s32.totalorder %s2856_s27, 1  ;;  %s2856_s27 = sphi %s3005_s27, %s36_s27  }
   0xd   : > { %p720_p1 = scmp.lt.s32.totalorder %s2856_s27, 3 }
   0xf   : > { %p721_p2 = pnand %p2486_p0, %p720_p1 }
  0x10   : > { %s3396_s8 = sld [smem:[#allocation7_spill]] (!%p721_p2)  ;;  %p792_p3 = scmp.lt.s32.totalorder (!%p721_p2), %s2482_s3, 1 }
  0x11   : > { %724 = sbr.rel (%p721_p2) target bundleno = 4421 (0x1145), region = 124  ;;  %s3397_s0 = sld [smem:[#allocation5_spill]] (!%p721_p2) }
  0x12   : > { %s3398_s7 = sld [smem:[#allocation3_spill]] (!%p721_p2)  ;;  %s3383_s5 = smov (!%p721_p2), 112  }
  0x13   : > { %s3399_s29 = sld [smem:[#allocation8_spill]] (!%p721_p2)  ;;  %s2861_s6 = smov (!%p721_p2), 120  }
  0x14   : > { %s3400_s2 = sld [smem:[#allocation6_spill]] (!%p721_p2)  ;;  %s3381_s1 = smov (!%p721_p2), 104  }
  0x15   : > { %s3380_s4 = smov (!%p721_p2), 88   ;;  %s3377_s9 = smov (!%p721_p2), 24  }
  0x16   : > { %v2792_v0 = vld [vmem:[%s3396_s8 + $0x8] sm:$0xff]   ;;  %v2858_v1 = vmov 0.0   ;;  %v2794_v3 = vld [vmem:[%s3396_s8] sm:$0xff]   ;;  %vm2859_vm0 = vmmov 0   ;;  %s3417_s3 = smov (!%p792_p3, %s2482_s3), 1  ;;  %vm843_vm1 = vcmask 261120   ;;  %v947_v31 = vlaneseq }
  0x17   : > { %2616 = vmatprep.subr.bf16.mxu1 %v2858_v1  ;;  %2608 = vmatprep.subr.bf16.mxu0 %v2858_v1  ;;  %v2793_v2 = vld [vmem:[%s3397_s0 + $0x8] sm:$0xff]   ;;  %v2795_v4 = vld [vmem:[%s3397_s0] sm:$0xff]   ;;  %s3033_s10 = sshll.u32 %s3417_s3, 3  ;;  %vm953_vm2 = vcmask 64512   ;;  %vm1020_vm4 = vcmask 1043456   ;;  %s3375_s3 = smov 72  }
  0x18   : > { %2617 = vmatpush3.bf16.msra.mxu1 %v2792_v0  ;;  %2620 = vmatprep.mubr.msk.bf16.mxu1 %vm2859_vm0, %v2858_v1  ;;  %s795_s28 = scalar_lea.vmem %s3398_s7, %s3033_s10  ;;  %v948_v32 = vshrl.u32 %v947_v31, 7  ;;  %v950_v33 = vand.u32 127, %v947_v31  ;;  %s3376_s7 = smov 96   ;;  %vm1182_vm5 = vcmask 130112   ;;  %vm1300_vm6 = vcmask 195712  }
  0x19   : > { %2609 = vmatpush3.bf16.msra.mxu0 %v2793_v2  ;;  %2618 = vmatprep.subr.bf16.mxu1 %v2858_v1  ;;  %v3040_v5 = vld [vmem:[%s795_s28] sm:$0xff]  ;;  %s3374_s28 = smov 80   ;;  %vm1418_vm7 = vcmask 261312   ;;  %s3402_s30 = sld [smem:[#allocation10_spill]]  ;;  %vm2308_vm8 = vcmask 523264  }
  0x1a   : > { %2610 = vmatprep.subr.bf16.mxu0 %v2858_v1  ;;  %2612 = vmatprep.mubr.msk.bf16.mxu0 %vm2859_vm0, %v2858_v1  ;;  %v824_v6 = vpack.c.bf16 %v3040_v5, %v3040_v5  ;;  %v2494_v7 = vld [vmem:[%s3399_s29] ss:$0 sm:$0xff]  ;;  %vm951_vm3 = vcmp.gt.s32.totalorder %v950_v33, %v948_v32  ;;  %s3379_s29 = smov 8  }
  0x1b   : > { %v2490_v8 = vld [vmem:[%s3400_s2] ss:$0 sm:$0xff]  ;;  %v952_v35 = vsel %vm951_vm3, -inf, %v2858_v1  ;;  %s3401_s2 = sld [smem:[#allocation9_spill]] }
  0x1c   : > { %2619 = vmatpush3.bf16.msra.mxu1 %v2794_v3 }
  0x1d   : > { %2611 = vmatpush3.bf16.msra.mxu0 %v2795_v4  ;;  %2630 = vmatprep.subr.bf16.mxu1 %v2858_v1 }
  0x1e   : > { %2624 = vmatprep.subr.bf16.mxu0 %v2858_v1 }
  0x1f   : > { %2621 = vmatmul.mubr.msk.bf16.vlgmr.msra.gmra.mxu1 %vm843_vm1, %v824_v6 }
  0x20   : > { %2613 = vmatmul.mubr.msk.bf16.vlgmr.msra.gmra.mxu0 %vm843_vm1, %v824_v6  ;;  %2632 = vmatprep.mubr.msk.bf16.mxu1 %vm2859_vm0, %v2858_v1 }
  0x21   : > { %2626 = vmatprep.mubr.msk.bf16.mxu0 %vm2859_vm0, %v2858_v1 }
  0xdf   : > { %v939_v9 = vpop.f32.mrf.mxu1 }
  0xe0   : > { %v881_v10 = vpop.f32.mrf.mxu0  ;;  %v940_v11 = vadd.f32 %v2494_v7, %v939_v9 }
  0xe1   : > { %v882_v12 = vadd.f32 %v2490_v8, %v881_v10  ;;  %v2622_v13 = vpop.f32.mrf.mxu1 }
  0xe2   : > { %v2614_v14 = vpop.f32.mrf.mxu0  ;;  %v3057_v15 = vpack.c.bf16 %v940_v11, %v940_v11 }
  0xe3   : > { %v942_v16 = vpop.f32.mrf.mxu1  ;;  %v945_v18 = vpack.c.bf16 %v882_v12, %v882_v12 }
  0xe4   : > { %v884_v17 = vpop.f32.mrf.mxu0  ;;  %1186 = vrot.lane.b32.xlu1 %v3057_v15, %s3383_s5  ;;  %1068 = vrot.lane.b32.xlu0 %v3057_v15, %s2861_s6  ;;  %v958_v19 = vsel %vm953_vm2, %v3057_v15, 0 }
  0xe5   : > { %v2623_v20 = vpop.f32.mrf.mxu1  ;;  %2625 = vmatpush3.bf16.xpose.msra.mxu0 %v958_v19 }
  0xe6   : > { %v2615_v21 = vpop.f32.mrf.mxu0  ;;  %2636 = vmatprep.subr.bf16.mxu0 %v2858_v1 }
  0xe8   : > { %1184 = vrot.lane.b32.xlu1 %v945_v18, %s3383_s5  ;;  %1066 = vrot.lane.b32.xlu0 %v945_v18, %s2861_s6  ;;  %s3404_s5 = sld [smem:[#allocation13_spill]] }
  0xec   : > { %1302 = vrot.lane.b32.xlu1 %v945_v18, %s3381_s1  ;;  %1304 = vrot.lane.b32.xlu0 %v3057_v15, %s3381_s1 }
  0xed   : > { %2627 = vmatmul.mubr.msk.bf16.vlgmr.msra.gmra.mxu0 %vm953_vm2, %v945_v18 }
  0xee   : > { %2638 = vmatprep.mubr.msk.bf16.mxu0 %vm2859_vm0, %v2858_v1 }
 0x156   : > { %v1069_v22 = vpop.permute.xlu0 %1068  ;;  %v1187_v24 = vpop.permute.xlu1 %1186 }
 0x157   : > { %v1074_v23 = vsel %vm953_vm2, %v1069_v22, 0  ;;  %v1192_v26 = vsel %vm953_vm2, %v1187_v24, 0 }
 0x158   : > { %2637 = vmatpush3.bf16.xpose.msra.mxu0 %v1074_v23 }
 0x159   : > { %2648 = vmatprep.subr.bf16.mxu0 %v2858_v1 }
 0x15a   : > { %v1067_v25 = vpop.permute.xlu0 %1066  ;;  %v1185_v28 = vpop.permute.xlu1 %1184 }
 0x15e   : > { %v1305_v27 = vpop.permute.xlu0 %1304  ;;  %v1303_v30 = vpop.permute.xlu1 %1302 }
 0x15f   : > { %2639 = vmatmul.mubr.msk.bf16.vlgmr.msra.gmra.mxu0 %vm953_vm2, %v1067_v25  ;;  %v1310_v29 = vsel %vm953_vm2, %v1305_v27, 0 }
 0x160   : > { %2649 = vmatpush3.bf16.xpose.msra.mxu0 %v1192_v26  ;;  %2650 = vmatprep.mubr.msk.bf16.mxu0 %vm2859_vm0, %v2858_v1 }
 0x161   : > { %2660 = vmatprep.subr.bf16.mxu0 %v2858_v1 }
 0x167   : > { %2651 = vmatmul.mubr.msk.bf16.vlgmr.msra.gmra.mxu0 %vm953_vm2, %v1185_v28 }
 0x168   : > { %2661 = vmatpush3.bf16.xpose.msra.mxu0 %v1310_v29  ;;  %2662 = vmatprep.mubr.msk.bf16.mxu0 %vm2859_vm0, %v2858_v1 }
 0x169   : > { %2672 = vmatprep.subr.bf16.mxu0 %v2858_v1 }
 0x16f   : > { %2663 = vmatmul.mubr.msk.bf16.vlgmr.msra.gmra.mxu0 %vm953_vm2, %v1303_v30 }
 0x170   : > { %2676 = vmatprep.mubr.msk.bf16.mxu0 %vm2859_vm0, %v2858_v1 }
 0x1ad   : > { %v994_v34 = vpop.f32.mrf.mxu0 }
 0x1ae   : > { %v1000_v36 = vmul.f32 0.35355338, %v994_v34 }
 0x1af   : > { %v2628_v37 = vpop.f32.mrf.mxu0 }
 0x1b0   : > { %v1001_v38 = vadd.f32 %v1000_v36, %v952_v35 }
 0x1b1   : > { %v997_v39 = vpop.f32.mrf.mxu0 }
 0x1b2   : > { %v1002_v40 = vsel %vm953_vm2, %v1001_v38, -inf }
 0x1b3   : > { %1003 = vmax.xlane.f32.xlu0 %v1002_v40  ;;  %v2629_v41 = vpop.f32.mrf.mxu0 }
 0x21f   : > { %v1110_v42 = vpop.f32.mrf.mxu0 }
 0x220   : > { %v1116_v43 = vmul.f32 0.35355338, %v1110_v42 }
 0x221   : > { %v2640_v44 = vpop.f32.mrf.mxu0 }
 0x222   : > { %v1117_v45 = vadd.f32 %v1116_v43, %v952_v35 }
 0x223   : > { %v1113_v46 = vpop.f32.mrf.mxu0 }
 0x224   : > { %v1118_v47 = vsel %vm953_vm2, %v1117_v45, -inf }
 0x225   : > { %1119 = vmax.xlane.f32.xlu1 %v1118_v47  ;;  %v2641_v48 = vpop.f32.mrf.mxu0 }
 0x227   : > { %v1228_v49 = vpop.f32.mrf.mxu0 }
 0x228   : > { %v1234_v50 = vmul.f32 0.35355338, %v1228_v49 }
 0x229   : > { %v2652_v51 = vpop.f32.mrf.mxu0 }
 0x22a   : > { %v1235_v52 = vadd.f32 %v1234_v50, %v952_v35 }
 0x22b   : > { %v1231_v53 = vpop.f32.mrf.mxu0 }
 0x22c   : > { %v1236_v54 = vsel %vm953_vm2, %v1235_v52, -inf }
 0x22d   : > { %1237 = vmax.xlane.f32.xlu0 %v1236_v54  ;;  %v2653_v55 = vpop.f32.mrf.mxu0  ;;  %v2797_v54 = vld [vmem:[%s3401_s2] sm:$0xff]  }
 0x22f   : > { %v1346_v56 = vpop.f32.mrf.mxu0 }
 0x230   : > { %v1352_v57 = vmul.f32 0.35355338, %v1346_v56 }
 0x231   : > { %v2664_v58 = vpop.f32.mrf.mxu0 }
 0x232   : > { %v1353_v59 = vadd.f32 %v1352_v57, %v952_v35 }
 0x233   : > { %v1349_v60 = vpop.f32.mrf.mxu0 }
 0x234   : > { %v1354_v61 = vsel %vm953_vm2, %v1353_v59, -inf }
 0x235   : > { %1355 = vmax.xlane.f32.xlu0 %v1354_v61  ;;  %v2665_v62 = vpop.f32.mrf.mxu0 }
 0x23c   : > { %v1004_v63 = vpop.xlane.xlu0 %1003 }
 0x23d   : > { %v1005_v0 = vsub.f32 %v1001_v38, %v1004_v63 }
 0x23f   : > { %v1006_v2 = vmul.f32 1.442695, %v1005_v0 }
 0x241   : > { %2810 = vpow2.f32 %v1006_v2 }
 0x24e   : > { %v2811_v3 = vpop.eup %2810 }
 0x24f   : > { %v1008_v4 = vsel %vm953_vm2, %v2811_v3, 0.0 }
 0x250   : > { %1009 = vadd.xlane.f32.xlu1 %v1008_v4 }
 0x261   : > { %1015 = vrot.lane.b32.xlu1 %v3057_v15, %s3376_s7  ;;  %s3378_s7 = smov 16  }
 0x2ae   : > { %v1120_v6 = vpop.xlane.xlu1 %1119 }
 0x2af   : > { %v1121_v7 = vsub.f32 %v1117_v45, %v1120_v6  ;;  %v2506_v6 = vld [vmem:[%s3402_s30] ss:$0 sm:$0xff]  ;;  %s3413_s30 = smov 8  }
 0x2b1   : > { %v1122_v8 = vmul.f32 1.442695, %v1121_v7 }
 0x2b3   : > { %2812 = vpow2.f32 %v1122_v8 }
 0x2b6   : > { %v1238_v9 = vpop.xlane.xlu0 %1237 }
 0x2b7   : > { %v1239_v10 = vsub.f32 %v1235_v52, %v1238_v9  ;;  %v2796_v52 = vld [vmem:[%s3401_s2 + $0x8] sm:$0xff]  }
 0x2b8   : > { %2673 = vmatpush3.bf16.msra.mxu0 %v2796_v52 }
 0x2b9   : > { %v1240_v11 = vmul.f32 1.442695, %v1239_v10  ;;  %2674 = vmatprep.subr.bf16.mxu0 %v2858_v1 }
 0x2bb   : > { %2814 = vpow2.f32 %v1240_v11 }
 0x2bc   : > { %2675 = vmatpush3.bf16.msra.mxu0 %v2797_v54 }
 0x2bd   : > { %2688 = vmatprep.subr.bf16.mxu0 %v2858_v1 }
 0x2be   : > { %v1356_v12 = vpop.xlane.xlu0 %1355 }
 0x2bf   : > { %v1357_v13 = vsub.f32 %v1353_v59, %v1356_v12 }
 0x2c0   : > { %v2813_v14 = vpop.eup %2812 }
 0x2c1   : > { %v1358_v16 = vmul.f32 1.442695, %v1357_v13  ;;  %v1124_v17 = vsel %vm953_vm2, %v2813_v14, 0.0 }
 0x2c2   : > { %1125 = vadd.xlane.f32.xlu0 %v1124_v17 }
 0x2c3   : > { %2816 = vpow2.f32 %v1358_v16 }
 0x2c8   : > { %v2815_v18 = vpop.eup %2814 }
 0x2c9   : > { %v1242_v19 = vsel %vm953_vm2, %v2815_v18, 0.0 }
 0x2ca   : > { %1243 = vadd.xlane.f32.xlu1 %v1242_v19 }
 0x2d0   : > { %v2817_v20 = vpop.eup %2816 }
 0x2d1   : > { %v1360_v21 = vsel %vm953_vm2, %v2817_v20, 0.0 }
 0x2d2   : > { %1361 = vadd.xlane.f32.xlu0 %v1360_v21 }
 0x2d9   : > { %v1010_v22 = vpop.xlane.xlu1 %1009 }
 0x2da   : > { %2818 = vrcp.f32 %v1010_v22 }
 0x2db   : > { %1248 = vrot.lane.b32.xlu1 %v3057_v15, %s3374_s28  ;;  %s3410_s28 = smov 96  }
 0x2dd   : > { %v1016_v23 = vpop.permute.xlu1 %1015 }
 0x2de   : > { %v1022_v24 = vsel %vm1020_vm4, %v1016_v23, 0  ;;  %v2800_v23 = vld [vmem:[%s3404_s5 + $0x8] sm:$0xff]  }
 0x2df   : > { %2631 = vmatpush3.bf16.msra.mxu1 %v1022_v24  ;;  %1366 = vrot.lane.b32.xlu1 %v3057_v15, %s3375_s3  ;;  %v2801_v24 = vld [vmem:[%s3404_s5] sm:$0xff]   ;;  %s3406_s3 = sld [smem:[#allocation12_spill]] }
 0x2e0   : > { %2642 = vmatprep.subr.bf16.mxu1 %v2858_v1 }
 0x2e7   : > { %v2819_v25 = vpop.eup %2818 }
 0x2e8   : > { %1130 = vrot.lane.b32.xlu0 %v3057_v15, %s3380_s4  ;;  %v1012_v26 = vmul.f32 %v2819_v25, %v2811_v3  ;;  %s3403_s4 = sld [smem:[#allocation4_spill]] }
 0x2ea   : > { %v1013_v27 = vpack.c.bf16 %v1012_v26, %v1012_v26 }
 0x2ec   : > { %2633 = vmatmul.mubr.msk.bf16.vlgmr.msra.gmra.mxu1 %vm953_vm2, %v1013_v27 }
 0x2ed   : > { %2644 = vmatprep.mubr.msk.bf16.mxu1 %vm2859_vm0, %v2858_v1 }
 0x2ee   : > { %s799_s1 = scalar_lea.vmem %s3403_s4, %s3033_s10  ;;  %s3405_s4 = sld [smem:[#allocation11_spill]] }
 0x2ef   : > { %v806_v21 = vld [vmem:[%s799_s1] sm:$0xff] }
 0x2f0   : > { %v1591_v22 = vpack.c.bf16 %v806_v21, %v806_v21 }
 0x34b   : > { %v1126_v28 = vpop.xlane.xlu0 %1125 }
 0x34c   : > { %2820 = vrcp.f32 %v1126_v28 }
 0x353   : > { %v1244_v29 = vpop.xlane.xlu1 %1243 }
 0x354   : > { %2822 = vrcp.f32 %v1244_v29  ;;  %v2510_v29 = vld [vmem:[%s3405_s4] ss:$0 sm:$0xff]  ;;  %s3407_s4 = smov 112  }
 0x357   : > { %v1249_v35 = vpop.permute.xlu1 %1248 }
 0x358   : > { %v1254_v37 = vsel %vm1020_vm4, %v1249_v35, 0  ;;  %v2516_v35 = vld [vmem:[%s3356_s13] ss:$0 sm:$0xff] }
 0x359   : > { %v2821_v30 = vpop.eup %2820 }
 0x35a   : > { %v1128_v32 = vmul.f32 %v2821_v30, %v2813_v14 }
 0x35b   : > { %v1362_v31 = vpop.xlane.xlu0 %1361  ;;  %v1367_v39 = vpop.permute.xlu1 %1366 }
 0x35c   : > { %2824 = vrcp.f32 %v1362_v31  ;;  %v1129_v15 = vpack.c.bf16 %v1128_v32, %v1128_v32  ;;  %v1372_v42 = vsel %vm1020_vm4, %v1367_v39, 0  ;;  %v2511_v31 = vld [vmem:[%s3406_s3] ss:$0 sm:$0xff]  ;;  %s3411_s3 = smov 72  }
 0x35f   : > { %v1131_v33 = vpop.permute.xlu0 %1130 }
 0x360   : > { %v1136_v34 = vsel %vm1020_vm4, %v1131_v33, 0 }
 0x361   : > { %2643 = vmatpush3.bf16.msra.mxu1 %v1136_v34  ;;  %v2823_v36 = vpop.eup %2822 }
 0x362   : > { %2654 = vmatprep.subr.bf16.mxu1 %v2858_v1  ;;  %v1246_v38 = vmul.f32 %v2823_v36, %v2815_v18 }
 0x364   : > { %2645 = vmatmul.mubr.msk.bf16.vlgmr.msra.gmra.mxu1 %vm953_vm2, %v1129_v15  ;;  %v1247_v40 = vpack.c.bf16 %v1246_v38, %v1246_v38 }
 0x365   : > { %2655 = vmatpush3.bf16.msra.mxu1 %v1254_v37  ;;  %2656 = vmatprep.mubr.msk.bf16.mxu1 %vm2859_vm0, %v2858_v1 }
 0x366   : > { %2666 = vmatprep.subr.bf16.mxu1 %v2858_v1 }
 0x369   : > { %v2825_v41 = vpop.eup %2824 }
 0x36a   : > { %v1364_v43 = vmul.f32 %v2825_v41, %v2817_v20  ;;  %v2798_v20 = vld [vmem:[%s3355_s12 + $0x8] sm:$0xff]  }
 0x36c   : > { %2657 = vmatmul.mubr.msk.bf16.vlgmr.msra.gmra.mxu1 %vm953_vm2, %v1247_v40  ;;  %v1365_v44 = vpack.c.bf16 %v1364_v43, %v1364_v43 }
 0x36d   : > { %2667 = vmatpush3.bf16.msra.mxu1 %v1372_v42  ;;  %2668 = vmatprep.mubr.msk.bf16.mxu1 %vm2859_vm0, %v2858_v1  ;;  %v2512_v42 = vld [vmem:[%s3354_s11] ss:$0 sm:$0xff] }
 0x36e   : > { %2680 = vmatprep.subr.bf16.mxu1 %v2858_v1 }
 0x374   : > { %2669 = vmatmul.mubr.msk.bf16.vlgmr.msra.gmra.mxu1 %vm953_vm2, %v1365_v44 }
 0x375   : > { %2684 = vmatprep.mubr.msk.bf16.mxu1 %vm2859_vm0, %v2858_v1  ;;  %2681 = vmatpush3.bf16.msra.mxu1 %v2800_v23 }
 0x376   : > { %2682 = vmatprep.subr.bf16.mxu1 %v2858_v1 }
 0x379   : > { %2683 = vmatpush3.bf16.msra.mxu1 %v2801_v24 }
 0x37a   : > { %2696 = vmatprep.subr.bf16.mxu1 %v2858_v1 }
 0x3ac   : > { %v1058_v45 = vpop.f32.mrf.mxu1 }
 0x3ad   : > { %1064 = vst.msk [vmem:[#allocation2] sm:$0xff] %vm953_vm2, %v1058_v45 }
 0x3ae   : > { %v2634_v46 = vpop.f32.mrf.mxu1 }
 0x3b0   : > { %v1061_v47 = vpop.f32.mrf.mxu1 }
 0x3b2   : > { %v2635_v48 = vpop.f32.mrf.mxu1 }
 0x424   : > { %v1172_v49 = vpop.f32.mrf.mxu1 }
 0x425   : > { %1179 = vrot.lane.b32.xlu0 %v1172_v49, %s3379_s29  ;;  %s3408_s29 = smov 104  }
 0x426   : > { %v2646_v50 = vpop.f32.mrf.mxu1 }
 0x428   : > { %v1175_v51 = vpop.f32.mrf.mxu1 }
 0x42a   : > { %v2647_v53 = vpop.f32.mrf.mxu1 }
 0x42c   : > { %v1290_v55 = vpop.f32.mrf.mxu1 }
 0x42d   : > { %1297 = vrot.lane.b32.xlu1 %v1290_v55, %s3378_s7 }
 0x42e   : > { %v2658_v56 = vpop.f32.mrf.mxu1 }
 0x430   : > { %v1293_v57 = vpop.f32.mrf.mxu1 }
 0x432   : > { %v2659_v58 = vpop.f32.mrf.mxu1 }
 0x434   : > { %v1408_v59 = vpop.f32.mrf.mxu1 }
 0x435   : > { %1415 = vrot.lane.b32.xlu0 %v1408_v59, %s3377_s9  ;;  %s3412_s9 = smov 80  }
 0x436   : > { %v2670_v60 = vpop.f32.mrf.mxu1 }
 0x438   : > { %v1411_v61 = vpop.f32.mrf.mxu1 }
 0x43a   : > { %v2671_v62 = vpop.f32.mrf.mxu1 }
 0x497   : > { %v1180_v63 = vpop.permute.xlu0 %1179 }
 0x498   : > { %1183 = vst.msk [vmem:[#allocation2] sm:$0xff] %vm1182_vm5, %v1180_v63 }
 0x49f   : > { %v1298_v0 = vpop.permute.xlu1 %1297 }
 0x4a0   : > { %1301 = vst.msk [vmem:[#allocation2] sm:$0xff] %vm1300_vm6, %v1298_v0 }
 0x4a7   : > { %v1416_v2 = vpop.permute.xlu0 %1415 }
 0x4a8   : > { %1419 = vst.msk [vmem:[#allocation2] sm:$0xff] %vm1418_vm7, %v1416_v2 }
 0x4af   : > { %v1420_v3 = vld [vmem:[#allocation2] sm:$0xff] }
 0x4b0   : > { %v1421_v4 = vpack.c.bf16 %v1420_v3, %v1420_v3 }
 0x4b2   : > { %2677 = vmatmul.mubr.msk.bf16.vlgmr.msra.gmra.mxu0 %vm843_vm1, %v1421_v4 }
 0x4b3   : > { %2692 = vmatprep.mubr.msk.bf16.mxu0 %vm2859_vm0, %v2858_v1  ;;  %2689 = vmatpush3.bf16.msra.mxu0 %v2798_v20 }
 0x4b4   : > { %2690 = vmatprep.subr.bf16.mxu0 %v2858_v1 }
 0x572   : > { %v1477_v7 = vpop.f32.mrf.mxu0 }
 0x573   : > { %v1478_v8 = vadd.f32 %v2506_v6, %v1477_v7 }
 0x574   : > { %v2678_v9 = vpop.f32.mrf.mxu0 }
 0x575   : > { %v1483_v10 = vadd.f32 %v1478_v8, %v3040_v5  ;;  %v2799_v5 = vld [vmem:[%s3355_s12] sm:$0xff]  }
 0x576   : > { %v1480_v11 = vpop.f32.mrf.mxu0  ;;  %2691 = vmatpush3.bf16.msra.mxu0 %v2799_v5 }
 0x577   : > { %v1484_v12 = vsel %vm843_vm1, %v1483_v10, 0.0  ;;  %2702 = vmatprep.subr.bf16.mxu0 %v2858_v1 }
 0x578   : > { %1485 = vadd.xlane.f32.xlu1 %v1484_v12  ;;  %v2679_v13 = vpop.f32.mrf.mxu0 }
 0x579   : > { %2693 = vmatmul.mubr.msk.bf16.vlgmr.msra.gmra.mxu0 %vm843_vm1, %v1591_v22 }
 0x57a   : > { %2704 = vmatprep.mubr.msk.bf16.mxu0 %vm2859_vm0, %v2858_v1 }
 0x601   : > { %v1486_v14 = vpop.xlane.xlu1 %1485 }
 0x602   : > { %v1488_v16 = vmul.f32 0.03125, %v1486_v14 }
 0x604   : > { %v1489_v17 = vsub.f32 %v1483_v10, %v1488_v16 }
 0x606   : > { %v1490_v18 = vmul.f32 %v1489_v17, %v1489_v17 }
 0x608   : > { %v1491_v19 = vsel %vm843_vm1, %v1490_v18, 0.0 }
 0x609   : > { %1492 = vadd.xlane.f32.xlu0 %v1491_v19 }
 0x639   : > { %v1647_v15 = vpop.f32.mrf.mxu0 }
 0x63a   : > { %v1648_v36 = vadd.f32 %v2516_v35, %v1647_v15 }
 0x63b   : > { %v2694_v37 = vpop.f32.mrf.mxu0 }
 0x63c   : > { %v3189_v38 = vpack.c.bf16 %v1648_v36, %v1648_v36 }
 0x63d   : > { %v1650_v39 = vpop.f32.mrf.mxu0 }
 0x63e   : > { %1767 = vrot.lane.b32.xlu0 %v3189_v38, %s2861_s6  ;;  %v1659_v40 = vsel %vm953_vm2, %v3189_v38, 0 }
 0x63f   : > { %v2695_v41 = vpop.f32.mrf.mxu0 }
 0x692   : > { %v1493_v25 = vpop.xlane.xlu0 %1492 }
 0x693   : > { %v1494_v26 = vmul.f32 0.03125, %v1493_v25 }
 0x695   : > { %v1495_v27 = vadd.f32 1e-05, %v1494_v26 }
 0x697   : > { %2826 = vrsqrt.f32 %v1495_v27 }
 0x6a4   : > { %v2827_v28 = vpop.eup %2826 }
 0x6a5   : > { %v1497_v30 = vmul.f32 %v2827_v28, %v1489_v17 }
 0x6a7   : > { %v1504_v32 = vmul.f32 %v2510_v29, %v1497_v30 }
 0x6a9   : > { %v3179_v33 = vadd.f32 %v2511_v31, %v1504_v32 }
 0x6ab   : > { %v1529_v34 = vpack.c.bf16 %v3179_v33, %v3179_v33 }
 0x6ad   : > { %2685 = vmatmul.mubr.msk.bf16.vlgmr.msra.gmra.mxu1 %vm843_vm1, %v1529_v34 }
 0x6ae   : > { %2698 = vmatprep.mubr.msk.bf16.mxu1 %vm2859_vm0, %v2858_v1  ;;  %2697 = vmatpush3.bf16.xpose.msra.mxu1 %v1659_v40 }
 0x6af   : > { %2708 = vmatprep.subr.bf16.mxu1 %v2858_v1 }
 0x6b0   : > { %v1768_v45 = vpop.permute.xlu0 %1767 }
 0x6b1   : > { %v1773_v49 = vsel %vm953_vm2, %v1768_v45, 0 }
 0x76d   : > { %v1585_v43 = vpop.f32.mrf.mxu1 }
 0x76e   : > { %v1586_v44 = vadd.f32 %v2512_v42, %v1585_v43 }
 0x76f   : > { %v2686_v46 = vpop.f32.mrf.mxu1 }
 0x770   : > { %v1653_v47 = vpack.c.bf16 %v1586_v44, %v1586_v44 }
 0x771   : > { %v1588_v48 = vpop.f32.mrf.mxu1 }
 0x772   : > { %1765 = vrot.lane.b32.xlu1 %v1653_v47, %s2861_s6  ;;  %1881 = vrot.lane.b32.xlu0 %v1653_v47, %s3407_s4  ;;  %s3409_s6 = smov 88  }
 0x773   : > { %2699 = vmatmul.mubr.msk.bf16.vlgmr.msra.gmra.mxu1 %vm953_vm2, %v1653_v47  ;;  %v2687_v50 = vpop.f32.mrf.mxu1 }
 0x774   : > { %2709 = vmatpush3.bf16.xpose.msra.mxu1 %v1773_v49  ;;  %2710 = vmatprep.mubr.msk.bf16.mxu1 %vm2859_vm0, %v2858_v1 }
 0x775   : > { %2720 = vmatprep.subr.bf16.mxu1 %v2858_v1 }
 0x776   : > { %1883 = vrot.lane.b32.xlu1 %v3189_v38, %s3407_s4  ;;  %1997 = vrot.lane.b32.xlu0 %v1653_v47, %s3408_s29  ;;  %s803_s4 = scalar_lea.vmem %s3369_s26, %s3033_s10 }
 0x77a   : > { %1999 = vrot.lane.b32.xlu1 %v3189_v38, %s3408_s29 }
 0x7e4   : > { %v1766_v51 = vpop.permute.xlu1 %1765  ;;  %v1882_v55 = vpop.permute.xlu0 %1881 }
 0x7e5   : > { %2711 = vmatmul.mubr.msk.bf16.vlgmr.msra.gmra.mxu1 %vm953_vm2, %v1766_v51 }
 0x7e6   : > { %2722 = vmatprep.mubr.msk.bf16.mxu1 %vm2859_vm0, %v2858_v1 }
 0x7e8   : > { %v1884_v52 = vpop.permute.xlu1 %1883  ;;  %v1998_v57 = vpop.permute.xlu0 %1997 }
 0x7e9   : > { %v1889_v53 = vsel %vm953_vm2, %v1884_v52, 0 }
 0x7ea   : > { %2721 = vmatpush3.bf16.xpose.msra.mxu1 %v1889_v53 }
 0x7eb   : > { %2732 = vmatprep.subr.bf16.mxu1 %v2858_v1 }
 0x7ec   : > { %v2000_v54 = vpop.permute.xlu1 %1999 }
 0x7ed   : > { %v2005_v56 = vsel %vm953_vm2, %v2000_v54, 0 }
 0x7f1   : > { %2723 = vmatmul.mubr.msk.bf16.vlgmr.msra.gmra.mxu1 %vm953_vm2, %v1882_v55 }
 0x7f2   : > { %2733 = vmatpush3.bf16.xpose.msra.mxu1 %v2005_v56  ;;  %2734 = vmatprep.mubr.msk.bf16.mxu1 %vm2859_vm0, %v2858_v1 }
 0x7f3   : > { %2744 = vmatprep.subr.bf16.mxu1 %v2858_v1 }
 0x7f9   : > { %2735 = vmatmul.mubr.msk.bf16.vlgmr.msra.gmra.mxu1 %vm953_vm2, %v1998_v57 }
 0x7fa   : > { %2748 = vmatprep.mubr.msk.bf16.mxu1 %vm2859_vm0, %v2858_v1 }
 0x833   : > { %v1695_v58 = vpop.f32.mrf.mxu1 }
 0x834   : > { %v1701_v59 = vmul.f32 0.35355338, %v1695_v58 }
 0x835   : > { %v2700_v60 = vpop.f32.mrf.mxu1 }
 0x836   : > { %v1702_v61 = vsel %vm953_vm2, %v1701_v59, -inf }
 0x837   : > { %1703 = vmax.xlane.f32.xlu1 %v1702_v61  ;;  %v1698_v62 = vpop.f32.mrf.mxu1 }
 0x839   : > { %v2701_v63 = vpop.f32.mrf.mxu1 }
 0x8a5   : > { %v1809_v0 = vpop.f32.mrf.mxu1 }
 0x8a6   : > { %v1815_v2 = vmul.f32 0.35355338, %v1809_v0 }
 0x8a7   : > { %v2712_v3 = vpop.f32.mrf.mxu1 }
 0x8a8   : > { %v1816_v4 = vsel %vm953_vm2, %v1815_v2, -inf }
 0x8a9   : > { %1817 = vmax.xlane.f32.xlu0 %v1816_v4  ;;  %v1812_v6 = vpop.f32.mrf.mxu1 }
 0x8ab   : > { %v2713_v7 = vpop.f32.mrf.mxu1 }
 0x8b1   : > { %v1925_v8 = vpop.f32.mrf.mxu1 }
 0x8b2   : > { %v1931_v9 = vmul.f32 0.35355338, %v1925_v8 }
 0x8b3   : > { %v2724_v10 = vpop.f32.mrf.mxu1 }
 0x8b4   : > { %v1932_v11 = vsel %vm953_vm2, %v1931_v9, -inf  ;;  %v2802_v10 = vld [vmem:[%s3357_s14 + $0x8] sm:$0xff]  }
 0x8b5   : > { %1933 = vmax.xlane.f32.xlu0 %v1932_v11  ;;  %v1928_v12 = vpop.f32.mrf.mxu1  ;;  %2745 = vmatpush3.bf16.msra.mxu1 %v2802_v10 }
 0x8b6   : > { %v2803_v12 = vld [vmem:[%s3357_s14] sm:$0xff]   ;;  %2746 = vmatprep.subr.bf16.mxu1 %v2858_v1 }
 0x8b7   : > { %v2725_v13 = vpop.f32.mrf.mxu1 }
 0x8b9   : > { %v2041_v14 = vpop.f32.mrf.mxu1  ;;  %2747 = vmatpush3.bf16.msra.mxu1 %v2803_v12 }
 0x8ba   : > { %v2047_v16 = vmul.f32 0.35355338, %v2041_v14  ;;  %2760 = vmatprep.subr.bf16.mxu1 %v2858_v1 }
 0x8bb   : > { %v2736_v17 = vpop.f32.mrf.mxu1 }
 0x8bc   : > { %v2048_v18 = vsel %vm953_vm2, %v2047_v16, -inf }
 0x8bd   : > { %2049 = vmax.xlane.f32.xlu1 %v2048_v18  ;;  %v2044_v19 = vpop.f32.mrf.mxu1 }
 0x8bf   : > { %v2737_v20 = vpop.f32.mrf.mxu1 }
 0x8c0   : > { %v1704_v5 = vpop.xlane.xlu1 %1703 }
 0x8c1   : > { %v1705_v21 = vsub.f32 %v1701_v59, %v1704_v5 }
 0x8c3   : > { %v1706_v22 = vmul.f32 1.442695, %v1705_v21 }
 0x8c5   : > { %2828 = vpow2.f32 %v1706_v22 }
 0x8d2   : > { %v2829_v23 = vpop.eup %2828 }
 0x8d3   : > { %v1708_v24 = vsel %vm953_vm2, %v2829_v23, 0.0 }
 0x8d4   : > { %1709 = vadd.xlane.f32.xlu0 %v1708_v24 }
 0x932   : > { %v1818_v25 = vpop.xlane.xlu0 %1817 }
 0x933   : > { %v1819_v26 = vsub.f32 %v1815_v2, %v1818_v25  ;;  %v2528_v25 = vld [vmem:[%s3358_s15] ss:$0 sm:$0xff] }
 0x935   : > { %v1820_v27 = vmul.f32 1.442695, %v1819_v26 }
 0x937   : > { %2830 = vpow2.f32 %v1820_v27 }
 0x93e   : > { %v1934_v28 = vpop.xlane.xlu0 %1933 }
 0x93f   : > { %v1935_v29 = vsub.f32 %v1931_v9, %v1934_v28 }
 0x941   : > { %v1936_v30 = vmul.f32 1.442695, %v1935_v29 }
 0x943   : > { %2832 = vpow2.f32 %v1936_v30 }
 0x944   : > { %v2831_v31 = vpop.eup %2830 }
 0x945   : > { %v1822_v32 = vsel %vm953_vm2, %v2831_v31, 0.0 }
 0x946   : > { %1823 = vadd.xlane.f32.xlu1 %v1822_v32  ;;  %v2050_v15 = vpop.xlane.xlu1 %2049 }
 0x947   : > { %v2051_v36 = vsub.f32 %v2047_v16, %v2050_v15 }
 0x949   : > { %v2052_v37 = vmul.f32 1.442695, %v2051_v36 }
 0x94b   : > { %2834 = vpow2.f32 %v2052_v37 }
 0x950   : > { %v2833_v34 = vpop.eup %2832 }
 0x951   : > { %v1938_v35 = vsel %vm953_vm2, %v2833_v34, 0.0 }
 0x952   : > { %1939 = vadd.xlane.f32.xlu0 %v1938_v35 }
 0x957   : > { %1828 = vrot.lane.b32.xlu1 %v3189_v38, %s3409_s6  ;;  %s3414_s6 = smov 16  }
 0x958   : > { %v2835_v39 = vpop.eup %2834 }
 0x959   : > { %v2054_v40 = vsel %vm953_vm2, %v2835_v39, 0.0 }
 0x95d   : > { %v1710_v41 = vpop.xlane.xlu0 %1709 }
 0x95e   : > { %2836 = vrcp.f32 %v1710_v41  ;;  %v2807_v41 = vld [vmem:[%s3363_s20 + $0x10] sm:$0xff]  }
 0x968   : > { %1715 = vrot.lane.b32.xlu0 %v3189_v38, %s3410_s28  ;;  %s3415_s28 = smov 24  }
 0x96b   : > { %v2837_v43 = vpop.eup %2836 }
 0x96c   : > { %2060 = vrot.lane.b32.xlu0 %v3189_v38, %s3411_s3  ;;  %v1712_v45 = vmul.f32 %v2837_v43, %v2829_v23 }
 0x96e   : > { %v1713_v49 = vpack.c.bf16 %v1712_v45, %v1712_v45 }
 0x97b   : > { %2055 = vadd.xlane.f32.xlu1 %v2054_v40  ;;  %v2806_v40 = vld [vmem:[%s3363_s20 + $0x18] sm:$0xff]  }
 0x98c   : > { %1944 = vrot.lane.b32.xlu1 %v3189_v38, %s3412_s9 }
 0x9cf   : > { %v1824_v42 = vpop.xlane.xlu1 %1823 }
 0x9d0   : > { %2838 = vrcp.f32 %v1824_v42 }
 0x9d3   : > { %v1829_v48 = vpop.permute.xlu1 %1828 }
 0x9d4   : > { %v1834_v51 = vsel %vm1020_vm4, %v1829_v48, 0  ;;  %v2533_v48 = vld [vmem:[%s3360_s17] ss:$0 sm:$0xff] }
 0x9db   : > { %v1940_v44 = vpop.xlane.xlu0 %1939 }
 0x9dc   : > { %2840 = vrcp.f32 %v1940_v44 }
 0x9dd   : > { %v2839_v50 = vpop.eup %2838 }
 0x9de   : > { %v1826_v38 = vmul.f32 %v2839_v50, %v2831_v31 }
 0x9df   : > { %v1716_v46 = vpop.permute.xlu0 %1715 }
 0x9e0   : > { %v1721_v47 = vsel %vm1020_vm4, %v1716_v46, 0  ;;  %v1827_v52 = vpack.c.bf16 %v1826_v38, %v1826_v38  ;;  %v2532_v46 = vld [vmem:[%s3359_s16] ss:$0 sm:$0xff]  ;;  %v2808_v38 = vld [vmem:[%s3363_s20 + $0x8] sm:$0xff]  }
 0x9e1   : > { %2703 = vmatpush3.bf16.msra.mxu0 %v1721_v47 }
 0x9e2   : > { %2714 = vmatprep.subr.bf16.mxu0 %v2858_v1 }
 0x9e3   : > { %v2061_v58 = vpop.permute.xlu0 %2060 }
 0x9e4   : > { %2705 = vmatmul.mubr.msk.bf16.vlgmr.msra.gmra.mxu0 %vm953_vm2, %v1713_v49  ;;  %v2066_v60 = vsel %vm1020_vm4, %v2061_v58, 0 }
 0x9e5   : > { %2715 = vmatpush3.bf16.msra.mxu0 %v1834_v51  ;;  %2716 = vmatprep.mubr.msk.bf16.mxu0 %vm2859_vm0, %v2858_v1 }
 0x9e6   : > { %2726 = vmatprep.subr.bf16.mxu0 %v2858_v1 }
 0x9e9   : > { %v2841_v53 = vpop.eup %2840 }
 0x9ea   : > { %v1942_v55 = vmul.f32 %v2841_v53, %v2833_v34  ;;  %v2534_v53 = vld [vmem:[%s3362_s19] ss:$0 sm:$0xff] }
 0x9ec   : > { %2717 = vmatmul.mubr.msk.bf16.vlgmr.msra.gmra.mxu0 %vm953_vm2, %v1827_v52  ;;  %v1943_v59 = vpack.c.bf16 %v1942_v55, %v1942_v55  ;;  %v2809_v52 = vld [vmem:[%s3363_s20] sm:$0xff]  }
 0x9ed   : > { %2728 = vmatprep.mubr.msk.bf16.mxu0 %vm2859_vm0, %v2858_v1 }
 0xa04   : > { %v2056_v54 = vpop.xlane.xlu1 %2055 }
 0xa05   : > { %2842 = vrcp.f32 %v2056_v54 }
 0xa08   : > { %v1945_v56 = vpop.permute.xlu1 %1944 }
 0xa09   : > { %v1950_v57 = vsel %vm1020_vm4, %v1945_v56, 0 }
 0xa0a   : > { %2727 = vmatpush3.bf16.msra.mxu0 %v1950_v57 }
 0xa0b   : > { %2738 = vmatprep.subr.bf16.mxu0 %v2858_v1 }
 0xa0d   : > { %2729 = vmatmul.mubr.msk.bf16.vlgmr.msra.gmra.mxu0 %vm953_vm2, %v1943_v59 }
 0xa0e   : > { %2739 = vmatpush3.bf16.msra.mxu0 %v2066_v60  ;;  %2740 = vmatprep.mubr.msk.bf16.mxu0 %vm2859_vm0, %v2858_v1 }
 0xa0f   : > { %2752 = vmatprep.subr.bf16.mxu0 %v2858_v1 }
 0xa12   : > { %v2843_v61 = vpop.eup %2842 }
 0xa13   : > { %v2058_v62 = vmul.f32 %v2843_v61, %v2835_v39  ;;  %v2804_v39 = vld [vmem:[%s3361_s18 + $0x8] sm:$0xff]  }
 0xa15   : > { %v2059_v63 = vpack.c.bf16 %v2058_v62, %v2058_v62 }
 0xa17   : > { %2741 = vmatmul.mubr.msk.bf16.vlgmr.msra.gmra.mxu0 %vm953_vm2, %v2059_v63 }
 0xa18   : > { %2756 = vmatprep.mubr.msk.bf16.mxu0 %vm2859_vm0, %v2858_v1  ;;  %2753 = vmatpush3.bf16.msra.mxu0 %v2804_v39 }
 0xa19   : > { %2754 = vmatprep.subr.bf16.mxu0 %v2858_v1 }
 0xaa4   : > { %v1757_v0 = vpop.f32.mrf.mxu0 }
 0xaa5   : > { %1763 = vst.msk [vmem:[#allocation2] sm:$0xff] %vm953_vm2, %v1757_v0 }
 0xaa6   : > { %v2706_v2 = vpop.f32.mrf.mxu0 }
 0xaa8   : > { %v1760_v3 = vpop.f32.mrf.mxu0 }
 0xaaa   : > { %v2707_v4 = vpop.f32.mrf.mxu0 }
 0xaac   : > { %v1870_v6 = vpop.f32.mrf.mxu0 }
 0xaad   : > { %1877 = vrot.lane.b32.xlu1 %v1870_v6, %s3413_s30 }
 0xaae   : > { %v2718_v7 = vpop.f32.mrf.mxu0 }
 0xab0   : > { %v1873_v8 = vpop.f32.mrf.mxu0 }
 0xab2   : > { %v2719_v9 = vpop.f32.mrf.mxu0 }
 0xacd   : > { %v1986_v11 = vpop.f32.mrf.mxu0 }
 0xace   : > { %1993 = vrot.lane.b32.xlu0 %v1986_v11, %s3414_s6 }
 0xacf   : > { %v2730_v13 = vpop.f32.mrf.mxu0 }
 0xad1   : > { %v1989_v14 = vpop.f32.mrf.mxu0 }
 0xad3   : > { %v2731_v16 = vpop.f32.mrf.mxu0 }
 0xad4   : > { %v2544_v16 = vld [vmem:[%s3365_s22] ss:$0 sm:$0xff] }
 0xad7   : > { %v2102_v17 = vpop.f32.mrf.mxu0 }
 0xad8   : > { %2109 = vrot.lane.b32.xlu1 %v2102_v17, %s3415_s28 }
 0xad9   : > { %v2742_v18 = vpop.f32.mrf.mxu0 }
 0xada   : > { %v2545_v18 = vld [vmem:[%s3366_s23] ss:$0 sm:$0xff] }
 0xadb   : > { %v2105_v19 = vpop.f32.mrf.mxu0 }
 0xadd   : > { %v2743_v20 = vpop.f32.mrf.mxu0 }
 0xb1f   : > { %v1878_v5 = vpop.permute.xlu1 %1877 }
 0xb20   : > { %1880 = vst.msk [vmem:[#allocation2] sm:$0xff] %vm1182_vm5, %v1878_v5 }
 0xb40   : > { %v1994_v21 = vpop.permute.xlu0 %1993 }
 0xb41   : > { %1996 = vst.msk [vmem:[#allocation2] sm:$0xff] %vm1300_vm6, %v1994_v21 }
 0xb4a   : > { %v2110_v22 = vpop.permute.xlu1 %2109 }
 0xb4b   : > { %2112 = vst.msk [vmem:[#allocation2] sm:$0xff] %vm1418_vm7, %v2110_v22 }
 0xb52   : > { %v2113_v23 = vld [vmem:[#allocation2] sm:$0xff] }
 0xb53   : > { %v2114_v24 = vpack.c.bf16 %v2113_v23, %v2113_v23 }
 0xb55   : > { %2749 = vmatmul.mubr.msk.bf16.vlgmr.msra.gmra.mxu1 %vm843_vm1, %v2114_v24 }
 0xb56   : > { %2768 = vmatprep.mubr.msk.bf16.mxu1 %vm2859_vm0, %v2858_v1  ;;  %2761 = vmatpush3.bf16.msra.mxu1 %v2806_v40 }
 0xb57   : > { %2762 = vmatprep.subr.bf16.mxu1 %v2858_v1 }
 0xb5a   : > { %2763 = vmatpush3.bf16.msra.mxu1 %v2807_v41 }
 0xb5b   : > { %2764 = vmatprep.subr.bf16.mxu1 %v2858_v1 }
 0xb5e   : > { %2765 = vmatpush3.bf16.msra.mxu1 %v2808_v38 }
 0xb5f   : > { %2766 = vmatprep.subr.bf16.mxu1 %v2858_v1  ;;  %v2543_v1 = vld [vmem:[%s3364_s21] ss:$0 sm:$0xff] }
 0xb62   : > { %2767 = vmatpush3.bf16.msra.mxu1 %v2809_v52 }
 0xc15   : > { %v2170_v26 = vpop.f32.mrf.mxu1 }
 0xc16   : > { %v2171_v27 = vadd.f32 %v2528_v25, %v2170_v26 }
 0xc17   : > { %v2750_v28 = vpop.f32.mrf.mxu1 }
 0xc18   : > { %v2176_v29 = vadd.f32 %v2171_v27, %v3179_v33  ;;  %v2805_v33 = vld [vmem:[%s3361_s18] sm:$0xff]  }
 0xc19   : > { %v2173_v30 = vpop.f32.mrf.mxu1  ;;  %2755 = vmatpush3.bf16.msra.mxu0 %v2805_v33 }
 0xc1a   : > { %v2177_v31 = vsel %vm843_vm1, %v2176_v29, 0.0  ;;  %v2546_v30 = vld [vmem:[%s3367_s24] ss:$0 sm:$0xff] }
 0xc1b   : > { %2178 = vadd.xlane.f32.xlu0 %v2177_v31  ;;  %v2751_v32 = vpop.f32.mrf.mxu1 }
 0xc1c   : > { %v2547_v32 = vld [vmem:[%s3368_s25] ss:$0 sm:$0xff] }
 0xca4   : > { %v2179_v34 = vpop.xlane.xlu0 %2178 }
 0xca5   : > { %v2180_v35 = vmul.f32 0.03125, %v2179_v34 }
 0xca7   : > { %v2181_v15 = vsub.f32 %v2176_v29, %v2180_v35 }
 0xca9   : > { %v2182_v36 = vmul.f32 %v2181_v15, %v2181_v15 }
 0xcab   : > { %v2183_v37 = vsel %vm843_vm1, %v2182_v36, 0.0 }
 0xcac   : > { %2184 = vadd.xlane.f32.xlu1 %v2183_v37 }
 0xd35   : > { %v2185_v42 = vpop.xlane.xlu1 %2184 }
 0xd36   : > { %v2186_v43 = vmul.f32 0.03125, %v2185_v42 }
 0xd38   : > { %v2187_v44 = vadd.f32 1e-05, %v2186_v43 }
 0xd3a   : > { %2844 = vrsqrt.f32 %v2187_v44 }
 0xd47   : > { %v2845_v45 = vpop.eup %2844 }
 0xd48   : > { %v2189_v47 = vmul.f32 %v2845_v45, %v2181_v15 }
 0xd4a   : > { %v2196_v49 = vmul.f32 %v2532_v46, %v2189_v47 }
 0xd4c   : > { %v2203_v50 = vadd.f32 %v2533_v48, %v2196_v49 }
 0xd4e   : > { %v2220_v51 = vpack.c.bf16 %v2203_v50, %v2203_v50 }
 0xd50   : > { %2757 = vmatmul.mubr.msk.bf16.vlgmr.msra.gmra.mxu0 %vm843_vm1, %v2220_v51 }
 0xe10   : > { %v2276_v54 = vpop.f32.mrf.mxu0 }
 0xe11   : > { %v2277_v55 = vadd.f32 %v2534_v53, %v2276_v54 }
 0xe12   : > { %v2758_v56 = vpop.f32.mrf.mxu0 }
 0xe13   : > { %v2282_v57 = vmax.f32 %v2277_v55, 0.0 }
 0xe14   : > { %v2279_v58 = vpop.f32.mrf.mxu0 }
 0xe15   : > { %v2283_v59 = vpack.c.bf16 %v2282_v57, %v2282_v57 }
 0xe16   : > { %v2759_v60 = vpop.f32.mrf.mxu0 }
 0xe17   : > { %2769 = vmatmul.mubr.msk.bf16.vlgmr.msra.gmra.mxu1 %vm2308_vm8, %v2283_v59 }
 0xed7   : > { %v2346_v61 = vpop.f32.mrf.mxu1 }
 0xed8   : > { %v2352_v62 = vadd.f32 %v2346_v61, %v2203_v50 }
 0xed9   : > { %v2770_v63 = vpop.f32.mrf.mxu1 }
 0xeda   : > { %v2359_v0 = vadd.f32 %v2543_v1, %v2352_v62 }
 0xedb   : > { %v2349_v2 = vpop.f32.mrf.mxu1 }
 0xedc   : > { %v2360_v3 = vsel %vm843_vm1, %v2359_v0, 0.0 }
 0xedd   : > { %2361 = vadd.xlane.f32.xlu0 %v2360_v3  ;;  %v2771_v4 = vpop.f32.mrf.mxu1 }
 0xf66   : > { %v2362_v6 = vpop.xlane.xlu0 %2361 }
 0xf67   : > { %v2363_v7 = vmul.f32 0.03125, %v2362_v6 }
 0xf69   : > { %v2364_v8 = vsub.f32 %v2359_v0, %v2363_v7 }
 0xf6b   : > { %v2365_v9 = vmul.f32 %v2364_v8, %v2364_v8 }
 0xf6d   : > { %v2366_v10 = vsel %vm843_vm1, %v2365_v9, 0.0 }
 0xf6e   : > { %2367 = vadd.xlane.f32.xlu0 %v2366_v10 }
 0xff7   : > { %v2368_v11 = vpop.xlane.xlu0 %2367 }
 0xff8   : > { %v2369_v12 = vmul.f32 0.03125, %v2368_v11 }
 0xffa   : > { %v2370_v13 = vadd.f32 1e-05, %v2369_v12 }
 0xffc   : > { %2846 = vrsqrt.f32 %v2370_v13 }
0x1009   : > { %v2847_v14 = vpop.eup %2846 }
0x100a   : > { %v2372_v17 = vmul.f32 %v2847_v14, %v2364_v8 }
0x100c   : > { %v2379_v19 = vmul.f32 %v2544_v16, %v2372_v17 }
0x100e   : > { %v2386_v20 = vadd.f32 %v2545_v18, %v2379_v19 }
0x1010   : > { %v2389_v5 = vsel %vm843_vm1, %v2386_v20, 0.0 }
0x1011   : > { %2390 = vadd.xlane.f32.xlu1 %v2389_v5 }
0x109a   : > { %v2391_v21 = vpop.xlane.xlu1 %2390 }
0x109b   : > { %v2392_v22 = vmul.f32 0.03125, %v2391_v21 }
0x109d   : > { %v2393_v23 = vsub.f32 %v2386_v20, %v2392_v22 }
0x109f   : > { %v2394_v24 = vmul.f32 %v2393_v23, %v2393_v23 }
0x10a1   : > { %v2395_v25 = vsel %vm843_vm1, %v2394_v24, 0.0 }
0x10a2   : > { %2396 = vadd.xlane.f32.xlu0 %v2395_v25 }
0x112b   : > { %v2397_v26 = vpop.xlane.xlu0 %2396 }
0x112c   : > { %v2398_v27 = vmul.f32 0.03125, %v2397_v26 }
0x112e   : > { %v2399_v28 = vadd.f32 1e-05, %v2398_v27 }
0x1130   : > { %2848 = vrsqrt.f32 %v2399_v28 }
0x113d   : > { %v2849_v29 = vpop.eup %2848 }
0x113e   : > { %v2401_v31 = vmul.f32 %v2849_v29, %v2393_v23 }
0x1140   : > { %v2408_v34 = vmul.f32 %v2546_v30, %v2401_v31 }
0x1142   : > { %v2415_v35 = vadd.f32 %v2547_v32, %v2408_v34 }
0x1144   : > { %2416 = vst.msk [vmem:[%s803_s4] sm:$0xff] %vm843_vm1, %v2415_v35 }
0x1145 PF: > { %s36_s27 = sadd.s32 1, %s2856_s27  }
0x1146   : > { %p33_p4 = scmp.ge.s32.totalorder %s36_s27, 4  }
0x1148   :  { %35 = sbr.rel (!%p33_p4) target bundleno = 12 (0xc), region = 157 }

// kernel: transformer_seq2seq_forward.9
= control target key start
LH: loop header
LB: loop body
LE: loop exit
PB: predicated region body
PF: predicated region fallthrough
CT: control target
= control target key end

     0   :  { %v150_v1 = vmov 0.0   ;;  %vm151_vm0 = vmmov 0   ;;  %s193_s0 = inlined_call_operand.vmem [shape: f32[16,32], index: 0, kind: input, shape index: {}]   ;;  %s194_s1 = inlined_call_operand.vmem [shape: bf16[32,60], index: 1, kind: input, shape index: {}]   ;;  %s195_s2 = inlined_call_operand.vmem [shape: f32[1,60], index: 2, kind: input, shape index: {}]   ;;  %s196_s3 = inlined_call_operand.hbm [shape: f32[16,60], index: 3, kind: output, shape index: {}]  }
   0x1   :  { %v126_v0 = vld [vmem:[%s194_s1 + $0x8] sm:$0xff]   ;;  %113 = vmatprep.subr.bf16.mxu0 %v150_v1  ;;  %v127_v2 = vld [vmem:[%s194_s1] sm:$0xff]   ;;  %117 = vmatprep.mubr.msk.bf16.mxu0 %vm151_vm0, %v150_v1 }
   0x2   :  { %114 = vmatpush3.bf16.msra.mxu0 %v126_v0  ;;  %v16_v3 = vld [vmem:[%s193_s0] sm:$0xff]  ;;  %v17_v4 = vld [vmem:[%s193_s0 + $0x8] sm:$0xff] }
   0x3   :  { %115 = vmatprep.subr.bf16.mxu0 %v150_v1 }
   0x4   :  { %8 = vsyncpa [#allocation3], 0  ;;  %v18_v5 = vpack.c.bf16 %v17_v4, %v16_v3  ;;  %vm42_vm1 = vcmask 261120   ;;  %v106_v6 = vld [vmem:[%s195_s2] ss:$0 sm:$0xff]  ;;  %vm87_vm2 = vcmask 490496  }
   0x5   :  { %s152_s1 = smov [#allocation2]  }
   0x6   :  { %116 = vmatpush3.bf16.msra.mxu0 %v127_v2  ;;  %s95_s22 = sshll.u32 %s152_s1, 4  ;;  %s96_s22 = int_to_ptr.vmem [resolvable:$true] %s95_s22 }
   0x7   :  { %s128_s0 = scalar_lea.vmem %s96_s22, 256  ;;  %p133_p1 = scmp.lt.s32.totalorder %s96_s22, %s96_s22 }
   0x8   :  { %p129_p0 = scmp.ne.s32.totalorder %s96_s22, %s128_s0  ;;  %p134_p2 = scmp.lt.s32.totalorder %s128_s0, %s128_s0 }
   0x9   :  { %118 = vmatmul.mubr.msk.bf16.vlgmr.msra.gmra.mxu0 %vm42_vm1, %v18_v5 }
   0xa   :  { %p135_p3 = por %p134_p2, %p133_p1 }
   0xc   :  { %p136_p4 = pnand %p135_p3, %p129_p0 }
  0xc9   :  { %v80_v7 = vpop.f32.mrf.mxu0 }
  0xca   :  { %v81_v8 = vadd.f32 %v106_v6, %v80_v7 }
  0xcb   :  { %v119_v9 = vpop.f32.mrf.mxu0 }
  0xcc   :  { %88 = vst.msk [vmem:[#allocation2] sm:$0xff] %vm87_vm2, %v81_v8 }
  0xcd   :  { %v83_v10 = vpop.f32.mrf.mxu0 }
  0xce   :  { %v84_v11 = vadd.f32 %v106_v6, %v83_v10 }
  0xcf   :  { %v120_v12 = vpop.f32.mrf.mxu0 }
  0xd0   :  { %89 = vst.msk [vmem:[#allocation2 + $0x8] sm:$0xff] %vm87_vm2, %v84_v11 }
  0xd1   :  { %139 = shalt.err (!%p136_p4)
}
  0xd2   :  { %s153_s2 = smov 128   ;;  %s154_s23 = smov 8  }
  0xd3   :  { %101 = dma.vmem_to_hbm [thread:$0]  %s96_s22, 256, %s196_s3, [#allocation3], %s153_s2, %s153_s2, %s154_s23  }
  0xd4   :  { %148 = dma.done.wait [#allocation3], 256  }
  0xd5   :  { %149 = vsyncadd [#allocation3], 4294967040 }
  0xd6   :  { %105 = vsyncpa [#allocation3], 1 }

</bundles_post_ra>
